<compile_context>
chip_gen: v7x
topology: tpu7x:2x2x1
jax: 0.10.0
libtpu: 0.0.40
codegen_flags: <defaults>
</compile_context>

<pallas_src>
import math
from functools import partial

import jax
import jax.numpy as jnp
import numpy as np
from jax.experimental import pallas as pl
from jax.experimental.pallas import tpu as pltpu


# ----------------------------------------------------------------------------
# In-kernel helpers
# ----------------------------------------------------------------------------
def _erf_approx(x):
    # Abramowitz & Stegun 7.1.26 (max abs error ~1.5e-7).
    # TODO(synk): lax.erf may lack a Mosaic lowering; exact-GELU erf is
    # approximated in-kernel at f32 accuracy instead.
    a1, a2, a3, a4, a5 = (0.254829592, -0.284496736, 1.421413741,
                          -1.453152027, 1.061405429)
    p = 0.3275911
    z = jnp.abs(x)
    t = 1.0 / (1.0 + p * z)
    poly = ((((a5 * t + a4) * t + a3) * t + a2) * t + a1) * t
    y = 1.0 - poly * jnp.exp(-z * z)
    return jnp.where(x < 0.0, -y, y)


def _gelu_exact(x):
    # nn.GELU() default = exact (erf-based) GELU.
    return 0.5 * x * (1.0 + _erf_approx(x * (1.0 / math.sqrt(2.0))))


def _layernorm(x, g, b, eps):
    mu = jnp.mean(x, axis=-1, keepdims=True)
    var = jnp.mean(jnp.square(x - mu), axis=-1, keepdims=True)
    return (x - mu) * jax.lax.rsqrt(var + eps) * g + b


def _shift_left(x):
    # out[:, i] = x[:, i+1] (wrap).  Lane shift (XLU relayout; equivalent to
    # pltpu.roll(x, shift=head_dim-1, axis=1)).  The wrapped lane lands on a
    # zero of sin_even, so wrap-around is harmless.
    return jnp.concatenate([x[:, 1:], x[:, :1]], axis=1)


def _shift_right(x):
    # out[:, i] = x[:, i-1] (wrap).  Wrapped lane lands on a zero of sin_odd.
    return jnp.concatenate([x[:, -1:], x[:, :-1]], axis=1)


# ----------------------------------------------------------------------------
# Fused encoder-layer kernel.
#   grid = (B, n_i):  axis 0 = batch (parallel), axis 1 = MLP intermediate
#   tiles (arbitrary / accumulation).  Attention runs once per batch element
#   (at j == 0); its results live in VMEM scratch across the j axis.
# ----------------------------------------------------------------------------
def _encoder_layer_kernel(x_ref, cos_ref, sine_ref, sino_ref,
                          ln1_g_ref, ln1_b_ref,
                          wqkv_ref, bqkv_ref, wo_ref, bo_ref,
                          ln2_g_ref, ln2_b_ref,
                          w1_ref, b1_ref, w2_ref, b2_ref,
                          o_ref,
                          qkv_sc, attn_sc, h1_sc, h2_sc, acc_sc,
                          *, num_heads, head_dim, seq_len, eps):
    j = pl.program_id(1)
    D = num_heads * head_dim
    S_pad = x_ref.shape[1]

    # ---------------- attention block (once per batch element) --------------
    @pl.when(j == 0)
    def _attention():
        x = x_ref[0].astype(jnp.float32)                         # (S_pad, D)

        # input_layernorm
        h = _layernorm(x, ln1_g_ref[...], ln1_b_ref[...], eps)

        # qkv_proj (bias=True); the attention scale is pre-folded into the
        # q columns of wqkv/bqkv, so q comes out of the matmul already scaled.
        qkv = jnp.dot(h.astype(jnp.bfloat16), wqkv_ref[...],
                      preferred_element_type=jnp.float32) + bqkv_ref[...]
        qkv_sc[...] = qkv.astype(jnp.bfloat16)

        cos = cos_ref[...]                                       # (S_pad, hd)
        sin_e = sine_ref[...]
        sin_o = sino_ref[...]

        def rope(t):
            # out[2i]   = t[2i]   * cos_i - t[2i+1] * sin_i
            # out[2i+1] = t[2i+1] * cos_i + t[2i]   * sin_i
            # (mllama4 interleaved-pair rotary embedding, is_neox_style=False)
            return t * cos + _shift_left(t) * sin_e + _shift_right(t) * sin_o

        pad_keys = seq_len < S_pad                               # static bool
        if pad_keys:
            col_ids = jax.lax.broadcasted_iota(jnp.int32, (1, S_pad), 1)
            kmask = jnp.where(col_ids < seq_len, 0.0,
                              -1e30).astype(jnp.float32)

        # Head-tiled attention: only a single (S_pad, S_pad) f32 score tile is
        # live at any time (bounds VMEM / vreg live-ranges at real shapes).
        def _per_head(h_idx, carry):
            col = h_idx * head_dim
            qh = rope(qkv_sc[:, pl.ds(col, head_dim)].astype(jnp.float32))
            kh = rope(qkv_sc[:, pl.ds(D + col, head_dim)].astype(jnp.float32))
            vh = qkv_sc[:, pl.ds(2 * D + col, head_dim)]

            sc = jax.lax.dot_general(
                qh.astype(jnp.bfloat16), kh.astype(jnp.bfloat16),
                (((1,), (1,)), ((), ())),
                preferred_element_type=jnp.float32)              # (S_pad, S_pad)
            if pad_keys:
                sc = sc + kmask
            sc = sc - jnp.max(sc, axis=-1, keepdims=True)
            p = jnp.exp(sc)
            p = p * pl.reciprocal(jnp.sum(p, axis=-1, keepdims=True),
                                  approx=True)
            o = jnp.dot(p.astype(jnp.bfloat16), vh,
                        preferred_element_type=jnp.float32)      # (S_pad, hd)
            attn_sc[:, pl.ds(col, head_dim)] = o.astype(jnp.bfloat16)
            return carry

        jax.lax.fori_loop(0, num_heads, _per_head, 0)

        # o_proj (bias=True) + residual
        attn = jnp.dot(attn_sc[...], wo_ref[...],
                       preferred_element_type=jnp.float32) + bo_ref[...]
        h1 = x + attn
        h1_sc[...] = h1

        # post_attention_layernorm (stored bf16: it is only a matmul LHS)
        h2_sc[...] = _layernorm(h1, ln2_g_ref[...], ln2_b_ref[...],
                                eps).astype(jnp.bfloat16)

    # ---------------- MLP tile: fc1 column tile -> GELU -> fc2 row tile -----
    f = jnp.dot(h2_sc[...], w1_ref[...],
                preferred_element_type=jnp.float32) + b1_ref[...]
    f = _gelu_exact(f)
    part = jnp.dot(f.astype(jnp.bfloat16), w2_ref[...],
                   preferred_element_type=jnp.float32)

    @pl.when(j == 0)
    def _init_acc():
        acc_sc[...] = part                  # first tile: store, no RMW pass

    @pl.when(j > 0)
    def _accumulate():
        acc_sc[...] += part

    # ---------------- finalize: fc2 bias + residual, write output -----------
    @pl.when(j == pl.num_programs(1) - 1)
    def _finalize():
        o_ref[0] = (h1_sc[...] + acc_sc[...] + b2_ref[...]).astype(o_ref.dtype)


# ----------------------------------------------------------------------------
# Wrappers
# ----------------------------------------------------------------------------
def _full_spec(a):
    nd = a.ndim
    return pl.BlockSpec(a.shape, lambda b, j, _n=nd: (0,) * _n)


def _pick_itile(I, target=1408):
    """Largest multiple of 128 that divides I and is <= target (else full I).

    target=1408 fits v7x; v5e/v6e can pass i_tile=2816 explicitly (I=5632).
    """
    if I % 128 != 0:
        return I
    best = None
    t = 128
    while t <= min(I, target):
        if I % t == 0:
            best = t
        t += 128
    return best if best is not None else I


def encoder_layer(x, cos, sin_even, sin_odd, p, *, num_heads, head_dim,
                  seq_len, eps=1e-5, i_tile=None,
                  vmem_limit_bytes=64 * 1024 * 1024):
    """One fused Llama4 vision encoder layer on a padded (B, S_pad, D) input."""
    B, S_pad, D = x.shape
    assert D == num_heads * head_dim
    I = p["w1"].shape[1]
    if i_tile is None:
        i_tile = _pick_itile(I)
    assert I % i_tile == 0
    n_i = I // i_tile

    kernel = partial(_encoder_layer_kernel, num_heads=num_heads,
                     head_dim=head_dim, seq_len=seq_len, eps=eps)

    operands = (x, cos, sin_even, sin_odd,
                p["ln1_g"], p["ln1_b"], p["wqkv"], p["bqkv"],
                p["wo"], p["bo"], p["ln2_g"], p["ln2_b"],
                p["w1"], p["b1"], p["w2"], p["b2"])

    in_specs = [
        pl.BlockSpec((1, S_pad, D), lambda b, j: (b, 0, 0)),       # x
        _full_spec(cos), _full_spec(sin_even), _full_spec(sin_odd),
        _full_spec(p["ln1_g"]), _full_spec(p["ln1_b"]),
        _full_spec(p["wqkv"]), _full_spec(p["bqkv"]),
        _full_spec(p["wo"]), _full_spec(p["bo"]),
        _full_spec(p["ln2_g"]), _full_spec(p["ln2_b"]),
        pl.BlockSpec((D, i_tile), lambda b, j: (0, j)),            # w1 col tile
        pl.BlockSpec((1, i_tile), lambda b, j: (0, j)),            # b1 tile
        pl.BlockSpec((i_tile, D), lambda b, j: (j, 0)),            # w2 row tile
        _full_spec(p["b2"]),
    ]

    return pl.pallas_call(
        kernel,
        out_shape=jax.ShapeDtypeStruct((B, S_pad, D), x.dtype),
        grid_spec=pltpu.PrefetchScalarGridSpec(
            num_scalar_prefetch=0,
            grid=(B, n_i),
            in_specs=in_specs,
            out_specs=pl.BlockSpec((1, S_pad, D), lambda b, j: (b, 0, 0)),
            scratch_shapes=[
                pltpu.VMEM((S_pad, 3 * D), jnp.bfloat16),  # qkv (pre-rotary)
                pltpu.VMEM((S_pad, D), jnp.bfloat16),      # per-head attn out
                pltpu.VMEM((S_pad, D), jnp.float32),       # post-attn residual
                pltpu.VMEM((S_pad, D), jnp.bfloat16),      # post-attn layernorm
                pltpu.VMEM((S_pad, D), jnp.float32),       # MLP accumulator
            ],
        ),
        compiler_params=pltpu.CompilerParams(
            dimension_semantics=("parallel", "arbitrary"),
            vmem_limit_bytes=vmem_limit_bytes,
        ),
    )(*operands)


def _fold_attention_scale(p, D, scale):
    """Fold head_dim**-0.5 into the q columns of wqkv / bqkv (RoPE is linear)."""
    wqkv = p["wqkv"]
    wq = (wqkv[:, :D].astype(jnp.float32) * scale).astype(wqkv.dtype)
    bqkv = p["bqkv"]
    bq = bqkv[:, :D] * scale
    pf = dict(p)
    pf["wqkv"] = jnp.concatenate([wq, wqkv[:, D:]], axis=1)
    pf["bqkv"] = jnp.concatenate([bq, bqkv[:, D:]], axis=1)
    return pf


def _signed_sin_tables(sin, head_dim):
    """sin_even = -sin on even lanes else 0; sin_odd = +sin on odd lanes else 0."""
    lane = jnp.arange(head_dim) % 2
    sin_even = jnp.where(lane == 0, -sin, 0.0).astype(sin.dtype)
    sin_odd = jnp.where(lane == 1, sin, 0.0).astype(sin.dtype)
    return sin_even, sin_odd


def llama4_vision_encoder(x, cos, sin, layers, *, num_heads, head_dim,
                          i_tile=None, seq_pad_multiple=128,
                          vmem_limit_bytes=64 * 1024 * 1024):
    B, S, D = x.shape
    scale = head_dim ** -0.5
    S_pad = -(-S // seq_pad_multiple) * seq_pad_multiple

    sin_even, sin_odd = _signed_sin_tables(sin, head_dim)
    cos_p, sine_p, sino_p = cos, sin_even, sin_odd
    h = x
    if S_pad != S:
        pad = S_pad - S
        h = jnp.pad(h, ((0, 0), (0, pad), (0, 0)))
        cos_p = jnp.pad(cos_p, ((0, pad), (0, 0)))
        sine_p = jnp.pad(sine_p, ((0, pad), (0, 0)))
        sino_p = jnp.pad(sino_p, ((0, pad), (0, 0)))

    for p in layers:
        pf = _fold_attention_scale(p, D, scale)
        h = encoder_layer(h, cos_p, sine_p, sino_p, pf,
                          num_heads=num_heads, head_dim=head_dim,
                          seq_len=S, i_tile=i_tile,
                          vmem_limit_bytes=vmem_limit_bytes)
    return h[:, :S, :]


# ----------------------------------------------------------------------------
# Parameter / RoPE-table construction (plain JAX / numpy glue)
# ----------------------------------------------------------------------------
def build_vision_rope_tables(num_patches, head_dim, theta):
    """cos/sin tables of shape (S, head_dim), S = num_patches + 1 (CLS).

    Matches vLLM Llama4VisionRotaryEmbedding (rope_type='mllama4',
    is_neox_style=False; complex pairs are adjacent elements).
    """
    rotary_dim = head_dim // 2
    inv_freq = 1.0 / (theta ** (np.arange(0, rotary_dim, 2, dtype=np.float64)
                                / rotary_dim))
    inv_freq = inv_freq[: rotary_dim // 2]
    side = int(math.isqrt(num_patches))
    img_idx = np.arange(num_patches, dtype=np.int64).reshape(num_patches, 1)
    img_idx = np.concatenate([img_idx, img_idx[:1]], axis=0)
    img_idx[-1, -1] = -2                                   # CLS token sentinel
    fx = img_idx % side
    fy = img_idx // side
    freqs_x = np.repeat((fx + 1)[..., None] * inv_freq[None, None, :], 2, axis=-1)
    freqs_y = np.repeat((fy + 1)[..., None] * inv_freq[None, None, :], 2, axis=-1)
    freqs = np.concatenate([freqs_x, freqs_y], axis=-1)[..., ::2]
    freqs = np.where(img_idx.reshape(-1, 1, 1) < 0, 0.0, freqs)
    freqs = freqs[:, 0, :].astype(np.float32)              # (S, head_dim//2)
    cos = np.repeat(np.cos(freqs), 2, axis=-1)             # (S, head_dim)
    sin = np.repeat(np.sin(freqs), 2, axis=-1)
    return (jnp.asarray(cos, dtype=jnp.float32),
            jnp.asarray(sin, dtype=jnp.float32))


def init_params(key, num_layers, D, I):
    layers = []
    for _ in range(num_layers):
        key, *ks = jax.random.split(key, 9)

        def w_bf16(k, shape, s=0.02):
            return (s * jax.random.normal(k, shape, jnp.float32)).astype(jnp.bfloat16)

        def b_f32(k, shape, s=0.02):
            return s * jax.random.normal(k, shape, jnp.float32)

        layers.append(dict(
            ln1_g=jnp.ones((1, D), jnp.float32),
            ln1_b=jnp.zeros((1, D), jnp.float32),
            wqkv=w_bf16(ks[0], (D, 3 * D)), bqkv=b_f32(ks[1], (1, 3 * D)),
            wo=w_bf16(ks[2], (D, D)), bo=b_f32(ks[3], (1, D)),
            ln2_g=jnp.ones((1, D), jnp.float32),
            ln2_b=jnp.zeros((1, D), jnp.float32),
            w1=w_bf16(ks[4], (D, I)), b1=b_f32(ks[5], (1, I)),
            w2=w_bf16(ks[6], (I, D)), b2=b_f32(ks[7], (1, D)),
        ))
    return layers


# ----------------------------------------------------------------------------
# Pure-JAX reference (f32 math on the same bf16-stored weights)
# ----------------------------------------------------------------------------
def reference_encoder(x, cos, sin, layers, num_heads, head_dim, eps=1e-5):
    scale = head_dim ** -0.5
    D = num_heads * head_dim

    def ln(z, g, b):
        mu = jnp.mean(z, -1, keepdims=True)
        var = jnp.mean((z - mu) ** 2, -1, keepdims=True)
        return (z - mu) / jnp.sqrt(var + eps) * g + b

    def rot_pairs(t):
        t2 = t.reshape(*t.shape[:-1], -1, 2)
        a, b = t2[..., 0], t2[..., 1]
        return jnp.stack([-b, a], axis=-1).reshape(t.shape)

    h = x
    for p in layers:
        res = h
        z = ln(h, p["ln1_g"][0], p["ln1_b"][0])
        qkv = z @ p["wqkv"].astype(jnp.float32) + p["bqkv"][0]
        q, k, v = qkv[..., :D], qkv[..., D:2 * D], qkv[..., 2 * D:]
        B, S, _ = q.shape
        qh = q.reshape(B, S, num_heads, head_dim)
        kh = k.reshape(B, S, num_heads, head_dim)
        c = cos[None, :, None, :]
        s = sin[None, :, None, :]
        qh = qh * c + rot_pairs(qh) * s
        kh = kh * c + rot_pairs(kh) * s
        qh = qh.transpose(0, 2, 1, 3)
        kh = kh.transpose(0, 2, 1, 3)
        vh = v.reshape(B, S, num_heads, head_dim).transpose(0, 2, 1, 3)
        att = jnp.einsum("bhqd,bhkd->bhqk", qh, kh) * scale
        att = jax.nn.softmax(att, axis=-1)
        o = jnp.einsum("bhqk,bhkd->bhqd", att, vh).transpose(0, 2, 1, 3)
        o = o.reshape(B, S, D) @ p["wo"].astype(jnp.float32) + p["bo"][0]
        h = res + o
        res = h
        z = ln(h, p["ln2_g"][0], p["ln2_b"][0])
        f = jax.nn.gelu(z @ p["w1"].astype(jnp.float32) + p["b1"][0],
                        approximate=False)
        f = f @ p["w2"].astype(jnp.float32) + p["b2"][0]
        h = res + f
    return h


# ----------------------------------------------------------------------------
if __name__ == "__main__":
    # Small but lane-aligned Llama4VisionConfig-like setup.
    hidden_size = 256
    num_heads = 2
    head_dim = hidden_size // num_heads            # 128
    intermediate_size = 512
    num_layers = 2
    image_size, patch_size = 16, 4
    num_patches = (image_size // patch_size) ** 2  # 16
    seq_len = num_patches + 1                      # patches + CLS token = 17
    rope_theta = 10000.0
    batch = 2

    key = jax.random.PRNGKey(0)
    key, xk = jax.random.split(key)
    x = jax.random.normal(xk, (batch, seq_len, hidden_size), dtype=jnp.float32)

    cos, sin = build_vision_rope_tables(num_patches, head_dim, rope_theta)
    layers = init_params(key, num_layers, hidden_size, intermediate_size)

    # i_tile=256 -> 2 intermediate tiles, so the streamed-MLP accumulation
    # path is exercised; seq is padded 17 -> 128, exercising the key mask.
    out = llama4_vision_encoder(x, cos, sin, layers,
                                num_heads=num_heads, head_dim=head_dim,
                                i_tile=256)
    out = jax.block_until_ready(out)

    ref = reference_encoder(x, cos, sin, layers, num_heads, head_dim)
    assert out.shape == (batch, seq_len, hidden_size)
    assert bool(jnp.all(jnp.isfinite(out)))
    max_err = float(jnp.max(jnp.abs(out - ref)))
    # bf16 matmul inputs + approx reciprocal bound the error well below 1e-2.
    assert max_err < 1e-2, f"mismatch vs reference: {max_err}"
    print("KERNEL_OK")
</pallas_src>

<mosaic_0001>
module attributes {stable_mosaic.version = 11 : i64} {
  func.func @_encoder_layer_kernel(%arg0: i32, %arg1: i32, %arg2: memref<1x128x256xf32, #tpu.memory_space<vmem>>, %arg3: memref<128x128xf32, #tpu.memory_space<vmem>>, %arg4: memref<128x128xf32, #tpu.memory_space<vmem>>, %arg5: memref<128x128xf32, #tpu.memory_space<vmem>>, %arg6: memref<1x256xf32, #tpu.memory_space<vmem>>, %arg7: memref<1x256xf32, #tpu.memory_space<vmem>>, %arg8: memref<256x768xbf16, #tpu.memory_space<vmem>>, %arg9: memref<1x768xf32, #tpu.memory_space<vmem>>, %arg10: memref<256x256xbf16, #tpu.memory_space<vmem>>, %arg11: memref<1x256xf32, #tpu.memory_space<vmem>>, %arg12: memref<1x256xf32, #tpu.memory_space<vmem>>, %arg13: memref<1x256xf32, #tpu.memory_space<vmem>>, %arg14: memref<256x256xbf16, #tpu.memory_space<vmem>>, %arg15: memref<1x256xf32, #tpu.memory_space<vmem>>, %arg16: memref<256x256xbf16, #tpu.memory_space<vmem>>, %arg17: memref<1x256xf32, #tpu.memory_space<vmem>>, %arg18: memref<1x128x256xf32, #tpu.memory_space<vmem>>, %arg19: memref<128x768xbf16, #tpu.memory_space<vmem>>, %arg20: memref<128x256xbf16, #tpu.memory_space<vmem>>, %arg21: memref<128x256xf32, #tpu.memory_space<vmem>>, %arg22: memref<128x256xbf16, #tpu.memory_space<vmem>>, %arg23: memref<128x256xf32, #tpu.memory_space<vmem>>) attributes {dimension_semantics = [#tpu.dimension_semantics<parallel>, #tpu.dimension_semantics<arbitrary>], iteration_bounds = array<i64: 2, 2>, scalar_prefetch = 0 : i64, scratch_operands = 5 : i64, tpu.core_type = #tpu.core_type<tc>, window_params = [{transform_indices = @transform_0, window_bounds = array<i64: 1, 128, 256>}, {pipeline_mode = #tpu.pipeline_mode<synchronous>, transform_indices = @transform_1, window_bounds = array<i64: 128, 128>}, {pipeline_mode = #tpu.pipeline_mode<synchronous>, transform_indices = @transform_2, window_bounds = array<i64: 128, 128>}, {pipeline_mode = #tpu.pipeline_mode<synchronous>, transform_indices = @transform_3, window_bounds = array<i64: 128, 128>}, {pipeline_mode = #tpu.pipeline_mode<synchronous>, transform_indices = @transform_4, window_bounds = array<i64: 1, 256>}, {pipeline_mode = #tpu.pipeline_mode<synchronous>, transform_indices = @transform_5, window_bounds = array<i64: 1, 256>}, {pipeline_mode = #tpu.pipeline_mode<synchronous>, transform_indices = @transform_6, window_bounds = array<i64: 256, 768>}, {pipeline_mode = #tpu.pipeline_mode<synchronous>, transform_indices = @transform_7, window_bounds = array<i64: 1, 768>}, {pipeline_mode = #tpu.pipeline_mode<synchronous>, transform_indices = @transform_8, window_bounds = array<i64: 256, 256>}, {pipeline_mode = #tpu.pipeline_mode<synchronous>, transform_indices = @transform_9, window_bounds = array<i64: 1, 256>}, {pipeline_mode = #tpu.pipeline_mode<synchronous>, transform_indices = @transform_10, window_bounds = array<i64: 1, 256>}, {pipeline_mode = #tpu.pipeline_mode<synchronous>, transform_indices = @transform_11, window_bounds = array<i64: 1, 256>}, {transform_indices = @transform_12, window_bounds = array<i64: 256, 256>}, {transform_indices = @transform_13, window_bounds = array<i64: 1, 256>}, {transform_indices = @transform_14, window_bounds = array<i64: 256, 256>}, {pipeline_mode = #tpu.pipeline_mode<synchronous>, transform_indices = @transform_15, window_bounds = array<i64: 1, 256>}, {transform_indices = @transform_16, window_bounds = array<i64: 1, 128, 256>}]} {
    %c0_i32 = arith.constant 0 : i32
    %0 = arith.cmpi eq, %arg1, %c0_i32 : i32
    %1 = arith.extui %0 : i1 to i32
    %c0_i32_0 = arith.constant 0 : i32
    %2 = arith.cmpi ne, %1, %c0_i32_0 : i32
    scf.if %2 {
      %c0_29 = arith.constant 0 : index
      %c0_30 = arith.constant 0 : index
      %c0_31 = arith.constant 0 : index
      %61 = vector.load %arg2[%c0_29, %c0_30, %c0_31] : memref<1x128x256xf32, #tpu.memory_space<vmem>>, vector<1x128x256xf32>
      %62 = vector.shape_cast %61 : vector<1x128x256xf32> to vector<128x256xf32>
      %c0_32 = arith.constant 0 : index
      %c0_33 = arith.constant 0 : index
      %63 = vector.load %arg6[%c0_32, %c0_33] : memref<1x256xf32, #tpu.memory_space<vmem>>, vector<1x256xf32>
      %c0_34 = arith.constant 0 : index
      %c0_35 = arith.constant 0 : index
      %64 = vector.load %arg7[%c0_34, %c0_35] : memref<1x256xf32, #tpu.memory_space<vmem>>, vector<1x256xf32>
      %cst_36 = arith.constant dense<0.000000e+00> : vector<128xf32>
      %65 = vector.multi_reduction <add>, %62, %cst_36 [1] : vector<128x256xf32> to vector<128xf32>
      %66 = vector.shape_cast %65 : vector<128xf32> to vector<128x1xf32>
      %cst_37 = arith.constant 2.560000e+02 : f32
      %67 = vector.broadcast %cst_37 : f32 to vector<128x1xf32>
      %68 = arith.divf %66, %67 : vector<128x1xf32>
      %69 = vector.broadcast %68 : vector<128x1xf32> to vector<128x256xf32>
      %70 = arith.subf %62, %69 : vector<128x256xf32>
      %71 = arith.mulf %70, %70 : vector<128x256xf32>
      %cst_38 = arith.constant dense<0.000000e+00> : vector<128xf32>
      %72 = vector.multi_reduction <add>, %71, %cst_38 [1] : vector<128x256xf32> to vector<128xf32>
      %73 = vector.shape_cast %72 : vector<128xf32> to vector<128x1xf32>
      %cst_39 = arith.constant 2.560000e+02 : f32
      %74 = vector.broadcast %cst_39 : f32 to vector<128x1xf32>
      %75 = arith.divf %73, %74 : vector<128x1xf32>
      %76 = vector.broadcast %68 : vector<128x1xf32> to vector<128x256xf32>
      %77 = arith.subf %62, %76 : vector<128x256xf32>
      %cst_40 = arith.constant 9.99999974E-6 : f32
      %78 = vector.broadcast %cst_40 : f32 to vector<128x1xf32>
      %79 = arith.addf %75, %78 : vector<128x1xf32>
      %80 = math.rsqrt %79 : vector<128x1xf32>
      %81 = vector.broadcast %80 : vector<128x1xf32> to vector<128x256xf32>
      %82 = arith.mulf %77, %81 : vector<128x256xf32>
      %83 = vector.broadcast %63 : vector<1x256xf32> to vector<128x256xf32>
      %84 = arith.mulf %82, %83 : vector<128x256xf32>
      %85 = vector.broadcast %64 : vector<1x256xf32> to vector<128x256xf32>
      %86 = arith.addf %84, %85 : vector<128x256xf32>
      %87 = arith.truncf %86 : vector<128x256xf32> to vector<128x256xbf16>
      %c0_41 = arith.constant 0 : index
      %c0_42 = arith.constant 0 : index
      %88 = vector.load %arg8[%c0_41, %c0_42] : memref<256x768xbf16, #tpu.memory_space<vmem>>, vector<256x768xbf16>
      %cst_43 = arith.constant dense<0.000000e+00> : vector<128x768xf32>
      %89 = tpu.matmul %87, %88, %cst_43 {dimension_numbers = #tpu.dot_dimension_numbers<[1], [0], [0], [1], [0, 0, 1, 1], [], []>} : vector<128x256xbf16>, vector<256x768xbf16>, vector<128x768xf32> -> vector<128x768xf32>
      %c0_44 = arith.constant 0 : index
      %c0_45 = arith.constant 0 : index
      %90 = vector.load %arg9[%c0_44, %c0_45] : memref<1x768xf32, #tpu.memory_space<vmem>>, vector<1x768xf32>
      %91 = vector.broadcast %90 : vector<1x768xf32> to vector<128x768xf32>
      %92 = arith.addf %89, %91 : vector<128x768xf32>
      %93 = arith.truncf %92 : vector<128x768xf32> to vector<128x768xbf16>
      %c0_46 = arith.constant 0 : index
      %c0_47 = arith.constant 0 : index
      %94 = vector.load %arg19[%c0_46, %c0_47] : memref<128x768xbf16, #tpu.memory_space<vmem>>, vector<128x768xbf16>
      tpu.vector_store %arg19[%c0_46, %c0_47], %93 {strides = array<i32>} : memref<128x768xbf16, #tpu.memory_space<vmem>>, vector<128x768xbf16>,
      %c0_48 = arith.constant 0 : index
      %c0_49 = arith.constant 0 : index
      %95 = vector.load %arg3[%c0_48, %c0_49] : memref<128x128xf32, #tpu.memory_space<vmem>>, vector<128x128xf32>
      %c0_50 = arith.constant 0 : index
      %c0_51 = arith.constant 0 : index
      %96 = vector.load %arg4[%c0_50, %c0_51] : memref<128x128xf32, #tpu.memory_space<vmem>>, vector<128x128xf32>
      %c0_52 = arith.constant 0 : index
      %c0_53 = arith.constant 0 : index
      %97 = vector.load %arg5[%c0_52, %c0_53] : memref<128x128xf32, #tpu.memory_space<vmem>>, vector<128x128xf32>
      %98 = tpu.iota {dimensions = array<i32: 1>} : vector<1x128xi32>
      %c17_i32 = arith.constant 17 : i32
      %99 = vector.broadcast %c17_i32 : i32 to vector<1x128xi32>
      %100 = arith.cmpi slt, %98, %99 : vector<1x128xi32>
      %cst_54 = arith.constant 0.000000e+00 : f32
      %cst_55 = arith.constant -1.000000e+30 : f32
      %101 = vector.broadcast %cst_54 : f32 to vector<1x128xf32>
      %102 = vector.broadcast %cst_55 : f32 to vector<1x128xf32>
      %103 = arith.select %100, %101, %102 : vector<1x128xi1>, vector<1x128xf32>
      %c0_i32_56 = arith.constant 0 : i32
      %c2_i32 = arith.constant 2 : i32
      %104 = arith.addi %c0_i32_56, %c2_i32 : i32
      %c1_i32_57 = arith.constant 1 : i32
      scf.for %arg24 = %c0_i32_56 to %104 step %c1_i32_57  : i32 {
        %c128_i32 = arith.constant 128 : i32
        %139 = arith.muli %arg24, %c128_i32 : i32
        %c0_79 = arith.constant 0 : index
        %140 = arith.index_cast %139 : i32 to index
        %141 = vector.load %arg19[%c0_79, %140] : memref<128x768xbf16, #tpu.memory_space<vmem>>, vector<128x128xbf16>
        %142 = arith.extf %141 : vector<128x128xbf16> to vector<128x128xf32>
        %143 = arith.mulf %142, %95 : vector<128x128xf32>
        %144 = vector.extract_strided_slice %142 {offsets = [0, 1], sizes = [128, 127], strides = [1, 1]} : vector<128x128xf32> to vector<128x127xf32>
        %145 = vector.extract_strided_slice %142 {offsets = [0, 0], sizes = [128, 1], strides = [1, 1]} : vector<128x128xf32> to vector<128x1xf32>
        %146 = tpu.concatenate %144, %145 in 1 : vector<128x127xf32>, vector<128x1xf32> -> vector<128x128xf32>
        %147 = arith.mulf %146, %96 : vector<128x128xf32>
        %148 = arith.addf %143, %147 : vector<128x128xf32>
        %149 = vector.extract_strided_slice %142 {offsets = [0, 127], sizes = [128, 1], strides = [1, 1]} : vector<128x128xf32> to vector<128x1xf32>
        %150 = vector.extract_strided_slice %142 {offsets = [0, 0], sizes = [128, 127], strides = [1, 1]} : vector<128x128xf32> to vector<128x127xf32>
        %151 = tpu.concatenate %149, %150 in 1 : vector<128x1xf32>, vector<128x127xf32> -> vector<128x128xf32>
        %152 = arith.mulf %151, %97 : vector<128x128xf32>
        %153 = arith.addf %148, %152 : vector<128x128xf32>
        %c256_i32 = arith.constant 256 : i32
        %154 = arith.addi %c256_i32, %139 : i32
        %c0_80 = arith.constant 0 : index
        %155 = arith.index_cast %154 : i32 to index
        %156 = vector.load %arg19[%c0_80, %155] : memref<128x768xbf16, #tpu.memory_space<vmem>>, vector<128x128xbf16>
        %157 = arith.extf %156 : vector<128x128xbf16> to vector<128x128xf32>
        %158 = arith.mulf %157, %95 : vector<128x128xf32>
        %159 = vector.extract_strided_slice %157 {offsets = [0, 1], sizes = [128, 127], strides = [1, 1]} : vector<128x128xf32> to vector<128x127xf32>
        %160 = vector.extract_strided_slice %157 {offsets = [0, 0], sizes = [128, 1], strides = [1, 1]} : vector<128x128xf32> to vector<128x1xf32>
        %161 = tpu.concatenate %159, %160 in 1 : vector<128x127xf32>, vector<128x1xf32> -> vector<128x128xf32>
        %162 = arith.mulf %161, %96 : vector<128x128xf32>
        %163 = arith.addf %158, %162 : vector<128x128xf32>
        %164 = vector.extract_strided_slice %157 {offsets = [0, 127], sizes = [128, 1], strides = [1, 1]} : vector<128x128xf32> to vector<128x1xf32>
        %165 = vector.extract_strided_slice %157 {offsets = [0, 0], sizes = [128, 127], strides = [1, 1]} : vector<128x128xf32> to vector<128x127xf32>
        %166 = tpu.concatenate %164, %165 in 1 : vector<128x1xf32>, vector<128x127xf32> -> vector<128x128xf32>
        %167 = arith.mulf %166, %97 : vector<128x128xf32>
        %168 = arith.addf %163, %167 : vector<128x128xf32>
        %c512_i32 = arith.constant 512 : i32
        %169 = arith.addi %c512_i32, %139 : i32
        %c0_81 = arith.constant 0 : index
        %170 = arith.index_cast %169 : i32 to index
        %171 = vector.load %arg19[%c0_81, %170] : memref<128x768xbf16, #tpu.memory_space<vmem>>, vector<128x128xbf16>
        %172 = arith.truncf %153 : vector<128x128xf32> to vector<128x128xbf16>
        %173 = arith.truncf %168 : vector<128x128xf32> to vector<128x128xbf16>
        %cst_82 = arith.constant dense<0.000000e+00> : vector<128x128xf32>
        %174 = tpu.matmul %172, %173, %cst_82 {dimension_numbers = #tpu.dot_dimension_numbers<[1], [1], [0], [0], [0, 0, 1, 0], [], []>} : vector<128x128xbf16>, vector<128x128xbf16>, vector<128x128xf32> -> vector<128x128xf32>
        %175 = vector.broadcast %103 : vector<1x128xf32> to vector<128x128xf32>
        %176 = arith.addf %174, %175 : vector<128x128xf32>
        %cst_83 = arith.constant dense<0xFF800000> : vector<128xf32>
        %177 = vector.multi_reduction <maximumf>, %176, %cst_83 [1] : vector<128x128xf32> to vector<128xf32>
        %178 = vector.shape_cast %177 : vector<128xf32> to vector<128x1xf32>
        %179 = vector.broadcast %178 : vector<128x1xf32> to vector<128x128xf32>
        %180 = arith.subf %176, %179 : vector<128x128xf32>
        %181 = math.exp %180 : vector<128x128xf32>
        %cst_84 = arith.constant dense<0.000000e+00> : vector<128xf32>
        %182 = vector.multi_reduction <add>, %181, %cst_84 [1] : vector<128x128xf32> to vector<128xf32>
        %183 = vector.shape_cast %182 : vector<128xf32> to vector<128x1xf32>
        %184 = tpu.reciprocal %183 {approx = true} : vector<128x1xf32> -> vector<128x1xf32>
        %185 = vector.broadcast %184 : vector<128x1xf32> to vector<128x128xf32>
        %186 = arith.mulf %181, %185 : vector<128x128xf32>
        %187 = arith.truncf %186 : vector<128x128xf32> to vector<128x128xbf16>
        %cst_85 = arith.constant dense<0.000000e+00> : vector<128x128xf32>
        %188 = tpu.matmul %187, %171, %cst_85 {dimension_numbers = #tpu.dot_dimension_numbers<[1], [0], [0], [1], [0, 0, 1, 1], [], []>} : vector<128x128xbf16>, vector<128x128xbf16>, vector<128x128xf32> -> vector<128x128xf32>
        %189 = arith.truncf %188 : vector<128x128xf32> to vector<128x128xbf16>
        %c0_86 = arith.constant 0 : index
        %190 = arith.index_cast %139 : i32 to index
        %191 = vector.load %arg20[%c0_86, %190] : memref<128x256xbf16, #tpu.memory_space<vmem>>, vector<128x128xbf16>
        tpu.vector_store %arg20[%c0_86, %190], %189 {strides = array<i32>} : memref<128x256xbf16, #tpu.memory_space<vmem>>, vector<128x128xbf16>,
      }
      %c2_i32_58 = arith.constant 2 : i32
      %c0_59 = arith.constant 0 : index
      %c0_60 = arith.constant 0 : index
      %105 = vector.load %arg20[%c0_59, %c0_60] : memref<128x256xbf16, #tpu.memory_space<vmem>>, vector<128x256xbf16>
      %c0_61 = arith.constant 0 : index
      %c0_62 = arith.constant 0 : index
      %106 = vector.load %arg10[%c0_61, %c0_62] : memref<256x256xbf16, #tpu.memory_space<vmem>>, vector<256x256xbf16>
      %cst_63 = arith.constant dense<0.000000e+00> : vector<128x256xf32>
      %107 = tpu.matmul %105, %106, %cst_63 {dimension_numbers = #tpu.dot_dimension_numbers<[1], [0], [0], [1], [0, 0, 1, 1], [], []>} : vector<128x256xbf16>, vector<256x256xbf16>, vector<128x256xf32> -> vector<128x256xf32>
      %c0_64 = arith.constant 0 : index
      %c0_65 = arith.constant 0 : index
      %108 = vector.load %arg11[%c0_64, %c0_65] : memref<1x256xf32, #tpu.memory_space<vmem>>, vector<1x256xf32>
      %109 = vector.broadcast %108 : vector<1x256xf32> to vector<128x256xf32>
      %110 = arith.addf %107, %109 : vector<128x256xf32>
      %111 = arith.addf %62, %110 : vector<128x256xf32>
      %c0_66 = arith.constant 0 : index
      %c0_67 = arith.constant 0 : index
      %112 = vector.load %arg21[%c0_66, %c0_67] : memref<128x256xf32, #tpu.memory_space<vmem>>, vector<128x256xf32>
      tpu.vector_store %arg21[%c0_66, %c0_67], %111 {strides = array<i32>} : memref<128x256xf32, #tpu.memory_space<vmem>>, vector<128x256xf32>,
      %c0_68 = arith.constant 0 : index
      %c0_69 = arith.constant 0 : index
      %113 = vector.load %arg12[%c0_68, %c0_69] : memref<1x256xf32, #tpu.memory_space<vmem>>, vector<1x256xf32>
      %c0_70 = arith.constant 0 : index
      %c0_71 = arith.constant 0 : index
      %114 = vector.load %arg13[%c0_70, %c0_71] : memref<1x256xf32, #tpu.memory_space<vmem>>, vector<1x256xf32>
      %cst_72 = arith.constant dense<0.000000e+00> : vector<128xf32>
      %115 = vector.multi_reduction <add>, %111, %cst_72 [1] : vector<128x256xf32> to vector<128xf32>
      %116 = vector.shape_cast %115 : vector<128xf32> to vector<128x1xf32>
      %cst_73 = arith.constant 2.560000e+02 : f32
      %117 = vector.broadcast %cst_73 : f32 to vector<128x1xf32>
      %118 = arith.divf %116, %117 : vector<128x1xf32>
      %119 = vector.broadcast %118 : vector<128x1xf32> to vector<128x256xf32>
      %120 = arith.subf %111, %119 : vector<128x256xf32>
      %121 = arith.mulf %120, %120 : vector<128x256xf32>
      %cst_74 = arith.constant dense<0.000000e+00> : vector<128xf32>
      %122 = vector.multi_reduction <add>, %121, %cst_74 [1] : vector<128x256xf32> to vector<128xf32>
      %123 = vector.shape_cast %122 : vector<128xf32> to vector<128x1xf32>
      %cst_75 = arith.constant 2.560000e+02 : f32
      %124 = vector.broadcast %cst_75 : f32 to vector<128x1xf32>
      %125 = arith.divf %123, %124 : vector<128x1xf32>
      %126 = vector.broadcast %118 : vector<128x1xf32> to vector<128x256xf32>
      %127 = arith.subf %111, %126 : vector<128x256xf32>
      %cst_76 = arith.constant 9.99999974E-6 : f32
      %128 = vector.broadcast %cst_76 : f32 to vector<128x1xf32>
      %129 = arith.addf %125, %128 : vector<128x1xf32>
      %130 = math.rsqrt %129 : vector<128x1xf32>
      %131 = vector.broadcast %130 : vector<128x1xf32> to vector<128x256xf32>
      %132 = arith.mulf %127, %131 : vector<128x256xf32>
      %133 = vector.broadcast %113 : vector<1x256xf32> to vector<128x256xf32>
      %134 = arith.mulf %132, %133 : vector<128x256xf32>
      %135 = vector.broadcast %114 : vector<1x256xf32> to vector<128x256xf32>
      %136 = arith.addf %134, %135 : vector<128x256xf32>
      %137 = arith.truncf %136 : vector<128x256xf32> to vector<128x256xbf16>
      %c0_77 = arith.constant 0 : index
      %c0_78 = arith.constant 0 : index
      %138 = vector.load %arg22[%c0_77, %c0_78] : memref<128x256xbf16, #tpu.memory_space<vmem>>, vector<128x256xbf16>
      tpu.vector_store %arg22[%c0_77, %c0_78], %137 {strides = array<i32>} : memref<128x256xbf16, #tpu.memory_space<vmem>>, vector<128x256xbf16>,
    } else {
    }
    %c0 = arith.constant 0 : index
    %c0_1 = arith.constant 0 : index
    %3 = vector.load %arg22[%c0, %c0_1] : memref<128x256xbf16, #tpu.memory_space<vmem>>, vector<128x256xbf16>
    %c0_2 = arith.constant 0 : index
    %c0_3 = arith.constant 0 : index
    %4 = vector.load %arg14[%c0_2, %c0_3] : memref<256x256xbf16, #tpu.memory_space<vmem>>, vector<256x256xbf16>
    %cst = arith.constant dense<0.000000e+00> : vector<128x256xf32>
    %5 = tpu.matmul %3, %4, %cst {dimension_numbers = #tpu.dot_dimension_numbers<[1], [0], [0], [1], [0, 0, 1, 1], [], []>} : vector<128x256xbf16>, vector<256x256xbf16>, vector<128x256xf32> -> vector<128x256xf32>
    %c0_4 = arith.constant 0 : index
    %c0_5 = arith.constant 0 : index
    %6 = vector.load %arg15[%c0_4, %c0_5] : memref<1x256xf32, #tpu.memory_space<vmem>>, vector<1x256xf32>
    %7 = vector.broadcast %6 : vector<1x256xf32> to vector<128x256xf32>
    %8 = arith.addf %5, %7 : vector<128x256xf32>
    %cst_6 = arith.constant 5.000000e-01 : f32
    %9 = vector.broadcast %cst_6 : f32 to vector<128x256xf32>
    %10 = arith.mulf %9, %8 : vector<128x256xf32>
    %cst_7 = arith.constant 0.707106769 : f32
    %11 = vector.broadcast %cst_7 : f32 to vector<128x256xf32>
    %12 = arith.mulf %8, %11 : vector<128x256xf32>
    %13 = math.absf %12 : vector<128x256xf32>
    %cst_8 = arith.constant 0.327591091 : f32
    %14 = vector.broadcast %cst_8 : f32 to vector<128x256xf32>
    %15 = arith.mulf %14, %13 : vector<128x256xf32>
    %cst_9 = arith.constant 1.000000e+00 : f32
    %16 = vector.broadcast %cst_9 : f32 to vector<128x256xf32>
    %17 = arith.addf %16, %15 : vector<128x256xf32>
    %cst_10 = arith.constant 1.000000e+00 : f32
    %18 = vector.broadcast %cst_10 : f32 to vector<128x256xf32>
    %19 = arith.divf %18, %17 : vector<128x256xf32>
    %cst_11 = arith.constant 1.06140542 : f32
    %20 = vector.broadcast %cst_11 : f32 to vector<128x256xf32>
    %21 = arith.mulf %20, %19 : vector<128x256xf32>
    %cst_12 = arith.constant -1.45315206 : f32
    %22 = vector.broadcast %cst_12 : f32 to vector<128x256xf32>
    %23 = arith.addf %21, %22 : vector<128x256xf32>
    %24 = arith.mulf %23, %19 : vector<128x256xf32>
    %cst_13 = arith.constant 1.42141378 : f32
    %25 = vector.broadcast %cst_13 : f32 to vector<128x256xf32>
    %26 = arith.addf %24, %25 : vector<128x256xf32>
    %27 = arith.mulf %26, %19 : vector<128x256xf32>
    %cst_14 = arith.constant -0.284496725 : f32
    %28 = vector.broadcast %cst_14 : f32 to vector<128x256xf32>
    %29 = arith.addf %27, %28 : vector<128x256xf32>
    %30 = arith.mulf %29, %19 : vector<128x256xf32>
    %cst_15 = arith.constant 0.254829586 : f32
    %31 = vector.broadcast %cst_15 : f32 to vector<128x256xf32>
    %32 = arith.addf %30, %31 : vector<128x256xf32>
    %33 = arith.mulf %32, %19 : vector<128x256xf32>
    %cst_16 = arith.constant 0.000000e+00 : f32
    %34 = vector.broadcast %cst_16 : f32 to vector<128x256xf32>
    %35 = arith.subf %34, %13 : vector<128x256xf32>
    %36 = arith.mulf %35, %13 : vector<128x256xf32>
    %37 = math.exp %36 : vector<128x256xf32>
    %38 = arith.mulf %33, %37 : vector<128x256xf32>
    %cst_17 = arith.constant 1.000000e+00 : f32
    %39 = vector.broadcast %cst_17 : f32 to vector<128x256xf32>
    %40 = arith.subf %39, %38 : vector<128x256xf32>
    %cst_18 = arith.constant 0.000000e+00 : f32
    %41 = vector.broadcast %cst_18 : f32 to vector<128x256xf32>
    %42 = arith.cmpf olt, %12, %41 : vector<128x256xf32>
    %cst_19 = arith.constant 0.000000e+00 : f32
    %43 = vector.broadcast %cst_19 : f32 to vector<128x256xf32>
    %44 = arith.subf %43, %40 : vector<128x256xf32>
    %45 = arith.select %42, %44, %40 : vector<128x256xi1>, vector<128x256xf32>
    %cst_20 = arith.constant 1.000000e+00 : f32
    %46 = vector.broadcast %cst_20 : f32 to vector<128x256xf32>
    %47 = arith.addf %46, %45 : vector<128x256xf32>
    %48 = arith.mulf %10, %47 : vector<128x256xf32>
    %49 = arith.truncf %48 : vector<128x256xf32> to vector<128x256xbf16>
    %c0_21 = arith.constant 0 : index
    %c0_22 = arith.constant 0 : index
    %50 = vector.load %arg16[%c0_21, %c0_22] : memref<256x256xbf16, #tpu.memory_space<vmem>>, vector<256x256xbf16>
    %cst_23 = arith.constant dense<0.000000e+00> : vector<128x256xf32>
    %51 = tpu.matmul %49, %50, %cst_23 {dimension_numbers = #tpu.dot_dimension_numbers<[1], [0], [0], [1], [0, 0, 1, 1], [], []>} : vector<128x256xbf16>, vector<256x256xbf16>, vector<128x256xf32> -> vector<128x256xf32>
    %c0_i32_24 = arith.constant 0 : i32
    %52 = arith.cmpi eq, %arg1, %c0_i32_24 : i32
    %53 = arith.extui %52 : i1 to i32
    %c0_i32_25 = arith.constant 0 : i32
    %54 = arith.cmpi ne, %53, %c0_i32_25 : i32
    scf.if %54 {
      %c0_29 = arith.constant 0 : index
      %c0_30 = arith.constant 0 : index
      %61 = vector.load %arg23[%c0_29, %c0_30] : memref<128x256xf32, #tpu.memory_space<vmem>>, vector<128x256xf32>
      tpu.vector_store %arg23[%c0_29, %c0_30], %51 {strides = array<i32>} : memref<128x256xf32, #tpu.memory_space<vmem>>, vector<128x256xf32>,
    } else {
    }
    %c0_i32_26 = arith.constant 0 : i32
    %55 = arith.cmpi sgt, %arg1, %c0_i32_26 : i32
    %56 = arith.extui %55 : i1 to i32
    %c0_i32_27 = arith.constant 0 : i32
    %57 = arith.cmpi ne, %56, %c0_i32_27 : i32
    scf.if %57 {
      %c0_29 = arith.constant 0 : index
      %c0_30 = arith.constant 0 : index
      %61 = vector.load %arg23[%c0_29, %c0_30] : memref<128x256xf32, #tpu.memory_space<vmem>>, vector<128x256xf32>
      %62 = arith.addf %61, %51 : vector<128x256xf32>
      %c0_31 = arith.constant 0 : index
      %c0_32 = arith.constant 0 : index
      %63 = vector.load %arg23[%c0_31, %c0_32] : memref<128x256xf32, #tpu.memory_space<vmem>>, vector<128x256xf32>
      tpu.vector_store %arg23[%c0_31, %c0_32], %62 {strides = array<i32>} : memref<128x256xf32, #tpu.memory_space<vmem>>, vector<128x256xf32>,
    } else {
    }
    %c1_i32 = arith.constant 1 : i32
    %58 = arith.cmpi eq, %arg1, %c1_i32 : i32
    %59 = arith.extui %58 : i1 to i32
    %c0_i32_28 = arith.constant 0 : i32
    %60 = arith.cmpi ne, %59, %c0_i32_28 : i32
    scf.if %60 {
      %c0_29 = arith.constant 0 : index
      %c0_30 = arith.constant 0 : index
      %61 = vector.load %arg21[%c0_29, %c0_30] : memref<128x256xf32, #tpu.memory_space<vmem>>, vector<128x256xf32>
      %c0_31 = arith.constant 0 : index
      %c0_32 = arith.constant 0 : index
      %62 = vector.load %arg23[%c0_31, %c0_32] : memref<128x256xf32, #tpu.memory_space<vmem>>, vector<128x256xf32>
      %63 = arith.addf %61, %62 : vector<128x256xf32>
      %c0_33 = arith.constant 0 : index
      %c0_34 = arith.constant 0 : index
      %64 = vector.load %arg17[%c0_33, %c0_34] : memref<1x256xf32, #tpu.memory_space<vmem>>, vector<1x256xf32>
      %65 = vector.broadcast %64 : vector<1x256xf32> to vector<128x256xf32>
      %66 = arith.addf %63, %65 : vector<128x256xf32>
      %c0_35 = arith.constant 0 : index
      %c0_36 = arith.constant 0 : index
      %c0_37 = arith.constant 0 : index
      %67 = vector.load %arg18[%c0_35, %c0_36, %c0_37] : memref<1x128x256xf32, #tpu.memory_space<vmem>>, vector<1x128x256xf32>
      %68 = vector.shape_cast %67 : vector<1x128x256xf32> to vector<128x256xf32>
      %69 = vector.shape_cast %66 : vector<128x256xf32> to vector<1x128x256xf32>
      tpu.vector_store %arg18[%c0_35, %c0_36, %c0_37], %69 {strides = array<i32>} : memref<1x128x256xf32, #tpu.memory_space<vmem>>, vector<1x128x256xf32>,
    } else {
    }
    return
  }
  func.func @transform_0(%arg0: i32, %arg1: i32) -> (i32, i32, i32) {
    %c0_i32 = arith.constant 0 : i32
    %c0_i32_0 = arith.constant 0 : i32
    %c0_i32_1 = arith.constant 0 : i32
    return %arg0, %c0_i32, %c0_i32_0 : i32, i32, i32
  }
  func.func @transform_1(%arg0: i32, %arg1: i32) -> (i32, i32) {
    %c0_i32 = arith.constant 0 : i32
    %c0_i32_0 = arith.constant 0 : i32
    %c0_i32_1 = arith.constant 0 : i32
    return %c0_i32, %c0_i32_0 : i32, i32
  }
  func.func @transform_2(%arg0: i32, %arg1: i32) -> (i32, i32) {
    %c0_i32 = arith.constant 0 : i32
    %c0_i32_0 = arith.constant 0 : i32
    %c0_i32_1 = arith.constant 0 : i32
    return %c0_i32, %c0_i32_0 : i32, i32
  }
  func.func @transform_3(%arg0: i32, %arg1: i32) -> (i32, i32) {
    %c0_i32 = arith.constant 0 : i32
    %c0_i32_0 = arith.constant 0 : i32
    %c0_i32_1 = arith.constant 0 : i32
    return %c0_i32, %c0_i32_0 : i32, i32
  }
  func.func @transform_4(%arg0: i32, %arg1: i32) -> (i32, i32) {
    %c0_i32 = arith.constant 0 : i32
    %c0_i32_0 = arith.constant 0 : i32
    %c0_i32_1 = arith.constant 0 : i32
    return %c0_i32, %c0_i32_0 : i32, i32
  }
  func.func @transform_5(%arg0: i32, %arg1: i32) -> (i32, i32) {
    %c0_i32 = arith.constant 0 : i32
    %c0_i32_0 = arith.constant 0 : i32
    %c0_i32_1 = arith.constant 0 : i32
    return %c0_i32, %c0_i32_0 : i32, i32
  }
  func.func @transform_6(%arg0: i32, %arg1: i32) -> (i32, i32) {
    %c0_i32 = arith.constant 0 : i32
    %c0_i32_0 = arith.constant 0 : i32
    %c0_i32_1 = arith.constant 0 : i32
    return %c0_i32, %c0_i32_0 : i32, i32
  }
  func.func @transform_7(%arg0: i32, %arg1: i32) -> (i32, i32) {
    %c0_i32 = arith.constant 0 : i32
    %c0_i32_0 = arith.constant 0 : i32
    %c0_i32_1 = arith.constant 0 : i32
    return %c0_i32, %c0_i32_0 : i32, i32
  }
  func.func @transform_8(%arg0: i32, %arg1: i32) -> (i32, i32) {
    %c0_i32 = arith.constant 0 : i32
    %c0_i32_0 = arith.constant 0 : i32
    %c0_i32_1 = arith.constant 0 : i32
    return %c0_i32, %c0_i32_0 : i32, i32
  }
  func.func @transform_9(%arg0: i32, %arg1: i32) -> (i32, i32) {
    %c0_i32 = arith.constant 0 : i32
    %c0_i32_0 = arith.constant 0 : i32
    %c0_i32_1 = arith.constant 0 : i32
    return %c0_i32, %c0_i32_0 : i32, i32
  }
  func.func @transform_10(%arg0: i32, %arg1: i32) -> (i32, i32) {
    %c0_i32 = arith.constant 0 : i32
    %c0_i32_0 = arith.constant 0 : i32
    %c0_i32_1 = arith.constant 0 : i32
    return %c0_i32, %c0_i32_0 : i32, i32
  }
  func.func @transform_11(%arg0: i32, %arg1: i32) -> (i32, i32) {
    %c0_i32 = arith.constant 0 : i32
    %c0_i32_0 = arith.constant 0 : i32
    %c0_i32_1 = arith.constant 0 : i32
    return %c0_i32, %c0_i32_0 : i32, i32
  }
  func.func @transform_12(%arg0: i32, %arg1: i32) -> (i32, i32) {
    %c0_i32 = arith.constant 0 : i32
    %c0_i32_0 = arith.constant 0 : i32
    return %c0_i32, %arg1 : i32, i32
  }
  func.func @transform_13(%arg0: i32, %arg1: i32) -> (i32, i32) {
    %c0_i32 = arith.constant 0 : i32
    %c0_i32_0 = arith.constant 0 : i32
    return %c0_i32, %arg1 : i32, i32
  }
  func.func @transform_14(%arg0: i32, %arg1: i32) -> (i32, i32) {
    %c0_i32 = arith.constant 0 : i32
    %c0_i32_0 = arith.constant 0 : i32
    return %arg1, %c0_i32 : i32, i32
  }
  func.func @transform_15(%arg0: i32, %arg1: i32) -> (i32, i32) {
    %c0_i32 = arith.constant 0 : i32
    %c0_i32_0 = arith.constant 0 : i32
    %c0_i32_1 = arith.constant 0 : i32
    return %c0_i32, %c0_i32_0 : i32, i32
  }
  func.func @transform_16(%arg0: i32, %arg1: i32) -> (i32, i32, i32) {
    %c0_i32 = arith.constant 0 : i32
    %c0_i32_0 = arith.constant 0 : i32
    %c0_i32_1 = arith.constant 0 : i32
    return %arg0, %c0_i32, %c0_i32_0 : i32, i32, i32
  }
}

</mosaic_0001>

<bundles_post_ra>
// kernel: tpu_custom_call.1
= control target key start
LH: loop header
LB: loop body
LE: loop exit
PB: predicated region body
PF: predicated region fallthrough
CT: control target
= control target key end

     0   :  { %s11779_s0 = inlined_call_operand.hbm [shape: f32[2,128,256], index: 0, kind: input, shape index: {}]   ;;  %s11780_s1 = inlined_call_operand.hbm [shape: f32[128,128], index: 1, kind: input, shape index: {}]   ;;  %s11781_s2 = inlined_call_operand.hbm [shape: f32[128,128], index: 2, kind: input, shape index: {}]   ;;  %s11782_s3 = inlined_call_operand.hbm [shape: f32[128,128], index: 3, kind: input, shape index: {}]   ;;  %s11783_s4 = inlined_call_operand.hbm [shape: f32[1,256], index: 4, kind: input, shape index: {}]   ;;  %s11784_s5 = inlined_call_operand.hbm [shape: f32[1,256], index: 5, kind: input, shape index: {}]   ;;  %s11785_s6 = inlined_call_operand.hbm [shape: bf16[256,768], index: 6, kind: input, shape index: {}]   ;;  %s11786_s7 = inlined_call_operand.hbm [shape: f32[1,768], index: 7, kind: input, shape index: {}]   ;;  %s11787_s8 = inlined_call_operand.hbm [shape: bf16[256,256], index: 8, kind: input, shape index: {}]   ;;  %s11788_s9 = inlined_call_operand.hbm [shape: f32[1,256], index: 9, kind: input, shape index: {}]   ;;  %s11789_s10 = inlined_call_operand.hbm [shape: f32[1,256], index: 10, kind: input, shape index: {}]   ;;  %s11790_s11 = inlined_call_operand.hbm [shape: f32[1,256], index: 11, kind: input, shape index: {}]   ;;  %s11791_s12 = inlined_call_operand.hbm [shape: bf16[256,512], index: 12, kind: input, shape index: {}]   ;;  %s11792_s13 = inlined_call_operand.hbm [shape: f32[1,512], index: 13, kind: input, shape index: {}]   ;;  %s11793_s14 = inlined_call_operand.hbm [shape: bf16[512,256], index: 14, kind: input, shape index: {}]   ;;  %s11794_s15 = inlined_call_operand.hbm [shape: f32[1,256], index: 15, kind: input, shape index: {}]   ;;  %s11795_s16 = inlined_call_operand.hbm [shape: f32[2,128,256], index: 16, kind: output, shape index: {}]  }
   0x1   :  { %11976 = sst [smem:[#allocation158_spill]] %s11779_s0 }
   0x2   :  { %11977 = sst [smem:[#allocation159_spill]] %s11780_s1 }
   0x3   :  { %11978 = sst [smem:[#allocation160_spill]] %s11781_s2 }
   0x4   :  { %11979 = sst [smem:[#allocation161_spill]] %s11782_s3 }
   0x5   :  { %11980 = sst [smem:[#allocation162_spill]] %s11783_s4 }
   0x6   :  { %11981 = sst [smem:[#allocation163_spill]] %s11784_s5 }
   0x7   :  { %11982 = sst [smem:[#allocation164_spill]] %s11787_s8 }
   0x8   :  { %11983 = sst [smem:[#allocation165_spill]] %s11789_s10 }
   0x9   :  { %11984 = sst [smem:[#allocation166_spill]] %s11790_s11 }
   0xa   :  { %11985 = sst [smem:[#allocation167_spill]] %s11791_s12 }
   0xb   :  { %11986 = sst [smem:[#allocation168_spill]] %s11793_s14 }
   0xc   :  { %11987 = sst [smem:[#allocation169_spill]] %s11794_s15 }
   0xd   :  { %11988 = sst [smem:[#allocation170_spill]] %s11795_s16 }
   0xe   :  { %21 = vsyncpa [#allocation8], 0 }
   0xf   :  { %23 = vsyncpa [#allocation8 + $0x1], 0 }
  0x10   :  { %24 = vsyncpa [#allocation11], 0 }
  0x11   :  { %25 = vsyncpa [#allocation14], 0 }
  0x12   :  { %26 = vsyncpa [#allocation17], 0 }
  0x13   :  { %27 = vsyncpa [#allocation20], 0 }
  0x14   :  { %28 = vsyncpa [#allocation23], 0 }
  0x15   :  { %29 = vsyncpa [#allocation26], 0 }
  0x16   :  { %30 = vsyncpa [#allocation9], 0 }
  0x17   :  { %32 = vsyncpa [#allocation9 + $0x1], 0  ;;  %s8159_s21 = smov 0   ;;  %s8161_s22 = smov 0  }
  0x18   :  { %s8163_s23 = smov 0   ;;  %s8165_s24 = smov 0  }
  0x19   :  { %s8167_s25 = smov 0   ;;  %s8169_s26 = smov 0  }
  0x1a   :  { %s8171_s27 = smov 0   ;;  %s8173_s28 = smov 0  }
  0x1b   :  { %s8175_s29 = smov 0   ;;  %s8177_s30 = smov 0  }
  0x1c   :  { %s8179_s0 = smov 0  }
  0x1d LB: > { %11989 = sst [smem:[#allocation42_spill]] %s8004_s22  ;;  %s8215_s17 = sadd.s32 4294967295, %s8040_s0   ;;  %s8040_s0 = sphi %s8179_s0, %s38_s0   ;;  %s8036_s30 = sphi %s8177_s30, %s12358_s30   ;;  %s8032_s29 = sphi %s8175_s29, %s12362_s29   ;;  %s8028_s28 = sphi %s8173_s28, %s12356_s28   ;;  %s8024_s27 = sphi %s8171_s27, %s12361_s27   ;;  %s8020_s26 = sphi %s8169_s26, %s12355_s26   ;;  %s8016_s25 = sphi %s8167_s25, %s12354_s25   ;;  %s8012_s24 = sphi %s8165_s24, %s12353_s24   ;;  %s8008_s23 = sphi %s8163_s23, %s12360_s23   ;;  %s8004_s22 = sphi %s8161_s22, %s12359_s22   ;;  %s8000_s21 = sphi %s8159_s21, %s12351_s21  }
  0x1e   : > { %11990 = sst [smem:[#allocation43_spill]] %s8012_s24  ;;  %s6047_s18 = sadd.s32 4294967294, %s8040_s0  }
  0x1f   : > { %11991 = sst [smem:[#allocation44_spill]] %s8016_s25  ;;  %s47_s19 = sadd.s32 1, %s8032_s29 }
  0x20   : > { %11992 = sst [smem:[#allocation45_spill]] %s8020_s26  ;;  %s50_s20 = sadd.s32 1, %s8036_s30 }
  0x21   : > { %11993 = sst [smem:[#allocation46_spill]] %s8024_s27  ;;  %p48_p0 = scmp.ge.s32.totalorder %s47_s19, 2 }
  0x22   : > { %11994 = sst [smem:[#allocation47_spill]] %s8028_s28  ;;  %s57_s16 = sadd.s32 1, %s8020_s26 }
  0x23   : > { %11995 = sst [smem:[#allocation48_spill]] %s8036_s30  ;;  %p64_p1 = scmp.ne.s32.totalorder %s8020_s26, %s8016_s25 }
  0x24   : > { %11996 = sst [smem:[#allocation49_spill]] %s8040_s0  ;;  %p65_p2 = scmp.eq.s32.totalorder %s8040_s0, 0 }
  0x25   : > { %11997 = sst [smem:[#allocation50_spill]] %s8215_s17  ;;  %s12364_s19 = smov (%p48_p0, %s47_s19), 0 }
  0x26   : > { %11998 = sst [smem:[#allocation51_spill]] %s12364_s19  ;;  %s12366_s20 = smov (!%p48_p0, %s50_s20), %s8036_s30 }
  0x27   : > { %p8232_p3 = por %p65_p2, %p64_p1  ;;  %p11805_p4 = scmp.ne.s32.totalorder %s8016_s25, %s8012_s24 }
  0x28   : > { %p52_p5 = scmp.ge.s32.totalorder %s12366_s20, 2  ;;  %p11806_p6 = scmp.eq.s32.totalorder %s8215_s17, 0 }
  0x29   : > { %s311_s27 = ssub.s32 %s8032_s29, %s12364_s19  ;;  %s314_s14 = sadd.s32 1, %s8008_s23 }
  0x2a   : > { %s12368_s20 = smov (%p52_p5, %s12366_s20), 0  ;;  %p8249_p7 = por %p11806_p6, %p11805_p4 }
  0x2b   : > { %12000 = sst [smem:[#allocation52_spill]] %s12368_s20  ;;  %p312_p8 = scmp.eq.s32.totalorder %s311_s27, 0 }
  0x2c   : > { %s12001_s15 = scalar_select %p8249_p7, 1, 0 }
  0x2d   : > { %s54_s11 = ssub.s32 %s8036_s30, %s12368_s20  ;;  %p321_p9 = scmp.ne.s32.totalorder %s8008_s23, %s8004_s22 }
  0x2e   : > { %12002 = sst [smem:[#allocation53_spill]] %s12001_s15  ;;  %p55_p10 = scmp.eq.s32.totalorder %s54_s11, 0 }
  0x2f   : > { %p327_p11 = scmp.ne.s32.totalorder %s8004_s22, %s8000_s21  ;;  %p8267_p12 = por %p321_p9, %p65_p2 }
  0x30   : > { %s8260_s19 = scalar_select %p312_p8, %s8008_s23, %s314_s14  }
  0x31   : > { %s8263_s10 = scalar_select %p55_p10, %s8020_s26, %s57_s16  }
  0x32   : > { %12003 = sst [smem:[#allocation54_spill]] %s8260_s19  ;;  %p8273_p13 = por %p327_p11, %p11806_p6 }
  0x33   : > { %12004 = sst [smem:[#allocation55_spill]] %s8263_s10  ;;  %p424_p0 = scmp.eq.s32.totalorder %s8215_s17, 3 }
  0x34   : > { %s12006_s27 = scalar_select %p8273_p13, 1, 0 }
  0x35   : > { %p430_p5 = scmp.eq.s32.totalorder %s6047_s18, 3  ;;  %p6048_p4 = scmp.ge.s32.totalorder %s8040_s0, 1 }
  0x36   : > { %12007 = sst [smem:[#allocation56_spill]] %s12006_s27  ;;  %p437_p8 = scmp.lt.s32.totalorder %s8040_s0, 5 }
  0x37   : > { %p8283_p10 = por %p424_p0, %p64_p1  ;;  %p12010_p2 = scmp.ne.s32.totalorder %s8016_s25, %s8012_s24 }
  0x38   : > { %p8294_p11 = pnand %p6048_p4, %p437_p8  ;;  %p11820_p6 = scmp.lt.s32.totalorder %s8040_s0, 4 }
  0x39   : > { %s12008_s11 = scalar_select %p8283_p10, 1, 0 }
  0x3a   : > { %p8290_p9 = por %p430_p5, %p12010_p2  ;;  %p6523_p13 = pneg %p8294_p11 }
  0x3b   : > { %12009 = sst [smem:[#allocation57_spill]] %s12008_s11  ;;  %s592_s21 = sand.u32 1, %s8040_s0  }
  0x3c   : > { %s12011_s14 = scalar_select %p8290_p9, 1, 0 }
  0x3d   : > { %s12013_s16 = scalar_select %p8294_p11, 1, 0 }
  0x3e   : > { %12012 = sst [smem:[#allocation58_spill]] %s12011_s14  ;;  %s594_s18 = sand.u32 1, %s8020_s26  }
  0x3f   : > { %12014 = sst [smem:[#allocation59_spill]] %s12013_s16  ;;  %p12015_p7 = scmp.eq.s32.totalorder %s8215_s17, 0 }
  0x40   : > { %s6062_s10 = sshll.u32 %s594_s18, 8  ;;  %s6299_s19 = sshll.u32 %s8036_s30, 12 }
  0x41   : > { %p8305_p1 = pnand %p6523_p13, %p12015_p7  ;;  %s12017_s14 = sld [smem:[#allocation158_spill]] }
  0x42   : > { %s596_s22 = scalar_lea.vmem [#allocation7], %s6062_s10  ;;  %p8319_p4 = pnand %p11820_p6, %p8232_p3 }
  0x43   : > { %s12016_s20 = scalar_select %p8305_p1, 1, 0 }
  0x44   : > { %s603_s15 = sshll.u32 %s596_s22, 4  ;;  %s8325_s18 = scalar_lea.sflag [#allocation8], %s592_s21  ;;  %s8323_s15 = int_to_ptr.vmem [resolvable:$true] %s603_s15 }
  0x45   : > { %p7428_p13 = pneg %p8319_p4 }
  0x47   : > { %s8313_s27 = scalar_lea.hbm %s12017_s14, %s6299_s19  ;;  %s7431_s28 = scalar_lea.hbm %s12017_s14, 8192 }
  0x48   : > { %s7426_s24 = scalar_lea.hbm %s8313_s27, 4096  ;;  %p7432_p3 = scmp.lt.u32.totalorder %s8313_s27, %s12017_s14 }
  0x49   : > { %p7427_p7 = scmp.ne.s32.totalorder %s8313_s27, %s7426_s24  ;;  %p7433_p8 = scmp.lt.u32.totalorder %s7431_s28, %s7426_s24 }
  0x4a   : > { %p7435_p6 = scmp.lt.u32.totalorder %s7426_s24, %s8313_s27 }
  0x4b   : > { %p7429_p0 = pnand %p7428_p13, %p7427_p7  ;;  %p7434_p2 = por %p7433_p8, %p7432_p3 }
  0x4d   : > { %p7430_p5 = pneg %p7429_p0  ;;  %p7436_p9 = por %p7435_p6, %p7434_p2 }
  0x4f   : > { %p7437_p10 = pnand %p7436_p9, %p7430_p5 }
  0x51   : > { %7440 = shalt.err (!%p7437_p10)
}
  0x52   : > { %s7441_s21 = scalar_lea.vmem %s8323_s15, 4096  ;;  %s8046_s10 = smov [#allocation7]  }
  0x53   : > { %p7442_p7 = scmp.ne.s32.totalorder %s8323_s15, %s7441_s21  ;;  %s7446_s22 = sshll.u32 %s8046_s10, 4  ;;  %s7447_s22 = int_to_ptr.vmem [resolvable:$false] %s7446_s22 }
  0x54   : > { %s7448_s19 = scalar_lea.vmem %s7447_s22, 8192  ;;  %p7449_p1 = scmp.lt.s32.totalorder %s8323_s15, %s7447_s22 }
  0x55   : > { %p7444_p0 = pnand %p7442_p7, %p7428_p13  ;;  %p7450_p3 = scmp.lt.s32.totalorder %s7448_s19, %s7441_s21 }
  0x57   : > { %p7445_p11 = pneg %p7444_p0  ;;  %p7451_p8 = por %p7450_p3, %p7449_p1 }
  0x59   : > { %p7452_p6 = pnand %p7451_p8, %p7445_p11 }
  0x5b   : > { %7455 = shalt.err (!%p7452_p6)
}
  0x5c   : > { %s11831_s24 = smov 256   ;;  %s8048_s28 = smov 16  }
  0x5d   : > { %6563 = dma.hbm_to_vmem [thread:$0]  (!%p8319_p4), %s8313_s27, 4096, %s8323_s15, %s8325_s18, %s11831_s24, %s11831_s24, %s8048_s28  }
  0x5e   : > { %p12019_p10 = scmp.lt.s32.totalorder %s8040_s0, 4  ;;  %s8049_s21 = smov [#allocation10]  }
  0x5f   : > { %s449_s10 = sshll.u32 %s8049_s21, 4  ;;  %s11832_s22 = sand.u32 1, %s8008_s23   ;;  %s450_s10 = int_to_ptr.vmem [resolvable:$true] %s449_s10 }
  0x60   : > { %p8359_p9 = pnand %p12019_p10, %p8267_p12  ;;  %s12021_s1 = sld [smem:[#allocation159_spill]] }
  0x61   : > { %p12022_p1 = scmp.ne.s32.totalorder %s12016_s20, 0 }
  0x62   : > { %s12020_s11 = scalar_select %p8359_p9, 1, 0 }
  0x63   : > { %p8372_p4 = pneg %p12022_p1 }
  0x65   : > { %s12023_s8 = scalar_select %p8372_p4, 1, 0 }
  0x66   : > { %s7456_s30 = scalar_lea.hbm %s12021_s1, 2048 }
  0x67   : > { %p7457_p11 = scmp.ne.s32.totalorder %s12021_s1, %s7456_s30  ;;  %p7463_p5 = scmp.lt.u32.totalorder %s7456_s30, %s12021_s1 }
  0x69   : > { %p7459_p12 = pnand %p8372_p4, %p7457_p11 }
  0x6b   : > { %p7460_p13 = pneg %p7459_p12 }
  0x6d   : > { %p7465_p2 = pnand %p7463_p5, %p7460_p13 }
  0x6f   : > { %7468 = shalt.err (!%p7465_p2)
}
  0x70   : > { %s7469_s27 = scalar_lea.vmem %s450_s10, 2048  ;;  %p7477_p8 = scmp.lt.s32.totalorder %s450_s10, %s450_s10 }
  0x71   : > { %p7470_p7 = scmp.ne.s32.totalorder %s450_s10, %s7469_s27  ;;  %p7478_p6 = scmp.lt.s32.totalorder %s7469_s27, %s7469_s27 }
  0x73   : > { %p7472_p0 = pnand %p7470_p7, %p8372_p4  ;;  %p7479_p10 = por %p7478_p6, %p7477_p8 }
  0x75   : > { %p7473_p3 = pneg %p7472_p0 }
  0x77   : > { %p7480_p9 = pnand %p7479_p10, %p7473_p3 }
  0x79   : > { %7483 = shalt.err (!%p7480_p9)
}
  0x7a   : > { %s11833_s25 = smov 128   ;;  %s11847_s17 = smov 8  }
  0x7b   : > { %6526 = dma.hbm_to_vmem [thread:$0]  (!%p12022_p1), %s12021_s1, 2048, %s450_s10, [#allocation11], %s11833_s25, %s11833_s25, %s11847_s17  }
  0x7c   : > { %s8393_s28 = sshll.u32 %s11832_s22, 8  ;;  %s6300_s21 = sshll.u32 %s8032_s29, 7 }
  0x7d   : > { %s12024_s12 = sld [smem:[#allocation167_spill]]  ;;  %s617_s27 = scalar_lea.vmem [#allocation27], %s8393_s28 }
  0x7e   : > { %s624_s24 = sshll.u32 %s617_s27, 4  ;;  %s8052_s30 = smov [#allocation12]   ;;  %s8402_s24 = int_to_ptr.vmem [resolvable:$true] %s624_s24 }
  0x7f   : > { %s8404_s10 = sshll.u32 %s8052_s30, 4  ;;  %p12025_p11 = scmp.ne.s32.totalorder %s12020_s11, 0  ;;  %s463_s10 = int_to_ptr.vmem [resolvable:$true] %s8404_s10 }
  0x81   : > { %p8410_p12 = pneg %p12025_p11 }
  0x83   : > { %s8399_s26 = scalar_lea.hbm %s12024_s12, %s6300_s21  ;;  %s7489_s15 = scalar_lea.hbm %s12024_s12, 8192 }
  0x84   : > { %s7484_s14 = scalar_lea.hbm %s8399_s26, 4096  ;;  %p7490_p2 = scmp.lt.u32.totalorder %s8399_s26, %s12024_s12 }
  0x85   : > { %p7485_p9 = scmp.ne.s32.totalorder %s8399_s26, %s7484_s14  ;;  %p7491_p7 = scmp.lt.u32.totalorder %s7489_s15, %s7484_s14 }
  0x86   : > { %s12026_s22 = scalar_select %p8410_p12, 1, 0 }
  0x87   : > { %p7487_p13 = pnand %p8410_p12, %p7485_p9  ;;  %p7492_p0 = por %p7491_p7, %p7490_p2 }
  0x88   : > { %p7493_p3 = scmp.lt.u32.totalorder %s7484_s14, %s8399_s26 }
  0x89   : > { %p7488_p5 = pneg %p7487_p13 }
  0x8a   : > { %p7494_p8 = por %p7493_p3, %p7492_p0 }
  0x8c   : > { %p7495_p6 = pnand %p7494_p8, %p7488_p5 }
  0x8e   : > { %7498 = shalt.err (!%p7495_p6)
}
  0x8f   : > { %s7499_s30 = scalar_lea.vmem %s8402_s24, 4096  ;;  %s8053_s21 = smov [#allocation27]  }
  0x90   : > { %p7500_p10 = scmp.ne.s32.totalorder %s8402_s24, %s7499_s30  ;;  %s7504_s19 = sshll.u32 %s8053_s21, 4  ;;  %s7505_s19 = int_to_ptr.vmem [resolvable:$false] %s7504_s19 }
  0x91   : > { %s7506_s25 = scalar_lea.vmem %s7505_s19, 8192  ;;  %p7507_p1 = scmp.lt.s32.totalorder %s8402_s24, %s7505_s19 }
  0x92   : > { %p7502_p9 = pnand %p7500_p10, %p8410_p12  ;;  %p7508_p4 = scmp.lt.s32.totalorder %s7506_s25, %s7499_s30 }
  0x94   : > { %p7503_p13 = pneg %p7502_p9  ;;  %p7509_p2 = por %p7508_p4, %p7507_p1 }
  0x96   : > { %p7510_p7 = pnand %p7509_p2, %p7503_p13 }
  0x98   : > { %7513 = shalt.err (!%p7510_p7)
}
  0x99   : > { %s12027_s14 = smov 128   ;;  %s12028_s15 = smov 256  }
  0x9a   : > { %6566 = dma.hbm_to_vmem [thread:$0]  (!%p12025_p11), %s8399_s26, 4096, %s8402_s24, %s8325_s18, %s12028_s15, %s12027_s14, %s11847_s17  }
  0x9b   : > { %s12029_s2 = sld [smem:[#allocation160_spill]]  ;;  %p12030_p4 = scmp.ne.s32.totalorder %s12023_s8, 0 }
  0xa1   : > { %s7514_s19 = scalar_lea.hbm %s12029_s2, 2048 }
  0xa2   : > { %p7515_p1 = scmp.ne.s32.totalorder %s12029_s2, %s7514_s19  ;;  %p7521_p3 = scmp.lt.u32.totalorder %s7514_s19, %s12029_s2 }
  0xa4   : > { %p7517_p5 = pnand %p7515_p1, %p12030_p4 }
  0xa6   : > { %p7518_p0 = pneg %p7517_p5 }
  0xa8   : > { %p7523_p8 = pnand %p7521_p3, %p7518_p0 }
  0xaa   : > { %7526 = shalt.err (!%p7523_p8)
}
  0xab   : > { %s7527_s0 = scalar_lea.vmem %s463_s10, 2048  ;;  %p7535_p13 = scmp.lt.s32.totalorder %s463_s10, %s463_s10 }
  0xac   : > { %p7528_p6 = scmp.ne.s32.totalorder %s463_s10, %s7527_s0  ;;  %p7536_p2 = scmp.lt.s32.totalorder %s7527_s0, %s7527_s0 }
  0xae   : > { %p7530_p10 = pnand %p7528_p6, %p12030_p4  ;;  %p7537_p7 = por %p7536_p2, %p7535_p13 }
  0xb0   : > { %p7531_p9 = pneg %p7530_p10 }
  0xb2   : > { %p7538_p11 = pnand %p7537_p7, %p7531_p9 }
  0xb4   : > { %7541 = shalt.err (!%p7538_p11)
}
  0xb5   : > { %p12031_p1 = scmp.ne.s32.totalorder %s12016_s20, 0  ;;  %s8054_s24 = smov [#allocation13]  }
  0xb6   : > { %s475_s26 = sshll.u32 %s8054_s24, 4  ;;  %s8055_s15 = smov [#allocation16]   ;;  %s476_s26 = int_to_ptr.vmem [resolvable:$true] %s475_s26 }
  0xb7   : > { %6529 = dma.hbm_to_vmem [thread:$0]  (!%p12031_p1), %s12029_s2, 2048, %s463_s10, [#allocation11], %s12027_s14, %s12027_s14, %s11847_s17  }
  0xb8   : > { %s500_s27 = sshll.u32 %s8055_s15, 4  ;;  %s12032_s3 = sld [smem:[#allocation161_spill]]  ;;  %s501_s27 = int_to_ptr.vmem [resolvable:$true] %s500_s27 }
  0xbe   : > { %s7542_s19 = scalar_lea.hbm %s12032_s3, 2048 }
  0xbf   : > { %p7543_p11 = scmp.ne.s32.totalorder %s12032_s3, %s7542_s19  ;;  %p7549_p3 = scmp.lt.u32.totalorder %s7542_s19, %s12032_s3 }
  0xc1   : > { %p7545_p5 = pnand %p7543_p11, %p12030_p4 }
  0xc3   : > { %p7546_p0 = pneg %p7545_p5 }
  0xc5   : > { %p7551_p8 = pnand %p7549_p3, %p7546_p0 }
  0xc7   : > { %7554 = shalt.err (!%p7551_p8)
}
  0xc8   : > { %s7555_s10 = scalar_lea.vmem %s476_s26, 2048  ;;  %p7563_p13 = scmp.lt.s32.totalorder %s476_s26, %s476_s26 }
  0xc9   : > { %p7556_p6 = scmp.ne.s32.totalorder %s476_s26, %s7555_s10  ;;  %p7564_p2 = scmp.lt.s32.totalorder %s7555_s10, %s7555_s10 }
  0xcb   : > { %p7558_p10 = pnand %p7556_p6, %p12030_p4  ;;  %p7565_p7 = por %p7564_p2, %p7563_p13 }
  0xcd   : > { %p7559_p9 = pneg %p7558_p10 }
  0xcf   : > { %p7566_p12 = pnand %p7565_p7, %p7559_p9 }
  0xd1   : > { %7569 = shalt.err (!%p7566_p12)
}
  0xd2   : > { %6532 = dma.hbm_to_vmem [thread:$0]  (!%p12031_p1), %s12032_s3, 2048, %s476_s26, [#allocation14], %s12027_s14, %s12027_s14, %s11847_s17  }
  0xd3   : > { %s12033_s5 = sld [smem:[#allocation163_spill]] }
  0xd9   : > { %s7570_s21 = scalar_lea.hbm %s12033_s5, 32 }
  0xda   : > { %p7571_p11 = scmp.ne.s32.totalorder %s12033_s5, %s7570_s21  ;;  %p7577_p0 = scmp.lt.u32.totalorder %s7570_s21, %s12033_s5 }
  0xdc   : > { %p7573_p12 = pnand %p7571_p11, %p12030_p4 }
  0xde   : > { %p7574_p5 = pneg %p7573_p12 }
  0xe0   : > { %p7579_p3 = pnand %p7577_p0, %p7574_p5 }
  0xe2   : > { %7582 = shalt.err (!%p7579_p3)
}
  0xe3   : > { %s7583_s1 = scalar_lea.vmem %s501_s27, 32  ;;  %p7591_p9 = scmp.lt.s32.totalorder %s501_s27, %s501_s27 }
  0xe4   : > { %p7584_p8 = scmp.ne.s32.totalorder %s501_s27, %s7583_s1  ;;  %p7592_p13 = scmp.lt.s32.totalorder %s7583_s1, %s7583_s1 }
  0xe6   : > { %p7586_p6 = pnand %p7584_p8, %p12030_p4  ;;  %p7593_p2 = por %p7592_p13, %p7591_p9 }
  0xe8   : > { %p7587_p10 = pneg %p7586_p6 }
  0xea   : > { %p7594_p7 = pnand %p7593_p2, %p7587_p10 }
  0xec   : > { %7597 = shalt.err (!%p7594_p7)
}
  0xed   : > { %6538 = dma.hbm_to_vmem [thread:$0]  (!%p12031_p1), %s12033_s5, 32, %s501_s27, [#allocation17]  }
  0xee   : > { %s8056_s16 = smov [#allocation19]   ;;  %s8057_s24 = smov [#allocation22]  }
  0xef   : > { %s524_s12 = sshll.u32 %s8056_s16, 4  ;;  %s548_s15 = sshll.u32 %s8057_s24, 4  ;;  %s525_s12 = int_to_ptr.vmem [resolvable:$true] %s524_s12  ;;  %s549_s15 = int_to_ptr.vmem [resolvable:$true] %s548_s15 }
  0xf0   : > { %s7598_s19 = scalar_lea.hbm %s11786_s7, 96 }
  0xf1   : > { %p7599_p11 = scmp.ne.s32.totalorder %s11786_s7, %s7598_s19  ;;  %p7605_p0 = scmp.lt.u32.totalorder %s7598_s19, %s11786_s7 }
  0xf3   : > { %p7601_p12 = pnand %p7599_p11, %p12030_p4 }
  0xf5   : > { %p7602_p5 = pneg %p7601_p12 }
  0xf7   : > { %p7607_p3 = pnand %p7605_p0, %p7602_p5 }
  0xf9   : > { %7610 = shalt.err (!%p7607_p3)
}
  0xfa   : > { %s7611_s27 = scalar_lea.vmem %s525_s12, 96  ;;  %p7619_p9 = scmp.lt.s32.totalorder %s525_s12, %s525_s12 }
  0xfb   : > { %p7612_p8 = scmp.ne.s32.totalorder %s525_s12, %s7611_s27  ;;  %p7620_p13 = scmp.lt.s32.totalorder %s7611_s27, %s7611_s27 }
  0xfd   : > { %p7614_p6 = pnand %p7612_p8, %p12030_p4  ;;  %p7621_p2 = por %p7620_p13, %p7619_p9 }
  0xff   : > { %p7615_p10 = pneg %p7614_p6 }
 0x101   : > { %p7622_p7 = pnand %p7621_p2, %p7615_p10 }
 0x103   : > { %7625 = shalt.err (!%p7622_p7)
}
 0x104   : > { %6544 = dma.hbm_to_vmem [thread:$0]  (!%p12031_p1), %s11786_s7, 96, %s525_s12, [#allocation20]  }
 0x105   : > { %s12034_s24 = sand.u32 1, %s8008_s23   ;;  %s7626_s30 = scalar_lea.hbm %s11788_s9, 32 }
 0x106   : > { %s6068_s21 = sshll.u32 %s12034_s24, 1  ;;  %p7627_p11 = scmp.ne.s32.totalorder %s11788_s9, %s7626_s30 }
 0x107   : > { %p7633_p0 = scmp.lt.u32.totalorder %s7626_s30, %s11788_s9 }
 0x108   : > { %p7629_p12 = pnand %p7627_p11, %p12030_p4 }
 0x10a   : > { %p7630_p5 = pneg %p7629_p12 }
 0x10c   : > { %p7635_p3 = pnand %p7633_p0, %p7630_p5 }
 0x10e   : > { %7638 = shalt.err (!%p7635_p3)
}
 0x10f   : > { %s7639_s12 = scalar_lea.vmem %s549_s15, 32  ;;  %p7647_p9 = scmp.lt.s32.totalorder %s549_s15, %s549_s15 }
 0x110   : > { %p7640_p8 = scmp.ne.s32.totalorder %s549_s15, %s7639_s12  ;;  %p7648_p13 = scmp.lt.s32.totalorder %s7639_s12, %s7639_s12 }
 0x112   : > { %p7642_p6 = pnand %p7640_p8, %p12030_p4  ;;  %p7649_p2 = por %p7648_p13, %p7647_p9 }
 0x114   : > { %p7643_p10 = pneg %p7642_p6 }
 0x116   : > { %p7650_p7 = pnand %p7649_p2, %p7643_p10 }
 0x118   : > { %7653 = shalt.err (!%p7650_p7)
}
 0x119   : > { %6550 = dma.hbm_to_vmem [thread:$0]  (!%p12031_p1), %s11788_s9, 32, %s549_s15, [#allocation23]  }
 0x11a   : > { %s6301_s24 = sshll.u32 %s8032_s29, 5  ;;  %s638_s25 = scalar_lea.vmem [#allocation28], %s6068_s21 }
 0x11b   : > { %s8540_s30 = scalar_lea.hbm %s11792_s13, %s6301_s24  ;;  %s646_s1 = sshll.u32 %s638_s25, 4  ;;  %s647_s1 = int_to_ptr.vmem [resolvable:$true] %s646_s1 }
 0x11c   : > { %s7654_s26 = scalar_lea.hbm %s8540_s30, 32  ;;  %p12035_p12 = scmp.ne.s32.totalorder %s12026_s22, 0 }
 0x11d   : > { %p7655_p11 = scmp.ne.s32.totalorder %s8540_s30, %s7654_s26  ;;  %s7659_s12 = scalar_lea.hbm %s11792_s13, 64 }
 0x11e   : > { %p7660_p3 = scmp.lt.u32.totalorder %s8540_s30, %s11792_s13  ;;  %p7661_p8 = scmp.lt.u32.totalorder %s7659_s12, %s7654_s26 }
 0x11f   : > { %p7657_p5 = pnand %p7655_p11, %p12035_p12  ;;  %p7663_p10 = scmp.lt.u32.totalorder %s7654_s26, %s8540_s30 }
 0x120   : > { %p7662_p6 = por %p7661_p8, %p7660_p3 }
 0x121   : > { %p7658_p0 = pneg %p7657_p5 }
 0x122   : > { %p7664_p9 = por %p7663_p10, %p7662_p6 }
 0x124   : > { %p7665_p13 = pnand %p7664_p9, %p7658_p0 }
 0x126   : > { %7668 = shalt.err (!%p7665_p13)
}
 0x127   : > { %s7669_s21 = scalar_lea.vmem %s647_s1, 32  ;;  %s8058_s24 = smov [#allocation28]  }
 0x128   : > { %p7670_p2 = scmp.ne.s32.totalorder %s647_s1, %s7669_s21  ;;  %s7674_s0 = sshll.u32 %s8058_s24, 4  ;;  %s7675_s0 = int_to_ptr.vmem [resolvable:$false] %s7674_s0 }
 0x129   : > { %s7676_s19 = scalar_lea.vmem %s7675_s0, 64  ;;  %p7677_p5 = scmp.lt.s32.totalorder %s647_s1, %s7675_s0 }
 0x12a   : > { %p7672_p7 = pnand %p7670_p2, %p12035_p12  ;;  %p7678_p1 = scmp.lt.s32.totalorder %s7676_s19, %s7669_s21 }
 0x12c   : > { %p7673_p11 = pneg %p7672_p7  ;;  %p7679_p4 = por %p7678_p1, %p7677_p5 }
 0x12e   : > { %p7680_p3 = pnand %p7679_p4, %p7673_p11 }
 0x130   : > { %7683 = shalt.err (!%p7680_p3)
}
 0x131   : > { %p12036_p8 = scmp.ne.s32.totalorder %s12020_s11, 0  ;;  %s8059_s25 = smov [#allocation15]  }
 0x132   : > { %s489_s26 = sshll.u32 %s8059_s25, 4  ;;  %s8060_s27 = smov [#allocation18]   ;;  %s490_s26 = int_to_ptr.vmem [resolvable:$true] %s489_s26 }
 0x133   : > { %6569 = dma.hbm_to_vmem [thread:$0]  (!%p12036_p8), %s8540_s30, 32, %s647_s1, %s8325_s18  }
 0x134   : > { %s510_s15 = sshll.u32 %s8060_s27, 4  ;;  %s12037_s4 = sld [smem:[#allocation162_spill]]  ;;  %s511_s15 = int_to_ptr.vmem [resolvable:$true] %s510_s15 }
 0x135   : > { %p12038_p1 = scmp.ne.s32.totalorder %s12023_s8, 0 }
 0x13a   : > { %s7684_s16 = scalar_lea.hbm %s12037_s4, 32 }
 0x13b   : > { %p7685_p4 = scmp.ne.s32.totalorder %s12037_s4, %s7684_s16  ;;  %p7691_p10 = scmp.lt.u32.totalorder %s7684_s16, %s12037_s4 }
 0x13d   : > { %p7687_p0 = pnand %p7685_p4, %p12038_p1 }
 0x13f   : > { %p7688_p6 = pneg %p7687_p0 }
 0x141   : > { %p7693_p9 = pnand %p7691_p10, %p7688_p6 }
 0x143   : > { %7696 = shalt.err (!%p7693_p9)
}
 0x144   : > { %s7697_s30 = scalar_lea.vmem %s490_s26, 32  ;;  %p7705_p11 = scmp.lt.s32.totalorder %s490_s26, %s490_s26 }
 0x145   : > { %p7698_p13 = scmp.ne.s32.totalorder %s490_s26, %s7697_s30  ;;  %p7706_p5 = scmp.lt.s32.totalorder %s7697_s30, %s7697_s30 }
 0x147   : > { %p7700_p2 = pnand %p7698_p13, %p12038_p1  ;;  %p7707_p3 = por %p7706_p5, %p7705_p11 }
 0x149   : > { %p7701_p7 = pneg %p7700_p2 }
 0x14b   : > { %p7708_p8 = pnand %p7707_p3, %p7701_p7 }
 0x14d   : > { %7711 = shalt.err (!%p7708_p8)
}
 0x14e   : > { %p12039_p4 = scmp.ne.s32.totalorder %s12016_s20, 0  ;;  %s7712_s10 = scalar_lea.hbm %s11785_s6, 12288 }
 0x14f   : > { %p7713_p0 = scmp.ne.s32.totalorder %s11785_s6, %s7712_s10  ;;  %p7719_p8 = scmp.lt.u32.totalorder %s7712_s10, %s11785_s6 }
 0x150   : > { %6535 = dma.hbm_to_vmem [thread:$0]  (!%p12039_p4), %s12037_s4, 32, %s490_s26, [#allocation14]  }
 0x151   : > { %p7715_p6 = pnand %p7713_p0, %p12038_p1 }
 0x153   : > { %p7716_p10 = pneg %p7715_p6 }
 0x155   : > { %p7721_p9 = pnand %p7719_p8, %p7716_p10 }
 0x157   : > { %7724 = shalt.err (!%p7721_p9)
}
 0x158   : > { %s7725_s19 = scalar_lea.vmem %s511_s15, 12288  ;;  %p7733_p11 = scmp.lt.s32.totalorder %s511_s15, %s511_s15 }
 0x159   : > { %p7726_p13 = scmp.ne.s32.totalorder %s511_s15, %s7725_s19  ;;  %p7734_p5 = scmp.lt.s32.totalorder %s7725_s19, %s7725_s19 }
 0x15b   : > { %p7728_p2 = pnand %p7726_p13, %p12038_p1  ;;  %p7735_p3 = por %p7734_p5, %p7733_p11 }
 0x15d   : > { %p7729_p7 = pneg %p7728_p2 }
 0x15f   : > { %p7736_p12 = pnand %p7735_p3, %p7729_p7 }
 0x161   : > { %7739 = shalt.err (!%p7736_p12)
}
 0x162   : > { %s8061_s26 = smov 384   ;;  %s8062_s30 = smov 24  }
 0x163   : > { %6541 = dma.hbm_to_vmem [thread:$0]  (!%p12039_p4), %s11785_s6, 12288, %s511_s15, [#allocation17], %s8061_s26, %s8061_s26, %s8062_s30  }
 0x164   : > { %s8063_s27 = smov [#allocation21]   ;;  %s8064_s10 = smov [#allocation24]  }
 0x165   : > { %s534_s12 = sshll.u32 %s8063_s27, 4  ;;  %s559_s16 = sshll.u32 %s8064_s10, 4  ;;  %s535_s12 = int_to_ptr.vmem [resolvable:$true] %s534_s12  ;;  %s560_s16 = int_to_ptr.vmem [resolvable:$true] %s559_s16 }
 0x166   : > { %s12040_s0 = sld [smem:[#allocation164_spill]] }
 0x16c   : > { %s12041_s19 = smov %s12040_s0  ;;  %s7740_s17 = scalar_lea.hbm %s12040_s0, 4096 }
 0x16d   : > { %p7741_p12 = scmp.ne.s32.totalorder %s12041_s19, %s7740_s17  ;;  %p7747_p10 = scmp.lt.u32.totalorder %s7740_s17, %s12041_s19 }
 0x16f   : > { %p7743_p0 = pnand %p7741_p12, %p12038_p1 }
 0x171   : > { %p7744_p6 = pneg %p7743_p0 }
 0x173   : > { %p7749_p8 = pnand %p7747_p10, %p7744_p6 }
 0x175   : > { %7752 = shalt.err (!%p7749_p8)
}
 0x176   : > { %s7753_s15 = scalar_lea.vmem %s535_s12, 4096  ;;  %p7761_p7 = scmp.lt.s32.totalorder %s535_s12, %s535_s12 }
 0x177   : > { %p7754_p9 = scmp.ne.s32.totalorder %s535_s12, %s7753_s15  ;;  %p7762_p11 = scmp.lt.s32.totalorder %s7753_s15, %s7753_s15 }
 0x179   : > { %p7756_p13 = pnand %p7754_p9, %p12038_p1  ;;  %p7763_p5 = por %p7762_p11, %p7761_p7 }
 0x17b   : > { %p7757_p2 = pneg %p7756_p13 }
 0x17d   : > { %p7764_p3 = pnand %p7763_p5, %p7757_p2 }
 0x17f   : > { %7767 = shalt.err (!%p7764_p3)
}
 0x180   : > { %s12042_s2 = smov 8   ;;  %s12043_s26 = sld [smem:[#allocation165_spill]] }
 0x181   : > { %6547 = dma.hbm_to_vmem [thread:$0]  (!%p12039_p4), %s12041_s19, 4096, %s535_s12, [#allocation20], %s12027_s14, %s12027_s14, %s12042_s2  }
 0x186   : > { %s12044_s1 = smov %s12043_s26  ;;  %s7768_s30 = scalar_lea.hbm %s12043_s26, 32 }
 0x187   : > { %p7769_p12 = scmp.ne.s32.totalorder %s12044_s1, %s7768_s30  ;;  %p7775_p10 = scmp.lt.u32.totalorder %s7768_s30, %s12044_s1 }
 0x189   : > { %p7771_p0 = pnand %p7769_p12, %p12038_p1 }
 0x18b   : > { %p7772_p6 = pneg %p7771_p0 }
 0x18d   : > { %p7777_p8 = pnand %p7775_p10, %p7772_p6 }
 0x18f   : > { %7780 = shalt.err (!%p7777_p8)
}
 0x190   : > { %s7781_s21 = scalar_lea.vmem %s560_s16, 32  ;;  %p7789_p7 = scmp.lt.s32.totalorder %s560_s16, %s560_s16 }
 0x191   : > { %p7782_p9 = scmp.ne.s32.totalorder %s560_s16, %s7781_s21  ;;  %p7790_p11 = scmp.lt.s32.totalorder %s7781_s21, %s7781_s21 }
 0x193   : > { %p7784_p13 = pnand %p7782_p9, %p12038_p1  ;;  %p7791_p5 = por %p7790_p11, %p7789_p7 }
 0x195   : > { %p7785_p2 = pneg %p7784_p13 }
 0x197   : > { %p7792_p3 = pnand %p7791_p5, %p7785_p2 }
 0x199   : > { %7795 = shalt.err (!%p7792_p3)
}
 0x19a   : > { %6553 = dma.hbm_to_vmem [thread:$0]  (!%p12039_p4), %s12044_s1, 32, %s560_s16, [#allocation23]  }
 0x19b   : > { %s8065_s15 = smov [#allocation25]   ;;  %s8066_s4 = smov [#allocation30]  }
 0x19c   : > { %s570_s3 = sshll.u32 %s8065_s15, 4  ;;  %s581_s5 = sshll.u32 %s8066_s4, 4  ;;  %s571_s3 = int_to_ptr.vmem [resolvable:$true] %s570_s3  ;;  %s582_s5 = int_to_ptr.vmem [resolvable:$true] %s581_s5 }
 0x19d   : > { %s12045_s30 = sld [smem:[#allocation166_spill]] }
 0x1a3   : > { %s12046_s10 = smov %s12045_s30  ;;  %s7796_s25 = scalar_lea.hbm %s12045_s30, 32 }
 0x1a4   : > { %p7797_p12 = scmp.ne.s32.totalorder %s12046_s10, %s7796_s25  ;;  %p7803_p10 = scmp.lt.u32.totalorder %s7796_s25, %s12046_s10 }
 0x1a6   : > { %p7799_p0 = pnand %p7797_p12, %p12038_p1 }
 0x1a8   : > { %p7800_p6 = pneg %p7799_p0 }
 0x1aa   : > { %p7805_p8 = pnand %p7803_p10, %p7800_p6 }
 0x1ac   : > { %7808 = shalt.err (!%p7805_p8)
}
 0x1ad   : > { %s7809_s16 = scalar_lea.vmem %s571_s3, 32  ;;  %p7817_p7 = scmp.lt.s32.totalorder %s571_s3, %s571_s3 }
 0x1ae   : > { %p7810_p9 = scmp.ne.s32.totalorder %s571_s3, %s7809_s16  ;;  %p7818_p11 = scmp.lt.s32.totalorder %s7809_s16, %s7809_s16 }
 0x1b0   : > { %p7812_p13 = pnand %p7810_p9, %p12038_p1  ;;  %p7819_p5 = por %p7818_p11, %p7817_p7 }
 0x1b2   : > { %p7813_p2 = pneg %p7812_p13 }
 0x1b4   : > { %p7820_p3 = pnand %p7819_p5, %p7813_p2 }
 0x1b6   : > { %7823 = shalt.err (!%p7820_p3)
}
 0x1b7   : > { %6556 = dma.hbm_to_vmem [thread:$0]  (!%p12039_p4), %s12046_s10, 32, %s571_s3, [#allocation26]  }
 0x1b8   : > { %s12047_s26 = sld [smem:[#allocation169_spill]] }
 0x1be   : > { %s12048_s12 = smov %s12047_s26  ;;  %s7824_s30 = scalar_lea.hbm %s12047_s26, 32 }
 0x1bf   : > { %p7825_p12 = scmp.ne.s32.totalorder %s12048_s12, %s7824_s30  ;;  %p7831_p10 = scmp.lt.u32.totalorder %s7824_s30, %s12048_s12 }
 0x1c1   : > { %p7827_p0 = pnand %p7825_p12, %p12038_p1 }
 0x1c3   : > { %p7828_p6 = pneg %p7827_p0 }
 0x1c5   : > { %p7833_p8 = pnand %p7831_p10, %p7828_p6 }
 0x1c7   : > { %7836 = shalt.err (!%p7833_p8)
}
 0x1c8   : > { %s7837_s16 = scalar_lea.vmem %s582_s5, 32  ;;  %p7845_p7 = scmp.lt.s32.totalorder %s582_s5, %s582_s5 }
 0x1c9   : > { %p7838_p9 = scmp.ne.s32.totalorder %s582_s5, %s7837_s16  ;;  %p7846_p11 = scmp.lt.s32.totalorder %s7837_s16, %s7837_s16 }
 0x1cb   : > { %p7840_p13 = pnand %p7838_p9, %p12038_p1  ;;  %p7847_p5 = por %p7846_p11, %p7845_p7 }
 0x1cd   : > { %p7841_p2 = pneg %p7840_p13 }
 0x1cf   : > { %p7848_p3 = pnand %p7847_p5, %p7841_p2 }
 0x1d1   : > { %7851 = shalt.err (!%p7848_p3)
}
 0x1d2   : > { %6559 = dma.hbm_to_vmem [thread:$0]  (!%p12039_p4), %s12048_s12, 32, %s582_s5, [#allocation11]  }
 0x1d3   : > { %s6303_s15 = sshll.u32 %s8032_s29, 12  ;;  %s657_s4 = scalar_lea.vmem [#allocation29], %s8393_s28 }
 0x1d4   : > { %s665_s17 = sshll.u32 %s657_s4, 4  ;;  %s12049_s30 = sld [smem:[#allocation168_spill]]  ;;  %s8678_s17 = int_to_ptr.vmem [resolvable:$true] %s665_s17 }
 0x1d5   : > { %p12051_p12 = scmp.ne.s32.totalorder %s12026_s22, 0 }
 0x1da   : > { %s12050_s1 = smov %s12049_s30  ;;  %s8676_s25 = scalar_lea.hbm %s12049_s30, %s6303_s15 }
 0x1db   : > { %s7852_s20 = scalar_lea.hbm %s8676_s25, 4096  ;;  %s7857_s28 = scalar_lea.hbm %s12050_s1, 8192 }
 0x1dc   : > { %p7853_p1 = scmp.ne.s32.totalorder %s8676_s25, %s7852_s20  ;;  %p7858_p4 = scmp.lt.u32.totalorder %s8676_s25, %s12050_s1 }
 0x1dd   : > { %p7859_p10 = scmp.lt.u32.totalorder %s7857_s28, %s7852_s20  ;;  %p7861_p9 = scmp.lt.u32.totalorder %s7852_s20, %s8676_s25 }
 0x1de   : > { %p7855_p0 = pnand %p7853_p1, %p12051_p12 }
 0x1df   : > { %p7860_p8 = por %p7859_p10, %p7858_p4 }
 0x1e0   : > { %p7856_p6 = pneg %p7855_p0 }
 0x1e1   : > { %p7862_p13 = por %p7861_p9, %p7860_p8 }
 0x1e3   : > { %p7863_p2 = pnand %p7862_p13, %p7856_p6 }
 0x1e5   : > { %7866 = shalt.err (!%p7863_p2)
}
 0x1e6   : > { %s7867_s16 = scalar_lea.vmem %s8678_s17, 4096  ;;  %s8067_s3 = smov [#allocation29]  }
 0x1e7   : > { %p7868_p7 = scmp.ne.s32.totalorder %s8678_s17, %s7867_s16  ;;  %s7872_s0 = sshll.u32 %s8067_s3, 4  ;;  %s7873_s0 = int_to_ptr.vmem [resolvable:$false] %s7872_s0 }
 0x1e8   : > { %s7874_s15 = scalar_lea.vmem %s7873_s0, 8192  ;;  %p7875_p3 = scmp.lt.s32.totalorder %s8678_s17, %s7873_s0 }
 0x1e9   : > { %p7870_p11 = pnand %p7868_p7, %p12051_p12  ;;  %p7876_p1 = scmp.lt.s32.totalorder %s7874_s15, %s7867_s16 }
 0x1eb   : > { %p7871_p5 = pneg %p7870_p11  ;;  %p7877_p0 = por %p7876_p1, %p7875_p3 }
 0x1ed   : > { %p7878_p4 = pnand %p7877_p0, %p7871_p5 }
 0x1ef   : > { %7881 = shalt.err (!%p7878_p4)
}
 0x1f0   : > { %p12052_p6 = scmp.ne.s32.totalorder %s12020_s11, 0  ;;  %s12053_s22 = sld [smem:[#allocation59_spill]] }
 0x1f2   : > { %6572 = dma.hbm_to_vmem [thread:$0]  (!%p12052_p6), %s8676_s25, 4096, %s8678_s17, %s8325_s18, %s12027_s14, %s12027_s14, %s12042_s2  }
 0x1f6   : > { %p12054_p12 = scmp.ne.s32.totalorder %s12053_s22, 0 }
 0x1f8   : > { %677 = sbr.rel (%p12054_p12) target bundleno = 3616 (0xe20), region = 84 }
 0x1ff   : > { %s12055_s4 = sld [smem:[#allocation50_spill]]  ;;  %s12056_s8 = sld [smem:[#allocation44_spill]] }
 0x200   : > { %s12057_s26 = sld [smem:[#allocation53_spill]] }
 0x205   : > { %s679_s30 = sand.u32 1, %s12055_s4   ;;  %s681_s20 = sand.u32 1, %s12056_s8  }
 0x206   : > { %s6076_s5 = sshll.u32 %s681_s20, 8  ;;  %s680_s27 = scalar_lea.sflag [#allocation8], %s679_s30 }
 0x207   : > { %s8711_s11 = scalar_lea.vmem [#allocation7], %s6076_s5  ;;  %p12058_p10 = scmp.ne.s32.totalorder %s12057_s26, 0 }
 0x209   : > { %7959 = dma.done.wait (%p12058_p10), %s680_s27, 4096  }
 0x20a   : > { %7961 = vsyncadd (%p12058_p10), %s680_s27, 4294963200  ;;  %p12059_p8 = scmp.eq.s32.totalorder %s12055_s4, 0 }
 0x20c   : > { %7963 = dma.done.wait (%p12059_p8), [#allocation11], 4096   ;;  %p12060_p9 = pmov %p12059_p8 }
 0x20d   : > { %p12061_p13 = pmov %p12059_p8 }
 0x20e   : > { %7965 = vsyncadd (%p12060_p9), [#allocation11], 4294963200 }
 0x20f   : > { %7967 = dma.done.wait (%p12061_p13), [#allocation14], 2080   ;;  %p12062_p2 = pmov %p12059_p8 }
 0x211   : > { %7969 = vsyncadd (%p12062_p2), [#allocation14], 4294965216  ;;  %p12063_p7 = pmov %p12062_p2 }
 0x212   : > { %p12064_p11 = pmov %p12062_p2 }
 0x213   : > { %7971 = dma.done.wait (%p12063_p7), [#allocation17], 12320  }
 0x214   : > { %7973 = vsyncadd (%p12064_p11), [#allocation17], 4294954976  ;;  %p12065_p5 = pmov %p12062_p2 }
 0x215   : > { %p12066_p3 = pmov %p12062_p2 }
 0x216   : > { %7975 = dma.done.wait (%p12065_p5), [#allocation20], 4192  }
 0x217   : > { %7977 = vsyncadd (%p12066_p3), [#allocation20], 4294963104  ;;  %p12067_p1 = pmov %p12062_p2 }
 0x219   : > { %7979 = dma.done.wait (%p12067_p1), [#allocation23], 64   ;;  %p12068_p0 = pmov %p12067_p1 }
 0x21b   : > { %7981 = vsyncadd (%p12068_p0), [#allocation23], 4294967232  ;;  %p12069_p4 = pmov %p12068_p0 }
 0x21c   : > { %p12070_p6 = pmov %p12068_p0 }
 0x21d   : > { %7983 = dma.done.wait (%p12069_p4), [#allocation26], 32  }
 0x21e   : > { %7985 = vsyncadd (%p12070_p6), [#allocation26], 4294967264  ;;  %s12071_s18 = sld [smem:[#allocation42_spill]]  ;;  %s12072_s14 = sld [smem:[#allocation56_spill]] }
 0x224   : > { %s734_s2 = sand.u32 1, %s12071_s18   ;;  %p12073_p12 = scmp.ne.s32.totalorder %s12072_s14, 0 }
 0x225   : > { %s6088_s17 = sshll.u32 %s734_s2, 8 }
 0x226   : > { %s8742_s25 = scalar_lea.vmem [#allocation27], %s6088_s17 }
 0x227   : > { %7987 = dma.done.wait (%p12073_p12), %s680_s27, 8224  }
 0x228   : > { %7989 = vsyncadd (%p12073_p12), %s680_s27, 4294959072  ;;  %s8748_s28 = sshll.u32 %s734_s2, 1  ;;  %s8751_s21 = scalar_lea.vmem [#allocation29], %s6088_s17 }
 0x229   : > { %s745_s24 = scalar_lea.vmem [#allocation28], %s8748_s28  ;;  %p12074_p10 = pmov %p12068_p0 }
 0x22a   : > { %p12075_p8 = pmov %p12068_p0 }
 0x22b   : > { %7991 = dma.done.wait (%p12074_p10), [#allocation11], 32  }
 0x22c   : > { %7993 = vsyncadd (%p12075_p8), [#allocation11], 4294967264  ;;  %s8757_s16 = scalar_lea.vmem [#allocation31], %s6076_s5  ;;  %s12076_s3 = sld [smem:[#allocation46_spill]] }
 0x232   : > { %p6093_p9 = scmp.ne.s32.totalorder %s12076_s3, 0 }
 0x234   : > { %829 = sbr.rel (%p6093_p9) target bundleno = 2767 (0xacf), region = 152 }
 0x23b   : > { %v8763_v0 = vld [vmem:[%s8711_s11] sm:$0xff]  ;;  %v8766_v1 = vld [vmem:[%s8711_s11 + $0x8] sm:$0xff]  ;;  %v8777_v5 = vld [vmem:[%s8711_s11 + $0x10] sm:$0xff]  ;;  %s9451_s0 = smov 0  }
 0x23c   : > { %12077 = vst [vmem:[#allocation60_spill] sm:$0xff] %v8763_v0  ;;  %12078 = vst [vmem:[#allocation61_spill] sm:$0xff] %v8766_v1  ;;  %v8769_v2 = vld [vmem:[%s8711_s11 + $0x20] sm:$0xff]  ;;  %v864_v3 = vadd.f32 %v8766_v1, %v8763_v0  ;;  %v8774_v4 = vld [vmem:[%s8711_s11 + $0x28] sm:$0xff] }
 0x23d   : > { %12079 = vst [vmem:[#allocation62_spill] sm:$0xff] %v8769_v2  ;;  %12080 = vst [vmem:[#allocation63_spill] sm:$0xff] %v8774_v4  ;;  %v8780_v6 = vld [vmem:[%s8711_s11 + $0x18] sm:$0xff]  ;;  %v870_v7 = vadd.f32 %v8774_v4, %v8769_v2  ;;  %v8785_v8 = vld [vmem:[%s8711_s11 + $0x30] sm:$0xff] }
 0x23e   : > { %12081 = vst [vmem:[#allocation64_spill] sm:$0xff] %v8777_v5  ;;  %12082 = vst [vmem:[#allocation65_spill] sm:$0xff] %v8780_v6  ;;  %v8788_v9 = vld [vmem:[%s8711_s11 + $0x38] sm:$0xff]  ;;  %865 = vadd.xlane.f32.xlu0 %v864_v3  ;;  %v867_v10 = vadd.f32 %v8780_v6, %v8777_v5  ;;  %v8795_v12 = vld [vmem:[%s8711_s11 + $0x40] sm:$0xff] }
 0x23f   : > { %12083 = vst [vmem:[#allocation66_spill] sm:$0xff] %v8785_v8  ;;  %12084 = vst [vmem:[#allocation67_spill] sm:$0xff] %v8788_v9  ;;  %871 = vadd.xlane.f32.xlu1 %v870_v7  ;;  %v873_v11 = vadd.f32 %v8788_v9, %v8785_v8  ;;  %v8798_v13 = vld [vmem:[%s8711_s11 + $0x48] sm:$0xff]  ;;  %v8801_v14 = vld [vmem:[%s8711_s11 + $0x50] sm:$0xff] }
 0x240   : > { %12085 = vst [vmem:[#allocation68_spill] sm:$0xff] %v8795_v12  ;;  %12086 = vst [vmem:[#allocation69_spill] sm:$0xff] %v8798_v13  ;;  %v8804_v15 = vld [vmem:[%s8711_s11 + $0x58] sm:$0xff]  ;;  %v876_v16 = vadd.f32 %v8798_v13, %v8795_v12  ;;  %v8811_v18 = vld [vmem:[%s8711_s11 + $0x60] sm:$0xff] }
 0x241   : > { %12087 = vst [vmem:[#allocation70_spill] sm:$0xff] %v8801_v14  ;;  %12088 = vst [vmem:[#allocation71_spill] sm:$0xff] %v8804_v15  ;;  %v879_v17 = vadd.f32 %v8804_v15, %v8801_v14  ;;  %v8814_v19 = vld [vmem:[%s8711_s11 + $0x68] sm:$0xff]  ;;  %v8817_v20 = vld [vmem:[%s8711_s11 + $0x70] sm:$0xff] }
 0x242   : > { %868 = vadd.xlane.f32.xlu0 %v867_v10  ;;  %12089 = vst [vmem:[#allocation72_spill] sm:$0xff] %v8811_v18  ;;  %12090 = vst [vmem:[#allocation73_spill] sm:$0xff] %v8814_v19  ;;  %v8820_v21 = vld [vmem:[%s8711_s11 + $0x78] sm:$0xff]  ;;  %v8823_v22 = vld [vmem:[%s8711_s11 + $0x80] sm:$0xff]  ;;  %v882_v24 = vadd.f32 %v8814_v19, %v8811_v18 }
 0x243   : > { %874 = vadd.xlane.f32.xlu1 %v873_v11  ;;  %12091 = vst [vmem:[#allocation74_spill] sm:$0xff] %v8817_v20  ;;  %12092 = vst [vmem:[#allocation75_spill] sm:$0xff] %v8820_v21  ;;  %v8826_v23 = vld [vmem:[%s8711_s11 + $0x88] sm:$0xff]  ;;  %v8831_v25 = vld [vmem:[%s8711_s11 + $0x90] sm:$0xff]  ;;  %v885_v27 = vadd.f32 %v8820_v21, %v8817_v20 }
 0x244   : > { %12093 = vst [vmem:[#allocation76_spill] sm:$0xff] %v8823_v22  ;;  %12094 = vst [vmem:[#allocation77_spill] sm:$0xff] %v8826_v23  ;;  %v8834_v26 = vld [vmem:[%s8711_s11 + $0x98] sm:$0xff]  ;;  %v8839_v28 = vld [vmem:[%s8711_s11 + $0xa0] sm:$0xff]  ;;  %v888_v30 = vadd.f32 %v8826_v23, %v8823_v22 }
 0x245   : > { %12095 = vst [vmem:[#allocation78_spill] sm:$0xff] %v8831_v25  ;;  %12096 = vst [vmem:[#allocation79_spill] sm:$0xff] %v8834_v26  ;;  %v8842_v29 = vld [vmem:[%s8711_s11 + $0xa8] sm:$0xff]  ;;  %v8847_v31 = vld [vmem:[%s8711_s11 + $0xb0] sm:$0xff]  ;;  %v891_v33 = vadd.f32 %v8834_v26, %v8831_v25 }
 0x246   : > { %877 = vadd.xlane.f32.xlu0 %v876_v16  ;;  %12097 = vst [vmem:[#allocation80_spill] sm:$0xff] %v8839_v28  ;;  %12098 = vst [vmem:[#allocation81_spill] sm:$0xff] %v8842_v29  ;;  %v8850_v32 = vld [vmem:[%s8711_s11 + $0xb8] sm:$0xff]  ;;  %v8855_v34 = vld [vmem:[%s8711_s11 + $0xc0] sm:$0xff]  ;;  %v894_v36 = vadd.f32 %v8842_v29, %v8839_v28 }
 0x247   : > { %880 = vadd.xlane.f32.xlu1 %v879_v17  ;;  %12099 = vst [vmem:[#allocation82_spill] sm:$0xff] %v8847_v31  ;;  %12100 = vst [vmem:[#allocation83_spill] sm:$0xff] %v8850_v32  ;;  %v8858_v35 = vld [vmem:[%s8711_s11 + $0xc8] sm:$0xff]  ;;  %v8863_v37 = vld [vmem:[%s8711_s11 + $0xd0] sm:$0xff]  ;;  %v897_v39 = vadd.f32 %v8850_v32, %v8847_v31 }
 0x248   : > { %12101 = vst [vmem:[#allocation84_spill] sm:$0xff] %v8855_v34  ;;  %12102 = vst [vmem:[#allocation85_spill] sm:$0xff] %v8858_v35  ;;  %v8866_v38 = vld [vmem:[%s8711_s11 + $0xd8] sm:$0xff]  ;;  %v8871_v40 = vld [vmem:[%s8711_s11 + $0xe0] sm:$0xff]  ;;  %v900_v42 = vadd.f32 %v8858_v35, %v8855_v34 }
 0x249   : > { %12103 = vst [vmem:[#allocation86_spill] sm:$0xff] %v8863_v37  ;;  %12104 = vst [vmem:[#allocation87_spill] sm:$0xff] %v8866_v38  ;;  %v8874_v41 = vld [vmem:[%s8711_s11 + $0xe8] sm:$0xff]  ;;  %v8879_v43 = vld [vmem:[%s8711_s11 + $0xf0] sm:$0xff]  ;;  %v903_v45 = vadd.f32 %v8866_v38, %v8863_v37 }
 0x24a   : > { %883 = vadd.xlane.f32.xlu0 %v882_v24  ;;  %12105 = vst [vmem:[#allocation88_spill] sm:$0xff] %v8871_v40  ;;  %12106 = vst [vmem:[#allocation89_spill] sm:$0xff] %v8874_v41  ;;  %v8882_v44 = vld [vmem:[%s8711_s11 + $0xf8] sm:$0xff]  ;;  %v906_v46 = vadd.f32 %v8874_v41, %v8871_v40  ;;  %v6722_v48 = vld [vmem:[#allocation18 + $0x4] ss:$24 sps:$4 sm:$0xff]  }
 0x24b   : > { %886 = vadd.xlane.f32.xlu1 %v885_v27  ;;  %12107 = vst [vmem:[#allocation90_spill] sm:$0xff] %v8879_v43  ;;  %12108 = vst [vmem:[#allocation91_spill] sm:$0xff] %v8882_v44  ;;  %v909_v47 = vadd.f32 %v8882_v44, %v8879_v43  ;;  %v6724_v49 = vld [vmem:[#allocation18 + $0xc] ss:$24 sps:$4 sm:$0xff]   ;;  %v6726_v50 = vld [vmem:[#allocation18] ss:$24 sps:$4 sm:$0xff]   ;;  %1831 = vmatprep.subr.bf16.mxu0 %v6722_v48 }
 0x24c   : > { %v6727_v51 = vld [vmem:[#allocation18 + $0x8] ss:$24 sps:$4 sm:$0xff]   ;;  %v6728_v52 = vld [vmem:[#allocation18 + $0x34] ss:$24 sps:$4 sm:$0xff]   ;;  %1944 = vmatprep.subr.bf16.mxu1 %v6724_v49  ;;  %1832 = vmatpush1.bf16.msra.mxu0 %v6726_v50  ;;  %v6733_v55 = vld [vmem:[#allocation18 + $0x38] ss:$24 sps:$4 sm:$0xff]  }
 0x24d   : > { %v6730_v53 = vld [vmem:[#allocation18 + $0x3c] ss:$24 sps:$4 sm:$0xff]   ;;  %1945 = vmatpush1.bf16.msra.mxu1 %v6727_v51  ;;  %v6732_v54 = vld [vmem:[#allocation18 + $0x30] ss:$24 sps:$4 sm:$0xff]   ;;  %1833 = vmatprep.subr.bf16.mxu0 %v6728_v52  ;;  %v6736_v57 = vld [vmem:[#allocation18 + $0x6c] ss:$24 sps:$4 sm:$0xff]  }
 0x24e   : > { %889 = vadd.xlane.f32.xlu0 %v888_v30  ;;  %1946 = vmatprep.subr.bf16.mxu1 %v6730_v53  ;;  %v6734_v56 = vld [vmem:[#allocation18 + $0x64] ss:$24 sps:$4 sm:$0xff]   ;;  %v6738_v58 = vld [vmem:[#allocation18 + $0x60] ss:$24 sps:$4 sm:$0xff]   ;;  %v6740_v60 = vld [vmem:[#allocation18 + $0x94] ss:$24 sps:$4 sm:$0xff]  }
 0x24f   : > { %892 = vadd.xlane.f32.xlu1 %v891_v33  ;;  %v6739_v59 = vld [vmem:[#allocation18 + $0x68] ss:$24 sps:$4 sm:$0xff]   ;;  %v6742_v61 = vld [vmem:[#allocation18 + $0x9c] ss:$24 sps:$4 sm:$0xff]   ;;  %v6745_v63 = vld [vmem:[#allocation18 + $0x98] ss:$24 sps:$4 sm:$0xff]  }
 0x250   : > { %1834 = vmatpush1.bf16.msra.mxu0 %v6732_v54  ;;  %v6744_v62 = vld [vmem:[#allocation18 + $0x90] ss:$24 sps:$4 sm:$0xff]   ;;  %v6746_v3 = vld [vmem:[#allocation18 + $0xc4] ss:$24 sps:$4 sm:$0xff]   ;;  %v6750_v10 = vld [vmem:[#allocation18 + $0xc0] ss:$24 sps:$4 sm:$0xff]  }
 0x251   : > { %1947 = vmatpush1.bf16.msra.mxu1 %v6733_v55  ;;  %1835 = vmatprep.subr.bf16.mxu0 %v6734_v56  ;;  %v6748_v7 = vld [vmem:[#allocation18 + $0xcc] ss:$24 sps:$4 sm:$0xff]   ;;  %v6751_v11 = vld [vmem:[#allocation18 + $0xc8] ss:$24 sps:$4 sm:$0xff]   ;;  %v6754_v17 = vld [vmem:[#allocation18 + $0xfc] ss:$24 sps:$4 sm:$0xff]  }
 0x252   : > { %895 = vadd.xlane.f32.xlu0 %v894_v36  ;;  %1948 = vmatprep.subr.bf16.mxu1 %v6736_v57  ;;  %v6752_v16 = vld [vmem:[#allocation18 + $0xf4] ss:$24 sps:$4 sm:$0xff]   ;;  %v6756_v24 = vld [vmem:[#allocation18 + $0xf0] ss:$24 sps:$4 sm:$0xff]   ;;  %v6758_v30 = vld [vmem:[#allocation18 + $0x124] ss:$24 sps:$4 sm:$0xff]  }
 0x253   : > { %898 = vadd.xlane.f32.xlu1 %v897_v39  ;;  %v6757_v27 = vld [vmem:[#allocation18 + $0xf8] ss:$24 sps:$4 sm:$0xff]   ;;  %v6760_v33 = vld [vmem:[#allocation18 + $0x12c] ss:$24 sps:$4 sm:$0xff]   ;;  %v6763_v39 = vld [vmem:[#allocation18 + $0x128] ss:$24 sps:$4 sm:$0xff]  }
 0x254   : > { %1836 = vmatpush1.bf16.msra.mxu0 %v6738_v58  ;;  %v6762_v36 = vld [vmem:[#allocation18 + $0x120] ss:$24 sps:$4 sm:$0xff]   ;;  %v6770_v48 = vld [vmem:[#allocation18 + $0x184] ss:$24 sps:$4 sm:$0xff]   ;;  %v6776_v52 = vld [vmem:[#allocation18 + $0x1b4] ss:$24 sps:$4 sm:$0xff]  }
 0x255   : > { %1949 = vmatpush1.bf16.msra.mxu1 %v6739_v59  ;;  %1837 = vmatprep.subr.bf16.mxu0 %v6740_v60  ;;  %v6772_v49 = vld [vmem:[#allocation18 + $0x18c] ss:$24 sps:$4 sm:$0xff]   ;;  %v6774_v50 = vld [vmem:[#allocation18 + $0x180] ss:$24 sps:$4 sm:$0xff]   ;;  %v6778_v53 = vld [vmem:[#allocation18 + $0x1bc] ss:$24 sps:$4 sm:$0xff]  }
 0x256   : > { %901 = vadd.xlane.f32.xlu0 %v900_v42  ;;  %1950 = vmatprep.subr.bf16.mxu1 %v6742_v61  ;;  %v6764_v42 = vld [vmem:[#allocation18 + $0x154] ss:$24 sps:$4 sm:$0xff]   ;;  %v6775_v51 = vld [vmem:[#allocation18 + $0x188] ss:$24 sps:$4 sm:$0xff]  }
 0x257   : > { %904 = vadd.xlane.f32.xlu1 %v903_v45  ;;  %v6766_v45 = vld [vmem:[#allocation18 + $0x15c] ss:$24 sps:$4 sm:$0xff]  }
 0x258   : > { %1838 = vmatpush1.bf16.msra.mxu0 %v6744_v62 }
 0x259   : > { %1951 = vmatpush1.bf16.msra.mxu1 %v6745_v63  ;;  %1839 = vmatprep.subr.bf16.mxu0 %v6746_v3 }
 0x25a   : > { %907 = vadd.xlane.f32.xlu0 %v906_v46  ;;  %1952 = vmatprep.subr.bf16.mxu1 %v6748_v7  ;;  %v6768_v46 = vld [vmem:[#allocation18 + $0x150] ss:$24 sps:$4 sm:$0xff]  }
 0x25b   : > { %910 = vadd.xlane.f32.xlu1 %v909_v47  ;;  %v6769_v47 = vld [vmem:[#allocation18 + $0x158] ss:$24 sps:$4 sm:$0xff]  }
 0x25c   : > { %1840 = vmatpush1.bf16.msra.mxu0 %v6750_v10 }
 0x25d   : > { %1953 = vmatpush1.bf16.msra.mxu1 %v6751_v11  ;;  %1841 = vmatprep.subr.bf16.mxu0 %v6752_v16 }
 0x25e   : > { %1954 = vmatprep.subr.bf16.mxu1 %v6754_v17 }
 0x260   : > { %1842 = vmatpush1.bf16.msra.mxu0 %v6756_v24 }
 0x261   : > { %1955 = vmatpush1.bf16.msra.mxu1 %v6757_v27  ;;  %1843 = vmatprep.subr.bf16.mxu0 %v6758_v30 }
 0x262   : > { %1956 = vmatprep.subr.bf16.mxu1 %v6760_v33 }
 0x264   : > { %1844 = vmatpush1.bf16.msra.mxu0 %v6762_v36 }
 0x265   : > { %1957 = vmatpush1.bf16.msra.mxu1 %v6763_v39  ;;  %1845 = vmatprep.subr.bf16.mxu0 %v6764_v42 }
 0x266   : > { %1958 = vmatprep.subr.bf16.mxu1 %v6766_v45 }
 0x268   : > { %1846 = vmatpush1.bf16.msra.mxu0 %v6768_v46 }
 0x269   : > { %1959 = vmatpush1.bf16.msra.mxu1 %v6769_v47  ;;  %1847 = vmatprep.subr.bf16.mxu0 %v6770_v48 }
 0x26a   : > { %1960 = vmatprep.subr.bf16.mxu1 %v6772_v49 }
 0x26c   : > { %1848 = vmatpush1.bf16.msra.mxu0 %v6774_v50 }
 0x26d   : > { %1961 = vmatpush1.bf16.msra.mxu1 %v6775_v51  ;;  %1849 = vmatprep.subr.bf16.mxu0 %v6776_v52 }
 0x26e   : > { %1962 = vmatprep.subr.bf16.mxu1 %v6778_v53 }
 0x2cb   : > { %v866_v54 = vpop.xlane.xlu0 %865 }
 0x2cc   : > { %v913_v55 = vmul.f32 0.00390625, %v866_v54  ;;  %v872_v56 = vpop.xlane.xlu1 %871 }
 0x2cd   : > { %v915_v57 = vmul.f32 0.00390625, %v872_v56 }
 0x2ce   : > { %v8891_v58 = vsub.f32 %v8763_v0, %v913_v55  ;;  %v8894_v59 = vsub.f32 %v8766_v1, %v913_v55 }
 0x2cf   : > { %v8897_v60 = vsub.f32 %v8769_v2, %v915_v57  ;;  %v8900_v61 = vsub.f32 %v8774_v4, %v915_v57  ;;  %v869_v62 = vpop.xlane.xlu0 %868 }
 0x2d0   : > { %v914_v63 = vmul.f32 0.00390625, %v869_v62  ;;  %v875_v3 = vpop.xlane.xlu1 %874  ;;  %v961_v7 = vmul.f32 %v8891_v58, %v8891_v58  ;;  %v962_v10 = vmul.f32 %v8894_v59, %v8894_v59 }
 0x2d1   : > { %v916_v11 = vmul.f32 0.00390625, %v875_v3  ;;  %v965_v16 = vmul.f32 %v8897_v60, %v8897_v60  ;;  %v966_v17 = vmul.f32 %v8900_v61, %v8900_v61 }
 0x2d2   : > { %v8911_v24 = vsub.f32 %v8777_v5, %v914_v63  ;;  %v8914_v27 = vsub.f32 %v8780_v6, %v914_v63  ;;  %v993_v30 = vadd.f32 %v962_v10, %v961_v7 }
 0x2d3   : > { %v8917_v33 = vsub.f32 %v8785_v8, %v916_v11  ;;  %v8920_v36 = vsub.f32 %v8788_v9, %v916_v11  ;;  %v878_v39 = vpop.xlane.xlu0 %877  ;;  %v999_v46 = vadd.f32 %v966_v17, %v965_v16 }
 0x2d4   : > { %v917_v42 = vmul.f32 0.00390625, %v878_v39  ;;  %994 = vadd.xlane.f32.xlu0 %v993_v30  ;;  %v881_v45 = vpop.xlane.xlu1 %880  ;;  %v963_v47 = vmul.f32 %v8911_v24, %v8911_v24  ;;  %v964_v48 = vmul.f32 %v8914_v27, %v8914_v27 }
 0x2d5   : > { %v918_v49 = vmul.f32 0.00390625, %v881_v45  ;;  %v967_v50 = vmul.f32 %v8917_v33, %v8917_v33  ;;  %v968_v51 = vmul.f32 %v8920_v36, %v8920_v36 }
 0x2d6   : > { %v8931_v52 = vsub.f32 %v8795_v12, %v917_v42  ;;  %v8934_v53 = vsub.f32 %v8798_v13, %v917_v42  ;;  %v996_v54 = vadd.f32 %v964_v48, %v963_v47 }
 0x2d7   : > { %v8937_v55 = vsub.f32 %v8801_v14, %v918_v49  ;;  %v8940_v56 = vsub.f32 %v8804_v15, %v918_v49  ;;  %v884_v57 = vpop.xlane.xlu0 %883  ;;  %v1002_v3 = vadd.f32 %v968_v51, %v967_v50 }
 0x2d8   : > { %v919_v62 = vmul.f32 0.00390625, %v884_v57  ;;  %1000 = vadd.xlane.f32.xlu0 %v999_v46  ;;  %997 = vadd.xlane.f32.xlu1 %v996_v54  ;;  %v887_v63 = vpop.xlane.xlu1 %886  ;;  %v969_v7 = vmul.f32 %v8931_v52, %v8931_v52  ;;  %v970_v10 = vmul.f32 %v8934_v53, %v8934_v53 }
 0x2d9   : > { %v920_v11 = vmul.f32 0.00390625, %v887_v63  ;;  %v971_v16 = vmul.f32 %v8937_v55, %v8937_v55  ;;  %v972_v17 = vmul.f32 %v8940_v56, %v8940_v56 }
 0x2da   : > { %v8951_v30 = vsub.f32 %v8811_v18, %v919_v62  ;;  %v8954_v39 = vsub.f32 %v8814_v19, %v919_v62  ;;  %v1005_v42 = vadd.f32 %v970_v10, %v969_v7  ;;  %v6781_v19 = vld [vmem:[#allocation18 + $0x1b8] ss:$24 sps:$4 sm:$0xff]  }
 0x2db   : > { %v8957_v45 = vsub.f32 %v8817_v20, %v920_v11  ;;  %v8960_v46 = vsub.f32 %v8820_v21, %v920_v11  ;;  %v890_v47 = vpop.xlane.xlu0 %889  ;;  %v1008_v50 = vadd.f32 %v972_v17, %v971_v16  ;;  %1963 = vmatpush1.bf16.msra.mxu1 %v6781_v19 }
 0x2dc   : > { %v921_v48 = vmul.f32 0.00390625, %v890_v47  ;;  %1003 = vadd.xlane.f32.xlu1 %v1002_v3  ;;  %1006 = vadd.xlane.f32.xlu0 %v1005_v42  ;;  %v893_v49 = vpop.xlane.xlu1 %892  ;;  %v973_v51 = vmul.f32 %v8951_v30, %v8951_v30  ;;  %v974_v54 = vmul.f32 %v8954_v39, %v8954_v39 }
 0x2dd   : > { %v922_v57 = vmul.f32 0.00390625, %v893_v49  ;;  %v975_v62 = vmul.f32 %v8957_v45, %v8957_v45  ;;  %v976_v63 = vmul.f32 %v8960_v46, %v8960_v46 }
 0x2de   : > { %v8971_v7 = vsub.f32 %v8823_v22, %v921_v48  ;;  %v8974_v3 = vsub.f32 %v8826_v23, %v921_v48  ;;  %v1011_v10 = vadd.f32 %v974_v54, %v973_v51 }
 0x2df   : > { %v8977_v11 = vsub.f32 %v8831_v25, %v922_v57  ;;  %v8980_v16 = vsub.f32 %v8834_v26, %v922_v57  ;;  %v896_v17 = vpop.xlane.xlu0 %895  ;;  %v1014_v49 = vadd.f32 %v976_v63, %v975_v62  ;;  %v6780_v57 = vld [vmem:[#allocation18 + $0x1b0] ss:$24 sps:$4 sm:$0xff]  }
 0x2e0   : > { %v923_v42 = vmul.f32 0.00390625, %v896_v17  ;;  %1009 = vadd.xlane.f32.xlu1 %v1008_v50  ;;  %1012 = vadd.xlane.f32.xlu0 %v1011_v10  ;;  %v899_v47 = vpop.xlane.xlu1 %898  ;;  %v977_v21 = vmul.f32 %v8971_v7, %v8971_v7  ;;  %v978_v48 = vmul.f32 %v8974_v3, %v8974_v3 }
 0x2e1   : > { %v924_v20 = vmul.f32 0.00390625, %v899_v47  ;;  %v979_v51 = vmul.f32 %v8977_v11, %v8977_v11  ;;  %v980_v54 = vmul.f32 %v8980_v16, %v8980_v16  ;;  %1850 = vmatpush1.bf16.msra.mxu0 %v6780_v57  ;;  %v6786_v57 = vld [vmem:[#allocation18 + $0x1e0] ss:$24 sps:$4 sm:$0xff]  }
 0x2e2   : > { %v8991_v50 = vsub.f32 %v8839_v28, %v923_v42  ;;  %v8994_v62 = vsub.f32 %v8842_v29, %v923_v42  ;;  %v1017_v63 = vadd.f32 %v978_v48, %v977_v21  ;;  %v6782_v42 = vld [vmem:[#allocation18 + $0x1e4] ss:$24 sps:$4 sm:$0xff]  }
 0x2e3   : > { %v8997_v10 = vsub.f32 %v8847_v31, %v924_v20  ;;  %v9000_v17 = vsub.f32 %v8850_v32, %v924_v20  ;;  %v902_v47 = vpop.xlane.xlu0 %901  ;;  %v1020_v14 = vadd.f32 %v980_v54, %v979_v51  ;;  %v6784_v48 = vld [vmem:[#allocation18 + $0x1ec] ss:$24 sps:$4 sm:$0xff]   ;;  %1851 = vmatprep.subr.bf16.mxu0 %v6782_v42 }
 0x2e4   : > { %v925_v18 = vmul.f32 0.00390625, %v902_v47  ;;  %1015 = vadd.xlane.f32.xlu1 %v1014_v49  ;;  %1018 = vadd.xlane.f32.xlu0 %v1017_v63  ;;  %v905_v15 = vpop.xlane.xlu1 %904  ;;  %v981_v13 = vmul.f32 %v8991_v50, %v8991_v50  ;;  %v982_v21 = vmul.f32 %v8994_v62, %v8994_v62  ;;  %v6787_v63 = vld [vmem:[#allocation18 + $0x1e8] ss:$24 sps:$4 sm:$0xff]  }
 0x2e5   : > { %v926_v12 = vmul.f32 0.00390625, %v905_v15  ;;  %v983_v20 = vmul.f32 %v8997_v10, %v8997_v10  ;;  %v984_v19 = vmul.f32 %v9000_v17, %v9000_v17  ;;  %1964 = vmatprep.subr.bf16.mxu1 %v6784_v48  ;;  %1852 = vmatpush1.bf16.msra.mxu0 %v6786_v57 }
 0x2e6   : > { %v9011_v49 = vsub.f32 %v8855_v34, %v925_v18  ;;  %v9014_v51 = vsub.f32 %v8858_v35, %v925_v18  ;;  %v1023_v54 = vadd.f32 %v982_v21, %v981_v13  ;;  %1965 = vmatpush1.bf16.msra.mxu1 %v6787_v63 }
 0x2e7   : > { %v9017_v47 = vsub.f32 %v8863_v37, %v926_v12  ;;  %v9020_v15 = vsub.f32 %v8866_v38, %v926_v12  ;;  %v908_v32 = vpop.xlane.xlu0 %907  ;;  %v1026_v31 = vadd.f32 %v984_v19, %v983_v20  ;;  %v6793_v38 = vld [vmem:[#allocation18 + $0x218] ss:$24 sps:$4 sm:$0xff]  }
 0x2e8   : > { %v927_v9 = vmul.f32 0.00390625, %v908_v32  ;;  %1021 = vadd.xlane.f32.xlu1 %v1020_v14  ;;  %1024 = vadd.xlane.f32.xlu0 %v1023_v54  ;;  %v911_v34 = vpop.xlane.xlu1 %910  ;;  %v985_v18 = vmul.f32 %v9011_v49, %v9011_v49  ;;  %v986_v13 = vmul.f32 %v9014_v51, %v9014_v51  ;;  %v6788_v32 = vld [vmem:[#allocation18 + $0x214] ss:$24 sps:$4 sm:$0xff]   ;;  %v6792_v54 = vld [vmem:[#allocation18 + $0x210] ss:$24 sps:$4 sm:$0xff]  }
 0x2e9   : > { %v928_v21 = vmul.f32 0.00390625, %v911_v34  ;;  %v987_v42 = vmul.f32 %v9017_v47, %v9017_v47  ;;  %v988_v12 = vmul.f32 %v9020_v15, %v9020_v15  ;;  %v6790_v14 = vld [vmem:[#allocation18 + $0x21c] ss:$24 sps:$4 sm:$0xff]   ;;  %1853 = vmatprep.subr.bf16.mxu0 %v6788_v32  ;;  %v6796_v32 = vld [vmem:[#allocation18 + $0x24c] ss:$24 sps:$4 sm:$0xff]  }
 0x2ea   : > { %v9031_v48 = vsub.f32 %v8871_v40, %v927_v9  ;;  %v9034_v20 = vsub.f32 %v8874_v41, %v927_v9  ;;  %v1029_v19 = vadd.f32 %v986_v13, %v985_v18  ;;  %1966 = vmatprep.subr.bf16.mxu1 %v6790_v14  ;;  %1854 = vmatpush1.bf16.msra.mxu0 %v6792_v54  ;;  %v6805_v41 = vld [vmem:[#allocation18 + $0x278] ss:$24 sps:$4 sm:$0xff]   ;;  %v6808_v54 = vld [vmem:[#allocation18 + $0x2ac] ss:$24 sps:$4 sm:$0xff]  }
 0x2eb   : > { %v9037_v34 = vsub.f32 %v8879_v43, %v928_v21  ;;  %v9040_v37 = vsub.f32 %v8882_v44, %v928_v21  ;;  %v1032_v57 = vadd.f32 %v988_v12, %v987_v42  ;;  %1967 = vmatpush1.bf16.msra.mxu1 %v6793_v38  ;;  %v6794_v21 = vld [vmem:[#allocation18 + $0x244] ss:$24 sps:$4 sm:$0xff]   ;;  %v6800_v12 = vld [vmem:[#allocation18 + $0x274] ss:$24 sps:$4 sm:$0xff]   ;;  %v6804_v43 = vld [vmem:[#allocation18 + $0x270] ss:$24 sps:$4 sm:$0xff]  }
 0x2ec   : > { %1027 = vadd.xlane.f32.xlu1 %v1026_v31  ;;  %1030 = vadd.xlane.f32.xlu0 %v1029_v19  ;;  %v989_v63 = vmul.f32 %v9031_v48, %v9031_v48  ;;  %v990_v9 = vmul.f32 %v9034_v20, %v9034_v20  ;;  %v6798_v31 = vld [vmem:[#allocation18 + $0x240] ss:$24 sps:$4 sm:$0xff]   ;;  %v6802_v44 = vld [vmem:[#allocation18 + $0x27c] ss:$24 sps:$4 sm:$0xff]  }
 0x2ed   : > { %v991_v18 = vmul.f32 %v9037_v34, %v9037_v34  ;;  %v992_v13 = vmul.f32 %v9040_v37, %v9040_v37  ;;  %v6799_v19 = vld [vmem:[#allocation18 + $0x248] ss:$24 sps:$4 sm:$0xff]   ;;  %1855 = vmatprep.subr.bf16.mxu0 %v6794_v21  ;;  %1968 = vmatprep.subr.bf16.mxu1 %v6796_v32  ;;  %v6806_v38 = vld [vmem:[#allocation18 + $0x2a4] ss:$24 sps:$4 sm:$0xff]   ;;  %v6817_v21 = vld [vmem:[#allocation18 + $0x2d8] ss:$24 sps:$4 sm:$0xff]  }
 0x2ee   : > { %v1035_v14 = vadd.f32 %v990_v9, %v989_v63  ;;  %1856 = vmatpush1.bf16.msra.mxu0 %v6798_v31  ;;  %v6810_v63 = vld [vmem:[#allocation18 + $0x2a0] ss:$24 sps:$4 sm:$0xff]   ;;  %v8068_v32 = vmov -1e+30  }
 0x2ef   : > { %v1038_v42 = vadd.f32 %v992_v13, %v991_v18  ;;  %1969 = vmatpush1.bf16.msra.mxu1 %v6799_v19  ;;  %1857 = vmatprep.subr.bf16.mxu0 %v6800_v12  ;;  %v6811_v9 = vld [vmem:[#allocation18 + $0x2a8] ss:$24 sps:$4 sm:$0xff]   ;;  %v6814_v18 = vld [vmem:[#allocation18 + $0x2dc] ss:$24 sps:$4 sm:$0xff]  }
 0x2f0   : > { %1033 = vadd.xlane.f32.xlu1 %v1032_v57  ;;  %1036 = vadd.xlane.f32.xlu0 %v1035_v14  ;;  %v6812_v57 = vld [vmem:[#allocation18 + $0x2d4] ss:$24 sps:$4 sm:$0xff]   ;;  %v6816_v13 = vld [vmem:[#allocation18 + $0x2d0] ss:$24 sps:$4 sm:$0xff]  }
 0x2f1   : > { %1970 = vmatprep.subr.bf16.mxu1 %v6802_v44  ;;  %v6820_v44 = vld [vmem:[#allocation18 + $0x14] ss:$24 sps:$4 sm:$0xff]  }
 0x2f2   : > { %1858 = vmatpush1.bf16.msra.mxu0 %v6804_v43 }
 0x2f3   : > { %1971 = vmatpush1.bf16.msra.mxu1 %v6805_v41  ;;  %1859 = vmatprep.subr.bf16.mxu0 %v6806_v38  ;;  %v1122_v41 = vlaneseq }
 0x2f4   : > { %1039 = vadd.xlane.f32.xlu1 %v1038_v42  ;;  %1972 = vmatprep.subr.bf16.mxu1 %v6808_v54 }
 0x2f5   : > { %v2315_v43 = vand.u32 127, %v1122_v41 }
 0x2f6   : > { %1860 = vmatpush1.bf16.msra.mxu0 %v6810_v63 }
 0x2f7   : > { %1973 = vmatpush1.bf16.msra.mxu1 %v6811_v9  ;;  %1861 = vmatprep.subr.bf16.mxu0 %v6812_v57  ;;  %vm2316_vm0 = vcmp.lt.s32.totalorder %v2315_v43, 17  ;;  %v9052_v9 = vshrl.u32 %v1122_v41, 7 }
 0x2f8   : > { %1974 = vmatprep.subr.bf16.mxu1 %v6814_v18  ;;  %v9050_v14 = vsel %vm2316_vm0, 0.0, %v8068_v32 }
 0x2f9   : > { %12109 = vst [vmem:[#allocation92_spill] sm:$0xff] %v9050_v14  ;;  %v9055_v32 = vsub.s32 1, %v9052_v9 }
 0x2fa   : > { %1862 = vmatpush1.bf16.msra.mxu0 %v6816_v13 }
 0x2fb   : > { %1975 = vmatpush1.bf16.msra.mxu1 %v6817_v21  ;;  %2057 = vmatprep.subr.bf16.mxu0 %v6820_v44  ;;  %12110 = vst [vmem:[#allocation93_spill] sm:$0xff] %v9055_v32 }
 0x2fc   : > { %6401 = vmatprep.subr.bf16.mxu1 %v6820_v44 }
 0x361   : > { %v995_v31 = vpop.xlane.xlu0 %994 }
 0x362   : > { %v1041_v19 = vmul.f32 0.00390625, %v995_v31  ;;  %v9058_v31 = vsub.s32 0, %v9052_v9 }
 0x364   : > { %v1057_v42 = vadd.f32 1e-05, %v1041_v19  ;;  %12111 = vst [vmem:[#allocation94_spill] sm:$0xff] %v9058_v31 }
 0x365   : > { %v998_v12 = vpop.xlane.xlu1 %997  ;;  %v1001_v38 = vpop.xlane.xlu0 %1000 }
 0x366   : > { %6866 = vrsqrt.f32 %v1057_v42  ;;  %v1042_v54 = vmul.f32 0.00390625, %v998_v12  ;;  %v1043_v63 = vmul.f32 0.00390625, %v1001_v38  ;;  %v862_v12 = vld [vmem:[#allocation15] sm:$0x3] }
 0x367   : > { %v9061_v40 = vrot.slane %v862_v12, %v9055_v32 }
 0x368   : > { %v1058_v57 = vadd.f32 1e-05, %v1042_v54  ;;  %v1059_v18 = vadd.f32 1e-05, %v1043_v63 }
 0x369   : > { %v1004_v13 = vpop.xlane.xlu1 %1003  ;;  %v1007_v21 = vpop.xlane.xlu0 %1006 }
 0x36a   : > { %6868 = vrsqrt.f32 %v1058_v57  ;;  %v1044_v44 = vmul.f32 0.00390625, %v1004_v13  ;;  %v1045_v43 = vmul.f32 0.00390625, %v1007_v21  ;;  %v863_v13 = vld [vmem:[#allocation16] sm:$0x3]  ;;  %v9064_v21 = vrot.slane %v862_v12, %v9058_v31 }
 0x36b   : > { %6870 = vrsqrt.f32 %v1059_v18  ;;  %v9070_v29 = vrot.slane %v863_v13, %v9055_v32  ;;  %v9074_v12 = vrot.slane %v863_v13, %v9058_v31 }
 0x36c   : > { %v1060_v19 = vadd.f32 1e-05, %v1044_v44  ;;  %v1061_v42 = vadd.f32 1e-05, %v1045_v43 }
 0x36d   : > { %v1010_v38 = vpop.xlane.xlu1 %1009  ;;  %v1013_v41 = vpop.xlane.xlu0 %1012 }
 0x36e   : > { %6872 = vrsqrt.f32 %v1060_v19  ;;  %v1046_v54 = vmul.f32 0.00390625, %v1010_v38  ;;  %v1047_v63 = vmul.f32 0.00390625, %v1013_v41 }
 0x36f   : > { %6874 = vrsqrt.f32 %v1061_v42 }
 0x370   : > { %v6867_v57 = vpop.eup %6866  ;;  %v1062_v18 = vadd.f32 1e-05, %v1046_v54  ;;  %v1063_v19 = vadd.f32 1e-05, %v1047_v63 }
 0x371   : > { %v1016_v35 = vpop.xlane.xlu1 %1015  ;;  %v1090_v44 = vmul.f32 %v6867_v57, %v8894_v59  ;;  %v1089_v43 = vmul.f32 %v6867_v57, %v8891_v58  ;;  %v1019_v38 = vpop.xlane.xlu0 %1018 }
 0x372   : > { %6876 = vrsqrt.f32 %v1062_v18  ;;  %v1048_v8 = vmul.f32 0.00390625, %v1016_v35  ;;  %v1049_v63 = vmul.f32 0.00390625, %v1019_v38 }
 0x373   : > { %v1133_v41 = vmul.f32 %v9061_v40, %v1090_v44  ;;  %v1132_v4 = vmul.f32 %v9064_v21, %v1089_v43 }
 0x374   : > { %v6869_v42 = vpop.eup %6868  ;;  %v1064_v54 = vadd.f32 1e-05, %v1048_v8 }
 0x375   : > { %v6871_v28 = vpop.eup %6870  ;;  %v1022_v59 = vpop.xlane.xlu1 %1021  ;;  %v1092_v58 = vmul.f32 %v6869_v42, %v8914_v27  ;;  %v1091_v35 = vmul.f32 %v6869_v42, %v8911_v24  ;;  %v1176_v8 = vadd.f32 %v9070_v29, %v1133_v41  ;;  %v1175_v26 = vadd.f32 %v9074_v12, %v1132_v4 }
 0x376   : > { %6878 = vrsqrt.f32 %v1064_v54  ;;  %v1050_v57 = vmul.f32 0.00390625, %v1022_v59  ;;  %v1094_v18 = vmul.f32 %v6871_v28, %v8900_v61  ;;  %v1093_v24 = vmul.f32 %v6871_v28, %v8897_v60  ;;  %v1025_v28 = vpop.xlane.xlu0 %1024 }
 0x377   : > { %6880 = vrsqrt.f32 %v1063_v19  ;;  %v1135_v44 = vmul.f32 %v9061_v40, %v1092_v58  ;;  %v1134_v43 = vmul.f32 %v9064_v21, %v1091_v35  ;;  %v1065_v41 = vadd.f32 1e-05, %v1049_v63  ;;  %v6818_v58 = vld [vmem:[#allocation18 + $0x10] ss:$24 sps:$4 sm:$0xff]  }
 0x378   : > { %v6873_v13 = vpop.eup %6872  ;;  %v1066_v2 = vadd.f32 1e-05, %v1050_v57  ;;  %v1137_v27 = vmul.f32 %v9061_v40, %v1094_v18 }
 0x379   : > { %v1178_v38 = vadd.f32 %v9070_v29, %v1135_v44  ;;  %v1177_v42 = vadd.f32 %v9074_v12, %v1134_v43  ;;  %v1096_v61 = vmul.f32 %v6873_v13, %v8920_v36  ;;  %v1095_v19 = vmul.f32 %v6873_v13, %v8917_v33  ;;  %v6875_v54 = vpop.eup %6874  ;;  %v1028_v59 = vpop.xlane.xlu1 %1027  ;;  %v6823_v44 = vld [vmem:[#allocation18 + $0x44] ss:$24 sps:$4 sm:$0xff]  }
 0x37a   : > { %6882 = vrsqrt.f32 %v1066_v2  ;;  %v1180_v60 = vadd.f32 %v9070_v29, %v1137_v27  ;;  %v1136_v36 = vmul.f32 %v9064_v21, %v1093_v24  ;;  %v1052_v43 = vmul.f32 0.00390625, %v1028_v59  ;;  %v6821_v27 = vld [vmem:[#allocation18 + $0x40] ss:$24 sps:$4 sm:$0xff]  }
 0x37b   : > { %v9089_v35 = vpack.c.bf16 %v1178_v38, %v1176_v8  ;;  %v9091_v57 = vpack.c.bf16 %v1177_v42, %v1175_v26  ;;  %v1139_v4 = vmul.f32 %v9061_v40, %v1096_v61  ;;  %v1138_v33 = vmul.f32 %v9064_v21, %v1095_v19  ;;  %v6826_v42 = vld [vmem:[#allocation18 + $0x74] ss:$24 sps:$4 sm:$0xff]  }
 0x37c   : > { %v6877_v18 = vpop.eup %6876  ;;  %v1098_v63 = vmul.f32 %v6875_v54, %v8934_v53  ;;  %6884 = vrsqrt.f32 %v1065_v41  ;;  %v1051_v2 = vmul.f32 0.00390625, %v1025_v28  ;;  %v1068_v19 = vadd.f32 1e-05, %v1052_v43 }
 0x37d   : > { %1863 = vmatprep.mubr.bf16.mxu0 %v9089_v35  ;;  %1976 = vmatprep.mubr.bf16.mxu1 %v9089_v35  ;;  %v1182_v26 = vadd.f32 %v9070_v29, %v1139_v4  ;;  %v1100_v8 = vmul.f32 %v6877_v18, %v8940_v56  ;;  %v1181_v24 = vadd.f32 %v9074_v12, %v1138_v33  ;;  %v1034_v4 = vpop.xlane.xlu1 %1033  ;;  %v6824_v33 = vld [vmem:[#allocation18 + $0x70] ss:$24 sps:$4 sm:$0xff]  }
 0x37e   : > { %1864 = vmatmul.mubr.bf16.vlgmr.msra.gmra.mrb[0].mxu0 %v9091_v57  ;;  %1977 = vmatmul.mubr.bf16.vlgmr.msra.gmra.mrb[0].mxu1 %v9091_v57  ;;  %v1141_v53 = vmul.f32 %v9061_v40, %v1098_v63  ;;  %v1179_v41 = vadd.f32 %v9074_v12, %v1136_v36  ;;  %v1099_v59 = vmul.f32 %v6877_v18, %v8937_v55  ;;  %6886 = vrsqrt.f32 %v1068_v19 }
 0x37f   : > { %2058 = vmatpush1.bf16.msra.mxu0 %v6818_v58  ;;  %6417 = vmatpush1.bf16.msra.mxu1 %v6818_v58  ;;  %v9104_v13 = vpack.c.bf16 %v1182_v26, %v1180_v60  ;;  %v1143_v56 = vmul.f32 %v9061_v40, %v1100_v8  ;;  %v1031_v58 = vpop.xlane.xlu0 %1030  ;;  %v1097_v60 = vmul.f32 %v6875_v54, %v8931_v52  ;;  %v1054_v8 = vmul.f32 0.00390625, %v1034_v4  ;;  %v6829_v52 = vld [vmem:[#allocation18 + $0xa4] ss:$24 sps:$4 sm:$0xff]  }
 0x380   : > { %v6879_v38 = vpop.eup %6878  ;;  %2059 = vmatprep.subr.bf16.mxu0 %v6823_v44  ;;  %6402 = vmatprep.subr.bf16.mxu1 %v6823_v44  ;;  %v1067_v44 = vadd.f32 1e-05, %v1051_v2  ;;  %v9115_v26 = vpack.c.bf16 %v1181_v24, %v1179_v41  ;;  %v1184_v36 = vadd.f32 %v9070_v29, %v1141_v53  ;;  %v1142_v55 = vmul.f32 %v9064_v21, %v1099_v59  ;;  %v6827_v24 = vld [vmem:[#allocation18 + $0xa0] ss:$24 sps:$4 sm:$0xff]  }
 0x381   : > { %v6881_v61 = vpop.eup %6880  ;;  %1873 = vmatprep.mubr.bf16.mxu0 %v9104_v13  ;;  %1986 = vmatprep.mubr.bf16.mxu1 %v9104_v13  ;;  %v1186_v28 = vadd.f32 %v9070_v29, %v1143_v56  ;;  %v1104_v43 = vmul.f32 %v6879_v38, %v8960_v46  ;;  %v1053_v63 = vmul.f32 0.00390625, %v1031_v58  ;;  %v1140_v46 = vmul.f32 %v9064_v21, %v1097_v60  ;;  %v1040_v58 = vpop.xlane.xlu1 %1039 }
 0x382   : > { %v1102_v18 = vmul.f32 %v6881_v61, %v8954_v39  ;;  %6888 = vrsqrt.f32 %v1067_v44  ;;  %v1185_v53 = vadd.f32 %v9074_v12, %v1142_v55  ;;  %v1103_v19 = vmul.f32 %v6879_v38, %v8957_v45 }
 0x383   : > { %2060 = vmatpush1.bf16.msra.mxu0 %v6821_v27  ;;  %6418 = vmatpush1.bf16.msra.mxu1 %v6821_v27  ;;  %v9123_v2 = vpack.c.bf16 %v1186_v28, %v1184_v36  ;;  %v1147_v27 = vmul.f32 %v9061_v40, %v1104_v43  ;;  %v1069_v41 = vadd.f32 1e-05, %v1053_v63  ;;  %v1070_v59 = vadd.f32 1e-05, %v1054_v8  ;;  %v1037_v36 = vpop.xlane.xlu0 %1036  ;;  %v6835_v63 = vld [vmem:[#allocation18 + $0x104] ss:$24 sps:$4 sm:$0xff]  }
 0x384   : > { %2061 = vmatprep.subr.bf16.mxu0 %v6826_v42  ;;  %6403 = vmatprep.subr.bf16.mxu1 %v6826_v42  ;;  %v6883_v54 = vpop.eup %6882  ;;  %v6832_v42 = vld [vmem:[#allocation18 + $0xd4] ss:$24 sps:$4 sm:$0xff]   ;;  %v1145_v56 = vmul.f32 %v9061_v40, %v1102_v18  ;;  %v1183_v4 = vadd.f32 %v9074_v12, %v1140_v46  ;;  %v1101_v60 = vmul.f32 %v6881_v61, %v8951_v30  ;;  %v1056_v18 = vmul.f32 0.00390625, %v1040_v58 }
 0x385   : > { %v1190_v28 = vadd.f32 %v9070_v29, %v1147_v27  ;;  %v1108_v44 = vmul.f32 %v6883_v54, %v8980_v16  ;;  %v1146_v55 = vmul.f32 %v9064_v21, %v1103_v19  ;;  %6890 = vrsqrt.f32 %v1070_v59  ;;  %v6838_v27 = vld [vmem:[#allocation18 + $0x134] ss:$24 sps:$4 sm:$0xff]  }
 0x386   : > { %1874 = vmatmul.mubr.bf16.gmra.mrb[4].mxu0 %v9115_v26  ;;  %1987 = vmatmul.mubr.bf16.gmra.mrb[4].mxu1 %v9115_v26  ;;  %v6885_v39 = vpop.eup %6884  ;;  %v9137_v45 = vpack.c.bf16 %v1185_v53, %v1183_v4  ;;  %v1188_v38 = vadd.f32 %v9070_v29, %v1145_v56  ;;  %6892 = vrsqrt.f32 %v1069_v41  ;;  %v1055_v8 = vmul.f32 0.00390625, %v1037_v36  ;;  %v6839_v36 = vld [vmem:[#allocation18 + $0x160] ss:$24 sps:$4 sm:$0xff]  }
 0x387   : > { %2062 = vmatpush1.bf16.msra.mxu0 %v6824_v33  ;;  %6419 = vmatpush1.bf16.msra.mxu1 %v6824_v33  ;;  %v6830_v33 = vld [vmem:[#allocation18 + $0xd0] ss:$24 sps:$4 sm:$0xff]   ;;  %v1106_v43 = vmul.f32 %v6885_v39, %v8974_v3  ;;  %v1144_v3 = vmul.f32 %v9064_v21, %v1101_v60  ;;  %v1151_v16 = vmul.f32 %v9061_v40, %v1108_v44  ;;  %v1072_v56 = vadd.f32 1e-05, %v1056_v18 }
 0x388   : > { %1883 = vmatprep.mubr.bf16.mxu0 %v9123_v2  ;;  %1996 = vmatprep.mubr.bf16.mxu1 %v9123_v2  ;;  %v9143_v30 = vpack.c.bf16 %v1190_v28, %v1188_v38  ;;  %v6887_v61 = vpop.eup %6886  ;;  %v1105_v59 = vmul.f32 %v6885_v39, %v8971_v7  ;;  %v1071_v4 = vadd.f32 1e-05, %v1055_v8  ;;  %v6836_v28 = vld [vmem:[#allocation18 + $0x130] ss:$24 sps:$4 sm:$0xff]  }
 0x389   : > { %2063 = vmatprep.subr.bf16.mxu0 %v6829_v52  ;;  %6404 = vmatprep.subr.bf16.mxu1 %v6829_v52  ;;  %v6833_v52 = vld [vmem:[#allocation18 + $0x100] ss:$24 sps:$4 sm:$0xff]   ;;  %v1149_v46 = vmul.f32 %v9061_v40, %v1106_v43  ;;  %v1187_v19 = vadd.f32 %v9074_v12, %v1144_v3  ;;  %v1194_v41 = vadd.f32 %v9070_v29, %v1151_v16  ;;  %6894 = vrsqrt.f32 %v1072_v56 }
 0x38a   : > { %v1112_v58 = vmul.f32 %v6887_v61, %v9000_v17  ;;  %v1148_v17 = vmul.f32 %v9064_v21, %v1105_v59  ;;  %6896 = vrsqrt.f32 %v1071_v4  ;;  %v6845_v56 = vld [vmem:[#allocation18 + $0x1c0] ss:$24 sps:$4 sm:$0xff]  }
 0x38b   : > { %2064 = vmatpush1.bf16.msra.mxu0 %v6827_v24  ;;  %6420 = vmatpush1.bf16.msra.mxu1 %v6827_v24  ;;  %v1189_v24 = vadd.f32 %v9074_v12, %v1146_v55  ;;  %v1192_v60 = vadd.f32 %v9070_v29, %v1149_v46  ;;  %v6842_v46 = vld [vmem:[#allocation18 + $0x190] ss:$24 sps:$4 sm:$0xff]  }
 0x38c   : > { %2065 = vmatprep.subr.bf16.mxu0 %v6832_v42  ;;  %6405 = vmatprep.subr.bf16.mxu1 %v6832_v42  ;;  %v1107_v42 = vmul.f32 %v6883_v54, %v8977_v11  ;;  %v6889_v53 = vpop.eup %6888  ;;  %v1155_v39 = vmul.f32 %v9061_v40, %v1112_v58  ;;  %v1191_v3 = vadd.f32 %v9074_v12, %v1148_v17 }
 0x38d   : > { %v9157_v11 = vpack.c.bf16 %v1189_v24, %v1187_v19  ;;  %v1110_v44 = vmul.f32 %v6889_v53, %v8994_v62  ;;  %v9163_v7 = vpack.c.bf16 %v1194_v41, %v1192_v60  ;;  %v6844_v62 = vld [vmem:[#allocation18 + $0x194] ss:$24 sps:$4 sm:$0xff]   ;;  %v1109_v8 = vmul.f32 %v6889_v53, %v8991_v50 }
 0x38e   : > { %1884 = vmatmul.mubr.bf16.gmra.mrb[8].mxu0 %v9137_v45  ;;  %1997 = vmatmul.mubr.bf16.gmra.mrb[8].mxu1 %v9137_v45  ;;  %v1150_v54 = vmul.f32 %v9064_v21, %v1107_v42  ;;  %v1198_v16 = vadd.f32 %v9070_v29, %v1155_v39  ;;  %v6847_v42 = vld [vmem:[#allocation18 + $0x1c4] ss:$24 sps:$4 sm:$0xff]   ;;  %v6850_v41 = vld [vmem:[#allocation18 + $0x1f4] ss:$24 sps:$4 sm:$0xff]  }
 0x38f   : > { %2066 = vmatpush1.bf16.msra.mxu0 %v6830_v33  ;;  %6421 = vmatpush1.bf16.msra.mxu1 %v6830_v33  ;;  %v6841_v33 = vld [vmem:[#allocation18 + $0x164] ss:$24 sps:$4 sm:$0xff]   ;;  %v6891_v43 = vpop.eup %6890  ;;  %v1153_v18 = vmul.f32 %v9061_v40, %v1110_v44 }
 0x390   : > { %1893 = vmatprep.mubr.bf16.mxu0 %v9143_v30  ;;  %2006 = vmatprep.mubr.bf16.mxu1 %v9143_v30  ;;  %v6893_v38 = vpop.eup %6892  ;;  %v1193_v55 = vadd.f32 %v9074_v12, %v1150_v54  ;;  %v1115_v58 = vmul.f32 %v6891_v43, %v9017_v47 }
 0x391   : > { %2067 = vmatprep.subr.bf16.mxu0 %v6835_v63  ;;  %6406 = vmatprep.subr.bf16.mxu1 %v6835_v63  ;;  %v1111_v63 = vmul.f32 %v6887_v61, %v8997_v10  ;;  %v1196_v10 = vadd.f32 %v9070_v29, %v1153_v18  ;;  %v1113_v54 = vmul.f32 %v6893_v38, %v9011_v49 }
 0x392   : > { %v9177_v24 = vpack.c.bf16 %v1193_v55, %v1191_v3  ;;  %v1158_v47 = vmul.f32 %v9064_v21, %v1115_v58  ;;  %v6856_v55 = vld [vmem:[#allocation18 + $0x254] ss:$24 sps:$4 sm:$0xff]  }
 0x393   : > { %2068 = vmatpush1.bf16.msra.mxu0 %v6833_v52  ;;  %6422 = vmatpush1.bf16.msra.mxu1 %v6833_v52  ;;  %v1116_v52 = vmul.f32 %v6891_v43, %v9020_v15  ;;  %v1154_v61 = vmul.f32 %v9064_v21, %v1111_v63  ;;  %v9183_v50 = vpack.c.bf16 %v1198_v16, %v1196_v10  ;;  %v6859_v10 = vld [vmem:[#allocation18 + $0x284] ss:$24 sps:$4 sm:$0xff]   ;;  %v9263_v58 = vld [vmem:[#allocation10 + $0x78] sm:$0xff] }
 0x394   : > { %2069 = vmatprep.subr.bf16.mxu0 %v6838_v27  ;;  %6407 = vmatprep.subr.bf16.mxu1 %v6838_v27  ;;  %v1114_v27 = vmul.f32 %v6893_v38, %v9014_v51  ;;  %v1152_v15 = vmul.f32 %v9064_v21, %v1109_v8  ;;  %v6895_v51 = vpop.eup %6894  ;;  %12121 = vst [vmem:[#allocation104_spill] sm:$0xff] %v9263_v58 }
 0x395   : > { %v1159_v53 = vmul.f32 %v9061_v40, %v1116_v52  ;;  %v1197_v59 = vadd.f32 %v9074_v12, %v1154_v61  ;;  %v6897_v4 = vpop.eup %6896  ;;  %v1120_v44 = vmul.f32 %v6895_v51, %v9040_v37  ;;  %v1156_v37 = vmul.f32 %v9064_v21, %v1113_v54  ;;  %v6854_v52 = vld [vmem:[#allocation18 + $0x250] ss:$24 sps:$4 sm:$0xff]   ;;  %v9271_v54 = vld [vmem:[#allocation12 + $0x18] sm:$0xff] }
 0x396   : > { %1894 = vmatmul.mubr.bf16.gmra.mrb[12].mxu0 %v9157_v11  ;;  %2007 = vmatmul.mubr.bf16.gmra.mrb[12].mxu1 %v9157_v11  ;;  %v1157_v19 = vmul.f32 %v9061_v40, %v1114_v27  ;;  %v1118_v43 = vmul.f32 %v6897_v4, %v9034_v20  ;;  %v1201_v20 = vadd.f32 %v9074_v12, %v1158_v47  ;;  %v9281_v47 = vld [vmem:[#allocation12 + $0x40] sm:$0xff] }
 0x397   : > { %2070 = vmatpush1.bf16.msra.mxu0 %v6836_v28  ;;  %6423 = vmatpush1.bf16.msra.mxu1 %v6836_v28  ;;  %v1195_v28 = vadd.f32 %v9074_v12, %v1152_v15  ;;  %v1202_v60 = vadd.f32 %v9070_v29, %v1159_v53  ;;  %v1163_v38 = vmul.f32 %v9061_v40, %v1120_v44  ;;  %v6860_v53 = vld [vmem:[#allocation18 + $0x2b0] ss:$24 sps:$4 sm:$0xff]   ;;  %v9273_v44 = vld [vmem:[#allocation12 + $0x20] sm:$0xff] }
 0x398   : > { %1903 = vmatprep.mubr.bf16.mxu0 %v9163_v7  ;;  %2016 = vmatprep.mubr.bf16.mxu1 %v9163_v7  ;;  %v1200_v17 = vadd.f32 %v9070_v29, %v1157_v19  ;;  %v1161_v18 = vmul.f32 %v9061_v40, %v1118_v43  ;;  %v1119_v63 = vmul.f32 %v6895_v51, %v9037_v34  ;;  %v9257_v19 = vld [vmem:[#allocation10 + $0x60] sm:$0xff]  ;;  %v9283_v43 = vld [vmem:[#allocation12 + $0x48] sm:$0xff] }
 0x399   : > { %2071 = vmatprep.subr.bf16.mxu0 %v6841_v33  ;;  %6408 = vmatprep.subr.bf16.mxu1 %v6841_v33  ;;  %v6848_v33 = vld [vmem:[#allocation18 + $0x1f0] ss:$24 sps:$4 sm:$0xff]   ;;  %v9197_v39 = vpack.c.bf16 %v1197_v59, %v1195_v28  ;;  %v1199_v3 = vadd.f32 %v9074_v12, %v1156_v37  ;;  %v1206_v16 = vadd.f32 %v9070_v29, %v1163_v38  ;;  %v9289_v37 = vld [vmem:[#allocation12 + $0x60] sm:$0xff] }
 0x39a   : > { %v9203_v49 = vpack.c.bf16 %v1202_v60, %v1200_v17  ;;  %v1117_v8 = vmul.f32 %v6897_v4, %v9031_v48  ;;  %v1204_v27 = vadd.f32 %v9070_v29, %v1161_v18  ;;  %v1162_v40 = vmul.f32 %v9064_v21, %v1119_v63  ;;  %v6862_v48 = vld [vmem:[#allocation18 + $0x2b4] ss:$24 sps:$4 sm:$0xff]   ;;  %12118 = vst [vmem:[#allocation101_spill] sm:$0xff] %v9257_v19  ;;  %v9265_v4 = vld [vmem:[#allocation12] sm:$0xff]  ;;  %v9267_v28 = vld [vmem:[#allocation12 + $0x8] sm:$0xff] }
 0x39b   : > { %2072 = vmatpush1.bf16.msra.mxu0 %v6839_v36  ;;  %6424 = vmatpush1.bf16.msra.mxu1 %v6839_v36  ;;  %v6853_v36 = vld [vmem:[#allocation18 + $0x224] ss:$24 sps:$4 sm:$0xff]   ;;  %v9261_v59 = vld [vmem:[#allocation10 + $0x70] sm:$0xff]  ;;  %12122 = vst [vmem:[#allocation105_spill] sm:$0xff] %v9265_v4  ;;  %12124 = vst [vmem:[#allocation107_spill] sm:$0xff] %v9289_v37 }
 0x39c   : > { %2073 = vmatprep.subr.bf16.mxu0 %v6844_v62  ;;  %6409 = vmatprep.subr.bf16.mxu1 %v6844_v62  ;;  %v6851_v62 = vld [vmem:[#allocation18 + $0x220] ss:$24 sps:$4 sm:$0xff]   ;;  %v1222_v34 = vpack.c.bf16 %v1206_v16, %v1204_v27  ;;  %v1160_v61 = vmul.f32 %v9064_v21, %v1117_v8  ;;  %v1205_v15 = vadd.f32 %v9074_v12, %v1162_v40  ;;  %v9269_v60 = vld [vmem:[#allocation12 + $0x10] sm:$0xff]  ;;  %v9291_v38 = vld [vmem:[#allocation12 + $0x68] sm:$0xff] }
 0x39d   : > { %v6863_v21 = vld [vmem:[#allocation18 + $0x2e0] ss:$24 sps:$4 sm:$0xff]   ;;  %12120 = vst [vmem:[#allocation103_spill] sm:$0xff] %v9261_v59  ;;  %v9277_v17 = vld [vmem:[#allocation12 + $0x30] sm:$0xff]  ;;  %12125 = vst [vmem:[#allocation108_spill] sm:$0xff] %v9291_v38 }
 0x39e   : > { %1904 = vmatmul.mubr.bf16.gmra.mrb[16].mxu0 %v9177_v24  ;;  %2017 = vmatmul.mubr.bf16.gmra.mrb[16].mxu1 %v9177_v24  ;;  %v1203_v29 = vadd.f32 %v9074_v12, %v1160_v61  ;;  %v9233_v12 = vld [vmem:[#allocation10] sm:$0xff]  ;;  %12123 = vst [vmem:[#allocation106_spill] sm:$0xff] %v9277_v17  ;;  %v9299_v18 = vld [vmem:[#allocation13 + $0x8] sm:$0xff]  ;;  %v9301_v63 = vld [vmem:[#allocation13 + $0x10] sm:$0xff] }
 0x39f   : > { %2074 = vmatpush1.bf16.msra.mxu0 %v6842_v46  ;;  %6425 = vmatpush1.bf16.msra.mxu1 %v6842_v46  ;;  %v1219_v46 = vpack.c.bf16 %v1201_v20, %v1199_v3  ;;  %12112 = vst [vmem:[#allocation95_spill] sm:$0xff] %v9233_v12  ;;  %v9297_v20 = vld [vmem:[#allocation13] sm:$0xff]  ;;  %12128 = vst [vmem:[#allocation111_spill] sm:$0xff] %v9299_v18  ;;  %v9303_v3 = vld [vmem:[#allocation13 + $0x18] sm:$0xff] }
 0x3a0   : > { %1913 = vmatprep.mubr.bf16.mxu0 %v9183_v50  ;;  %2026 = vmatprep.mubr.bf16.mxu1 %v9183_v50  ;;  %v1221_v51 = vpack.c.bf16 %v1205_v15, %v1203_v29  ;;  %12129 = vst [vmem:[#allocation112_spill] sm:$0xff] %v9301_v63  ;;  %12130 = vst [vmem:[#allocation113_spill] sm:$0xff] %v9303_v3  ;;  %v9305_v16 = vld [vmem:[#allocation13 + $0x20] sm:$0xff]  ;;  %v9307_v8 = vld [vmem:[#allocation13 + $0x28] sm:$0xff]  ;;  %v1331_v29 = vsub.s32 2, %v9052_v9 }
 0x3a1   : > { %2075 = vmatprep.subr.bf16.mxu0 %v6847_v42  ;;  %6410 = vmatprep.subr.bf16.mxu1 %v6847_v42  ;;  %v6857_v42 = vld [vmem:[#allocation18 + $0x280] ss:$24 sps:$4 sm:$0xff]   ;;  %12131 = vst [vmem:[#allocation114_spill] sm:$0xff] %v9305_v16  ;;  %12132 = vst [vmem:[#allocation115_spill] sm:$0xff] %v9307_v8  ;;  %v9315_v40 = vld [vmem:[#allocation13 + $0x48] sm:$0xff] }
 0x3a2   : > { %v9313_v27 = vld [vmem:[#allocation13 + $0x40] sm:$0xff]  ;;  %v9327_v15 = vld [vmem:[#allocation13 + $0x78] sm:$0xff] }
 0x3a3   : > { %2076 = vmatpush1.bf16.msra.mxu0 %v6845_v56  ;;  %6426 = vmatpush1.bf16.msra.mxu1 %v6845_v56  ;;  %v6865_v56 = vld [vmem:[#allocation18 + $0x2e4] ss:$24 sps:$4 sm:$0xff]   ;;  %12138 = vst [vmem:[#allocation121_spill] sm:$0xff] %v9327_v15 }
 0x3a4   : > { %2077 = vmatprep.subr.bf16.mxu0 %v6850_v41  ;;  %6411 = vmatprep.subr.bf16.mxu1 %v6850_v41  ;;  %v9259_v41 = vld [vmem:[#allocation10 + $0x68] sm:$0xff]  ;;  %v9321_v61 = vld [vmem:[#allocation13 + $0x60] sm:$0xff] }
 0x3a5   : > { %12119 = vst [vmem:[#allocation102_spill] sm:$0xff] %v9259_v41  ;;  %12135 = vst [vmem:[#allocation118_spill] sm:$0xff] %v9321_v61 }
 0x3a6   : > { %1914 = vmatmul.mubr.bf16.gmra.mrb[20].mxu0 %v9197_v39  ;;  %2027 = vmatmul.mubr.bf16.gmra.mrb[20].mxu1 %v9197_v39 }
 0x3a7   : > { %2078 = vmatpush1.bf16.msra.mxu0 %v6848_v33  ;;  %6427 = vmatpush1.bf16.msra.mxu1 %v6848_v33  ;;  %v9275_v33 = vld [vmem:[#allocation12 + $0x28] sm:$0xff] }
 0x3a8   : > { %1923 = vmatprep.mubr.bf16.mxu0 %v9203_v49  ;;  %2036 = vmatprep.mubr.bf16.mxu1 %v9203_v49 }
 0x3a9   : > { %2079 = vmatprep.subr.bf16.mxu0 %v6853_v36  ;;  %6412 = vmatprep.subr.bf16.mxu1 %v6853_v36  ;;  %v9285_v36 = vld [vmem:[#allocation12 + $0x50] sm:$0xff] }
 0x3ab   : > { %2080 = vmatpush1.bf16.msra.mxu0 %v6851_v62  ;;  %6428 = vmatpush1.bf16.msra.mxu1 %v6851_v62  ;;  %v9293_v62 = vld [vmem:[#allocation12 + $0x70] sm:$0xff] }
 0x3ac   : > { %2081 = vmatprep.subr.bf16.mxu0 %v6856_v55  ;;  %6413 = vmatprep.subr.bf16.mxu1 %v6856_v55  ;;  %12126 = vst [vmem:[#allocation109_spill] sm:$0xff] %v9293_v62  ;;  %v9295_v55 = vld [vmem:[#allocation12 + $0x78] sm:$0xff] }
 0x3ad   : > { %12127 = vst [vmem:[#allocation110_spill] sm:$0xff] %v9295_v55 }
 0x3ae   : > { %1924 = vmatmul.mubr.bf16.gmra.mrb[24].mxu0 %v1219_v46  ;;  %2037 = vmatmul.mubr.bf16.gmra.mrb[24].mxu1 %v1219_v46 }
 0x3af   : > { %2082 = vmatpush1.bf16.msra.mxu0 %v6854_v52  ;;  %6429 = vmatpush1.bf16.msra.mxu1 %v6854_v52  ;;  %v9309_v52 = vld [vmem:[#allocation13 + $0x30] sm:$0xff] }
 0x3b0   : > { %1933 = vmatprep.mubr.bf16.mxu0 %v1222_v34  ;;  %2046 = vmatprep.mubr.bf16.mxu1 %v1222_v34 }
 0x3b1   : > { %2083 = vmatprep.subr.bf16.mxu0 %v6859_v10  ;;  %6414 = vmatprep.subr.bf16.mxu1 %v6859_v10  ;;  %v9317_v10 = vld [vmem:[#allocation13 + $0x50] sm:$0xff] }
 0x3b2   : > { %12133 = vst [vmem:[#allocation116_spill] sm:$0xff] %v9317_v10 }
 0x3b3   : > { %2084 = vmatpush1.bf16.msra.mxu0 %v6857_v42  ;;  %6430 = vmatpush1.bf16.msra.mxu1 %v6857_v42  ;;  %v9323_v42 = vld [vmem:[#allocation13 + $0x68] sm:$0xff] }
 0x3b4   : > { %2085 = vmatprep.subr.bf16.mxu0 %v6862_v48  ;;  %6415 = vmatprep.subr.bf16.mxu1 %v6862_v48  ;;  %12136 = vst [vmem:[#allocation119_spill] sm:$0xff] %v9323_v42  ;;  %v9325_v48 = vld [vmem:[#allocation13 + $0x70] sm:$0xff] }
 0x3b5   : > { %12137 = vst [vmem:[#allocation120_spill] sm:$0xff] %v9325_v48 }
 0x3b6   : > { %1934 = vmatmul.mubr.bf16.gmra.mrb[28].mxu0 %v1221_v51  ;;  %2047 = vmatmul.mubr.bf16.gmra.mrb[28].mxu1 %v1221_v51 }
 0x3b7   : > { %2086 = vmatpush1.bf16.msra.mxu0 %v6860_v53  ;;  %6431 = vmatpush1.bf16.msra.mxu1 %v6860_v53  ;;  %v9330_v53 = vld [vmem:[#allocation19] sm:$0x3f] }
 0x3b8   : > { %2089 = vmatprep.mubr.bf16.mxu0 %v9089_v35  ;;  %2129 = vmatprep.mubr.bf16.mxu1 %v9163_v7  ;;  %v9235_v35 = vld [vmem:[#allocation10 + $0x8] sm:$0xff]  ;;  %v9247_v7 = vld [vmem:[#allocation10 + $0x38] sm:$0xff]  ;;  %v9342_v5 = vrot.slane %v9330_v53, %v9055_v32 }
 0x3b9   : > { %2087 = vmatprep.subr.bf16.mxu0 %v6865_v56  ;;  %6416 = vmatprep.subr.bf16.mxu1 %v6865_v56  ;;  %12113 = vst [vmem:[#allocation96_spill] sm:$0xff] %v9235_v35  ;;  %12116 = vst [vmem:[#allocation99_spill] sm:$0xff] %v9247_v7  ;;  %v9335_v56 = vrot.slane %v9330_v53, %v9058_v31 }
 0x3bb   : > { %2088 = vmatpush1.bf16.msra.mxu0 %v6863_v21  ;;  %6432 = vmatpush1.bf16.msra.mxu1 %v6863_v21  ;;  %v9338_v21 = vrot.slane %v9330_v53, %v1331_v29 }
 0x3be   : > { %2090 = vmatmul.mubr.bf16.vlgmr.msra.gmra.mrb[32].mxu0 %v9091_v57  ;;  %2130 = vmatmul.mubr.bf16.vlgmr.msra.gmra.mrb[32].mxu1 %v9177_v24  ;;  %v9237_v57 = vld [vmem:[#allocation10 + $0x10] sm:$0xff] }
 0x3bf   : > { %2099 = vmatprep.mubr.bf16.mxu0 %v9104_v13  ;;  %2139 = vmatprep.mubr.bf16.mxu1 %v9183_v50  ;;  %v9239_v13 = vld [vmem:[#allocation10 + $0x18] sm:$0xff]  ;;  %v9253_v24 = vld [vmem:[#allocation10 + $0x50] sm:$0xff] }
 0x3c0   : > { %12114 = vst [vmem:[#allocation97_spill] sm:$0xff] %v9239_v13  ;;  %v9255_v50 = vld [vmem:[#allocation10 + $0x58] sm:$0xff] }
 0x3c6   : > { %2100 = vmatmul.mubr.bf16.gmra.mrb[36].mxu0 %v9115_v26  ;;  %2140 = vmatmul.mubr.bf16.gmra.mrb[36].mxu1 %v9197_v39  ;;  %v9241_v26 = vld [vmem:[#allocation10 + $0x20] sm:$0xff]  ;;  %v9279_v39 = vld [vmem:[#allocation12 + $0x38] sm:$0xff] }
 0x3c7   : > { %2109 = vmatprep.mubr.bf16.mxu0 %v9123_v2  ;;  %2149 = vmatprep.mubr.bf16.mxu1 %v9203_v49  ;;  %v9243_v2 = vld [vmem:[#allocation10 + $0x28] sm:$0xff]  ;;  %v9287_v49 = vld [vmem:[#allocation12 + $0x58] sm:$0xff] }
 0x3c8   : > { %12115 = vst [vmem:[#allocation98_spill] sm:$0xff] %v9243_v2 }
 0x3ce   : > { %2110 = vmatmul.mubr.bf16.gmra.mrb[40].mxu0 %v9137_v45  ;;  %2150 = vmatmul.mubr.bf16.gmra.mrb[40].mxu1 %v1219_v46  ;;  %v9245_v45 = vld [vmem:[#allocation10 + $0x30] sm:$0xff]  ;;  %v9311_v46 = vld [vmem:[#allocation13 + $0x38] sm:$0xff] }
 0x3cf   : > { %2119 = vmatprep.mubr.bf16.mxu0 %v9143_v30  ;;  %2159 = vmatprep.mubr.bf16.mxu1 %v1222_v34  ;;  %v9249_v30 = vld [vmem:[#allocation10 + $0x40] sm:$0xff]  ;;  %v9319_v34 = vld [vmem:[#allocation13 + $0x58] sm:$0xff] }
 0x3d0   : > { %12134 = vst [vmem:[#allocation117_spill] sm:$0xff] %v9319_v34 }
 0x3d6   : > { %2120 = vmatmul.mubr.bf16.gmra.mrb[44].mxu0 %v9157_v11  ;;  %2160 = vmatmul.mubr.bf16.gmra.mrb[44].mxu1 %v1221_v51  ;;  %v9251_v11 = vld [vmem:[#allocation10 + $0x48] sm:$0xff]  ;;  %v1335_v51 = vsub.s32 3, %v9052_v9 }
 0x3d7   : > { %12117 = vst [vmem:[#allocation100_spill] sm:$0xff] %v9251_v11 }
 0x3d8   : > { %v9345_v23 = vrot.slane %v9330_v53, %v1335_v51 }
 0x451   : > { %v1865_v6 = vpop.f32.mrb[0].mxu0  ;;  %v1978_v25 = vpop.f32.mrb[0].mxu1 }
 0x452   : > { %v1867_v1 = vpop.f32.mrb[1].mxu0  ;;  %v1980_v22 = vpop.f32.mrb[1].mxu1  ;;  %v1866_v48 = vadd.f32 %v1865_v6, %v9335_v56  ;;  %v1979_v31 = vadd.f32 %v1978_v25, %v9338_v21 }
 0x453   : > { %v1869_v0 = vpop.f32.mrb[2].mxu0  ;;  %v1982_v14 = vpop.f32.mrb[2].mxu1  ;;  %v1868_v32 = vadd.f32 %v1867_v1, %v9342_v5  ;;  %v1981_v59 = vadd.f32 %v1980_v22, %v9345_v23 }
 0x454   : > { %v1870_v29 = vadd.f32 %v1869_v0, %v9335_v56  ;;  %v1983_v15 = vadd.f32 %v1982_v14, %v9338_v21  ;;  %v1871_v62 = vpop.f32.mrb[3].mxu0  ;;  %v1984_v55 = vpop.f32.mrb[3].mxu1 }
 0x455   : > { %v1872_v51 = vadd.f32 %v1871_v62, %v9342_v5  ;;  %v1985_v58 = vadd.f32 %v1984_v55, %v9345_v23 }
 0x456   : > { %v2170_v61 = vpack.c.bf16 %v1870_v29, %v1866_v48  ;;  %v2172_v42 = vpack.c.bf16 %v1983_v15, %v1979_v31 }
 0x457   : > { %v2171_v37 = vpack.c.bf16 %v1872_v51, %v1868_v32  ;;  %v2173_v6 = vpack.c.bf16 %v1985_v58, %v1981_v59 }
 0x458   : > { %2218 = vst [vmem:[#allocation2] sm:$0xff] %v2170_v61  ;;  %2220 = vst [vmem:[#allocation2 + $0x10] sm:$0xff] %v2172_v42 }
 0x459   : > { %2219 = vst [vmem:[#allocation2 + $0x8] sm:$0xff] %v2171_v37  ;;  %2221 = vst [vmem:[#allocation2 + $0x18] sm:$0xff] %v2173_v6  ;;  %v1875_v0 = vpop.f32.mrb[4].mxu0  ;;  %v1988_v25 = vpop.f32.mrb[4].mxu1 }
 0x45a   : > { %v1877_v14 = vpop.f32.mrb[5].mxu0  ;;  %v1990_v38 = vpop.f32.mrb[5].mxu1  ;;  %v1876_v22 = vadd.f32 %v1875_v0, %v9335_v56  ;;  %v1989_v62 = vadd.f32 %v1988_v25, %v9338_v21 }
 0x45b   : > { %v1879_v41 = vpop.f32.mrb[6].mxu0  ;;  %v1992_v1 = vpop.f32.mrb[6].mxu1  ;;  %v1878_v58 = vadd.f32 %v1877_v14, %v9342_v5  ;;  %v1991_v37 = vadd.f32 %v1990_v38, %v9345_v23 }
 0x45c   : > { %v1880_v55 = vadd.f32 %v1879_v41, %v9335_v56  ;;  %v1993_v31 = vadd.f32 %v1992_v1, %v9338_v21  ;;  %v1881_v32 = vpop.f32.mrb[7].mxu0  ;;  %v1994_v59 = vpop.f32.mrb[7].mxu1 }
 0x45d   : > { %v1882_v61 = vadd.f32 %v1881_v32, %v9342_v5  ;;  %v1995_v42 = vadd.f32 %v1994_v59, %v9345_v23 }
 0x45e   : > { %v2176_v48 = vpack.c.bf16 %v1880_v55, %v1876_v22  ;;  %v2178_v15 = vpack.c.bf16 %v1993_v31, %v1989_v62 }
 0x45f   : > { %v2177_v29 = vpack.c.bf16 %v1882_v61, %v1878_v58  ;;  %v2179_v51 = vpack.c.bf16 %v1995_v42, %v1991_v37 }
 0x460   : > { %2224 = vst [vmem:[#allocation2 + $0x30] sm:$0xff] %v2176_v48  ;;  %2226 = vst [vmem:[#allocation2 + $0x40] sm:$0xff] %v2178_v15 }
 0x461   : > { %2225 = vst [vmem:[#allocation2 + $0x38] sm:$0xff] %v2177_v29  ;;  %2227 = vst [vmem:[#allocation2 + $0x48] sm:$0xff] %v2179_v51  ;;  %v1885_v41 = vpop.f32.mrb[8].mxu0  ;;  %v1998_v6 = vpop.f32.mrb[8].mxu1 }
 0x462   : > { %v1887_v0 = vpop.f32.mrb[9].mxu0  ;;  %v2000_v25 = vpop.f32.mrb[9].mxu1  ;;  %v1886_v38 = vadd.f32 %v1885_v41, %v9335_v56  ;;  %v1999_v32 = vadd.f32 %v1998_v6, %v9338_v21 }
 0x463   : > { %v1889_v1 = vpop.f32.mrb[10].mxu0  ;;  %v2002_v14 = vpop.f32.mrb[10].mxu1  ;;  %v1888_v31 = vadd.f32 %v1887_v0, %v9342_v5  ;;  %v2001_v58 = vadd.f32 %v2000_v25, %v9345_v23 }
 0x464   : > { %v1890_v59 = vadd.f32 %v1889_v1, %v9335_v56  ;;  %v2003_v22 = vadd.f32 %v2002_v14, %v9338_v21  ;;  %v1891_v62 = vpop.f32.mrb[11].mxu0  ;;  %v2004_v55 = vpop.f32.mrb[11].mxu1 }
 0x465   : > { %v1892_v37 = vadd.f32 %v1891_v62, %v9342_v5  ;;  %v2005_v61 = vadd.f32 %v2004_v55, %v9345_v23 }
 0x466   : > { %v2182_v42 = vpack.c.bf16 %v1890_v59, %v1886_v38  ;;  %v2184_v48 = vpack.c.bf16 %v2003_v22, %v1999_v32 }
 0x467   : > { %v2183_v15 = vpack.c.bf16 %v1892_v37, %v1888_v31  ;;  %v2185_v29 = vpack.c.bf16 %v2005_v61, %v2001_v58 }
 0x468   : > { %2230 = vst [vmem:[#allocation2 + $0x60] sm:$0xff] %v2182_v42  ;;  %2232 = vst [vmem:[#allocation2 + $0x70] sm:$0xff] %v2184_v48 }
 0x469   : > { %2231 = vst [vmem:[#allocation2 + $0x68] sm:$0xff] %v2183_v15  ;;  %2233 = vst [vmem:[#allocation2 + $0x78] sm:$0xff] %v2185_v29  ;;  %v1895_v51 = vpop.f32.mrb[12].mxu0  ;;  %v2008_v41 = vpop.f32.mrb[12].mxu1 }
 0x46a   : > { %v1897_v6 = vpop.f32.mrb[13].mxu0  ;;  %v2010_v1 = vpop.f32.mrb[13].mxu1  ;;  %v1896_v25 = vadd.f32 %v1895_v51, %v9335_v56  ;;  %v2009_v62 = vadd.f32 %v2008_v41, %v9338_v21 }
 0x46b   : > { %v1899_v14 = vpop.f32.mrb[14].mxu0  ;;  %v2012_v0 = vpop.f32.mrb[14].mxu1  ;;  %v1898_v22 = vadd.f32 %v1897_v6, %v9342_v5  ;;  %v2011_v31 = vadd.f32 %v2010_v1, %v9345_v23 }
 0x46c   : > { %v1900_v55 = vadd.f32 %v1899_v14, %v9335_v56  ;;  %v2013_v38 = vadd.f32 %v2012_v0, %v9338_v21  ;;  %v1901_v32 = vpop.f32.mrb[15].mxu0  ;;  %v2014_v59 = vpop.f32.mrb[15].mxu1 }
 0x46d   : > { %v1902_v58 = vadd.f32 %v1901_v32, %v9342_v5  ;;  %v2015_v37 = vadd.f32 %v2014_v59, %v9345_v23 }
 0x46e   : > { %v2188_v61 = vpack.c.bf16 %v1900_v55, %v1896_v25  ;;  %v2190_v42 = vpack.c.bf16 %v2013_v38, %v2009_v62 }
 0x46f   : > { %v2189_v48 = vpack.c.bf16 %v1902_v58, %v1898_v22  ;;  %v2191_v15 = vpack.c.bf16 %v2015_v37, %v2011_v31 }
 0x470   : > { %2236 = vst [vmem:[#allocation2 + $0x90] sm:$0xff] %v2188_v61  ;;  %2238 = vst [vmem:[#allocation2 + $0xa0] sm:$0xff] %v2190_v42 }
 0x471   : > { %2237 = vst [vmem:[#allocation2 + $0x98] sm:$0xff] %v2189_v48  ;;  %2239 = vst [vmem:[#allocation2 + $0xa8] sm:$0xff] %v2191_v15  ;;  %v1905_v29 = vpop.f32.mrb[16].mxu0  ;;  %v2018_v51 = vpop.f32.mrb[16].mxu1 }
 0x472   : > { %v1907_v41 = vpop.f32.mrb[17].mxu0  ;;  %v2020_v14 = vpop.f32.mrb[17].mxu1  ;;  %v1906_v1 = vadd.f32 %v1905_v29, %v9335_v56  ;;  %v2019_v32 = vadd.f32 %v2018_v51, %v9338_v21 }
 0x473   : > { %v1909_v0 = vpop.f32.mrb[18].mxu0  ;;  %v2022_v6 = vpop.f32.mrb[18].mxu1  ;;  %v1908_v38 = vadd.f32 %v1907_v41, %v9342_v5  ;;  %v2021_v22 = vadd.f32 %v2020_v14, %v9345_v23 }
 0x474   : > { %v1910_v59 = vadd.f32 %v1909_v0, %v9335_v56  ;;  %v2023_v25 = vadd.f32 %v2022_v6, %v9338_v21  ;;  %v1911_v62 = vpop.f32.mrb[19].mxu0  ;;  %v2024_v55 = vpop.f32.mrb[19].mxu1 }
 0x475   : > { %v1912_v31 = vadd.f32 %v1911_v62, %v9342_v5  ;;  %v2025_v58 = vadd.f32 %v2024_v55, %v9345_v23 }
 0x476   : > { %v2194_v37 = vpack.c.bf16 %v1910_v59, %v1906_v1  ;;  %v2196_v61 = vpack.c.bf16 %v2023_v25, %v2019_v32 }
 0x477   : > { %v2195_v42 = vpack.c.bf16 %v1912_v31, %v1908_v38  ;;  %v2197_v48 = vpack.c.bf16 %v2025_v58, %v2021_v22 }
 0x478   : > { %2242 = vst [vmem:[#allocation2 + $0xc0] sm:$0xff] %v2194_v37  ;;  %2244 = vst [vmem:[#allocation2 + $0xd0] sm:$0xff] %v2196_v61 }
 0x479   : > { %2243 = vst [vmem:[#allocation2 + $0xc8] sm:$0xff] %v2195_v42  ;;  %2245 = vst [vmem:[#allocation2 + $0xd8] sm:$0xff] %v2197_v48  ;;  %v1915_v15 = vpop.f32.mrb[20].mxu0  ;;  %v2028_v29 = vpop.f32.mrb[20].mxu1 }
 0x47a   : > { %v1917_v51 = vpop.f32.mrb[21].mxu0  ;;  %v2030_v0 = vpop.f32.mrb[21].mxu1  ;;  %v1916_v14 = vadd.f32 %v1915_v15, %v9335_v56  ;;  %v2029_v62 = vadd.f32 %v2028_v29, %v9338_v21 }
 0x47b   : > { %v1919_v6 = vpop.f32.mrb[22].mxu0  ;;  %v2032_v41 = vpop.f32.mrb[22].mxu1  ;;  %v1918_v25 = vadd.f32 %v1917_v51, %v9342_v5  ;;  %v2031_v38 = vadd.f32 %v2030_v0, %v9345_v23 }
 0x47c   : > { %v1920_v55 = vadd.f32 %v1919_v6, %v9335_v56  ;;  %v2033_v1 = vadd.f32 %v2032_v41, %v9338_v21  ;;  %v1921_v32 = vpop.f32.mrb[23].mxu0  ;;  %v2034_v59 = vpop.f32.mrb[23].mxu1 }
 0x47d   : > { %v1922_v22 = vadd.f32 %v1921_v32, %v9342_v5  ;;  %v2035_v31 = vadd.f32 %v2034_v59, %v9345_v23 }
 0x47e   : > { %v2200_v58 = vpack.c.bf16 %v1920_v55, %v1916_v14  ;;  %v2202_v37 = vpack.c.bf16 %v2033_v1, %v2029_v62 }
 0x47f   : > { %v2201_v61 = vpack.c.bf16 %v1922_v22, %v1918_v25  ;;  %v2203_v42 = vpack.c.bf16 %v2035_v31, %v2031_v38 }
 0x480   : > { %2248 = vst [vmem:[#allocation2 + $0xf0] sm:$0xff] %v2200_v58  ;;  %2250 = vst [vmem:[#allocation2 + $0x100] sm:$0xff] %v2202_v37 }
 0x481   : > { %2249 = vst [vmem:[#allocation2 + $0xf8] sm:$0xff] %v2201_v61  ;;  %2251 = vst [vmem:[#allocation2 + $0x108] sm:$0xff] %v2203_v42  ;;  %v1925_v48 = vpop.f32.mrb[24].mxu0  ;;  %v2038_v15 = vpop.f32.mrb[24].mxu1 }
 0x482   : > { %v1927_v29 = vpop.f32.mrb[25].mxu0  ;;  %v2040_v6 = vpop.f32.mrb[25].mxu1  ;;  %v1926_v0 = vadd.f32 %v1925_v48, %v9335_v56  ;;  %v2039_v32 = vadd.f32 %v2038_v15, %v9338_v21 }
 0x483   : > { %v1929_v41 = vpop.f32.mrb[26].mxu0  ;;  %v2042_v51 = vpop.f32.mrb[26].mxu1  ;;  %v1928_v1 = vadd.f32 %v1927_v29, %v9342_v5  ;;  %v2041_v25 = vadd.f32 %v2040_v6, %v9345_v23  ;;  %v1339_v6 = vsub.s32 4, %v9052_v9 }
 0x484   : > { %v1930_v59 = vadd.f32 %v1929_v41, %v9335_v56  ;;  %v2043_v14 = vadd.f32 %v2042_v51, %v9338_v21  ;;  %v1931_v62 = vpop.f32.mrb[27].mxu0  ;;  %v2044_v55 = vpop.f32.mrb[27].mxu1 }
 0x485   : > { %v1932_v38 = vadd.f32 %v1931_v62, %v9342_v5  ;;  %v2045_v22 = vadd.f32 %v2044_v55, %v9345_v23  ;;  %v1343_v62 = vsub.s32 5, %v9052_v9 }
 0x486   : > { %v2206_v31 = vpack.c.bf16 %v1930_v59, %v1926_v0  ;;  %v2208_v58 = vpack.c.bf16 %v2043_v14, %v2039_v32 }
 0x487   : > { %v2207_v37 = vpack.c.bf16 %v1932_v38, %v1928_v1  ;;  %v2209_v61 = vpack.c.bf16 %v2045_v22, %v2041_v25 }
 0x488   : > { %2254 = vst [vmem:[#allocation2 + $0x120] sm:$0xff] %v2206_v31  ;;  %2256 = vst [vmem:[#allocation2 + $0x130] sm:$0xff] %v2208_v58 }
 0x489   : > { %2255 = vst [vmem:[#allocation2 + $0x128] sm:$0xff] %v2207_v37  ;;  %2257 = vst [vmem:[#allocation2 + $0x138] sm:$0xff] %v2209_v61  ;;  %v1935_v42 = vpop.f32.mrb[28].mxu0  ;;  %v2048_v48 = vpop.f32.mrb[28].mxu1 }
 0x48a   : > { %v1937_v15 = vpop.f32.mrb[29].mxu0  ;;  %v2050_v41 = vpop.f32.mrb[29].mxu1  ;;  %v1936_v55 = vadd.f32 %v1935_v42, %v9335_v56  ;;  %v2049_v0 = vadd.f32 %v2048_v48, %v9338_v21  ;;  %v9417_v48 = vrot.slane %v9330_v53, %v1343_v62 }
 0x48b   : > { %v1939_v51 = vpop.f32.mrb[30].mxu0  ;;  %v2052_v29 = vpop.f32.mrb[30].mxu1  ;;  %v1938_v25 = vadd.f32 %v1937_v15, %v9342_v5  ;;  %v2051_v38 = vadd.f32 %v2050_v41, %v9345_v23 }
 0x48c   : > { %v1940_v32 = vadd.f32 %v1939_v51, %v9335_v56  ;;  %v2053_v59 = vadd.f32 %v2052_v29, %v9338_v21  ;;  %v1941_v14 = vpop.f32.mrb[31].mxu0  ;;  %v2054_v1 = vpop.f32.mrb[31].mxu1  ;;  %v9414_v56 = vrot.slane %v9330_v53, %v1339_v6 }
 0x48d   : > { %v1942_v22 = vadd.f32 %v1941_v14, %v9342_v5  ;;  %v2055_v31 = vadd.f32 %v2054_v1, %v9345_v23 }
 0x48e   : > { %v2212_v58 = vpack.c.bf16 %v1940_v32, %v1936_v55  ;;  %v2214_v9 = vpack.c.bf16 %v2053_v59, %v2049_v0 }
 0x48f   : > { %v2213_v37 = vpack.c.bf16 %v1942_v22, %v1938_v25  ;;  %v2215_v61 = vpack.c.bf16 %v2055_v31, %v2051_v38 }
 0x490   : > { %2260 = vst [vmem:[#allocation2 + $0x150] sm:$0xff] %v2212_v58  ;;  %2262 = vst [vmem:[#allocation2 + $0x160] sm:$0xff] %v2214_v9 }
 0x491   : > { %2261 = vst [vmem:[#allocation2 + $0x158] sm:$0xff] %v2213_v37  ;;  %2263 = vst [vmem:[#allocation2 + $0x168] sm:$0xff] %v2215_v61  ;;  %v2091_v21 = vpop.f32.mrb[32].mxu0  ;;  %v2131_v42 = vpop.f32.mrb[32].mxu1 }
 0x492   : > { %v2093_v15 = vpop.f32.mrb[33].mxu0  ;;  %v2133_v5 = vpop.f32.mrb[33].mxu1  ;;  %v2092_v51 = vadd.f32 %v2091_v21, %v9414_v56  ;;  %v2132_v29 = vadd.f32 %v2131_v42, %v9414_v56 }
 0x493   : > { %v2095_v41 = vpop.f32.mrb[34].mxu0  ;;  %v2135_v23 = vpop.f32.mrb[34].mxu1  ;;  %v2094_v59 = vadd.f32 %v2093_v15, %v9417_v48  ;;  %v2134_v14 = vadd.f32 %v2133_v5, %v9417_v48 }
 0x494   : > { %v2096_v55 = vadd.f32 %v2095_v41, %v9414_v56  ;;  %v2136_v6 = vadd.f32 %v2135_v23, %v9414_v56  ;;  %v2097_v0 = vpop.f32.mrb[35].mxu0  ;;  %v2137_v32 = vpop.f32.mrb[35].mxu1 }
 0x495   : > { %v2098_v53 = vadd.f32 %v2097_v0, %v9417_v48  ;;  %v2138_v62 = vadd.f32 %v2137_v32, %v9417_v48 }
 0x496   : > { %v2174_v1 = vpack.c.bf16 %v2096_v55, %v2092_v51  ;;  %v2198_v25 = vpack.c.bf16 %v2136_v6, %v2132_v29 }
 0x497   : > { %v2175_v38 = vpack.c.bf16 %v2098_v53, %v2094_v59  ;;  %v2199_v22 = vpack.c.bf16 %v2138_v62, %v2134_v14 }
 0x498   : > { %2222 = vst [vmem:[#allocation2 + $0x20] sm:$0xff] %v2174_v1  ;;  %2246 = vst [vmem:[#allocation2 + $0xe0] sm:$0xff] %v2198_v25 }
 0x499   : > { %2223 = vst [vmem:[#allocation2 + $0x28] sm:$0xff] %v2175_v38  ;;  %2247 = vst [vmem:[#allocation2 + $0xe8] sm:$0xff] %v2199_v22  ;;  %v2101_v31 = vpop.f32.mrb[36].mxu0  ;;  %v2141_v58 = vpop.f32.mrb[36].mxu1 }
 0x49a   : > { %v2103_v9 = vpop.f32.mrb[37].mxu0  ;;  %v2143_v37 = vpop.f32.mrb[37].mxu1  ;;  %v2102_v42 = vadd.f32 %v2101_v31, %v9414_v56  ;;  %v2142_v15 = vadd.f32 %v2141_v58, %v9414_v56 }
 0x49b   : > { %v2105_v61 = vpop.f32.mrb[38].mxu0  ;;  %v2145_v21 = vpop.f32.mrb[38].mxu1  ;;  %v2104_v29 = vadd.f32 %v2103_v9, %v9417_v48  ;;  %v2144_v55 = vadd.f32 %v2143_v37, %v9417_v48 }
 0x49c   : > { %v2106_v5 = vadd.f32 %v2105_v61, %v9414_v56  ;;  %v2146_v41 = vadd.f32 %v2145_v21, %v9414_v56  ;;  %v2107_v23 = vpop.f32.mrb[39].mxu0  ;;  %v2147_v51 = vpop.f32.mrb[39].mxu1 }
 0x49d   : > { %v2108_v6 = vadd.f32 %v2107_v23, %v9417_v48  ;;  %v2148_v0 = vadd.f32 %v2147_v51, %v9417_v48 }
 0x49e   : > { %v2180_v32 = vpack.c.bf16 %v2106_v5, %v2102_v42  ;;  %v2204_v59 = vpack.c.bf16 %v2146_v41, %v2142_v15 }
 0x49f   : > { %v2181_v14 = vpack.c.bf16 %v2108_v6, %v2104_v29  ;;  %v2205_v53 = vpack.c.bf16 %v2148_v0, %v2144_v55 }
 0x4a0   : > { %2228 = vst [vmem:[#allocation2 + $0x50] sm:$0xff] %v2180_v32  ;;  %2252 = vst [vmem:[#allocation2 + $0x110] sm:$0xff] %v2204_v59 }
 0x4a1   : > { %2229 = vst [vmem:[#allocation2 + $0x58] sm:$0xff] %v2181_v14  ;;  %2253 = vst [vmem:[#allocation2 + $0x118] sm:$0xff] %v2205_v53  ;;  %v2111_v62 = vpop.f32.mrb[40].mxu0  ;;  %v2151_v1 = vpop.f32.mrb[40].mxu1 }
 0x4a2   : > { %v2113_v25 = vpop.f32.mrb[41].mxu0  ;;  %v2153_v38 = vpop.f32.mrb[41].mxu1  ;;  %v2112_v58 = vadd.f32 %v2111_v62, %v9414_v56  ;;  %v2152_v9 = vadd.f32 %v2151_v1, %v9414_v56 }
 0x4a3   : > { %v2115_v22 = vpop.f32.mrb[42].mxu0  ;;  %v2155_v31 = vpop.f32.mrb[42].mxu1  ;;  %v2114_v15 = vadd.f32 %v2113_v25, %v9417_v48  ;;  %v2154_v5 = vadd.f32 %v2153_v38, %v9417_v48 }
 0x4a4   : > { %v2116_v37 = vadd.f32 %v2115_v22, %v9414_v56  ;;  %v2156_v61 = vadd.f32 %v2155_v31, %v9414_v56  ;;  %v2117_v21 = vpop.f32.mrb[43].mxu0  ;;  %v2157_v42 = vpop.f32.mrb[43].mxu1 }
 0x4a5   : > { %v2118_v41 = vadd.f32 %v2117_v21, %v9417_v48  ;;  %v2158_v23 = vadd.f32 %v2157_v42, %v9417_v48 }
 0x4a6   : > { %v2186_v51 = vpack.c.bf16 %v2116_v37, %v2112_v58  ;;  %v2210_v29 = vpack.c.bf16 %v2156_v61, %v2152_v9 }
 0x4a7   : > { %v2187_v55 = vpack.c.bf16 %v2118_v41, %v2114_v15  ;;  %v2211_v6 = vpack.c.bf16 %v2158_v23, %v2154_v5 }
 0x4a8   : > { %2234 = vst [vmem:[#allocation2 + $0x80] sm:$0xff] %v2186_v51  ;;  %2258 = vst [vmem:[#allocation2 + $0x140] sm:$0xff] %v2210_v29 }
 0x4a9   : > { %2235 = vst [vmem:[#allocation2 + $0x88] sm:$0xff] %v2187_v55  ;;  %2259 = vst [vmem:[#allocation2 + $0x148] sm:$0xff] %v2211_v6  ;;  %v2121_v0 = vpop.f32.mrb[44].mxu0  ;;  %v2161_v32 = vpop.f32.mrb[44].mxu1 }
 0x4aa   : > { %v2123_v59 = vpop.f32.mrb[45].mxu0  ;;  %v2163_v14 = vpop.f32.mrb[45].mxu1  ;;  %v2122_v1 = vadd.f32 %v2121_v0, %v9414_v56  ;;  %v2162_v25 = vadd.f32 %v2161_v32, %v9414_v56 }
 0x4ab   : > { %v2125_v53 = vpop.f32.mrb[46].mxu0  ;;  %v2165_v62 = vpop.f32.mrb[46].mxu1  ;;  %v2124_v9 = vadd.f32 %v2123_v59, %v9417_v48  ;;  %v2164_v37 = vadd.f32 %v2163_v14, %v9417_v48 }
 0x4ac   : > { %v2126_v38 = vadd.f32 %v2125_v53, %v9414_v56  ;;  %v2166_v22 = vadd.f32 %v2165_v62, %v9414_v56  ;;  %v2127_v31 = vpop.f32.mrb[47].mxu0  ;;  %v2167_v58 = vpop.f32.mrb[47].mxu1 }
 0x4ad   : > { %v2128_v61 = vadd.f32 %v2127_v31, %v9417_v48  ;;  %v2168_v21 = vadd.f32 %v2167_v58, %v9417_v48 }
 0x4ae   : > { %v2192_v42 = vpack.c.bf16 %v2126_v38, %v2122_v1  ;;  %v2216_v15 = vpack.c.bf16 %v2166_v22, %v2162_v25 }
 0x4af   : > { %v2193_v5 = vpack.c.bf16 %v2128_v61, %v2124_v9  ;;  %v2217_v41 = vpack.c.bf16 %v2168_v21, %v2164_v37 }
 0x4b0   : > { %2240 = vst [vmem:[#allocation2 + $0xb0] sm:$0xff] %v2192_v42  ;;  %2264 = vst [vmem:[#allocation2 + $0x170] sm:$0xff] %v2216_v15 }
 0x4b1   : > { %2241 = vst [vmem:[#allocation2 + $0xb8] sm:$0xff] %v2193_v5  ;;  %2265 = vst [vmem:[#allocation2 + $0x178] sm:$0xff] %v2217_v41 }
 0x4b2 LB: >> { %v12139_v19 = vld [vmem:[#allocation101_spill] sm:$0xff]  ;;  %v12140_v18 = vld [vmem:[#allocation111_spill] sm:$0xff]  ;;  %v12141_v17 = vld [vmem:[#allocation106_spill] sm:$0xff]  ;;  %s9457_s15 = sshll.u32 %s8044_s0, 7  ;;  %s8069_s30 = smov 127   ;;  %s8044_s0 = sphi %s9451_s0, %s2323_s0  }
 0x4b3   : >> { %v12142_v16 = vld [vmem:[#allocation114_spill] sm:$0xff]  ;;  %v12143_v11 = vld [vmem:[#allocation100_spill] sm:$0xff]  ;;  %v12144_v8 = vld [vmem:[#allocation115_spill] sm:$0xff]  ;;  %s2545_s22 = sadd.s32 256, %s9457_s15  ;;  %s8070_s5 = smov 1  }
 0x4b4   : >> { %v12145_v7 = vld [vmem:[#allocation99_spill] sm:$0xff]  ;;  %v12146_v3 = vld [vmem:[#allocation113_spill] sm:$0xff]  ;;  %s2546_s4 = sshra.s32 %s2545_s22, 7  ;;  %s2325_s27 = sshra.s32 %s9457_s15, 7  ;;  %v12156_v35 = vld [vmem:[#allocation96_spill] sm:$0xff] }
 0x4b5   : >> { %v12147_v4 = vld [vmem:[#allocation105_spill] sm:$0xff]  ;;  %s6192_s8 = sshll.u32 %s2546_s4, 3  ;;  %s9524_s11 = sshll.u32 %s2325_s27, 3  ;;  %v12158_v12 = vld [vmem:[#allocation95_spill] sm:$0xff]  ;;  %v12163_v63 = vld [vmem:[#allocation112_spill] sm:$0xff] }
 0x4b6   : >> { %s9460_s26 = scalar_lea.vmem [#allocation2], %s6192_s8  ;;  %s9546_s18 = scalar_lea.vmem [#allocation2], %s9524_s11  ;;  %v12160_v13 = vld [vmem:[#allocation97_spill] sm:$0xff]  ;;  %v12165_v2 = vld [vmem:[#allocation98_spill] sm:$0xff]  ;;  %v12175_v10 = vld [vmem:[#allocation116_spill] sm:$0xff] }
 0x4b7   : >> { %v12174_v34 = vld [vmem:[#allocation117_spill] sm:$0xff]  ;;  %s2766_s14 = sadd.s32 512, %s9457_s15  ;;  %s3150_s15 = scalar_lea.vmem [#allocation3], %s9524_s11 }
 0x4b8   : >> { %v9463_v56 = vld [vmem:[%s9460_s26] sm:$0xff]  ;;  %v9466_v48 = vld [vmem:[%s9460_s26 + $0x30] sm:$0xff]  ;;  %s2767_s2 = sshra.s32 %s2766_s14, 7  ;;  %s2323_s0 = sadd.s32 1, %s8044_s0  }
 0x4b9   : >> { %v11924_v23 = vunpack.c.l.bf16 %v9463_v56  ;;  %v11925_v51 = vunpack.c.h.bf16 %v9463_v56  ;;  %v11918_v29 = vunpack.c.l.bf16 %v9466_v48  ;;  %v11919_v55 = vunpack.c.h.bf16 %v9466_v48  ;;  %v9473_v6 = vld [vmem:[%s9460_s26 + $0x60] sm:$0xff]  ;;  %v9488_v53 = vld [vmem:[%s9460_s26 + $0x90] sm:$0xff]  ;;  %s6193_s17 = sshll.u32 %s2767_s2, 3  ;;  %p2320_p13 = scmp.ge.s32.totalorder %s2323_s0, 2  }
 0x4ba   : >> { %v11913_v59 = vunpack.c.l.bf16 %v9473_v6  ;;  %v11912_v14 = vunpack.c.h.bf16 %v9473_v6  ;;  %v11907_v1 = vunpack.c.l.bf16 %v9488_v53  ;;  %v11906_v25 = vunpack.c.h.bf16 %v9488_v53  ;;  %v9499_v38 = vld [vmem:[%s9460_s26 + $0xc0] sm:$0xff]  ;;  %v9510_v9 = vld [vmem:[%s9460_s26 + $0xf0] sm:$0xff]  ;;  %s9910_s3 = scalar_lea.vmem [#allocation2], %s6193_s17 }
 0x4bb   : >> { %v6898_v0 = vpack.i.bf16 %v11925_v51, %v11924_v23  ;;  %v6908_v32 = vpack.i.bf16 %v11919_v55, %v11918_v29  ;;  %v11902_v31 = vunpack.c.l.bf16 %v9499_v38  ;;  %v11905_v58 = vunpack.c.h.bf16 %v9499_v38  ;;  %v9522_v42 = vld [vmem:[%s9460_s26 + $0x120] sm:$0xff]  ;;  %v9622_v29 = vld [vmem:[%s9546_s18 + $0x150] sm:$0xff] }
 0x4bc   : >> { %v6918_v62 = vpack.i.bf16 %v11912_v14, %v11913_v59  ;;  %v6928_v22 = vpack.i.bf16 %v11906_v25, %v11907_v1  ;;  %v11899_v61 = vunpack.c.l.bf16 %v9510_v9  ;;  %v11898_v21 = vunpack.c.h.bf16 %v9510_v9  ;;  %v9600_v14 = vld [vmem:[%s9546_s18 + $0xf0] sm:$0xff]  ;;  %12155 = vst [vmem:[#allocation129_spill] sm:$0xff] %v9622_v29 }
 0x4bd   : >> { %6899 = vrot.lane.b32.xlu0 %v6898_v0, %s8069_s30  ;;  %6909 = vrot.lane.b32.xlu1 %v6908_v32, %s8069_s30  ;;  %v6938_v37 = vpack.i.bf16 %v11905_v58, %v11902_v31  ;;  %v11901_v5 = vunpack.c.l.bf16 %v9522_v42  ;;  %v11900_v41 = vunpack.c.h.bf16 %v9522_v42  ;;  %v9578_v58 = vld [vmem:[%s9546_s18 + $0x90] sm:$0xff]  ;;  %12153 = vst [vmem:[#allocation127_spill] sm:$0xff] %v9600_v14 }
 0x4be   : >> { %v6948_v15 = vpack.i.bf16 %v11898_v21, %v11899_v61  ;;  %v9552_v21 = vld [vmem:[%s9546_s18 + $0x30] sm:$0xff]  ;;  %12151 = vst [vmem:[#allocation125_spill] sm:$0xff] %v9578_v58  ;;  %v11916_v1 = vunpack.c.l.bf16 %v9578_v58 }
 0x4bf   : >> { %12149 = vst [vmem:[#allocation123_spill] sm:$0xff] %v9552_v21  ;;  %v11911_v31 = vunpack.c.h.bf16 %v9552_v21 }
 0x4c1   : >> { %6904 = vrot.lane.b32.xlu0 %v6898_v0, %s8070_s5  ;;  %6914 = vrot.lane.b32.xlu1 %v6908_v32, %s8070_s5  ;;  %v9535_v0 = vld [vmem:[%s9460_s26 + $0x150] sm:$0xff]  ;;  %v6958_v32 = vpack.i.bf16 %v11900_v41, %v11901_v5  ;;  %v11910_v5 = vunpack.c.l.bf16 %v9552_v21 }
 0x4c5   : >> { %6919 = vrot.lane.b32.xlu0 %v6918_v62, %s8069_s30  ;;  %6924 = vrot.lane.b32.xlu1 %v6918_v62, %s8070_s5  ;;  %v11903_v62 = vunpack.c.l.bf16 %v9535_v0 }
 0x4c9   : >> { %6929 = vrot.lane.b32.xlu0 %v6928_v22, %s8069_s30  ;;  %6934 = vrot.lane.b32.xlu1 %v6928_v22, %s8070_s5  ;;  %v11904_v22 = vunpack.c.h.bf16 %v9535_v0 }
 0x4cb   : >> { %v6968_v41 = vpack.i.bf16 %v11904_v22, %v11903_v62  ;;  %v6983_v62 = vpack.i.bf16 %v11911_v31, %v11910_v5  ;;  %v9575_v22 = vld [vmem:[%s9546_s18 + $0x60] sm:$0xff] }
 0x4cc   : >> { %12150 = vst [vmem:[#allocation124_spill] sm:$0xff] %v9575_v22  ;;  %v11917_v25 = vunpack.c.l.bf16 %v9575_v22  ;;  %v9597_v31 = vld [vmem:[%s9546_s18 + $0xc0] sm:$0xff] }
 0x4cd   : >> { %6939 = vrot.lane.b32.xlu0 %v6938_v37, %s8069_s30  ;;  %6944 = vrot.lane.b32.xlu1 %v6938_v37, %s8070_s5  ;;  %v9549_v37 = vld [vmem:[%s9546_s18] sm:$0xff]  ;;  %12152 = vst [vmem:[#allocation126_spill] sm:$0xff] %v9597_v31  ;;  %v11920_v59 = vunpack.c.h.bf16 %v9597_v31 }
 0x4ce   : >> { %12148 = vst [vmem:[#allocation122_spill] sm:$0xff] %v9549_v37  ;;  %v11908_v61 = vunpack.c.h.bf16 %v9549_v37 }
 0x4d1   : >> { %6949 = vrot.lane.b32.xlu0 %v6948_v15, %s8069_s30  ;;  %6954 = vrot.lane.b32.xlu1 %v6948_v15, %s8070_s5  ;;  %v11909_v15 = vunpack.c.l.bf16 %v9549_v37 }
 0x4d5   : >> { %6959 = vrot.lane.b32.xlu0 %v6958_v32, %s8069_s30  ;;  %6964 = vrot.lane.b32.xlu1 %v6958_v32, %s8070_s5  ;;  %v6978_v32 = vpack.i.bf16 %v11908_v61, %v11909_v15  ;;  %v11915_v61 = vunpack.c.h.bf16 %v9578_v58 }
 0x4d7   : >> { %v7003_v5 = vpack.i.bf16 %v11915_v61, %v11916_v1 }
 0x4d9   : >> { %6969 = vrot.lane.b32.xlu0 %v6968_v41, %s8069_s30  ;;  %6974 = vrot.lane.b32.xlu1 %v6968_v41, %s8070_s5  ;;  %v11914_v41 = vunpack.c.h.bf16 %v9575_v22 }
 0x4db   : >> { %v6998_v15 = vpack.i.bf16 %v11914_v41, %v11917_v25  ;;  %v11921_v41 = vunpack.c.h.bf16 %v9600_v14  ;;  %v9619_v25 = vld [vmem:[%s9546_s18 + $0x120] sm:$0xff] }
 0x4dc   : >> { %12154 = vst [vmem:[#allocation128_spill] sm:$0xff] %v9619_v25  ;;  %v11929_v55 = vunpack.c.l.bf16 %v9619_v25 }
 0x4dd   : >> { %6979 = vrot.lane.b32.xlu0 %v6978_v32, %s8069_s30  ;;  %6984 = vrot.lane.b32.xlu1 %v6983_v62, %s8069_s30 }
 0x4e1   : >> { %6989 = vrot.lane.b32.xlu0 %v6978_v32, %s8070_s5  ;;  %6994 = vrot.lane.b32.xlu1 %v6983_v62, %s8070_s5  ;;  %v11923_v32 = vunpack.c.l.bf16 %v9597_v31  ;;  %v11922_v62 = vunpack.c.l.bf16 %v9600_v14 }
 0x4e3   : >> { %v7018_v61 = vpack.i.bf16 %v11920_v59, %v11923_v32  ;;  %v7023_v1 = vpack.i.bf16 %v11921_v41, %v11922_v62  ;;  %v11930_v59 = vunpack.c.h.bf16 %v9622_v29 }
 0x4e5   : >> { %6999 = vrot.lane.b32.xlu0 %v6998_v15, %s8069_s30  ;;  %7004 = vrot.lane.b32.xlu1 %v7003_v5, %s8069_s30 }
 0x4e9   : >> { %7009 = vrot.lane.b32.xlu0 %v6998_v15, %s8070_s5  ;;  %7014 = vrot.lane.b32.xlu1 %v7003_v5, %s8070_s5  ;;  %v11928_v5 = vunpack.c.h.bf16 %v9619_v25  ;;  %v11931_v15 = vunpack.c.l.bf16 %v9622_v29  ;;  %v12161_v29 = vunpack.c.h.bf16 %v9466_v48 }
 0x4eb   : >> { %v7038_v41 = vpack.i.bf16 %v11928_v5, %v11929_v55  ;;  %v7043_v62 = vpack.i.bf16 %v11930_v59, %v11931_v15  ;;  %v12157_v5 = vunpack.c.h.bf16 %v9463_v56  ;;  %v12159_v59 = vunpack.c.l.bf16 %v9463_v56 }
 0x4ed   : >> { %7019 = vrot.lane.b32.xlu0 %v7018_v61, %s8069_s30  ;;  %7024 = vrot.lane.b32.xlu1 %v7023_v1, %s8069_s30  ;;  %v2575_v55 = vmul.f32 %v12157_v5, %v12156_v35  ;;  %v2574_v15 = vmul.f32 %v12159_v59, %v12158_v12 }
 0x4f1   : >> { %7029 = vrot.lane.b32.xlu0 %v7018_v61, %s8070_s5  ;;  %7034 = vrot.lane.b32.xlu1 %v7023_v1, %s8070_s5 }
 0x4f5   : >> { %7039 = vrot.lane.b32.xlu0 %v7038_v41, %s8069_s30  ;;  %7044 = vrot.lane.b32.xlu1 %v7043_v62, %s8069_s30 }
 0x4f9   : >> { %7049 = vrot.lane.b32.xlu0 %v7038_v41, %s8070_s5  ;;  %7054 = vrot.lane.b32.xlu1 %v7043_v62, %s8070_s5  ;;  %v2577_v41 = vmul.f32 %v12161_v29, %v12160_v13  ;;  %v12162_v62 = vunpack.c.l.bf16 %v9466_v48 }
 0x4fb   : >> { %v2576_v14 = vmul.f32 %v12162_v62, %v9237_v57 }
 0x52f   : >> { %v6900_v61 = vpop.permute.xlu0 %6899  ;;  %v6910_v1 = vpop.permute.xlu1 %6909 }
 0x530   : >> { %v6902_v32 = vunpack.i.h.bf16 %v6900_v61  ;;  %v6901_v23 = vunpack.i.l.bf16 %v6900_v61  ;;  %v6912_v51 = vunpack.i.h.bf16 %v6910_v1  ;;  %v6911_v25 = vunpack.i.l.bf16 %v6910_v1 }
 0x532   : >> { %v2655_v61 = vmul.f32 %v6902_v32, %v9267_v28  ;;  %v2654_v1 = vmul.f32 %v6901_v23, %v12147_v4  ;;  %v2657_v31 = vmul.f32 %v6912_v51, %v9271_v54  ;;  %v2656_v5 = vmul.f32 %v6911_v25, %v9269_v60 }
 0x533   : >> { %v6905_v58 = vpop.permute.xlu0 %6904  ;;  %v6915_v35 = vpop.permute.xlu1 %6914  ;;  %v12164_v25 = vunpack.c.l.bf16 %v9473_v6 }
 0x534   : >> { %v6907_v56 = vunpack.i.h.bf16 %v6905_v58  ;;  %v6906_v59 = vunpack.i.l.bf16 %v6905_v58  ;;  %v2673_v22 = vadd.f32 %v2657_v31, %v2577_v41  ;;  %v2672_v37 = vadd.f32 %v2656_v5, %v2576_v14 }
 0x535   : >> { %v6917_v12 = vunpack.i.h.bf16 %v6915_v35  ;;  %v6916_v29 = vunpack.i.l.bf16 %v6915_v35  ;;  %v2671_v21 = vadd.f32 %v2655_v61, %v2575_v55  ;;  %v2670_v13 = vadd.f32 %v2654_v1, %v2574_v15 }
 0x536   : >> { %v2735_v48 = vmul.f32 %v6907_v56, %v12140_v18  ;;  %v2734_v32 = vmul.f32 %v6906_v59, %v9297_v20  ;;  %v2578_v62 = vmul.f32 %v12164_v25, %v9241_v26  ;;  %v12166_v31 = vunpack.c.h.bf16 %v9473_v6 }
 0x537   : >> { %v2737_v23 = vmul.f32 %v6917_v12, %v12146_v3  ;;  %v2736_v51 = vmul.f32 %v6916_v29, %v12163_v63  ;;  %v6920_v58 = vpop.permute.xlu0 %6919  ;;  %v6925_v35 = vpop.permute.xlu1 %6924  ;;  %v12167_v25 = vunpack.c.l.bf16 %v9488_v53 }
 0x538   : >> { %v2579_v14 = vmul.f32 %v12166_v31, %v12165_v2  ;;  %v2750_v55 = vadd.f32 %v2734_v32, %v2670_v13  ;;  %v2751_v15 = vadd.f32 %v2735_v48, %v2671_v21  ;;  %v6922_v41 = vunpack.i.h.bf16 %v6920_v58 }
 0x539   : >> { %v6921_v61 = vunpack.i.l.bf16 %v6920_v58  ;;  %v2752_v1 = vadd.f32 %v2736_v51, %v2672_v37  ;;  %v2753_v5 = vadd.f32 %v2737_v23, %v2673_v22  ;;  %v6927_v56 = vunpack.i.h.bf16 %v6925_v35 }
 0x53a   : >> { %v6926_v12 = vunpack.i.l.bf16 %v6925_v35  ;;  %v2787_v59 = vpack.c.bf16 %v2751_v15, %v2750_v55  ;;  %v2659_v29 = vmul.f32 %v6922_v41, %v9275_v33  ;;  %v2580_v6 = vmul.f32 %v12167_v25, %v9245_v45 }
 0x53b   : >> { %v2658_v63 = vmul.f32 %v6921_v61, %v9273_v44  ;;  %v2788_v31 = vpack.c.bf16 %v2753_v5, %v2752_v1  ;;  %v2739_v2 = vmul.f32 %v6927_v56, %v12144_v8  ;;  %v12168_v21 = vunpack.c.h.bf16 %v9488_v53  ;;  %v6930_v37 = vpop.permute.xlu0 %6929  ;;  %v6935_v48 = vpop.permute.xlu1 %6934 }
 0x53c   : >> { %v2738_v13 = vmul.f32 %v6926_v12, %v12142_v16  ;;  %6337 = vmatprep.subr.bf16.mxu0 %v2787_v59  ;;  %v2675_v32 = vadd.f32 %v2659_v29, %v2579_v14  ;;  %v6932_v51 = vunpack.i.h.bf16 %v6930_v37  ;;  %v6931_v58 = vunpack.i.l.bf16 %v6930_v37 }
 0x53d   : >> { %v2581_v22 = vmul.f32 %v12168_v21, %v12145_v7  ;;  %v2674_v23 = vadd.f32 %v2658_v63, %v2578_v62  ;;  %6338 = vmatpush3.bf16.xpose.msra.mxu0 %v2787_v59  ;;  %v6937_v35 = vunpack.i.h.bf16 %v6935_v48  ;;  %v6936_v55 = vunpack.i.l.bf16 %v6935_v48 }
 0x53e   : >> { %6339 = vmatprep.subr.bf16.mxu0 %v2788_v31  ;;  %v2755_v41 = vadd.f32 %v2739_v2, %v2675_v32  ;;  %v2661_v61 = vmul.f32 %v6932_v51, %v9279_v39  ;;  %v2660_v1 = vmul.f32 %v6931_v58, %v12141_v17  ;;  %v12169_v14 = vunpack.c.h.bf16 %v9499_v38 }
 0x53f   : >> { %v2754_v15 = vadd.f32 %v2738_v13, %v2674_v23  ;;  %v2741_v53 = vmul.f32 %v6937_v35, %v9311_v46  ;;  %v2740_v5 = vmul.f32 %v6936_v55, %v9309_v52  ;;  %v6940_v62 = vpop.permute.xlu0 %6939  ;;  %v6945_v56 = vpop.permute.xlu1 %6944  ;;  %v12170_v2 = vunpack.c.l.bf16 %v9499_v38 }
 0x540   : >> { %v2583_v63 = vmul.f32 %v12169_v14, %v12143_v11  ;;  %v2677_v12 = vadd.f32 %v2661_v61, %v2581_v22  ;;  %v2676_v59 = vadd.f32 %v2660_v1, %v2580_v6  ;;  %v6942_v25 = vunpack.i.h.bf16 %v6940_v62 }
 0x541   : >> { %v2789_v29 = vpack.c.bf16 %v2755_v41, %v2754_v15  ;;  %v2582_v13 = vmul.f32 %v12170_v2, %v9249_v30  ;;  %v6941_v21 = vunpack.i.l.bf16 %v6940_v62  ;;  %v6947_v37 = vunpack.i.h.bf16 %v6945_v56 }
 0x542   : >> { %v6946_v48 = vunpack.i.l.bf16 %v6945_v56  ;;  %v2756_v32 = vadd.f32 %v2740_v5, %v2676_v59  ;;  %v2757_v23 = vadd.f32 %v2741_v53, %v2677_v12  ;;  %v2663_v51 = vmul.f32 %v6942_v25, %v9283_v43 }
 0x543   : >> { %v12171_v58 = vunpack.c.l.bf16 %v9510_v9  ;;  %v2662_v22 = vmul.f32 %v6941_v21, %v9281_v47  ;;  %v2743_v6 = vmul.f32 %v6947_v37, %v9315_v40  ;;  %v12172_v38 = vunpack.c.h.bf16 %v9510_v9  ;;  %v6950_v41 = vpop.permute.xlu0 %6949  ;;  %v6955_v61 = vpop.permute.xlu1 %6954 }
 0x544   : >> { %v2742_v55 = vmul.f32 %v6946_v48, %v9313_v27  ;;  %v2679_v1 = vadd.f32 %v2663_v51, %v2583_v63  ;;  %v9700_v53 = vpack.c.bf16 %v2757_v23, %v2756_v32  ;;  %v6952_v5 = vunpack.i.h.bf16 %v6950_v41  ;;  %v12176_v32 = vld [vmem:[#allocation102_spill] sm:$0xff] }
 0x545   : >> { %v2584_v35 = vmul.f32 %v12171_v58, %v9253_v24  ;;  %v2585_v15 = vmul.f32 %v12172_v38, %v9255_v50  ;;  %v6951_v14 = vunpack.i.l.bf16 %v6950_v41  ;;  %6340 = vmatpush3.bf16.xpose.msra.mxu0 %v2788_v31  ;;  %v2678_v62 = vadd.f32 %v2662_v22, %v2582_v13 }
 0x546   : >> { %v6957_v56 = vunpack.i.h.bf16 %v6955_v61  ;;  %v6956_v12 = vunpack.i.l.bf16 %v6955_v61  ;;  %6341 = vmatprep.subr.bf16.mxu0 %v2789_v29  ;;  %v2759_v59 = vadd.f32 %v2743_v6, %v2679_v1  ;;  %v2665_v25 = vmul.f32 %v6952_v5, %v9287_v49 }
 0x547   : >> { %v2664_v2 = vmul.f32 %v6951_v14, %v9285_v36  ;;  %v12173_v9 = vunpack.c.l.bf16 %v9522_v42  ;;  %v2758_v37 = vadd.f32 %v2742_v55, %v2678_v62  ;;  %v12177_v31 = vunpack.c.h.bf16 %v9522_v42  ;;  %v6960_v23 = vpop.permute.xlu0 %6959  ;;  %v6965_v51 = vpop.permute.xlu1 %6964  ;;  %v12178_v14 = vld [vmem:[#allocation108_spill] sm:$0xff]  ;;  %v12181_v42 = vld [vmem:[#allocation118_spill] sm:$0xff] }
 0x548   : >> { %v2745_v63 = vmul.f32 %v6957_v56, %v12174_v34  ;;  %v2744_v48 = vmul.f32 %v6956_v12, %v12175_v10  ;;  %v2681_v58 = vadd.f32 %v2665_v25, %v2585_v15  ;;  %v6962_v6 = vunpack.i.h.bf16 %v6960_v23  ;;  %v12179_v56 = vld [vmem:[#allocation107_spill] sm:$0xff]  ;;  %v12182_v34 = vld [vmem:[#allocation104_spill] sm:$0xff] }
 0x549   : >> { %v2586_v21 = vmul.f32 %v12173_v9, %v12139_v19  ;;  %v2587_v13 = vmul.f32 %v12177_v31, %v12176_v32  ;;  %v2680_v22 = vadd.f32 %v2664_v2, %v2584_v35  ;;  %v6961_v38 = vunpack.i.l.bf16 %v6960_v23  ;;  %v12180_v9 = vld [vmem:[#allocation119_spill] sm:$0xff] }
 0x54a   : >> { %v9712_v41 = vpack.c.bf16 %v2759_v59, %v2758_v37  ;;  %v6967_v61 = vunpack.i.h.bf16 %v6965_v51  ;;  %v6966_v1 = vunpack.i.l.bf16 %v6965_v51  ;;  %v2761_v55 = vadd.f32 %v2745_v63, %v2681_v58  ;;  %v12184_v63 = vld [vmem:[#allocation103_spill] sm:$0xff] }
 0x54b   : >> { %v2760_v5 = vadd.f32 %v2744_v48, %v2680_v22  ;;  %v2667_v62 = vmul.f32 %v6962_v6, %v12178_v14  ;;  %v2666_v12 = vmul.f32 %v6961_v38, %v12179_v56  ;;  %v12183_v15 = vunpack.c.h.bf16 %v9535_v0  ;;  %v6970_v25 = vpop.permute.xlu0 %6969  ;;  %v6975_v2 = vpop.permute.xlu1 %6974  ;;  %v12192_v56 = vld [vmem:[#allocation120_spill] sm:$0xff] }
 0x54c   : >> { %v2747_v10 = vmul.f32 %v6967_v61, %v12180_v9  ;;  %v2746_v31 = vmul.f32 %v6966_v1, %v12181_v42  ;;  %v6972_v48 = vunpack.i.h.bf16 %v6970_v25  ;;  %v12185_v51 = vunpack.c.l.bf16 %v9535_v0  ;;  %v12187_v9 = vld [vmem:[#allocation97_spill] sm:$0xff] }
 0x54d   : >> { %v2589_v35 = vmul.f32 %v12183_v15, %v12182_v34  ;;  %v2683_v59 = vadd.f32 %v2667_v62, %v2587_v13  ;;  %v2682_v37 = vadd.f32 %v2666_v12, %v2586_v21  ;;  %v9721_v23 = vpack.c.bf16 %v2761_v55, %v2760_v5  ;;  %6342 = vmatpush3.bf16.xpose.msra.mxu0 %v2789_v29  ;;  %v12186_v15 = vld [vmem:[#allocation110_spill] sm:$0xff]  ;;  %v12188_v13 = vld [vmem:[#allocation123_spill] sm:$0xff]  ;;  %v12190_v55 = vld [vmem:[#allocation109_spill] sm:$0xff] }
 0x54e   : >> { %v2588_v58 = vmul.f32 %v12185_v51, %v12184_v63  ;;  %v6971_v22 = vunpack.i.l.bf16 %v6970_v25  ;;  %v6977_v6 = vunpack.i.h.bf16 %v6975_v2  ;;  %v6976_v38 = vunpack.i.l.bf16 %v6975_v2  ;;  %6343 = vmatprep.subr.bf16.mxu0 %v9700_v53  ;;  %v12191_v29 = vld [vmem:[#allocation121_spill] sm:$0xff] }
 0x54f   : >> { %v2762_v61 = vadd.f32 %v2746_v31, %v2682_v37  ;;  %v2763_v1 = vadd.f32 %v2747_v10, %v2683_v59  ;;  %v2669_v42 = vmul.f32 %v6972_v48, %v12186_v15  ;;  %v12189_v21 = vunpack.c.h.bf16 %v12188_v13  ;;  %v6980_v51 = vpop.permute.xlu0 %6979  ;;  %v6985_v25 = vpop.permute.xlu1 %6984 }
 0x550   : >> { %v2668_v62 = vmul.f32 %v6971_v22, %v12190_v55  ;;  %v2749_v12 = vmul.f32 %v6977_v6, %v12191_v29  ;;  %v2748_v0 = vmul.f32 %v6976_v38, %v12192_v56  ;;  %v12193_v2 = vunpack.c.l.bf16 %v12188_v13  ;;  %v12195_v22 = vld [vmem:[#allocation122_spill] sm:$0xff]  ;;  %v12197_v56 = vld [vmem:[#allocation124_spill] sm:$0xff] }
 0x551   : >> { %v2356_v5 = vmul.f32 %v12189_v21, %v12187_v9  ;;  %v2685_v31 = vadd.f32 %v2669_v42, %v2589_v35  ;;  %v9737_v10 = vpack.c.bf16 %v2763_v1, %v2762_v61  ;;  %v6982_v59 = vunpack.i.h.bf16 %v6980_v51  ;;  %v12194_v21 = vld [vmem:[#allocation95_spill] sm:$0xff] }
 0x552   : >> { %v2355_v14 = vmul.f32 %v12193_v2, %v9237_v57  ;;  %v6981_v37 = vunpack.i.l.bf16 %v6980_v51  ;;  %v2684_v48 = vadd.f32 %v2668_v62, %v2588_v58  ;;  %v6987_v15 = vunpack.i.h.bf16 %v6985_v25  ;;  %v12199_v2 = vld [vmem:[#allocation96_spill] sm:$0xff] }
 0x553   : >> { %v6986_v9 = vunpack.i.l.bf16 %v6985_v25  ;;  %v12196_v55 = vunpack.c.l.bf16 %v12195_v22  ;;  %v2765_v29 = vadd.f32 %v2749_v12, %v2685_v31  ;;  %v12198_v34 = vunpack.c.l.bf16 %v12197_v56  ;;  %v6990_v51 = vpop.permute.xlu0 %6989  ;;  %v7134_v57 = vld [vmem:[#allocation21 + $0x44] ss:$8 sps:$4 sm:$0xff] (%p2320_p13)  }
 0x554   : >> { %v2433_v38 = vmul.f32 %v6981_v37, %v12147_v4  ;;  %v12200_v42 = vunpack.c.h.bf16 %v12195_v22  ;;  %v2764_v61 = vadd.f32 %v2748_v0, %v2684_v48  ;;  %v2434_v58 = vmul.f32 %v6982_v59, %v9267_v28  ;;  %v12201_v48 = vld [vmem:[#allocation112_spill] sm:$0xff] }
 0x555   : >> { %v2353_v6 = vmul.f32 %v12196_v55, %v12194_v21  ;;  %v2357_v13 = vmul.f32 %v12198_v34, %v9241_v26  ;;  %v2436_v1 = vmul.f32 %v6987_v15, %v9271_v54  ;;  %v2435_v62 = vmul.f32 %v6986_v9, %v9269_v60  ;;  %v6995_v55 = vpop.permute.xlu1 %6994  ;;  %6344 = vmatpush3.bf16.xpose.msra.mxu0 %v9700_v53  ;;  %v7136_v26 = vld [vmem:[#allocation21 + $0x40] ss:$8 sps:$4 sm:$0xff] (%p2320_p13)   ;;  %v7143_v54 = vld [vmem:[#allocation21 + $0x74] ss:$8 sps:$4 sm:$0xff] (%p2320_p13)  }
 0x556   : >> { %v2354_v35 = vmul.f32 %v12200_v42, %v12199_v2  ;;  %v6992_v12 = vunpack.i.h.bf16 %v6990_v51  ;;  %v6991_v25 = vunpack.i.l.bf16 %v6990_v51  ;;  %v6997_v31 = vunpack.i.h.bf16 %v6995_v55  ;;  %6345 = vmatprep.subr.bf16.mxu0 %v9712_v41  ;;  %v12202_v2 = vld [vmem:[#allocation98_spill] sm:$0xff] }
 0x557   : >> { %v6996_v37 = vunpack.i.l.bf16 %v6995_v55  ;;  %v2452_v34 = vadd.f32 %v2436_v1, %v2356_v5  ;;  %v2451_v21 = vadd.f32 %v2435_v62, %v2355_v14  ;;  %v9753_v4 = vpack.c.bf16 %v2765_v29, %v2764_v61  ;;  %v7000_v53 = vpop.permute.xlu0 %6999  ;;  %v12204_v14 = vld [vmem:[#allocation125_spill] sm:$0xff]  ;;  %v7142_v60 = vld [vmem:[#allocation21 + $0x60] ss:$8 sps:$4 sm:$0xff] (%p2320_p13)  }
 0x558   : >> { %v2449_v22 = vadd.f32 %v2433_v38, %v2353_v6  ;;  %v2514_v0 = vmul.f32 %v6992_v12, %v12140_v18  ;;  %v2513_v15 = vmul.f32 %v6991_v25, %v9297_v20  ;;  %v2516_v59 = vmul.f32 %v6997_v31, %v12146_v3  ;;  %v12225_v18 = vld [vmem:[#allocation109_spill] sm:$0xff] }
 0x559   : >> { %v2515_v9 = vmul.f32 %v6996_v37, %v12201_v48  ;;  %v12203_v42 = vunpack.c.h.bf16 %v12197_v56  ;;  %v12205_v5 = vunpack.c.l.bf16 %v12204_v14  ;;  %v12206_v6 = vunpack.c.h.bf16 %v12204_v14  ;;  %v7005_v61 = vpop.permute.xlu1 %7004  ;;  %v7155_v20 = vld [vmem:[#allocation21 + $0xb4] ss:$8 sps:$4 sm:$0xff] (%p2320_p13)  }
 0x55a   : >> { %v2450_v1 = vadd.f32 %v2434_v58, %v2354_v35  ;;  %v9771_v55 = vadd.f32 %v2516_v59, %v2452_v34  ;;  %v7002_v12 = vunpack.i.h.bf16 %v7000_v53  ;;  %v7001_v25 = vunpack.i.l.bf16 %v7000_v53 }
 0x55b   : >> { %v2358_v51 = vmul.f32 %v12203_v42, %v12202_v2  ;;  %v2359_v29 = vmul.f32 %v12205_v5, %v9245_v45  ;;  %v2360_v38 = vmul.f32 %v12206_v6, %v12145_v7  ;;  %v9769_v62 = vadd.f32 %v2515_v9, %v2451_v21  ;;  %v7010_v34 = vpop.permute.xlu0 %7009  ;;  %v7137_v45 = vld [vmem:[#allocation21 + $0x54] ss:$8 sps:$4 sm:$0xff] (%p2320_p13)  }
 0x55c   : >> { %v7007_v31 = vunpack.i.h.bf16 %v7005_v61  ;;  %v7006_v56 = vunpack.i.l.bf16 %v7005_v61  ;;  %v2529_v37 = vadd.f32 %v2513_v15, %v2449_v22  ;;  %v2530_v48 = vadd.f32 %v2514_v0, %v2450_v1 }
 0x55d   : >> { %v2438_v2 = vmul.f32 %v7002_v12, %v9275_v33  ;;  %v2437_v42 = vmul.f32 %v7001_v25, %v9273_v44  ;;  %v7015_v21 = vpop.permute.xlu1 %7014  ;;  %v7012_v53 = vunpack.i.h.bf16 %v7010_v34  ;;  %v7011_v6 = vunpack.i.l.bf16 %v7010_v34  ;;  %6346 = vmatpush3.bf16.xpose.msra.mxu0 %v9712_v41  ;;  %v12207_v25 = vld [vmem:[#allocation126_spill] sm:$0xff]  ;;  %v7145_v44 = vld [vmem:[#allocation21 + $0x70] ss:$8 sps:$4 sm:$0xff] (%p2320_p13)   ;;  %v7146_v33 = vld [vmem:[#allocation21 + $0x84] ss:$8 sps:$4 sm:$0xff] (%p2320_p13)  }
 0x55e   : >> { %v2440_v5 = vmul.f32 %v7007_v31, %v9279_v39  ;;  %v2439_v35 = vmul.f32 %v7006_v56, %v12141_v17  ;;  %v2779_v58 = vpack.c.bf16 %v2530_v48, %v2529_v37  ;;  %v7017_v15 = vunpack.i.h.bf16 %v7015_v21  ;;  %6347 = vmatprep.subr.bf16.mxu0 %v9721_v23  ;;  %v12210_v37 = vld [vmem:[#allocation127_spill] sm:$0xff]  ;;  %v12224_v17 = vld [vmem:[#allocation110_spill] sm:$0xff] }
 0x55f   : >> { %v2454_v59 = vadd.f32 %v2438_v2, %v2358_v51  ;;  %v2453_v9 = vadd.f32 %v2437_v42, %v2357_v13  ;;  %v7016_v61 = vunpack.i.l.bf16 %v7015_v21  ;;  %v2518_v1 = vmul.f32 %v7012_v53, %v12144_v8  ;;  %v7148_v39 = vld [vmem:[#allocation21 + $0x80] ss:$8 sps:$4 sm:$0xff] (%p2320_p13)  }
 0x560   : >> { %v2456_v22 = vadd.f32 %v2440_v5, %v2360_v38  ;;  %v2455_v0 = vadd.f32 %v2439_v35, %v2359_v29  ;;  %6353 = vmatprep.mubr.bf16.mxu0 %v2779_v58  ;;  %v2517_v12 = vmul.f32 %v7011_v6, %v12142_v16  ;;  %v12208_v31 = vunpack.c.l.bf16 %v12207_v25  ;;  %v7020_v38 = vpop.permute.xlu0 %7019 }
 0x561   : >> { %v12209_v13 = vunpack.c.h.bf16 %v12207_v25  ;;  %v2520_v41 = vmul.f32 %v7017_v15, %v9311_v46  ;;  %v2519_v29 = vmul.f32 %v7016_v61, %v9309_v52  ;;  %v12211_v48 = vunpack.c.l.bf16 %v12210_v37  ;;  %v7025_v35 = vpop.permute.xlu1 %7024  ;;  %v7157_v52 = vld [vmem:[#allocation21 + $0xb0] ss:$8 sps:$4 sm:$0xff] (%p2320_p13)   ;;  %v7158_v46 = vld [vmem:[#allocation21 + $0xc4] ss:$8 sps:$4 sm:$0xff] (%p2320_p13)  }
 0x562   : >> { %v2361_v51 = vmul.f32 %v12208_v31, %v9249_v30  ;;  %v12212_v42 = vunpack.c.h.bf16 %v12210_v37  ;;  %v9797_v58 = vadd.f32 %v2517_v12, %v2453_v9  ;;  %v9799_v34 = vadd.f32 %v2518_v1, %v2454_v59  ;;  %v7139_v30 = vld [vmem:[#allocation21 + $0x50] ss:$8 sps:$4 sm:$0xff] (%p2320_p13)  }
 0x563   : >> { %v2362_v56 = vmul.f32 %v12209_v13, %v12143_v11  ;;  %v2363_v2 = vmul.f32 %v12211_v48, %v9253_v24  ;;  %v7022_v21 = vunpack.i.h.bf16 %v7020_v38  ;;  %v7021_v53 = vunpack.i.l.bf16 %v7020_v38  ;;  %v7140_v24 = vld [vmem:[#allocation21 + $0x64] ss:$8 sps:$4 sm:$0xff] (%p2320_p13)  }
 0x564   : >> { %v2364_v5 = vmul.f32 %v12212_v42, %v9255_v50  ;;  %v9801_v6 = vadd.f32 %v2519_v29, %v2455_v0  ;;  %v9803_v15 = vadd.f32 %v2520_v41, %v2456_v22  ;;  %v7027_v61 = vunpack.i.h.bf16 %v7025_v35  ;;  %v7030_v1 = vpop.permute.xlu0 %7029 }
 0x565   : >> { %v7026_v25 = vunpack.i.l.bf16 %v7025_v35  ;;  %v2442_v31 = vmul.f32 %v7022_v21, %v9283_v43  ;;  %v2441_v13 = vmul.f32 %v7021_v53, %v9281_v47  ;;  %v7035_v12 = vpop.permute.xlu1 %7034  ;;  %v7032_v29 = vunpack.i.h.bf16 %v7030_v1  ;;  %6348 = vmatpush3.bf16.xpose.msra.mxu0 %v9721_v23  ;;  %v7149_v47 = vld [vmem:[#allocation21 + $0x94] ss:$8 sps:$4 sm:$0xff] (%p2320_p13)   ;;  %v7151_v43 = vld [vmem:[#allocation21 + $0x90] ss:$8 sps:$4 sm:$0xff] (%p2320_p13)  }
 0x566   : >> { %v2444_v9 = vmul.f32 %v7027_v61, %v9287_v49  ;;  %v2782_v0 = vpack.c.bf16 %v9803_v15, %v9801_v6  ;;  %v7031_v38 = vunpack.i.l.bf16 %v7030_v1  ;;  %v7037_v35 = vunpack.i.h.bf16 %v7035_v12  ;;  %6349 = vmatprep.subr.bf16.mxu0 %v9737_v10  ;;  %v12216_v15 = vld [vmem:[#allocation117_spill] sm:$0xff]  ;;  %v12220_v1 = vld [vmem:[#allocation104_spill] sm:$0xff]  ;;  %v7154_v49 = vld [vmem:[#allocation21 + $0xa0] ss:$8 sps:$4 sm:$0xff] (%p2320_p13)  }
 0x567   : >> { %v2443_v59 = vmul.f32 %v7026_v25, %v9285_v36  ;;  %v2458_v22 = vadd.f32 %v2442_v31, %v2362_v56  ;;  %v2457_v41 = vadd.f32 %v2441_v13, %v2361_v51  ;;  %v7036_v21 = vunpack.i.l.bf16 %v7035_v12  ;;  %v12213_v25 = vld [vmem:[#allocation128_spill] sm:$0xff]  ;;  %v12218_v13 = vld [vmem:[#allocation129_spill] sm:$0xff] }
 0x568   : >> { %v2460_v48 = vadd.f32 %v2444_v9, %v2364_v5  ;;  %v2522_v53 = vmul.f32 %v7032_v29, %v9315_v40  ;;  %v2521_v61 = vmul.f32 %v7031_v38, %v9313_v27  ;;  %v12214_v37 = vunpack.c.l.bf16 %v12213_v25  ;;  %v12217_v5 = vld [vmem:[#allocation116_spill] sm:$0xff]  ;;  %v7040_v31 = vpop.permute.xlu0 %7039  ;;  %v7160_v27 = vld [vmem:[#allocation21 + $0xc0] ss:$8 sps:$4 sm:$0xff] (%p2320_p13)   ;;  %v7161_v40 = vld [vmem:[#allocation21 + $0xd4] ss:$8 sps:$4 sm:$0xff] (%p2320_p13)  }
 0x569   : >> { %v2459_v42 = vadd.f32 %v2443_v59, %v2363_v2  ;;  %v12215_v51 = vunpack.c.h.bf16 %v12213_v25  ;;  %v2524_v23 = vmul.f32 %v7037_v35, %v12216_v15  ;;  %v2523_v2 = vmul.f32 %v7036_v21, %v12217_v5  ;;  %v7045_v38 = vpop.permute.xlu1 %7044  ;;  %v12222_v15 = vld [vmem:[#allocation108_spill] sm:$0xff]  ;;  %v12223_v5 = vld [vmem:[#allocation107_spill] sm:$0xff] }
 0x56a   : >> { %v2365_v6 = vmul.f32 %v12214_v37, %v12139_v19  ;;  %v12219_v9 = vunpack.c.l.bf16 %v12218_v13  ;;  %v12221_v12 = vunpack.c.h.bf16 %v12218_v13  ;;  %v2537_v14 = vadd.f32 %v2521_v61, %v2457_v41  ;;  %v7152_v36 = vld [vmem:[#allocation21 + $0xa4] ss:$8 sps:$4 sm:$0xff] (%p2320_p13)  }
 0x56b   : >> { %v2366_v56 = vmul.f32 %v12215_v51, %v12176_v32  ;;  %v2538_v37 = vadd.f32 %v2522_v53, %v2458_v22  ;;  %v7042_v3 = vunpack.i.h.bf16 %v7040_v31  ;;  %v7041_v7 = vunpack.i.l.bf16 %v7040_v31  ;;  %v12229_v31 = vld [vmem:[#allocation120_spill] sm:$0xff] }
 0x56c   : >> { %v2367_v59 = vmul.f32 %v12219_v9, %v12184_v63  ;;  %v2368_v29 = vmul.f32 %v12221_v12, %v12220_v1  ;;  %v2539_v25 = vadd.f32 %v2523_v2, %v2459_v42  ;;  %v2540_v51 = vadd.f32 %v2524_v23, %v2460_v48  ;;  %v7050_v13 = vpop.permute.xlu0 %7049  ;;  %v7163_v32 = vld [vmem:[#allocation21 + $0xd0] ss:$8 sps:$4 sm:$0xff] (%p2320_p13)   ;;  %v7164_v63 = vld [vmem:[#allocation21 + $0xe4] ss:$8 sps:$4 sm:$0xff] (%p2320_p13)  }
 0x56d   : >> { %v7047_v8 = vunpack.i.h.bf16 %v7045_v38  ;;  %v7046_v35 = vunpack.i.l.bf16 %v7045_v38  ;;  %v2446_v21 = vmul.f32 %v7042_v3, %v12222_v15  ;;  %v2445_v11 = vmul.f32 %v7041_v7, %v12223_v5  ;;  %v7055_v1 = vpop.permute.xlu1 %7054  ;;  %6350 = vmatpush3.bf16.xpose.msra.mxu0 %v9737_v10  ;;  %v12226_v7 = vld [vmem:[#allocation119_spill] sm:$0xff] }
 0x56e   : >> { %v2783_v16 = vpack.c.bf16 %v2538_v37, %v2537_v14  ;;  %v2784_v12 = vpack.c.bf16 %v2540_v51, %v2539_v25  ;;  %v7052_v53 = vunpack.i.h.bf16 %v7050_v13  ;;  %v7051_v61 = vunpack.i.l.bf16 %v7050_v13  ;;  %6351 = vmatprep.subr.bf16.mxu0 %v9753_v4 }
 0x56f   : >> { %v2448_v9 = vmul.f32 %v7047_v8, %v12224_v17  ;;  %v2447_v19 = vmul.f32 %v7046_v35, %v12225_v18  ;;  %v2462_v41 = vadd.f32 %v2446_v21, %v2366_v56  ;;  %v2461_v22 = vadd.f32 %v2445_v11, %v2365_v6  ;;  %v12227_v17 = vld [vmem:[#allocation118_spill] sm:$0xff]  ;;  %v12228_v18 = vld [vmem:[#allocation121_spill] sm:$0xff]  ;;  %v12232_v35 = vld [vmem:[#allocation92_spill] sm:$0xff] }
 0x570   : >> { %v7057_v23 = vunpack.i.h.bf16 %v7055_v1  ;;  %v7056_v3 = vunpack.i.l.bf16 %v7055_v1  ;;  %v2526_v14 = vmul.f32 %v7052_v53, %v12226_v7  ;;  %v2525_v8 = vmul.f32 %v7051_v61, %v12227_v17 }
 0x571   : >> { %v2464_v48 = vadd.f32 %v2448_v9, %v2368_v29  ;;  %v2463_v42 = vadd.f32 %v2447_v19, %v2367_v59  ;;  %v12230_v19 = vpack.c.bf16 %v9771_v55, %v9769_v62  ;;  %v12231_v59 = vpack.c.bf16 %v9799_v34, %v9797_v58 }
 0x572   : >> { %v2528_v2 = vmul.f32 %v7057_v23, %v12228_v18  ;;  %v2527_v38 = vmul.f32 %v7056_v3, %v12229_v31  ;;  %v2541_v56 = vadd.f32 %v2525_v8, %v2461_v22  ;;  %v2542_v11 = vadd.f32 %v2526_v14, %v2462_v41 }
 0x574   : >> { %v2543_v6 = vadd.f32 %v2527_v38, %v2463_v42  ;;  %v2544_v37 = vadd.f32 %v2528_v2, %v2464_v48  ;;  %v2785_v25 = vpack.c.bf16 %v2542_v11, %v2541_v56  ;;  %v2771_v56 = vld [vmem:[%s9910_s3] sm:$0xff]  ;;  %v2772_v11 = vld [vmem:[%s9910_s3 + $0x30] sm:$0xff] }
 0x575   : >> { %6352 = vmatpush3.bf16.xpose.msra.mxu0 %v9753_v4  ;;  %6369 = vmatprep.subr.bf16.mxu1 %v2771_v56 }
 0x576   : >> { %v2786_v10 = vpack.c.bf16 %v2544_v37, %v2543_v6  ;;  %6370 = vmatpush3.bf16.msra.mxu1 %v2771_v56  ;;  %v2773_v6 = vld [vmem:[%s9910_s3 + $0x60] sm:$0xff] }
 0x577   : >> { %6371 = vmatprep.subr.bf16.mxu1 %v2772_v11 }
 0x57a   : >> { %6372 = vmatpush3.bf16.msra.mxu1 %v2772_v11 }
 0x57b   : >> { %6373 = vmatprep.subr.bf16.mxu1 %v2773_v6 }
 0x57c   : >> { %6354 = vmatmul.mubr.bf16.vlgmr.msra.gmra.mrb[0].mxu0 %v12230_v19 }
 0x57d   : >> { %6357 = vmatprep.mubr.bf16.mxu0 %v12231_v59 }
 0x57e   : >> { %6374 = vmatpush3.bf16.msra.mxu1 %v2773_v6 }
 0x584   : >> { %6358 = vmatmul.mubr.bf16.gmra.mrb[4].mxu0 %v2782_v0 }
 0x585   : >> { %6361 = vmatprep.mubr.bf16.mxu0 %v2783_v16 }
 0x58c   : >> { %6362 = vmatmul.mubr.bf16.gmra.mrb[8].mxu0 %v2784_v12 }
 0x58d   : >> { %6365 = vmatprep.mubr.bf16.mxu0 %v2785_v25 }
 0x594   : >> { %6366 = vmatmul.mubr.bf16.gmra.mrb[12].mxu0 %v2786_v10 }
 0x64f   : >> { %v6355_v29 = vpop.f32.mrb[0].mxu0 }
 0x650   : >> { %v2829_v51 = vpop.f32.mrb[1].mxu0  ;;  %v9853_v62 = vadd.f32 %v6355_v29, %v12232_v35 }
 0x651   : >> { %v2830_v15 = vadd.f32 %v2829_v51, %v12232_v35  ;;  %v6356_v21 = vpop.f32.mrb[2].mxu0 }
 0x652   : >> { %v2832_v5 = vpop.f32.mrb[3].mxu0  ;;  %v9858_v58 = vadd.f32 %v6356_v21, %v12232_v35 }
 0x653   : >> { %v9850_v4 = vadd.f32 %v2832_v5, %v12232_v35  ;;  %2892 = vmax.xlane.f32.xlu0 %v2830_v15 }
 0x655   : >> { %2894 = vmax.xlane.f32.xlu1 %v9850_v4 }
 0x657   : >> { %v6359_v55 = vpop.f32.mrb[4].mxu0  ;;  %2896 = vmax.xlane.f32.xlu0 %v9853_v62 }
 0x658   : >> { %v2845_v16 = vpop.f32.mrb[5].mxu0  ;;  %v9866_v13 = vadd.f32 %v6359_v55, %v12232_v35 }
 0x659   : >> { %v9861_v34 = vadd.f32 %v2845_v16, %v12232_v35  ;;  %v6360_v0 = vpop.f32.mrb[6].mxu0 }
 0x65a   : >> { %v2848_v9 = vpop.f32.mrb[7].mxu0  ;;  %v9874_v22 = vadd.f32 %v6360_v0, %v12232_v35 }
 0x65b   : >> { %2900 = vmax.xlane.f32.xlu1 %v9861_v34  ;;  %2898 = vmax.xlane.f32.xlu0 %v9858_v58  ;;  %v9869_v1 = vadd.f32 %v2848_v9, %v12232_v35 }
 0x65f   : >> { %v6363_v12 = vpop.f32.mrb[8].mxu0  ;;  %2904 = vmax.xlane.f32.xlu1 %v9866_v13  ;;  %2902 = vmax.xlane.f32.xlu0 %v9869_v1 }
 0x660   : >> { %v2861_v41 = vpop.f32.mrb[9].mxu0  ;;  %v9882_v42 = vadd.f32 %v6363_v12, %v12232_v35 }
 0x661   : >> { %v9877_v53 = vadd.f32 %v2861_v41, %v12232_v35  ;;  %v6364_v61 = vpop.f32.mrb[10].mxu0 }
 0x662   : >> { %v2864_v48 = vpop.f32.mrb[11].mxu0  ;;  %v9890_v14 = vadd.f32 %v6364_v61, %v12232_v35 }
 0x663   : >> { %2908 = vmax.xlane.f32.xlu1 %v9877_v53  ;;  %2906 = vmax.xlane.f32.xlu0 %v9874_v22  ;;  %v9885_v23 = vadd.f32 %v2864_v48, %v12232_v35 }
 0x667   : >> { %v6367_v3 = vpop.f32.mrb[12].mxu0  ;;  %2912 = vmax.xlane.f32.xlu1 %v9882_v42  ;;  %2910 = vmax.xlane.f32.xlu0 %v9885_v23 }
 0x668   : >> { %v2877_v7 = vpop.f32.mrb[13].mxu0  ;;  %v9898_v2 = vadd.f32 %v6367_v3, %v12232_v35 }
 0x669   : >> { %v9893_v17 = vadd.f32 %v2877_v7, %v12232_v35  ;;  %v6368_v8 = vpop.f32.mrb[14].mxu0 }
 0x66a   : >> { %v2880_v18 = vpop.f32.mrb[15].mxu0  ;;  %v9906_v38 = vadd.f32 %v6368_v8, %v12232_v35 }
 0x66b   : >> { %2916 = vmax.xlane.f32.xlu1 %v9893_v17  ;;  %2914 = vmax.xlane.f32.xlu0 %v9890_v14  ;;  %v9901_v31 = vadd.f32 %v2880_v18, %v12232_v35  ;;  %v7166_v35 = vld [vmem:[#allocation21 + $0xe0] ss:$8 sps:$4 sm:$0xff] (%p2320_p13)  }
 0x66f   : >> { %2920 = vmax.xlane.f32.xlu1 %v9898_v2  ;;  %2918 = vmax.xlane.f32.xlu0 %v9901_v31 }
 0x673   : >> { %2922 = vmax.xlane.f32.xlu0 %v9906_v38 }
 0x6e0   : >> { %v2893_v37 = vpop.xlane.xlu0 %2892 }
 0x6e1   : >> { %v2924_v25 = vsub.f32 %v2830_v15, %v2893_v37 }
 0x6e2   : >> { %v2895_v10 = vpop.xlane.xlu1 %2894 }
 0x6e3   : >> { %v2940_v19 = vmul.f32 1.442695, %v2924_v25  ;;  %v2925_v59 = vsub.f32 %v9850_v4, %v2895_v10 }
 0x6e4   : >> { %v2897_v29 = vpop.xlane.xlu0 %2896 }
 0x6e5   : >> { %7058 = vpow2.f32 %v2940_v19  ;;  %v2942_v51 = vmul.f32 1.442695, %v2925_v59  ;;  %v2926_v21 = vsub.f32 %v9853_v62, %v2897_v29 }
 0x6e7   : >> { %7060 = vpow2.f32 %v2942_v51  ;;  %v2944_v5 = vmul.f32 1.442695, %v2926_v21 }
 0x6e8   : >> { %v2901_v55 = vpop.xlane.xlu1 %2900  ;;  %v2899_v16 = vpop.xlane.xlu0 %2898 }
 0x6e9   : >> { %7062 = vpow2.f32 %v2944_v5  ;;  %v2928_v0 = vsub.f32 %v9861_v34, %v2901_v55  ;;  %v2927_v9 = vsub.f32 %v9858_v58, %v2899_v16 }
 0x6eb   : >> { %v2948_v12 = vmul.f32 1.442695, %v2928_v0  ;;  %v2946_v15 = vmul.f32 1.442695, %v2927_v9 }
 0x6ec   : >> { %v2905_v41 = vpop.xlane.xlu1 %2904  ;;  %v2903_v61 = vpop.xlane.xlu0 %2902 }
 0x6ed   : >> { %7064 = vpow2.f32 %v2948_v12  ;;  %v2930_v4 = vsub.f32 %v9866_v13, %v2905_v41  ;;  %v2929_v48 = vsub.f32 %v9869_v1, %v2903_v61 }
 0x6ee   : >> { %7066 = vpow2.f32 %v2946_v15 }
 0x6ef   : >> { %v9921_v62 = vpop.eup %7058  ;;  %v2952_v3 = vmul.f32 1.442695, %v2930_v4  ;;  %v2950_v7 = vmul.f32 1.442695, %v2929_v48  ;;  %v2774_v48 = vld [vmem:[%s9910_s3 + $0x90] sm:$0xff] }
 0x6f0   : >> { %v2909_v8 = vpop.xlane.xlu1 %2908  ;;  %2972 = vadd.xlane.f32.xlu1 %v9921_v62  ;;  %v2907_v34 = vpop.xlane.xlu0 %2906  ;;  %6375 = vmatprep.subr.bf16.mxu1 %v2774_v48 }
 0x6f1   : >> { %v9924_v18 = vpop.eup %7060  ;;  %7068 = vpow2.f32 %v2952_v3  ;;  %v2932_v58 = vsub.f32 %v9877_v53, %v2909_v8  ;;  %v2931_v56 = vsub.f32 %v9874_v22, %v2907_v34  ;;  %6376 = vmatpush3.bf16.msra.mxu1 %v2774_v48 }
 0x6f2   : >> { %7070 = vpow2.f32 %v2950_v7  ;;  %2974 = vadd.xlane.f32.xlu0 %v9924_v18 }
 0x6f3   : >> { %v9929_v13 = vpop.eup %7062  ;;  %v2956_v1 = vmul.f32 1.442695, %v2932_v58  ;;  %v2954_v11 = vmul.f32 1.442695, %v2931_v56 }
 0x6f4   : >> { %v2913_v6 = vpop.xlane.xlu1 %2912  ;;  %2976 = vadd.xlane.f32.xlu1 %v9929_v13  ;;  %v2911_v37 = vpop.xlane.xlu0 %2910 }
 0x6f5   : >> { %7072 = vpow2.f32 %v2956_v1  ;;  %v2934_v25 = vsub.f32 %v9882_v42, %v2913_v6  ;;  %v2933_v10 = vsub.f32 %v9885_v23, %v2911_v37  ;;  %v2777_v1 = vld [vmem:[%s9910_s3 + $0x120] sm:$0xff]  ;;  %v2778_v37 = vld [vmem:[%s9910_s3 + $0x150] sm:$0xff] }
 0x6f6   : >> { %7074 = vpow2.f32 %v2954_v11 }
 0x6f7   : >> { %v9934_v53 = vpop.eup %7064  ;;  %v2960_v22 = vmul.f32 1.442695, %v2934_v25  ;;  %v2958_v19 = vmul.f32 1.442695, %v2933_v10 }
 0x6f8   : >> { %v9936_v59 = vpop.eup %7066  ;;  %v2917_v29 = vpop.xlane.xlu1 %2916  ;;  %2980 = vadd.xlane.f32.xlu1 %v9934_v53 }
 0x6f9   : >> { %v2915_v51 = vpop.xlane.xlu0 %2914  ;;  %7076 = vpow2.f32 %v2960_v22  ;;  %v2936_v21 = vsub.f32 %v9893_v17, %v2917_v29  ;;  %2978 = vadd.xlane.f32.xlu0 %v9936_v59 }
 0x6fa   : >> { %v2935_v42 = vsub.f32 %v9890_v14, %v2915_v51  ;;  %7078 = vpow2.f32 %v2958_v19 }
 0x6fb   : >> { %v9942_v23 = vpop.eup %7068  ;;  %v2964_v5 = vmul.f32 1.442695, %v2936_v21 }
 0x6fc   : >> { %v2962_v55 = vmul.f32 1.442695, %v2935_v42  ;;  %v9944_v16 = vpop.eup %7070  ;;  %v2921_v0 = vpop.xlane.xlu1 %2920  ;;  %2984 = vadd.xlane.f32.xlu1 %v9942_v23 }
 0x6fd   : >> { %v2919_v9 = vpop.xlane.xlu0 %2918  ;;  %7080 = vpow2.f32 %v2964_v5  ;;  %v2938_v12 = vsub.f32 %v9898_v2, %v2921_v0  ;;  %2982 = vadd.xlane.f32.xlu0 %v9944_v16 }
 0x6fe   : >> { %v2937_v14 = vsub.f32 %v9901_v31, %v2919_v9  ;;  %7082 = vpow2.f32 %v2962_v55  ;;  %v2775_v31 = vld [vmem:[%s9910_s3 + $0xc0] sm:$0xff] }
 0x6ff   : >> { %v9950_v17 = vpop.eup %7072  ;;  %v2968_v15 = vmul.f32 1.442695, %v2938_v12  ;;  %6377 = vmatprep.subr.bf16.mxu1 %v2775_v31 }
 0x700   : >> { %v2966_v41 = vmul.f32 1.442695, %v2937_v14  ;;  %v9952_v61 = vpop.eup %7074  ;;  %2988 = vadd.xlane.f32.xlu1 %v9950_v17  ;;  %6378 = vmatpush3.bf16.msra.mxu1 %v2775_v31 }
 0x701   : >> { %v2923_v4 = vpop.xlane.xlu0 %2922  ;;  %7084 = vpow2.f32 %v2968_v15  ;;  %2986 = vadd.xlane.f32.xlu0 %v9952_v61 }
 0x702   : >> { %v2939_v2 = vsub.f32 %v9906_v38, %v2923_v4  ;;  %7086 = vpow2.f32 %v2966_v41  ;;  %v2776_v38 = vld [vmem:[%s9910_s3 + $0xf0] sm:$0xff] }
 0x703   : >> { %v9959_v3 = vpop.eup %7076  ;;  %6379 = vmatprep.subr.bf16.mxu1 %v2776_v38 }
 0x704   : >> { %v2970_v7 = vmul.f32 1.442695, %v2939_v2  ;;  %v9961_v8 = vpop.eup %7078  ;;  %2992 = vadd.xlane.f32.xlu1 %v9959_v3  ;;  %6380 = vmatpush3.bf16.msra.mxu1 %v2776_v38 }
 0x705   : >> { %2990 = vadd.xlane.f32.xlu0 %v9961_v8  ;;  %6381 = vmatprep.subr.bf16.mxu1 %v2777_v1 }
 0x706   : >> { %7088 = vpow2.f32 %v2970_v7 }
 0x707   : >> { %v9965_v34 = vpop.eup %7080 }
 0x708   : >> { %v9968_v58 = vpop.eup %7082  ;;  %2996 = vadd.xlane.f32.xlu1 %v9965_v34  ;;  %6382 = vmatpush3.bf16.msra.mxu1 %v2777_v1 }
 0x709   : >> { %2994 = vadd.xlane.f32.xlu0 %v9968_v58  ;;  %6383 = vmatprep.subr.bf16.mxu1 %v2778_v37 }
 0x70b   : >> { %v9972_v56 = vpop.eup %7084 }
 0x70c   : >> { %v9975_v11 = vpop.eup %7086  ;;  %3000 = vadd.xlane.f32.xlu1 %v9972_v56  ;;  %6384 = vmatpush3.bf16.msra.mxu1 %v2778_v37 }
 0x70d   : >> { %2998 = vadd.xlane.f32.xlu0 %v9975_v11 }
 0x710   : >> { %v9979_v6 = vpop.eup %7088 }
 0x711   : >> { %3002 = vadd.xlane.f32.xlu0 %v9979_v6 }
 0x77d   : >> { %v2973_v25 = vpop.xlane.xlu1 %2972 }
 0x77e   : >> { %7090 = vrcp.f32 %v2973_v25 }
 0x77f   : >> { %v2975_v10 = vpop.xlane.xlu0 %2974 }
 0x780   : >> { %7092 = vrcp.f32 %v2975_v10 }
 0x781   : >> { %v2977_v22 = vpop.xlane.xlu1 %2976 }
 0x782   : >> { %7094 = vrcp.f32 %v2977_v22 }
 0x785   : >> { %v2981_v19 = vpop.xlane.xlu1 %2980 }
 0x786   : >> { %v2979_v29 = vpop.xlane.xlu0 %2978 }
 0x787   : >> { %7096 = vrcp.f32 %v2979_v29 }
 0x788   : >> { %v7091_v51 = vpop.eup %7090  ;;  %7098 = vrcp.f32 %v2981_v19 }
 0x789   : >> { %v2985_v21 = vpop.xlane.xlu1 %2984  ;;  %v3020_v55 = vmul.f32 %v7091_v51, %v9921_v62 }
 0x78a   : >> { %v7093_v42 = vpop.eup %7092  ;;  %v2983_v5 = vpop.xlane.xlu0 %2982 }
 0x78b   : >> { %7100 = vrcp.f32 %v2983_v5  ;;  %v3021_v0 = vmul.f32 %v7093_v42, %v9924_v18 }
 0x78c   : >> { %7102 = vrcp.f32 %v2985_v21  ;;  %v7095_v15 = vpop.eup %7094 }
 0x78d   : >> { %v2989_v9 = vpop.xlane.xlu1 %2988  ;;  %v3036_v12 = vpack.c.bf16 %v3021_v0, %v3020_v55  ;;  %v3022_v2 = vmul.f32 %v7095_v15, %v9929_v13 }
 0x78e   : >> { %v2987_v14 = vpop.xlane.xlu0 %2986 }
 0x78f   : >> { %7104 = vrcp.f32 %v2987_v14  ;;  %6385 = vmatprep.mubr.bf16.mxu1 %v3036_v12 }
 0x790   : >> { %7106 = vrcp.f32 %v2989_v9 }
 0x791   : >> { %v7097_v41 = vpop.eup %7096  ;;  %v2993_v4 = vpop.xlane.xlu1 %2992 }
 0x792   : >> { %v2991_v48 = vpop.xlane.xlu0 %2990  ;;  %v3023_v31 = vmul.f32 %v7097_v41, %v9936_v59  ;;  %v7099_v7 = vpop.eup %7098 }
 0x793   : >> { %7108 = vrcp.f32 %v2991_v48  ;;  %v3024_v37 = vmul.f32 %v7099_v7, %v9934_v53 }
 0x794   : >> { %v3037_v62 = vpack.c.bf16 %v3023_v31, %v3022_v2  ;;  %7110 = vrcp.f32 %v2993_v4 }
 0x795   : >> { %v7101_v38 = vpop.eup %7100  ;;  %v2997_v18 = vpop.xlane.xlu1 %2996 }
 0x796   : >> { %6386 = vmatmul.mubr.bf16.vlgmr.msra.gmra.mrb[0].mxu1 %v3037_v62  ;;  %v2995_v1 = vpop.xlane.xlu0 %2994  ;;  %v3025_v25 = vmul.f32 %v7101_v38, %v9944_v16  ;;  %v7103_v10 = vpop.eup %7102 }
 0x797   : >> { %7112 = vrcp.f32 %v2995_v1  ;;  %v3026_v29 = vmul.f32 %v7103_v10, %v9942_v23 }
 0x798   : >> { %v3038_v22 = vpack.c.bf16 %v3025_v25, %v3024_v37  ;;  %7114 = vrcp.f32 %v2997_v18 }
 0x799   : >> { %v7105_v19 = vpop.eup %7104  ;;  %v3001_v13 = vpop.xlane.xlu1 %3000 }
 0x79a   : >> { %6389 = vmatprep.mubr.bf16.mxu1 %v3038_v22  ;;  %v2999_v59 = vpop.xlane.xlu0 %2998  ;;  %v3027_v51 = vmul.f32 %v7105_v19, %v9952_v61  ;;  %v7107_v21 = vpop.eup %7106 }
 0x79b   : >> { %7116 = vrcp.f32 %v2999_v59  ;;  %v3028_v16 = vmul.f32 %v7107_v21, %v9950_v17 }
 0x79c   : >> { %v3039_v42 = vpack.c.bf16 %v3027_v51, %v3026_v29  ;;  %7118 = vrcp.f32 %v3001_v13 }
 0x79d   : >> { %v7109_v5 = vpop.eup %7108 }
 0x79e   : >> { %6390 = vmatmul.mubr.bf16.gmra.mrb[4].mxu1 %v3039_v42  ;;  %v3003_v53 = vpop.xlane.xlu0 %3002  ;;  %v3029_v55 = vmul.f32 %v7109_v5, %v9961_v8  ;;  %v7111_v0 = vpop.eup %7110 }
 0x79f   : >> { %7120 = vrcp.f32 %v3003_v53  ;;  %v3030_v23 = vmul.f32 %v7111_v0, %v9959_v3  ;;  %v7122_v0 = vld [vmem:[#allocation21 + $0x4] ss:$8 sps:$4 sm:$0xff] (%p2320_p13)  }
 0x7a0   : >> { %v3040_v9 = vpack.c.bf16 %v3029_v55, %v3028_v16  ;;  %3379 = vmatprep.subr.bf16.mxu0 (%p2320_p13), %v7122_v0  ;;  %6433 = vmatprep.subr.bf16.mxu1 (%p2320_p13), %v7122_v0 }
 0x7a1   : >> { %v7113_v12 = vpop.eup %7112 }
 0x7a2   : >> { %6393 = vmatprep.mubr.bf16.mxu1 %v3040_v9  ;;  %v3031_v61 = vmul.f32 %v7113_v12, %v9968_v58  ;;  %v7115_v14 = vpop.eup %7114  ;;  %v7124_v9 = vld [vmem:[#allocation21] ss:$8 sps:$4 sm:$0xff] (%p2320_p13)   ;;  %v7125_v12 = vld [vmem:[#allocation21 + $0x14] ss:$8 sps:$4 sm:$0xff] (%p2320_p13)  }
 0x7a3   : >> { %v3032_v4 = vmul.f32 %v7115_v14, %v9965_v34  ;;  %3380 = vmatpush1.bf16.msra.mxu0 (%p2320_p13), %v7124_v9  ;;  %6449 = vmatpush1.bf16.msra.mxu1 (%p2320_p13), %v7124_v9  ;;  %v7130_v14 = vld [vmem:[#allocation21 + $0x20] ss:$8 sps:$4 sm:$0xff] (%p2320_p13)   ;;  %v12236_v9 = vld [vmem:[#allocation76_spill] sm:$0xff] (%p2320_p13) }
 0x7a4   : >> { %v3041_v15 = vpack.c.bf16 %v3031_v61, %v3030_v23  ;;  %v7127_v23 = vld [vmem:[#allocation21 + $0x10] ss:$8 sps:$4 sm:$0xff] (%p2320_p13)   ;;  %3381 = vmatprep.subr.bf16.mxu0 (%p2320_p13), %v7125_v12  ;;  %6434 = vmatprep.subr.bf16.mxu1 (%p2320_p13), %v7125_v12  ;;  %v7128_v61 = vld [vmem:[#allocation21 + $0x24] ss:$8 sps:$4 sm:$0xff] (%p2320_p13)  }
 0x7a5   : >> { %v7117_v41 = vpop.eup %7116 }
 0x7a6   : >> { %6394 = vmatmul.mubr.bf16.gmra.mrb[8].mxu1 %v3041_v15  ;;  %v3033_v17 = vmul.f32 %v7117_v41, %v9975_v11  ;;  %v7119_v48 = vpop.eup %7118  ;;  %v7131_v15 = vld [vmem:[#allocation21 + $0x34] ss:$8 sps:$4 sm:$0xff] (%p2320_p13)   ;;  %v7133_v41 = vld [vmem:[#allocation21 + $0x30] ss:$8 sps:$4 sm:$0xff] (%p2320_p13)  }
 0x7a7   : >> { %v3034_v31 = vmul.f32 %v7119_v48, %v9972_v56  ;;  %3382 = vmatpush1.bf16.msra.mxu0 (%p2320_p13), %v7127_v23  ;;  %6450 = vmatpush1.bf16.msra.mxu1 (%p2320_p13), %v7127_v23 }
 0x7a8   : >> { %v3042_v8 = vpack.c.bf16 %v3033_v17, %v3032_v4  ;;  %3383 = vmatprep.subr.bf16.mxu0 (%p2320_p13), %v7128_v61  ;;  %6435 = vmatprep.subr.bf16.mxu1 (%p2320_p13), %v7128_v61  ;;  %v7167_v4 = vld [vmem:[#allocation21 + $0xf4] ss:$8 sps:$4 sm:$0xff] (%p2320_p13)   ;;  %v7169_v17 = vld [vmem:[#allocation21 + $0xf0] ss:$8 sps:$4 sm:$0xff] (%p2320_p13)  }
 0x7a9   : >> { %v7121_v2 = vpop.eup %7120 }
 0x7aa   : >> { %6397 = vmatprep.mubr.bf16.mxu1 %v3042_v8  ;;  %v3035_v7 = vmul.f32 %v7121_v2, %v9979_v6 }
 0x7ab   : > { %3384 = vmatpush1.bf16.msra.mxu0 (%p2320_p13), %v7130_v14  ;;  %6451 = vmatpush1.bf16.msra.mxu1 (%p2320_p13), %v7130_v14 }
 0x7ac   : >> { %v3043_v3 = vpack.c.bf16 %v3035_v7, %v3034_v31  ;;  %3385 = vmatprep.subr.bf16.mxu0 (%p2320_p13), %v7131_v15  ;;  %6436 = vmatprep.subr.bf16.mxu1 (%p2320_p13), %v7131_v15 }
 0x7ae   : >> { %6398 = vmatmul.mubr.bf16.gmra.mrb[12].mxu1 %v3043_v3 }
 0x7af   : > { %3386 = vmatpush1.bf16.msra.mxu0 (%p2320_p13), %v7133_v41  ;;  %6452 = vmatpush1.bf16.msra.mxu1 (%p2320_p13), %v7133_v41  ;;  %v12237_v41 = vld [vmem:[#allocation61_spill] sm:$0xff] (%p2320_p13) }
 0x7b0   : > { %3387 = vmatprep.subr.bf16.mxu0 (%p2320_p13), %v7134_v57  ;;  %6437 = vmatprep.subr.bf16.mxu1 (%p2320_p13), %v7134_v57 }
 0x7b3   : > { %3388 = vmatpush1.bf16.msra.mxu0 (%p2320_p13), %v7136_v26  ;;  %6453 = vmatpush1.bf16.msra.mxu1 (%p2320_p13), %v7136_v26  ;;  %v12238_v26 = vld [vmem:[#allocation77_spill] sm:$0xff] (%p2320_p13) }
 0x7b4   : > { %3389 = vmatprep.subr.bf16.mxu0 (%p2320_p13), %v7137_v45  ;;  %6438 = vmatprep.subr.bf16.mxu1 (%p2320_p13), %v7137_v45 }
 0x7b7   : > { %3390 = vmatpush1.bf16.msra.mxu0 (%p2320_p13), %v7139_v30  ;;  %6454 = vmatpush1.bf16.msra.mxu1 (%p2320_p13), %v7139_v30 }
 0x7b8   : > { %3391 = vmatprep.subr.bf16.mxu0 (%p2320_p13), %v7140_v24  ;;  %6439 = vmatprep.subr.bf16.mxu1 (%p2320_p13), %v7140_v24 }
 0x7bb   : > { %3392 = vmatpush1.bf16.msra.mxu0 (%p2320_p13), %v7142_v60  ;;  %6455 = vmatpush1.bf16.msra.mxu1 (%p2320_p13), %v7142_v60  ;;  %v12240_v60 = vld [vmem:[#allocation78_spill] sm:$0xff] (%p2320_p13) }
 0x7bc   : > { %3393 = vmatprep.subr.bf16.mxu0 (%p2320_p13), %v7143_v54  ;;  %6440 = vmatprep.subr.bf16.mxu1 (%p2320_p13), %v7143_v54 }
 0x7bf   : > { %3394 = vmatpush1.bf16.msra.mxu0 (%p2320_p13), %v7145_v44  ;;  %6456 = vmatpush1.bf16.msra.mxu1 (%p2320_p13), %v7145_v44  ;;  %v12241_v44 = vld [vmem:[#allocation65_spill] sm:$0xff] (%p2320_p13) }
 0x7c0   : > { %3395 = vmatprep.subr.bf16.mxu0 (%p2320_p13), %v7146_v33  ;;  %6441 = vmatprep.subr.bf16.mxu1 (%p2320_p13), %v7146_v33 }
 0x7c3   : > { %3396 = vmatpush1.bf16.msra.mxu0 (%p2320_p13), %v7148_v39  ;;  %6457 = vmatpush1.bf16.msra.mxu1 (%p2320_p13), %v7148_v39  ;;  %v12242_v39 = vld [vmem:[#allocation79_spill] sm:$0xff] (%p2320_p13) }
 0x7c4   : > { %3397 = vmatprep.subr.bf16.mxu0 (%p2320_p13), %v7149_v47  ;;  %6442 = vmatprep.subr.bf16.mxu1 (%p2320_p13), %v7149_v47 }
 0x7c7   : > { %3398 = vmatpush1.bf16.msra.mxu0 (%p2320_p13), %v7151_v43  ;;  %6458 = vmatpush1.bf16.msra.mxu1 (%p2320_p13), %v7151_v43 }
 0x7c8   : > { %3399 = vmatprep.subr.bf16.mxu0 (%p2320_p13), %v7152_v36  ;;  %6443 = vmatprep.subr.bf16.mxu1 (%p2320_p13), %v7152_v36 }
 0x7cb   : > { %3400 = vmatpush1.bf16.msra.mxu0 (%p2320_p13), %v7154_v49  ;;  %6459 = vmatpush1.bf16.msra.mxu1 (%p2320_p13), %v7154_v49 }
 0x7cc   : > { %3401 = vmatprep.subr.bf16.mxu0 (%p2320_p13), %v7155_v20  ;;  %6444 = vmatprep.subr.bf16.mxu1 (%p2320_p13), %v7155_v20 }
 0x7cf   : > { %3402 = vmatpush1.bf16.msra.mxu0 (%p2320_p13), %v7157_v52  ;;  %6460 = vmatpush1.bf16.msra.mxu1 (%p2320_p13), %v7157_v52 }
 0x7d0   : > { %3403 = vmatprep.subr.bf16.mxu0 (%p2320_p13), %v7158_v46  ;;  %6445 = vmatprep.subr.bf16.mxu1 (%p2320_p13), %v7158_v46 }
 0x7d3   : > { %3404 = vmatpush1.bf16.msra.mxu0 (%p2320_p13), %v7160_v27  ;;  %6461 = vmatpush1.bf16.msra.mxu1 (%p2320_p13), %v7160_v27 }
 0x7d4   : > { %3405 = vmatprep.subr.bf16.mxu0 (%p2320_p13), %v7161_v40  ;;  %6446 = vmatprep.subr.bf16.mxu1 (%p2320_p13), %v7161_v40 }
 0x7d7   : > { %3406 = vmatpush1.bf16.msra.mxu0 (%p2320_p13), %v7163_v32  ;;  %6462 = vmatpush1.bf16.msra.mxu1 (%p2320_p13), %v7163_v32 }
 0x7d8   : > { %3407 = vmatprep.subr.bf16.mxu0 (%p2320_p13), %v7164_v63  ;;  %6447 = vmatprep.subr.bf16.mxu1 (%p2320_p13), %v7164_v63 }
 0x7db   : > { %3408 = vmatpush1.bf16.msra.mxu0 (%p2320_p13), %v7166_v35  ;;  %6463 = vmatpush1.bf16.msra.mxu1 (%p2320_p13), %v7166_v35 }
 0x7dc   : > { %3409 = vmatprep.subr.bf16.mxu0 (%p2320_p13), %v7167_v4  ;;  %6448 = vmatprep.subr.bf16.mxu1 (%p2320_p13), %v7167_v4 }
 0x7df   : > { %3410 = vmatpush1.bf16.msra.mxu0 (%p2320_p13), %v7169_v17  ;;  %6464 = vmatpush1.bf16.msra.mxu1 (%p2320_p13), %v7169_v17 }
 0x869   : >> { %v6387_v58 = vpop.f32.mrb[0].mxu1 }
 0x86a   : >> { %v3078_v62 = vpop.f32.mrb[1].mxu1 }
 0x86b   : >> { %v6388_v38 = vpop.f32.mrb[2].mxu1 }
 0x86c   : >> { %v3142_v18 = vpack.c.bf16 %v6388_v38, %v6387_v58  ;;  %v3081_v1 = vpop.f32.mrb[3].mxu1 }
 0x86d   : >> { %v3141_v37 = vpack.c.bf16 %v3081_v1, %v3078_v62 }
 0x86e   : >> { %3152 = vst [vmem:[%s3150_s15 + $0x10] sm:$0xff] %v3142_v18 }
 0x86f   : >> { %3151 = vst [vmem:[%s3150_s15] sm:$0xff] %v3141_v37 }
 0x871   : >> { %v6391_v34 = vpop.f32.mrb[4].mxu1 }
 0x872   : >> { %v3094_v11 = vpop.f32.mrb[5].mxu1 }
 0x873   : >> { %v6392_v25 = vpop.f32.mrb[6].mxu1 }
 0x874   : >> { %v3144_v10 = vpack.c.bf16 %v6392_v25, %v6391_v34  ;;  %v3097_v22 = vpop.f32.mrb[7].mxu1  ;;  %v3207_v25 = vld [vmem:[#allocation22] sm:$0x3] (%p2320_p13) }
 0x875   : >> { %v3143_v19 = vpack.c.bf16 %v3097_v22, %v3094_v11 }
 0x876   : >> { %3154 = vst [vmem:[%s3150_s15 + $0x30] sm:$0xff] %v3144_v10  ;;  %v12233_v10 = vld [vmem:[#allocation94_spill] sm:$0xff] (%p2320_p13) }
 0x877   : >> { %3153 = vst [vmem:[%s3150_s15 + $0x20] sm:$0xff] %v3143_v19  ;;  %v10004_v22 = vrot.slane (%p2320_p13), %v3207_v25, %v12233_v10  ;;  %v12234_v19 = vld [vmem:[#allocation93_spill] sm:$0xff] (%p2320_p13) }
 0x879   : >> { %v6395_v56 = vpop.f32.mrb[8].mxu1 }
 0x87a   : >> { %v3110_v6 = vpop.f32.mrb[9].mxu1 }
 0x87b   : >> { %v6396_v13 = vpop.f32.mrb[10].mxu1 }
 0x87c   : >> { %v3146_v59 = vpack.c.bf16 %v6396_v13, %v6395_v56  ;;  %v3113_v29 = vpop.f32.mrb[11].mxu1  ;;  %v10007_v56 = vrot.slane (%p2320_p13), %v3207_v25, %v12234_v19  ;;  %v12247_v25 = vld [vmem:[#allocation66_spill] sm:$0xff] (%p2320_p13) }
 0x87d   : >> { %v3145_v51 = vpack.c.bf16 %v3113_v29, %v3110_v6 }
 0x87e   : >> { %3156 = vst [vmem:[%s3150_s15 + $0x50] sm:$0xff] %v3146_v59 }
 0x87f   : >> { %3155 = vst [vmem:[%s3150_s15 + $0x40] sm:$0xff] %v3145_v51 }
 0x881   : >> { %v6399_v21 = vpop.f32.mrb[12].mxu1  ;;  %2322 = sbr.rel (!%p2320_p13) target bundleno = 1202 (0x4b2), region = 237 }
 0x882   : >> { %v3126_v42 = vpop.f32.mrb[13].mxu1 }
 0x883   : >> { %v6400_v5 = vpop.f32.mrb[14].mxu1 }
 0x884   : >> { %v3148_v53 = vpack.c.bf16 %v6400_v5, %v6399_v21  ;;  %v3129_v16 = vpop.f32.mrb[15].mxu1 }
 0x885   : >> { %v3147_v55 = vpack.c.bf16 %v3129_v16, %v3126_v42 }
 0x886   : >> { %3158 = vst [vmem:[%s3150_s15 + $0x70] sm:$0xff] %v3148_v53 }
 0x887   : >> { %3157 = vst [vmem:[%s3150_s15 + $0x60] sm:$0xff] %v3147_v55  ;;  %v12235_v55 = vld [vmem:[#allocation60_spill] sm:$0xff] (%p2320_p13) }
 0x88e   : > { %v3160_v50 = vld [vmem:[#allocation3 + $0x8] sm:$0xff]  ;;  %v3159_v48 = vld [vmem:[#allocation3] sm:$0xff]  ;;  %v3162_v2 = vld [vmem:[#allocation3 + $0x18] sm:$0xff] }
 0x88f   : > { %v3168_v28 = vld [vmem:[#allocation3 + $0x48] sm:$0xff]  ;;  %3411 = vmatprep.mubr.bf16.mxu0 %v3160_v50  ;;  %v3167_v8 = vld [vmem:[#allocation3 + $0x40] sm:$0xff]  ;;  %v3170_v31 = vld [vmem:[#allocation3 + $0x58] sm:$0xff] }
 0x890   : > { %3451 = vmatprep.mubr.bf16.mxu1 %v3168_v28  ;;  %3412 = vmatmul.mubr.bf16.vlgmr.msra.gmra.mrb[0].mxu0 %v3159_v48  ;;  %v3161_v7 = vld [vmem:[#allocation3 + $0x10] sm:$0xff]  ;;  %v3164_v58 = vld [vmem:[#allocation3 + $0x28] sm:$0xff]  ;;  %v3163_v38 = vld [vmem:[#allocation3 + $0x20] sm:$0xff] }
 0x891   : > { %3452 = vmatmul.mubr.bf16.vlgmr.msra.gmra.mrb[0].mxu1 %v3167_v8  ;;  %3421 = vmatprep.mubr.bf16.mxu0 %v3162_v2  ;;  %v3169_v3 = vld [vmem:[#allocation3 + $0x50] sm:$0xff]  ;;  %v3172_v62 = vld [vmem:[#allocation3 + $0x68] sm:$0xff]  ;;  %v3171_v18 = vld [vmem:[#allocation3 + $0x60] sm:$0xff] }
 0x892   : > { %3461 = vmatprep.mubr.bf16.mxu1 %v3170_v31  ;;  %v3166_v1 = vld [vmem:[#allocation3 + $0x38] sm:$0xff]  ;;  %v3165_v34 = vld [vmem:[#allocation3 + $0x30] sm:$0xff]  ;;  %v12243_v48 = vld [vmem:[#allocation62_spill] sm:$0xff] }
 0x893   : > { %v3174_v37 = vld [vmem:[#allocation3 + $0x78] sm:$0xff]  ;;  %v3173_v11 = vld [vmem:[#allocation3 + $0x70] sm:$0xff] }
 0x894   : > { %v12239_v50 = vld [vmem:[#allocation64_spill] sm:$0xff] }
 0x898   : > { %3422 = vmatmul.mubr.bf16.gmra.mrb[4].mxu0 %v3161_v7  ;;  %v12244_v7 = vld [vmem:[#allocation80_spill] sm:$0xff] }
 0x899   : > { %3462 = vmatmul.mubr.bf16.gmra.mrb[4].mxu1 %v3169_v3  ;;  %3431 = vmatprep.mubr.bf16.mxu0 %v3164_v58 }
 0x89a   : > { %3471 = vmatprep.mubr.bf16.mxu1 %v3172_v62 }
 0x8a0   : > { %3432 = vmatmul.mubr.bf16.gmra.mrb[8].mxu0 %v3163_v38  ;;  %v12245_v38 = vld [vmem:[#allocation63_spill] sm:$0xff] }
 0x8a1   : > { %3472 = vmatmul.mubr.bf16.gmra.mrb[8].mxu1 %v3171_v18  ;;  %3441 = vmatprep.mubr.bf16.mxu0 %v3166_v1 }
 0x8a2   : > { %3481 = vmatprep.mubr.bf16.mxu1 %v3174_v37  ;;  %v12246_v37 = vld [vmem:[#allocation81_spill] sm:$0xff] }
 0x8a8   : > { %3442 = vmatmul.mubr.bf16.gmra.mrb[12].mxu0 %v3165_v34 }
 0x8a9   : > { %3482 = vmatmul.mubr.bf16.gmra.mrb[12].mxu1 %v3173_v11 }
 0x963   : > { %v3413_v6 = vpop.f32.mrb[0].mxu0 }
 0x964   : > { %v3453_v13 = vpop.f32.mrb[0].mxu1  ;;  %v3414_v59 = vadd.f32 %v3413_v6, %v10004_v22  ;;  %v3415_v51 = vpop.f32.mrb[1].mxu0 }
 0x965   : > { %v3454_v29 = vadd.f32 %v3453_v13, %v10004_v22  ;;  %v3455_v21 = vpop.f32.mrb[1].mxu1  ;;  %v3416_v42 = vadd.f32 %v3415_v51, %v10007_v56  ;;  %v3417_v53 = vpop.f32.mrb[2].mxu0  ;;  %v12248_v13 = vld [vmem:[#allocation82_spill] sm:$0xff] }
 0x966   : > { %v3456_v5 = vadd.f32 %v3455_v21, %v10007_v56  ;;  %v3457_v16 = vpop.f32.mrb[2].mxu1  ;;  %v10014_v0 = vadd.f32 %v3414_v59, %v12235_v55  ;;  %v3418_v23 = vadd.f32 %v3417_v53, %v10004_v22  ;;  %v3419_v14 = vpop.f32.mrb[3].mxu0 }
 0x967   : > { %v10017_v12 = vadd.f32 %v3454_v29, %v12236_v9  ;;  %v3458_v61 = vadd.f32 %v3457_v16, %v10004_v22  ;;  %v3459_v15 = vpop.f32.mrb[3].mxu1  ;;  %v10022_v57 = vadd.f32 %v3416_v42, %v12237_v41  ;;  %v3420_v30 = vadd.f32 %v3419_v14, %v10007_v56  ;;  %v12249_v29 = vld [vmem:[#allocation67_spill] sm:$0xff] }
 0x968   : > { %v10025_v45 = vadd.f32 %v3456_v5, %v12238_v26  ;;  %v3460_v24 = vadd.f32 %v3459_v15, %v10007_v56  ;;  %3524 = vst [vmem:[#allocation4] sm:$0xff] %v10014_v0  ;;  %v10032_v28 = vadd.f32 %v3418_v23, %v12239_v50  ;;  %v12250_v5 = vld [vmem:[#allocation83_spill] sm:$0xff] }
 0x969   : > { %3540 = vst [vmem:[#allocation4 + $0x80] sm:$0xff] %v10017_v12  ;;  %v10035_v54 = vadd.f32 %v3458_v61, %v12240_v60  ;;  %3525 = vst [vmem:[#allocation4 + $0x8] sm:$0xff] %v10022_v57  ;;  %v10040_v33 = vadd.f32 %v3420_v30, %v12241_v44  ;;  %v3558_v43 = vadd.f32 %v10022_v57, %v10014_v0  ;;  %v12251_v44 = vld [vmem:[#allocation68_spill] sm:$0xff] }
 0x96a   : > { %3541 = vst [vmem:[#allocation4 + $0x88] sm:$0xff] %v10025_v45  ;;  %v10043_v47 = vadd.f32 %v3460_v24, %v12242_v39  ;;  %3526 = vst [vmem:[#allocation4 + $0x10] sm:$0xff] %v10032_v28  ;;  %v3582_v52 = vadd.f32 %v10025_v45, %v10017_v12 }
 0x96b   : > { %3542 = vst [vmem:[#allocation4 + $0x90] sm:$0xff] %v10035_v54  ;;  %3527 = vst [vmem:[#allocation4 + $0x18] sm:$0xff] %v10040_v33  ;;  %v3423_v36 = vpop.f32.mrb[4].mxu0  ;;  %3559 = vadd.xlane.f32.xlu0 %v3558_v43  ;;  %v3561_v42 = vadd.f32 %v10040_v33, %v10032_v28 }
 0x96c   : > { %3543 = vst [vmem:[#allocation4 + $0x98] sm:$0xff] %v10043_v47  ;;  %v3585_v49 = vadd.f32 %v10043_v47, %v10035_v54  ;;  %v3463_v20 = vpop.f32.mrb[4].mxu1  ;;  %v3424_v46 = vadd.f32 %v3423_v36, %v10004_v22  ;;  %v3425_v27 = vpop.f32.mrb[5].mxu0  ;;  %v12252_v36 = vld [vmem:[#allocation84_spill] sm:$0xff] }
 0x96d   : > { %v3464_v40 = vadd.f32 %v3463_v20, %v10004_v22  ;;  %v3465_v32 = vpop.f32.mrb[5].mxu1  ;;  %v3426_v63 = vadd.f32 %v3425_v27, %v10007_v56  ;;  %v3427_v35 = vpop.f32.mrb[6].mxu0  ;;  %v12253_v27 = vld [vmem:[#allocation69_spill] sm:$0xff] }
 0x96e   : > { %3586 = vadd.xlane.f32.xlu1 %v3585_v49  ;;  %v3466_v4 = vadd.f32 %v3465_v32, %v10007_v56  ;;  %v3467_v17 = vpop.f32.mrb[6].mxu1  ;;  %v10060_v8 = vadd.f32 %v3424_v46, %v12243_v48  ;;  %v3428_v2 = vadd.f32 %v3427_v35, %v10004_v22  ;;  %v3429_v31 = vpop.f32.mrb[7].mxu0  ;;  %v12256_v48 = vld [vmem:[#allocation86_spill] sm:$0xff] }
 0x96f   : > { %v10064_v3 = vadd.f32 %v3464_v40, %v12244_v7  ;;  %v3468_v58 = vadd.f32 %v3467_v17, %v10004_v22  ;;  %v3469_v62 = vpop.f32.mrb[7].mxu1  ;;  %v10068_v18 = vadd.f32 %v3426_v63, %v12245_v38  ;;  %v3430_v1 = vadd.f32 %v3429_v31, %v10007_v56  ;;  %3583 = vadd.xlane.f32.xlu0 %v3582_v52  ;;  %v12254_v63 = vld [vmem:[#allocation85_spill] sm:$0xff]  ;;  %v12257_v7 = vld [vmem:[#allocation71_spill] sm:$0xff] }
 0x970   : > { %v10072_v34 = vadd.f32 %v3466_v4, %v12246_v37  ;;  %v3470_v11 = vadd.f32 %v3469_v62, %v10007_v56  ;;  %3528 = vst [vmem:[#allocation4 + $0x20] sm:$0xff] %v10060_v8  ;;  %v10077_v6 = vadd.f32 %v3428_v2, %v12247_v25  ;;  %v12255_v4 = vld [vmem:[#allocation70_spill] sm:$0xff]  ;;  %v12258_v38 = vld [vmem:[#allocation87_spill] sm:$0xff] }
 0x971   : > { %3544 = vst [vmem:[#allocation4 + $0xa0] sm:$0xff] %v10064_v3  ;;  %v10081_v59 = vadd.f32 %v3468_v58, %v12248_v13  ;;  %3529 = vst [vmem:[#allocation4 + $0x28] sm:$0xff] %v10068_v18  ;;  %v10085_v51 = vadd.f32 %v3430_v1, %v12249_v29  ;;  %v3564_v21 = vadd.f32 %v10068_v18, %v10060_v8 }
 0x972   : > { %3545 = vst [vmem:[#allocation4 + $0xa8] sm:$0xff] %v10072_v34  ;;  %v10093_v53 = vadd.f32 %v3470_v11, %v12250_v5  ;;  %3530 = vst [vmem:[#allocation4 + $0x30] sm:$0xff] %v10077_v6  ;;  %v3588_v23 = vadd.f32 %v10072_v34, %v10064_v3 }
 0x973   : > { %3546 = vst [vmem:[#allocation4 + $0xb0] sm:$0xff] %v10081_v59  ;;  %3531 = vst [vmem:[#allocation4 + $0x38] sm:$0xff] %v10085_v51  ;;  %v3433_v16 = vpop.f32.mrb[8].mxu0  ;;  %3565 = vadd.xlane.f32.xlu1 %v3564_v21  ;;  %3562 = vadd.xlane.f32.xlu0 %v3561_v42  ;;  %v3567_v9 = vadd.f32 %v10085_v51, %v10077_v6 }
 0x974   : > { %3547 = vst [vmem:[#allocation4 + $0xb8] sm:$0xff] %v10093_v53  ;;  %v3473_v55 = vpop.f32.mrb[8].mxu1  ;;  %v3434_v61 = vadd.f32 %v3433_v16, %v10004_v22  ;;  %v3435_v14 = vpop.f32.mrb[9].mxu0  ;;  %v3591_v60 = vadd.f32 %v10093_v53, %v10081_v59 }
 0x975   : > { %v3474_v15 = vadd.f32 %v3473_v55, %v10004_v22  ;;  %v3475_v41 = vpop.f32.mrb[9].mxu1  ;;  %v3436_v26 = vadd.f32 %v3435_v14, %v10007_v56  ;;  %v3437_v30 = vpop.f32.mrb[10].mxu0  ;;  %v12259_v14 = vld [vmem:[#allocation72_spill] sm:$0xff] }
 0x976   : > { %v3476_v24 = vadd.f32 %v3475_v41, %v10007_v56  ;;  %v3477_v50 = vpop.f32.mrb[10].mxu1  ;;  %v10110_v39 = vadd.f32 %v3434_v61, %v12251_v44  ;;  %v3438_v43 = vadd.f32 %v3437_v30, %v10004_v22  ;;  %v3439_v20 = vpop.f32.mrb[11].mxu0  ;;  %v12261_v44 = vld [vmem:[#allocation73_spill] sm:$0xff] }
 0x977   : > { %v10114_v49 = vadd.f32 %v3474_v15, %v12252_v36  ;;  %v3478_v52 = vadd.f32 %v3477_v50, %v10004_v22  ;;  %v3479_v46 = vpop.f32.mrb[11].mxu1  ;;  %v10118_v40 = vadd.f32 %v3436_v26, %v12253_v27  ;;  %3568 = vadd.xlane.f32.xlu1 %v3567_v9  ;;  %3589 = vadd.xlane.f32.xlu0 %v3588_v23  ;;  %v12260_v26 = vld [vmem:[#allocation88_spill] sm:$0xff] }
 0x978   : > { %v3440_v32 = vadd.f32 %v3439_v20, %v10007_v56  ;;  %v10122_v35 = vadd.f32 %v3476_v24, %v12254_v63  ;;  %3532 = vst [vmem:[#allocation4 + $0x40] sm:$0xff] %v10110_v39  ;;  %v10126_v17 = vadd.f32 %v3438_v43, %v12255_v4  ;;  %v3480_v31 = vadd.f32 %v3479_v46, %v10007_v56  ;;  %v12262_v20 = vld [vmem:[#allocation89_spill] sm:$0xff]  ;;  %v12263_v46 = vld [vmem:[#allocation74_spill] sm:$0xff]  ;;  %v12265_v4 = vld [vmem:[#allocation75_spill] sm:$0xff] }
 0x979   : > { %3548 = vst [vmem:[#allocation4 + $0xc0] sm:$0xff] %v10114_v49  ;;  %v10130_v2 = vadd.f32 %v3478_v52, %v12256_v48  ;;  %3533 = vst [vmem:[#allocation4 + $0x48] sm:$0xff] %v10118_v40  ;;  %v3570_v62 = vadd.f32 %v10118_v40, %v10110_v39 }
 0x97a   : > { %v10135_v58 = vadd.f32 %v3440_v32, %v12257_v7  ;;  %3549 = vst [vmem:[#allocation4 + $0xc8] sm:$0xff] %v10122_v35  ;;  %3534 = vst [vmem:[#allocation4 + $0x50] sm:$0xff] %v10126_v17  ;;  %v10143_v1 = vadd.f32 %v3480_v31, %v12258_v38  ;;  %v3594_v13 = vadd.f32 %v10122_v35, %v10114_v49  ;;  %v12264_v32 = vld [vmem:[#allocation90_spill] sm:$0xff]  ;;  %v12266_v7 = vld [vmem:[#allocation91_spill] sm:$0xff] }
 0x97b   : > { %3550 = vst [vmem:[#allocation4 + $0xd0] sm:$0xff] %v10130_v2  ;;  %v3443_v37 = vpop.f32.mrb[12].mxu0  ;;  %3592 = vadd.xlane.f32.xlu1 %v3591_v60  ;;  %3571 = vadd.xlane.f32.xlu0 %v3570_v62 }
 0x97c   : > { %3535 = vst [vmem:[#allocation4 + $0x58] sm:$0xff] %v10135_v58  ;;  %v3483_v11 = vpop.f32.mrb[12].mxu1  ;;  %v3573_v25 = vadd.f32 %v10135_v58, %v10126_v17  ;;  %v3444_v29 = vadd.f32 %v3443_v37, %v10004_v22  ;;  %v3445_v21 = vpop.f32.mrb[13].mxu0  ;;  %3551 = vst [vmem:[#allocation4 + $0xd8] sm:$0xff] %v10143_v1  ;;  %v3597_v61 = vadd.f32 %v10143_v1, %v10130_v2 }
 0x97d   : > { %v3484_v42 = vadd.f32 %v3483_v11, %v10004_v22  ;;  %v3485_v5 = vpop.f32.mrb[13].mxu1  ;;  %v3446_v16 = vadd.f32 %v3445_v21, %v10007_v56  ;;  %v3447_v55 = vpop.f32.mrb[14].mxu0 }
 0x97e   : > { %v3486_v9 = vadd.f32 %v3485_v5, %v10007_v56  ;;  %v3487_v23 = vpop.f32.mrb[14].mxu1  ;;  %v10158_v15 = vadd.f32 %v3444_v29, %v12259_v14  ;;  %v3448_v41 = vadd.f32 %v3447_v55, %v10004_v22  ;;  %v3449_v24 = vpop.f32.mrb[15].mxu0 }
 0x97f   : > { %v10162_v30 = vadd.f32 %v3484_v42, %v12260_v26  ;;  %v3488_v50 = vadd.f32 %v3487_v23, %v10004_v22  ;;  %v3489_v60 = vpop.f32.mrb[15].mxu1  ;;  %v10166_v43 = vadd.f32 %v3446_v16, %v12261_v44  ;;  %3574 = vadd.xlane.f32.xlu1 %v3573_v25  ;;  %3595 = vadd.xlane.f32.xlu0 %v3594_v13 }
 0x980   : > { %v3450_v36 = vadd.f32 %v3449_v24, %v10007_v56  ;;  %v10170_v52 = vadd.f32 %v3486_v9, %v12262_v20  ;;  %3536 = vst [vmem:[#allocation4 + $0x60] sm:$0xff] %v10158_v15  ;;  %v10174_v27 = vadd.f32 %v3448_v41, %v12263_v46  ;;  %v3490_v63 = vadd.f32 %v3489_v60, %v10007_v56 }
 0x981   : > { %3552 = vst [vmem:[#allocation4 + $0xe0] sm:$0xff] %v10162_v30  ;;  %v10178_v22 = vadd.f32 %v3488_v50, %v12264_v32  ;;  %3537 = vst [vmem:[#allocation4 + $0x68] sm:$0xff] %v10166_v43  ;;  %v3576_v31 = vadd.f32 %v10166_v43, %v10158_v15 }
 0x982   : > { %v10183_v48 = vadd.f32 %v3450_v36, %v12265_v4  ;;  %3553 = vst [vmem:[#allocation4 + $0xe8] sm:$0xff] %v10170_v52  ;;  %3538 = vst [vmem:[#allocation4 + $0x70] sm:$0xff] %v10174_v27  ;;  %v10191_v62 = vadd.f32 %v3490_v63, %v12266_v7  ;;  %v3600_v38 = vadd.f32 %v10170_v52, %v10162_v30 }
 0x983   : > { %3554 = vst [vmem:[#allocation4 + $0xf0] sm:$0xff] %v10178_v22  ;;  %3598 = vadd.xlane.f32.xlu1 %v3597_v61  ;;  %3577 = vadd.xlane.f32.xlu0 %v3576_v31 }
 0x984   : > { %3539 = vst [vmem:[#allocation4 + $0x78] sm:$0xff] %v10183_v48  ;;  %v3579_v56 = vadd.f32 %v10183_v48, %v10174_v27  ;;  %3555 = vst [vmem:[#allocation4 + $0xf8] sm:$0xff] %v10191_v62  ;;  %v3603_v37 = vadd.f32 %v10191_v62, %v10178_v22 }
 0x987   : > { %3580 = vadd.xlane.f32.xlu1 %v3579_v56  ;;  %3601 = vadd.xlane.f32.xlu0 %v3600_v38 }
 0x98b   : > { %3604 = vadd.xlane.f32.xlu1 %v3603_v37 }
 0x9f8   : > { %v3560_v11 = vpop.xlane.xlu0 %3559 }
 0x9f9   : > { %v3606_v25 = vmul.f32 0.00390625, %v3560_v11 }
 0x9fb   : > { %v10202_v13 = vsub.f32 %v10014_v0, %v3606_v25  ;;  %v10205_v29 = vsub.f32 %v10022_v57, %v3606_v25  ;;  %v3587_v21 = vpop.xlane.xlu1 %3586 }
 0x9fc   : > { %v3584_v42 = vpop.xlane.xlu0 %3583  ;;  %v3615_v0 = vmul.f32 0.00390625, %v3587_v21 }
 0x9fd   : > { %v3614_v5 = vmul.f32 0.00390625, %v3584_v42  ;;  %v3654_v16 = vmul.f32 %v10202_v13, %v10202_v13  ;;  %v3655_v55 = vmul.f32 %v10205_v29, %v10205_v29 }
 0x9fe   : > { %v10234_v36 = vsub.f32 %v10035_v54, %v3615_v0  ;;  %v10237_v20 = vsub.f32 %v10043_v47, %v3615_v0 }
 0x9ff   : > { %v10212_v9 = vsub.f32 %v10017_v12, %v3614_v5  ;;  %v10215_v23 = vsub.f32 %v10025_v45, %v3614_v5  ;;  %v3686_v57 = vadd.f32 %v3655_v55, %v3654_v16 }
 0xa00   : > { %v3566_v61 = vpop.xlane.xlu1 %3565  ;;  %v3563_v14 = vpop.xlane.xlu0 %3562  ;;  %v3672_v21 = vmul.f32 %v10234_v36, %v10234_v36 }
 0xa01   : > { %v3608_v41 = vmul.f32 0.00390625, %v3566_v61  ;;  %v3607_v26 = vmul.f32 0.00390625, %v3563_v14  ;;  %v3670_v24 = vmul.f32 %v10212_v9, %v10212_v9  ;;  %v3671_v50 = vmul.f32 %v10215_v23, %v10215_v23  ;;  %3687 = vadd.xlane.f32.xlu0 %v3686_v57 }
 0xa03   : > { %v10222_v60 = vsub.f32 %v10060_v8, %v3608_v41  ;;  %v10225_v12 = vsub.f32 %v10068_v18, %v3608_v41  ;;  %v10228_v45 = vsub.f32 %v10032_v28, %v3607_v26  ;;  %v10231_v44 = vsub.f32 %v10040_v33, %v3607_v26 }
 0xa04   : > { %v3569_v46 = vpop.xlane.xlu1 %3568  ;;  %v3590_v32 = vpop.xlane.xlu0 %3589  ;;  %v3710_v63 = vadd.f32 %v3671_v50, %v3670_v24 }
 0xa05   : > { %v3609_v8 = vmul.f32 0.00390625, %v3569_v46  ;;  %v3616_v4 = vmul.f32 0.00390625, %v3590_v32  ;;  %v3658_v18 = vmul.f32 %v10222_v60, %v10222_v60  ;;  %v3659_v28 = vmul.f32 %v10225_v12, %v10225_v12 }
 0xa06   : > { %3711 = vadd.xlane.f32.xlu0 %v3710_v63  ;;  %v3656_v33 = vmul.f32 %v10228_v45, %v10228_v45  ;;  %v3657_v54 = vmul.f32 %v10231_v44, %v10231_v44 }
 0xa07   : > { %v10248_v47 = vsub.f32 %v10077_v6, %v3609_v8  ;;  %v10251_v31 = vsub.f32 %v10085_v51, %v3609_v8  ;;  %v10254_v7 = vsub.f32 %v10064_v3, %v3616_v4  ;;  %v10257_v56 = vsub.f32 %v10072_v34, %v3616_v4 }
 0xa08   : > { %v3593_v38 = vpop.xlane.xlu1 %3592  ;;  %v3572_v37 = vpop.xlane.xlu0 %3571  ;;  %v3692_v11 = vadd.f32 %v3659_v28, %v3658_v18  ;;  %v3689_v25 = vadd.f32 %v3657_v54, %v3656_v33  ;;  %v3673_v6 = vmul.f32 %v10237_v20, %v10237_v20 }
 0xa09   : > { %v3617_v42 = vmul.f32 0.00390625, %v3593_v38  ;;  %v3610_v5 = vmul.f32 0.00390625, %v3572_v37  ;;  %v3674_v51 = vmul.f32 %v10254_v7, %v10254_v7  ;;  %v3675_v3 = vmul.f32 %v10257_v56, %v10257_v56 }
 0xa0a   : > { %3693 = vadd.xlane.f32.xlu0 %v3692_v11  ;;  %3690 = vadd.xlane.f32.xlu1 %v3689_v25  ;;  %v3660_v34 = vmul.f32 %v10248_v47, %v10248_v47  ;;  %v3661_v61 = vmul.f32 %v10251_v31, %v10251_v31  ;;  %v3713_v26 = vadd.f32 %v3673_v6, %v3672_v21 }
 0xa0b   : > { %v10270_v16 = vsub.f32 %v10081_v59, %v3617_v42  ;;  %v10273_v55 = vsub.f32 %v10110_v39, %v3610_v5  ;;  %v10276_v0 = vsub.f32 %v10118_v40, %v3610_v5  ;;  %v10281_v14 = vsub.f32 %v10093_v53, %v3617_v42 }
 0xa0c   : > { %v3575_v57 = vpop.xlane.xlu1 %3574  ;;  %v3596_v41 = vpop.xlane.xlu0 %3595  ;;  %v3716_v24 = vadd.f32 %v3675_v3, %v3674_v51  ;;  %v3695_v32 = vadd.f32 %v3661_v61, %v3660_v34 }
 0xa0d   : > { %v3611_v50 = vmul.f32 0.00390625, %v3575_v57  ;;  %v3618_v46 = vmul.f32 0.00390625, %v3596_v41  ;;  %v3662_v59 = vmul.f32 %v10273_v55, %v10273_v55  ;;  %v3663_v39 = vmul.f32 %v10276_v0, %v10276_v0 }
 0xa0e   : > { %3714 = vadd.xlane.f32.xlu1 %v3713_v26  ;;  %3717 = vadd.xlane.f32.xlu0 %v3716_v24  ;;  %v3676_v63 = vmul.f32 %v10270_v16, %v10270_v16 }
 0xa0f   : > { %v10288_v40 = vsub.f32 %v10114_v49, %v3618_v46  ;;  %v10291_v53 = vsub.f32 %v10122_v35, %v3618_v46  ;;  %v10296_v8 = vsub.f32 %v10126_v17, %v3611_v50  ;;  %v10299_v4 = vsub.f32 %v10135_v58, %v3611_v50 }
 0xa10   : > { %v3599_v18 = vpop.xlane.xlu1 %3598  ;;  %v3578_v28 = vpop.xlane.xlu0 %3577  ;;  %v3698_v33 = vadd.f32 %v3663_v39, %v3662_v59  ;;  %v3677_v49 = vmul.f32 %v10281_v14, %v10281_v14 }
 0xa11   : > { %v3619_v54 = vmul.f32 0.00390625, %v3599_v18  ;;  %v3612_v38 = vmul.f32 0.00390625, %v3578_v28  ;;  %v3678_v35 = vmul.f32 %v10288_v40, %v10288_v40  ;;  %v3679_v37 = vmul.f32 %v10291_v53, %v10291_v53 }
 0xa12   : > { %3696 = vadd.xlane.f32.xlu1 %v3695_v32  ;;  %3699 = vadd.xlane.f32.xlu0 %v3698_v33  ;;  %v3719_v42 = vadd.f32 %v3677_v49, %v3676_v63  ;;  %v3664_v51 = vmul.f32 %v10296_v8, %v10296_v8 }
 0xa13   : > { %v10308_v17 = vsub.f32 %v10130_v2, %v3619_v54  ;;  %v10311_v58 = vsub.f32 %v10143_v1, %v3619_v54  ;;  %v10314_v11 = vsub.f32 %v10158_v15, %v3612_v38  ;;  %v10317_v25 = vsub.f32 %v10166_v43, %v3612_v38 }
 0xa14   : > { %v3581_v21 = vpop.xlane.xlu1 %3580  ;;  %v3602_v6 = vpop.xlane.xlu0 %3601  ;;  %v3722_v5 = vadd.f32 %v3679_v37, %v3678_v35  ;;  %v3665_v2 = vmul.f32 %v10299_v4, %v10299_v4 }
 0xa15   : > { %v3613_v3 = vmul.f32 0.00390625, %v3581_v21  ;;  %v3620_v34 = vmul.f32 0.00390625, %v3602_v6  ;;  %v3666_v1 = vmul.f32 %v10314_v11, %v10314_v11  ;;  %v3667_v15 = vmul.f32 %v10317_v25, %v10317_v25 }
 0xa16   : > { %3720 = vadd.xlane.f32.xlu1 %v3719_v42  ;;  %3723 = vadd.xlane.f32.xlu0 %v3722_v5  ;;  %v3680_v57 = vmul.f32 %v10308_v17, %v10308_v17  ;;  %v3681_v41 = vmul.f32 %v10311_v58, %v10311_v58  ;;  %v3701_v46 = vadd.f32 %v3665_v2, %v3664_v51 }
 0xa17   : > { %v10328_v43 = vsub.f32 %v10162_v30, %v3620_v34  ;;  %v10331_v61 = vsub.f32 %v10170_v52, %v3620_v34  ;;  %v10338_v26 = vsub.f32 %v10174_v27, %v3613_v3  ;;  %v10341_v24 = vsub.f32 %v10183_v48, %v3613_v3 }
 0xa18   : > { %v3605_v50 = vpop.xlane.xlu1 %3604  ;;  %v3704_v59 = vadd.f32 %v3667_v15, %v3666_v1  ;;  %v3725_v32 = vadd.f32 %v3681_v41, %v3680_v57 }
 0xa19   : > { %v3621_v30 = vmul.f32 0.00390625, %v3605_v50  ;;  %v3682_v52 = vmul.f32 %v10328_v43, %v10328_v43  ;;  %v3683_v39 = vmul.f32 %v10331_v61, %v10331_v61  ;;  %v3668_v18 = vmul.f32 %v10338_v26, %v10338_v26 }
 0xa1a   : > { %3702 = vadd.xlane.f32.xlu1 %v3701_v46  ;;  %3705 = vadd.xlane.f32.xlu0 %v3704_v59  ;;  %v3669_v28 = vmul.f32 %v10341_v24, %v10341_v24  ;;  %v3556_v46 = vld [vmem:[#allocation24] sm:$0x3] }
 0xa1b   : > { %v3728_v63 = vadd.f32 %v3683_v39, %v3682_v52  ;;  %v10348_v27 = vsub.f32 %v10178_v22, %v3621_v30  ;;  %v10351_v48 = vsub.f32 %v10191_v62, %v3621_v30 }
 0xa1c   : > { %v3707_v33 = vadd.f32 %v3669_v28, %v3668_v18  ;;  %v10362_v18 = vrot.slane %v3556_v46, %v12233_v10 }
 0xa1d   : > { %v3684_v49 = vmul.f32 %v10348_v27, %v10348_v27  ;;  %v3685_v54 = vmul.f32 %v10351_v48, %v10351_v48 }
 0xa1e   : > { %3726 = vadd.xlane.f32.xlu1 %v3725_v32  ;;  %3729 = vadd.xlane.f32.xlu0 %v3728_v63 }
 0xa1f   : > { %v3731_v22 = vadd.f32 %v3685_v54, %v3684_v49  ;;  %v3557_v49 = vld [vmem:[#allocation25] sm:$0x3]  ;;  %v10366_v54 = vrot.slane %v3556_v46, %v12234_v19 }
 0xa22   : > { %3708 = vadd.xlane.f32.xlu1 %v3707_v33 }
 0xa26   : > { %3732 = vadd.xlane.f32.xlu1 %v3731_v22 }
 0xa8e   : > { %v3688_v62 = vpop.xlane.xlu0 %3687 }
 0xa8f   : > { %v3734_v38 = vmul.f32 0.00390625, %v3688_v62 }
 0xa91   : > { %v3750_v35 = vadd.f32 1e-05, %v3734_v38 }
 0xa93   : > { %v3712_v37 = vpop.xlane.xlu0 %3711  ;;  %7170 = vrsqrt.f32 %v3750_v35 }
 0xa94   : > { %v3742_v21 = vmul.f32 0.00390625, %v3712_v37 }
 0xa96   : > { %v3758_v6 = vadd.f32 1e-05, %v3742_v21 }
 0xa97   : > { %v3691_v42 = vpop.xlane.xlu1 %3690  ;;  %v3694_v5 = vpop.xlane.xlu0 %3693 }
 0xa98   : > { %7172 = vrsqrt.f32 %v3758_v6  ;;  %v3735_v51 = vmul.f32 0.00390625, %v3691_v42  ;;  %v3736_v2 = vmul.f32 0.00390625, %v3694_v5 }
 0xa9a   : > { %v3751_v3 = vadd.f32 1e-05, %v3735_v51  ;;  %v3752_v34 = vadd.f32 1e-05, %v3736_v2  ;;  %v10376_v2 = vrot.slane %v3557_v49, %v12234_v19 }
 0xa9b   : > { %v3715_v1 = vpop.xlane.xlu1 %3714  ;;  %v3718_v15 = vpop.xlane.xlu0 %3717 }
 0xa9c   : > { %7174 = vrsqrt.f32 %v3751_v3  ;;  %v3743_v57 = vmul.f32 0.00390625, %v3715_v1  ;;  %v3744_v41 = vmul.f32 0.00390625, %v3718_v15 }
 0xa9d   : > { %7176 = vrsqrt.f32 %v3752_v34  ;;  %v7171_v50 = vpop.eup %7170 }
 0xa9e   : > { %v3759_v59 = vadd.f32 1e-05, %v3743_v57  ;;  %v3760_v30 = vadd.f32 1e-05, %v3744_v41  ;;  %v3782_v28 = vmul.f32 %v7171_v50, %v10202_v13  ;;  %v3783_v22 = vmul.f32 %v7171_v50, %v10205_v29 }
 0xa9f   : > { %v3697_v52 = vpop.xlane.xlu1 %3696  ;;  %v3700_v39 = vpop.xlane.xlu0 %3699  ;;  %v10372_v13 = vrot.slane %v3557_v49, %v12233_v10 }
 0xaa0   : > { %7178 = vrsqrt.f32 %v3759_v59  ;;  %v3737_v32 = vmul.f32 0.00390625, %v3697_v52  ;;  %v3738_v63 = vmul.f32 0.00390625, %v3700_v39  ;;  %v3825_v5 = vmul.f32 %v10362_v18, %v3782_v28 }
 0xaa1   : > { %7180 = vrsqrt.f32 %v3760_v30  ;;  %v3826_v29 = vmul.f32 %v10366_v54, %v3783_v22 }
 0xaa2   : > { %v7173_v33 = vpop.eup %7172  ;;  %v3753_v62 = vadd.f32 1e-05, %v3737_v32  ;;  %v3754_v35 = vadd.f32 1e-05, %v3738_v63  ;;  %v3868_v50 = vadd.f32 %v10372_v13, %v3825_v5 }
 0xaa3   : > { %v3798_v38 = vmul.f32 %v7173_v33, %v10212_v9  ;;  %v3721_v37 = vpop.xlane.xlu1 %3720  ;;  %v3724_v21 = vpop.xlane.xlu0 %3723  ;;  %v3799_v6 = vmul.f32 %v7173_v33, %v10215_v23  ;;  %v3869_v52 = vadd.f32 %v10376_v2, %v3826_v29 }
 0xaa4   : > { %7182 = vrsqrt.f32 %v3753_v62  ;;  %v3745_v42 = vmul.f32 0.00390625, %v3721_v37  ;;  %v3746_v9 = vmul.f32 0.00390625, %v3724_v21 }
 0xaa5   : > { %v3841_v1 = vmul.f32 %v10362_v18, %v3798_v38  ;;  %7184 = vrsqrt.f32 %v3754_v35  ;;  %v3842_v57 = vmul.f32 %v10366_v54, %v3799_v6 }
 0xaa6   : > { %v7175_v51 = vpop.eup %7174  ;;  %v3761_v3 = vadd.f32 1e-05, %v3745_v42 }
 0xaa7   : > { %v7177_v34 = vpop.eup %7176  ;;  %v3784_v23 = vmul.f32 %v7175_v51, %v10228_v45  ;;  %v3785_v15 = vmul.f32 %v7175_v51, %v10231_v44  ;;  %v3703_v10 = vpop.xlane.xlu1 %3702  ;;  %v3762_v44 = vadd.f32 1e-05, %v3746_v9  ;;  %v3884_v62 = vadd.f32 %v10372_v13, %v3841_v1 }
 0xaa8   : > { %v3786_v41 = vmul.f32 %v7177_v34, %v10222_v60  ;;  %7186 = vrsqrt.f32 %v3761_v3  ;;  %v3739_v19 = vmul.f32 0.00390625, %v3703_v10  ;;  %v3787_v45 = vmul.f32 %v7177_v34, %v10225_v12  ;;  %v3706_v49 = vpop.xlane.xlu0 %3705 }
 0xaa9   : > { %v3827_v46 = vmul.f32 %v10362_v18, %v3784_v23  ;;  %v3828_v59 = vmul.f32 %v10366_v54, %v3785_v15  ;;  %v3885_v38 = vadd.f32 %v10376_v2, %v3842_v57  ;;  %v3740_v51 = vmul.f32 0.00390625, %v3706_v49 }
 0xaaa   : > { %v7179_v30 = vpop.eup %7178  ;;  %v3755_v39 = vadd.f32 1e-05, %v3739_v19  ;;  %v3829_v35 = vmul.f32 %v10362_v18, %v3786_v41 }
 0xaab   : > { %v7181_v32 = vpop.eup %7180  ;;  %v3870_v63 = vadd.f32 %v10372_v13, %v3827_v46  ;;  %v3871_v60 = vadd.f32 %v10376_v2, %v3828_v59  ;;  %v3800_v28 = vmul.f32 %v7179_v30, %v10234_v36  ;;  %v3801_v33 = vmul.f32 %v7179_v30, %v10237_v20  ;;  %v3727_v22 = vpop.xlane.xlu1 %3726 }
 0xaac   : > { %v3802_v12 = vmul.f32 %v7181_v32, %v10254_v7  ;;  %v3830_v36 = vmul.f32 %v10366_v54, %v3787_v45  ;;  %v3803_v20 = vmul.f32 %v7181_v32, %v10257_v56  ;;  %7188 = vrsqrt.f32 %v3755_v39 }
 0xaad   : > { %v3900_v37 = vpack.c.bf16 %v3870_v63, %v3868_v50  ;;  %v3901_v21 = vpack.c.bf16 %v3871_v60, %v3869_v52  ;;  %v3843_v6 = vmul.f32 %v10362_v18, %v3800_v28  ;;  %v3844_v42 = vmul.f32 %v10366_v54, %v3801_v33 }
 0xaae   : > { %v7183_v5 = vpop.eup %7182  ;;  %v3872_v1 = vadd.f32 %v10372_v13, %v3829_v35  ;;  %v3845_v23 = vmul.f32 %v10362_v18, %v3802_v12  ;;  %7190 = vrsqrt.f32 %v3762_v44  ;;  %v3873_v50 = vadd.f32 %v10376_v2, %v3830_v36  ;;  %v3730_v44 = vpop.xlane.xlu0 %3729 }
 0xaaf   : > { %3916 = vst [vmem:[#allocation5] sm:$0xff] %v3900_v37  ;;  %3917 = vst [vmem:[#allocation5 + $0x8] sm:$0xff] %v3901_v21  ;;  %v3886_v29 = vadd.f32 %v10372_v13, %v3843_v6  ;;  %v3887_v3 = vadd.f32 %v10376_v2, %v3844_v42  ;;  %v3788_v7 = vmul.f32 %v7183_v5, %v10248_v47  ;;  %v3709_v34 = vpop.xlane.xlu1 %3708  ;;  %v7185_v15 = vpop.eup %7184  ;;  %v3756_v46 = vadd.f32 1e-05, %v3740_v51 }
 0xab0   : > { %v3789_v9 = vmul.f32 %v7183_v5, %v10251_v31  ;;  %v3846_v47 = vmul.f32 %v10366_v54, %v3803_v20  ;;  %v3747_v31 = vmul.f32 0.00390625, %v3727_v22  ;;  %v3888_v39 = vadd.f32 %v10372_v13, %v3845_v23 }
 0xab1   : > { %v3908_v56 = vpack.c.bf16 %v3886_v29, %v3884_v62  ;;  %v3909_v10 = vpack.c.bf16 %v3887_v3, %v3885_v38  ;;  %v3831_v57 = vmul.f32 %v10362_v18, %v3788_v7  ;;  %v3790_v32 = vmul.f32 %v7185_v15, %v10273_v55 }
 0xab2   : > { %v3832_v41 = vmul.f32 %v10366_v54, %v3789_v9  ;;  %v7187_v19 = vpop.eup %7186  ;;  %v3791_v63 = vmul.f32 %v7185_v15, %v10276_v0  ;;  %v3889_v62 = vadd.f32 %v10376_v2, %v3846_v47  ;;  %7192 = vrsqrt.f32 %v3756_v46 }
 0xab3   : > { %3924 = vst [vmem:[#allocation5 + $0x40] sm:$0xff] %v3908_v56  ;;  %3925 = vst [vmem:[#allocation5 + $0x48] sm:$0xff] %v3909_v10  ;;  %v3874_v59 = vadd.f32 %v10372_v13, %v3831_v57  ;;  %v3804_v52 = vmul.f32 %v7187_v19, %v10270_v16  ;;  %v3805_v45 = vmul.f32 %v7187_v19, %v10281_v14  ;;  %v3733_v60 = vpop.xlane.xlu1 %3732  ;;  %v3763_v16 = vadd.f32 1e-05, %v3747_v31 }
 0xab4   : > { %v3875_v30 = vadd.f32 %v10376_v2, %v3832_v41  ;;  %v3748_v38 = vmul.f32 0.00390625, %v3730_v44  ;;  %v3741_v35 = vmul.f32 0.00390625, %v3709_v34  ;;  %v3749_v0 = vmul.f32 0.00390625, %v3733_v60 }
 0xab5   : > { %v3902_v28 = vpack.c.bf16 %v3874_v59, %v3872_v1  ;;  %v3847_v49 = vmul.f32 %v10362_v18, %v3804_v52  ;;  %v3848_v22 = vmul.f32 %v10366_v54, %v3805_v45  ;;  %v3833_v37 = vmul.f32 %v10362_v18, %v3790_v32 }
 0xab6   : > { %v3903_v33 = vpack.c.bf16 %v3875_v30, %v3873_v50  ;;  %v7189_v12 = vpop.eup %7188  ;;  %v3834_v21 = vmul.f32 %v10366_v54, %v3791_v63  ;;  %7194 = vrsqrt.f32 %v3763_v16  ;;  %v3764_v6 = vadd.f32 1e-05, %v3748_v38 }
 0xab7   : > { %3918 = vst [vmem:[#allocation5 + $0x10] sm:$0xff] %v3902_v28  ;;  %v3890_v14 = vadd.f32 %v10372_v13, %v3847_v49  ;;  %v3891_v55 = vadd.f32 %v10376_v2, %v3848_v22  ;;  %v3792_v36 = vmul.f32 %v7189_v12, %v10296_v8  ;;  %v3793_v20 = vmul.f32 %v7189_v12, %v10299_v4 }
 0xab8   : > { %3919 = vst [vmem:[#allocation5 + $0x18] sm:$0xff] %v3903_v33  ;;  %v7191_v51 = vpop.eup %7190  ;;  %7196 = vrsqrt.f32 %v3764_v6  ;;  %v3757_v29 = vadd.f32 1e-05, %v3741_v35  ;;  %v3765_v3 = vadd.f32 1e-05, %v3749_v0  ;;  %v3876_v34 = vadd.f32 %v10372_v13, %v3833_v37 }
 0xab9   : > { %v3910_v42 = vpack.c.bf16 %v3890_v14, %v3888_v39  ;;  %v3911_v5 = vpack.c.bf16 %v3891_v55, %v3889_v62  ;;  %v3835_v7 = vmul.f32 %v10362_v18, %v3792_v36  ;;  %v3836_v9 = vmul.f32 %v10366_v54, %v3793_v20 }
 0xaba   : > { %7198 = vrsqrt.f32 %v3757_v29  ;;  %v3877_v1 = vadd.f32 %v10376_v2, %v3834_v21  ;;  %v3806_v4 = vmul.f32 %v7191_v51, %v10288_v40  ;;  %v3807_v15 = vmul.f32 %v7191_v51, %v10291_v53 }
 0xabb   : > { %3926 = vst [vmem:[#allocation5 + $0x50] sm:$0xff] %v3910_v42  ;;  %3927 = vst [vmem:[#allocation5 + $0x58] sm:$0xff] %v3911_v5  ;;  %v3878_v23 = vadd.f32 %v10372_v13, %v3835_v7  ;;  %v3879_v8 = vadd.f32 %v10376_v2, %v3836_v9  ;;  %7200 = vrsqrt.f32 %v3765_v3 }
 0xabc   : > { %v7193_v57 = vpop.eup %7192  ;;  %v3849_v19 = vmul.f32 %v10362_v18, %v3806_v4  ;;  %v3850_v50 = vmul.f32 %v10366_v54, %v3807_v15 }
 0xabd   : > { %v3904_v56 = vpack.c.bf16 %v3878_v23, %v3876_v34  ;;  %v3905_v10 = vpack.c.bf16 %v3879_v8, %v3877_v1  ;;  %v3794_v47 = vmul.f32 %v7193_v57, %v10314_v11  ;;  %v3795_v46 = vmul.f32 %v7193_v57, %v10317_v25 }
 0xabe   : > { %v3892_v39 = vadd.f32 %v10372_v13, %v3849_v19  ;;  %v3893_v11 = vadd.f32 %v10376_v2, %v3850_v50 }
 0xabf   : > { %3920 = vst [vmem:[#allocation5 + $0x20] sm:$0xff] %v3904_v56  ;;  %3921 = vst [vmem:[#allocation5 + $0x28] sm:$0xff] %v3905_v10  ;;  %v3837_v25 = vmul.f32 %v10362_v18, %v3794_v47 }
 0xac0   : > { %v7195_v41 = vpop.eup %7194 }
 0xac1   : > { %v3808_v31 = vmul.f32 %v7195_v41, %v10308_v17  ;;  %v3809_v40 = vmul.f32 %v7195_v41, %v10311_v58  ;;  %v3838_v17 = vmul.f32 %v10366_v54, %v3795_v46  ;;  %v3880_v14 = vadd.f32 %v10372_v13, %v3837_v25 }
 0xac2   : > { %v7197_v53 = vpop.eup %7196 }
 0xac3   : > { %v3851_v59 = vmul.f32 %v10362_v18, %v3808_v31  ;;  %v3852_v30 = vmul.f32 %v10366_v54, %v3809_v40  ;;  %v3810_v52 = vmul.f32 %v7197_v53, %v10328_v43  ;;  %v3811_v45 = vmul.f32 %v7197_v53, %v10331_v61 }
 0xac4   : > { %v7199_v44 = vpop.eup %7198 }
 0xac5   : > { %v3894_v58 = vadd.f32 %v10372_v13, %v3851_v59  ;;  %v3895_v32 = vadd.f32 %v10376_v2, %v3852_v30  ;;  %v7201_v63 = vpop.eup %7200  ;;  %v3796_v60 = vmul.f32 %v7199_v44, %v10338_v26  ;;  %v3797_v43 = vmul.f32 %v7199_v44, %v10341_v24 }
 0xac6   : > { %v3853_v33 = vmul.f32 %v10362_v18, %v3810_v52  ;;  %v3854_v49 = vmul.f32 %v10366_v54, %v3811_v45  ;;  %v3812_v16 = vmul.f32 %v7201_v63, %v10348_v27  ;;  %v3813_v38 = vmul.f32 %v7201_v63, %v10351_v48 }
 0xac7   : > { %v3912_v28 = vpack.c.bf16 %v3894_v58, %v3892_v39  ;;  %v3913_v61 = vpack.c.bf16 %v3895_v32, %v3893_v11  ;;  %v3839_v22 = vmul.f32 %v10362_v18, %v3796_v60  ;;  %v3840_v62 = vmul.f32 %v10366_v54, %v3797_v43 }
 0xac8   : > { %v3881_v26 = vadd.f32 %v10376_v2, %v3838_v17  ;;  %v3855_v35 = vmul.f32 %v10362_v18, %v3812_v16  ;;  %v3856_v0 = vmul.f32 %v10366_v54, %v3813_v38  ;;  %v3896_v12 = vadd.f32 %v10372_v13, %v3853_v33 }
 0xac9   : > { %3928 = vst [vmem:[#allocation5 + $0x60] sm:$0xff] %v3912_v28  ;;  %3929 = vst [vmem:[#allocation5 + $0x68] sm:$0xff] %v3913_v61  ;;  %v3882_v24 = vadd.f32 %v10372_v13, %v3839_v22  ;;  %v3883_v55 = vadd.f32 %v10376_v2, %v3840_v62  ;;  %v3897_v27 = vadd.f32 %v10376_v2, %v3854_v49 }
 0xaca   : > { %v3898_v21 = vadd.f32 %v10372_v13, %v3855_v35  ;;  %v3899_v6 = vadd.f32 %v10376_v2, %v3856_v0 }
 0xacb   : > { %v3906_v37 = vpack.c.bf16 %v3882_v24, %v3880_v14  ;;  %v3907_v48 = vpack.c.bf16 %v3883_v55, %v3881_v26 }
 0xacc   : > { %v3914_v42 = vpack.c.bf16 %v3898_v21, %v3896_v12  ;;  %v3915_v5 = vpack.c.bf16 %v3899_v6, %v3897_v27 }
 0xacd   : > { %3922 = vst [vmem:[#allocation5 + $0x30] sm:$0xff] %v3906_v37  ;;  %3923 = vst [vmem:[#allocation5 + $0x38] sm:$0xff] %v3907_v48 }
 0xace   : > { %3930 = vst [vmem:[#allocation5 + $0x70] sm:$0xff] %v3914_v42  ;;  %3931 = vst [vmem:[#allocation5 + $0x78] sm:$0xff] %v3915_v5 }
 0xacf PF: > { %v7202_v18 = vld [vmem:[%s8742_s25 + $0x4] ss:$8 sps:$4 sm:$0xff]   ;;  %v7204_v54 = vld [vmem:[%s8742_s25] ss:$8 sps:$4 sm:$0xff]   ;;  %v7205_v13 = vld [vmem:[%s8742_s25 + $0x14] ss:$8 sps:$4 sm:$0xff]  }
 0xad0   : > { %4152 = vmatprep.subr.bf16.mxu0 %v7202_v18  ;;  %v7207_v2 = vld [vmem:[%s8742_s25 + $0x10] ss:$8 sps:$4 sm:$0xff]   ;;  %v7208_v36 = vld [vmem:[%s8742_s25 + $0x24] ss:$8 sps:$4 sm:$0xff]   ;;  %v7210_v20 = vld [vmem:[%s8742_s25 + $0x20] ss:$8 sps:$4 sm:$0xff]  }
 0xad1   : > { %4153 = vmatpush1.bf16.msra.mxu0 %v7204_v54  ;;  %v7211_v51 = vld [vmem:[%s8742_s25 + $0x34] ss:$8 sps:$4 sm:$0xff]   ;;  %v7213_v29 = vld [vmem:[%s8742_s25 + $0x30] ss:$8 sps:$4 sm:$0xff]   ;;  %v7214_v3 = vld [vmem:[%s8742_s25 + $0x44] ss:$8 sps:$4 sm:$0xff]  }
 0xad2   : > { %4154 = vmatprep.subr.bf16.mxu0 %v7205_v13  ;;  %v7216_v7 = vld [vmem:[%s8742_s25 + $0x40] ss:$8 sps:$4 sm:$0xff]   ;;  %v7217_v9 = vld [vmem:[%s8742_s25 + $0x54] ss:$8 sps:$4 sm:$0xff]   ;;  %v7219_v34 = vld [vmem:[%s8742_s25 + $0x50] ss:$8 sps:$4 sm:$0xff]  }
 0xad3   : > { %v7220_v1 = vld [vmem:[%s8742_s25 + $0x64] ss:$8 sps:$4 sm:$0xff]   ;;  %v3933_v23 = vld [vmem:[#allocation5 + $0x8] sm:$0xff]  ;;  %v7222_v8 = vld [vmem:[%s8742_s25 + $0x60] ss:$8 sps:$4 sm:$0xff]  }
 0xad4   : > { %4184 = vmatprep.mubr.bf16.mxu0 %v3933_v23  ;;  %v7223_v4 = vld [vmem:[%s8742_s25 + $0x74] ss:$8 sps:$4 sm:$0xff]   ;;  %v7225_v15 = vld [vmem:[%s8742_s25 + $0x70] ss:$8 sps:$4 sm:$0xff]   ;;  %v7226_v56 = vld [vmem:[%s8742_s25 + $0x84] ss:$8 sps:$4 sm:$0xff]  }
 0xad5   : > { %4155 = vmatpush1.bf16.msra.mxu0 %v7207_v2  ;;  %v7250_v10 = vld [vmem:[%s8751_s21 + $0x4] ss:$8 sps:$4 sm:$0xff]   ;;  %v7252_v57 = vld [vmem:[%s8751_s21] ss:$8 sps:$4 sm:$0xff]   ;;  %v7253_v41 = vld [vmem:[%s8751_s21 + $0x14] ss:$8 sps:$4 sm:$0xff]  }
 0xad6   : > { %4156 = vmatprep.subr.bf16.mxu0 %v7208_v36  ;;  %v7228_v19 = vld [vmem:[%s8742_s25 + $0x80] ss:$8 sps:$4 sm:$0xff]   ;;  %5337 = vmatprep.subr.bf16.mxu1 %v7250_v10  ;;  %v7255_v50 = vld [vmem:[%s8751_s21 + $0x10] ss:$8 sps:$4 sm:$0xff]   ;;  %v7231_v46 = vld [vmem:[%s8742_s25 + $0x90] ss:$8 sps:$4 sm:$0xff]  }
 0xad7   : > { %v7229_v47 = vld [vmem:[%s8742_s25 + $0x94] ss:$8 sps:$4 sm:$0xff]   ;;  %5338 = vmatpush1.bf16.msra.mxu1 %v7252_v57  ;;  %v7232_v31 = vld [vmem:[%s8742_s25 + $0xa4] ss:$8 sps:$4 sm:$0xff]   ;;  %v7234_v40 = vld [vmem:[%s8742_s25 + $0xa0] ss:$8 sps:$4 sm:$0xff]  }
 0xad8   : > { %5339 = vmatprep.subr.bf16.mxu1 %v7253_v41  ;;  %v7235_v53 = vld [vmem:[%s8742_s25 + $0xb4] ss:$8 sps:$4 sm:$0xff]   ;;  %v7237_v59 = vld [vmem:[%s8742_s25 + $0xb0] ss:$8 sps:$4 sm:$0xff]   ;;  %v7238_v30 = vld [vmem:[%s8742_s25 + $0xc4] ss:$8 sps:$4 sm:$0xff]  }
 0xad9   : > { %4157 = vmatpush1.bf16.msra.mxu0 %v7210_v20  ;;  %v7240_v52 = vld [vmem:[%s8742_s25 + $0xc0] ss:$8 sps:$4 sm:$0xff]   ;;  %v7241_v45 = vld [vmem:[%s8742_s25 + $0xd4] ss:$8 sps:$4 sm:$0xff]   ;;  %v7243_v44 = vld [vmem:[%s8742_s25 + $0xd0] ss:$8 sps:$4 sm:$0xff]  }
 0xada   : > { %4158 = vmatprep.subr.bf16.mxu0 %v7211_v51  ;;  %v7244_v39 = vld [vmem:[%s8742_s25 + $0xe4] ss:$8 sps:$4 sm:$0xff]   ;;  %v7246_v11 = vld [vmem:[%s8742_s25 + $0xe0] ss:$8 sps:$4 sm:$0xff]   ;;  %v7247_v25 = vld [vmem:[%s8742_s25 + $0xf4] ss:$8 sps:$4 sm:$0xff]  }
 0xadb   : > { %5340 = vmatpush1.bf16.msra.mxu1 %v7255_v50  ;;  %v7249_v17 = vld [vmem:[%s8742_s25 + $0xf0] ss:$8 sps:$4 sm:$0xff]   ;;  %v3935_v32 = vld [vmem:[#allocation5 + $0x18] sm:$0xff]  ;;  %v3934_v63 = vld [vmem:[#allocation5 + $0x10] sm:$0xff] }
 0xadc   : > { %v3932_v58 = vld [vmem:[#allocation5] sm:$0xff]  ;;  %v3937_v60 = vld [vmem:[#allocation5 + $0x28] sm:$0xff]  ;;  %v3939_v28 = vld [vmem:[#allocation5 + $0x38] sm:$0xff] }
 0xadd   : > { %4159 = vmatpush1.bf16.msra.mxu0 %v7213_v29  ;;  %v3936_v43 = vld [vmem:[#allocation5 + $0x20] sm:$0xff]  ;;  %v3938_v61 = vld [vmem:[#allocation5 + $0x30] sm:$0xff]  ;;  %v3941_v33 = vld [vmem:[#allocation5 + $0x48] sm:$0xff] }
 0xade   : > { %4160 = vmatprep.subr.bf16.mxu0 %v7214_v3  ;;  %v3940_v49 = vld [vmem:[#allocation5 + $0x40] sm:$0xff]  ;;  %v3943_v22 = vld [vmem:[#allocation5 + $0x58] sm:$0xff]  ;;  %v3942_v62 = vld [vmem:[#allocation5 + $0x50] sm:$0xff]  ;;  %v3982_v3 = vlaneseq }
 0xadf   : > { %v3945_v16 = vld [vmem:[#allocation5 + $0x68] sm:$0xff]  ;;  %v3944_v38 = vld [vmem:[#allocation5 + $0x60] sm:$0xff]  ;;  %v3947_v14 = vld [vmem:[#allocation5 + $0x78] sm:$0xff] }
 0xae0   : > { %v3946_v26 = vld [vmem:[#allocation5 + $0x70] sm:$0xff]  ;;  %v7256_v24 = vld [vmem:[%s8751_s21 + $0x24] ss:$8 sps:$4 sm:$0xff]   ;;  %v7261_v0 = vld [vmem:[%s8751_s21 + $0x30] ss:$8 sps:$4 sm:$0xff]  }
 0xae1   : > { %4161 = vmatpush1.bf16.msra.mxu0 %v7216_v7  ;;  %5341 = vmatprep.subr.bf16.mxu1 %v7256_v24  ;;  %v7258_v55 = vld [vmem:[%s8751_s21 + $0x20] ss:$8 sps:$4 sm:$0xff]   ;;  %v7259_v35 = vld [vmem:[%s8751_s21 + $0x34] ss:$8 sps:$4 sm:$0xff]   ;;  %v7262_v12 = vld [vmem:[%s8751_s21 + $0x44] ss:$8 sps:$4 sm:$0xff]  }
 0xae2   : > { %4162 = vmatprep.subr.bf16.mxu0 %v7217_v9  ;;  %5342 = vmatpush1.bf16.msra.mxu1 %v7258_v55  ;;  %v7264_v27 = vld [vmem:[%s8751_s21 + $0x40] ss:$8 sps:$4 sm:$0xff]   ;;  %v7265_v37 = vld [vmem:[%s8751_s21 + $0x54] ss:$8 sps:$4 sm:$0xff]   ;;  %v7267_v48 = vld [vmem:[%s8751_s21 + $0x50] ss:$8 sps:$4 sm:$0xff]  }
 0xae3   : > { %5343 = vmatprep.subr.bf16.mxu1 %v7259_v35  ;;  %v7268_v21 = vld [vmem:[%s8751_s21 + $0x64] ss:$8 sps:$4 sm:$0xff]   ;;  %v7270_v6 = vld [vmem:[%s8751_s21 + $0x60] ss:$8 sps:$4 sm:$0xff]   ;;  %v7271_v42 = vld [vmem:[%s8751_s21 + $0x74] ss:$8 sps:$4 sm:$0xff]  }
 0xae4   : > { %v7273_v5 = vld [vmem:[%s8751_s21 + $0x70] ss:$8 sps:$4 sm:$0xff]   ;;  %v7274_v18 = vld [vmem:[%s8751_s21 + $0x84] ss:$8 sps:$4 sm:$0xff]   ;;  %v7276_v54 = vld [vmem:[%s8751_s21 + $0x80] ss:$8 sps:$4 sm:$0xff]  }
 0xae5   : > { %4163 = vmatpush1.bf16.msra.mxu0 %v7219_v34  ;;  %v7277_v13 = vld [vmem:[%s8751_s21 + $0x94] ss:$8 sps:$4 sm:$0xff]   ;;  %v7279_v2 = vld [vmem:[%s8751_s21 + $0x90] ss:$8 sps:$4 sm:$0xff]   ;;  %v7280_v36 = vld [vmem:[%s8751_s21 + $0xa4] ss:$8 sps:$4 sm:$0xff]  }
 0xae6   : > { %4164 = vmatprep.subr.bf16.mxu0 %v7220_v1  ;;  %5344 = vmatpush1.bf16.msra.mxu1 %v7261_v0  ;;  %v7282_v20 = vld [vmem:[%s8751_s21 + $0xa0] ss:$8 sps:$4 sm:$0xff]   ;;  %v7283_v51 = vld [vmem:[%s8751_s21 + $0xb4] ss:$8 sps:$4 sm:$0xff]   ;;  %v7285_v29 = vld [vmem:[%s8751_s21 + $0xb0] ss:$8 sps:$4 sm:$0xff]  }
 0xae7   : > { %5345 = vmatprep.subr.bf16.mxu1 %v7262_v12  ;;  %v10525_v7 = vshrl.u32 %v3982_v3, 7  ;;  %v7286_v34 = vld [vmem:[%s8751_s21 + $0xc4] ss:$8 sps:$4 sm:$0xff]   ;;  %v3980_v1 = vld [vmem:[%s745_s24] sm:$0x3] }
 0xae9   : > { %4165 = vmatpush1.bf16.msra.mxu0 %v7222_v8  ;;  %12267 = vst [vmem:[#allocation130_spill] sm:$0xff] %v10525_v7  ;;  %v11956_v9 = vsub.s32 0, %v10525_v7  ;;  %v7288_v8 = vld [vmem:[%s8751_s21 + $0xc0] ss:$8 sps:$4 sm:$0xff]  }
 0xaea   : > { %4166 = vmatprep.subr.bf16.mxu0 %v7223_v4  ;;  %5346 = vmatpush1.bf16.msra.mxu1 %v7264_v27 }
 0xaeb   : > { %5347 = vmatprep.subr.bf16.mxu1 %v7265_v37  ;;  %v10533_v23 = vrot.slane %v3980_v1, %v11956_v9 }
 0xaed   : > { %4167 = vmatpush1.bf16.msra.mxu0 %v7225_v15 }
 0xaee   : > { %4168 = vmatprep.subr.bf16.mxu0 %v7226_v56  ;;  %5348 = vmatpush1.bf16.msra.mxu1 %v7267_v48 }
 0xaef   : > { %5349 = vmatprep.subr.bf16.mxu1 %v7268_v21 }
 0xaf1   : > { %4169 = vmatpush1.bf16.msra.mxu0 %v7228_v19 }
 0xaf2   : > { %4170 = vmatprep.subr.bf16.mxu0 %v7229_v47  ;;  %5350 = vmatpush1.bf16.msra.mxu1 %v7270_v6  ;;  %v11955_v47 = vsub.s32 1, %v10525_v7 }
 0xaf3   : > { %5351 = vmatprep.subr.bf16.mxu1 %v7271_v42 }
 0xaf5   : > { %4171 = vmatpush1.bf16.msra.mxu0 %v7231_v46 }
 0xaf6   : > { %4172 = vmatprep.subr.bf16.mxu0 %v7232_v31  ;;  %5352 = vmatpush1.bf16.msra.mxu1 %v7273_v5 }
 0xaf7   : > { %5353 = vmatprep.subr.bf16.mxu1 %v7274_v18 }
 0xaf9   : > { %4173 = vmatpush1.bf16.msra.mxu0 %v7234_v40 }
 0xafa   : > { %4174 = vmatprep.subr.bf16.mxu0 %v7235_v53  ;;  %5354 = vmatpush1.bf16.msra.mxu1 %v7276_v54  ;;  %v7294_v54 = vld [vmem:[%s8751_s21 + $0xe0] ss:$8 sps:$4 sm:$0xff]  }
 0xafb   : > { %5355 = vmatprep.subr.bf16.mxu1 %v7277_v13 }
 0xafd   : > { %4175 = vmatpush1.bf16.msra.mxu0 %v7237_v59  ;;  %v10558_v59 = vrot.slane %v3980_v1, %v11955_v47 }
 0xafe   : > { %4176 = vmatprep.subr.bf16.mxu0 %v7238_v30  ;;  %5356 = vmatpush1.bf16.msra.mxu1 %v7279_v2 }
 0xaff   : > { %5357 = vmatprep.subr.bf16.mxu1 %v7280_v36 }
 0xb01   : > { %4177 = vmatpush1.bf16.msra.mxu0 %v7240_v52 }
 0xb02   : > { %4178 = vmatprep.subr.bf16.mxu0 %v7241_v45  ;;  %5358 = vmatpush1.bf16.msra.mxu1 %v7282_v20 }
 0xb03   : > { %5359 = vmatprep.subr.bf16.mxu1 %v7283_v51 }
 0xb05   : > { %4179 = vmatpush1.bf16.msra.mxu0 %v7243_v44 }
 0xb06   : > { %4180 = vmatprep.subr.bf16.mxu0 %v7244_v39  ;;  %5360 = vmatpush1.bf16.msra.mxu1 %v7285_v29 }
 0xb07   : > { %5361 = vmatprep.subr.bf16.mxu1 %v7286_v34 }
 0xb09   : > { %4181 = vmatpush1.bf16.msra.mxu0 %v7246_v11  ;;  %v7289_v11 = vld [vmem:[%s8751_s21 + $0xd4] ss:$8 sps:$4 sm:$0xff]  }
 0xb0a   : > { %4182 = vmatprep.subr.bf16.mxu0 %v7247_v25  ;;  %5362 = vmatpush1.bf16.msra.mxu1 %v7288_v8 }
 0xb0b   : > { %5363 = vmatprep.subr.bf16.mxu1 %v7289_v11 }
 0xb0d   : > { %4183 = vmatpush1.bf16.msra.mxu0 %v7249_v17  ;;  %v7291_v17 = vld [vmem:[%s8751_s21 + $0xd0] ss:$8 sps:$4 sm:$0xff]  }
 0xb0e   : > { %5364 = vmatpush1.bf16.msra.mxu1 %v7291_v17 }
 0xb10   : > { %4185 = vmatmul.mubr.bf16.vlgmr.msra.gmra.mrb[0].mxu0 %v3932_v58 }
 0xb11   : > { %4194 = vmatprep.mubr.bf16.mxu0 %v3935_v32 }
 0xb18   : > { %4195 = vmatmul.mubr.bf16.gmra.mrb[4].mxu0 %v3934_v63 }
 0xb19   : > { %4204 = vmatprep.mubr.bf16.mxu0 %v3937_v60  ;;  %v7292_v60 = vld [vmem:[%s8751_s21 + $0xe4] ss:$8 sps:$4 sm:$0xff]  }
 0xb1a   : > { %5365 = vmatprep.subr.bf16.mxu1 %v7292_v60  ;;  %v7297_v60 = vld [vmem:[%s8751_s21 + $0xf0] ss:$8 sps:$4 sm:$0xff]  }
 0xb1b   : > { %5366 = vmatpush1.bf16.msra.mxu1 %v7294_v54 }
 0xb20   : > { %4205 = vmatmul.mubr.bf16.gmra.mrb[8].mxu0 %v3936_v43 }
 0xb21   : > { %4214 = vmatprep.mubr.bf16.mxu0 %v3939_v28 }
 0xb28   : > { %4215 = vmatmul.mubr.bf16.gmra.mrb[12].mxu0 %v3938_v61 }
 0xb29   : > { %4224 = vmatprep.mubr.bf16.mxu0 %v3941_v33 }
 0xb30   : > { %4225 = vmatmul.mubr.bf16.gmra.mrb[16].mxu0 %v3940_v49 }
 0xb31   : > { %4234 = vmatprep.mubr.bf16.mxu0 %v3943_v22 }
 0xb38   : > { %4235 = vmatmul.mubr.bf16.gmra.mrb[20].mxu0 %v3942_v62 }
 0xb39   : > { %4244 = vmatprep.mubr.bf16.mxu0 %v3945_v16 }
 0xb40   : > { %4245 = vmatmul.mubr.bf16.gmra.mrb[24].mxu0 %v3944_v38 }
 0xb41   : > { %4254 = vmatprep.mubr.bf16.mxu0 %v3947_v14 }
 0xb48   : > { %4255 = vmatmul.mubr.bf16.gmra.mrb[28].mxu0 %v3946_v26 }
 0xbe3   : > { %v4186_v4 = vpop.f32.mrb[0].mxu0 }
 0xbe4   : > { %v10537_v15 = vadd.f32 %v4186_v4, %v10533_v23  ;;  %v4188_v56 = vpop.f32.mrb[1].mxu0 }
 0xbe5   : > { %v4190_v10 = vpop.f32.mrb[2].mxu0  ;;  %v10564_v58 = vadd.f32 %v4188_v56, %v10558_v59 }
 0xbe6   : > { %v10540_v57 = vmul.f32 0.70710677, %v10537_v15  ;;  %v10543_v41 = vadd.f32 %v4190_v10, %v10533_v23  ;;  %v4192_v19 = vpop.f32.mrb[3].mxu0 }
 0xbe7   : > { %v10589_v62 = vmul.f32 0.70710677, %v10564_v58  ;;  %v4193_v0 = vadd.f32 %v4192_v19, %v10558_v59 }
 0xbe8   : > { %v10546_v50 = vand.u32 2147483647, %v10540_v57  ;;  %v10550_v46 = vmul.f32 0.70710677, %v10543_v41  ;;  %vm4969_vm1 = vcmp.lt.f32.partialorder %v10540_v57, 0.0 }
 0xbe9   : > { %12268 = vst [vmem:[#allocation131_spill] sm:$0xff] %v10589_v62  ;;  %v4330_v48 = vand.u32 2147483647, %v10589_v62  ;;  %v10620_v20 = vmul.f32 0.70710677, %v4193_v0 }
 0xbea   : > { %v4361_v31 = vmul.f32 0.3275911, %v10546_v50  ;;  %v10554_v40 = vand.u32 2147483647, %v10550_v46  ;;  %v4777_v3 = vsub.f32 0.0, %v10546_v50  ;;  %vm4971_vm2 = vcmp.lt.f32.partialorder %v10550_v46, 0.0 }
 0xbeb   : > { %v4196_v52 = vpop.f32.mrb[4].mxu0  ;;  %12269 = vst [vmem:[#allocation132_spill] sm:$0xff] %v10620_v20  ;;  %v4362_v56 = vmul.f32 0.3275911, %v4330_v48 }
 0xbec   : > { %v4393_v53 = vadd.f32 1.0, %v4361_v31  ;;  %v4363_v30 = vmul.f32 0.3275911, %v10554_v40  ;;  %v4198_v45 = vpop.f32.mrb[5].mxu0  ;;  %v10567_v32 = vadd.f32 %v4196_v52, %v10533_v23  ;;  %v7295_v52 = vld [vmem:[%s8751_s21 + $0xf4] ss:$8 sps:$4 sm:$0xff]  }
 0xbed   : > { %v4200_v39 = vpop.f32.mrb[6].mxu0  ;;  %v10570_v63 = vadd.f32 %v4198_v45, %v10558_v59  ;;  %v4778_v45 = vsub.f32 0.0, %v4330_v48  ;;  %5367 = vmatprep.subr.bf16.mxu1 %v7295_v52 }
 0xbee   : > { %7298 = vrcp.f32 %v4393_v53  ;;  %v4395_v44 = vadd.f32 1.0, %v4363_v30  ;;  %v4202_v25 = vpop.f32.mrb[7].mxu0  ;;  %v10574_v43 = vadd.f32 %v4200_v39, %v10533_v23  ;;  %v10577_v28 = vmul.f32 0.70710677, %v10567_v32  ;;  %5368 = vmatpush1.bf16.msra.mxu1 %v7297_v60 }
 0xbef   : > { %v10580_v61 = vadd.f32 %v4202_v25, %v10558_v59  ;;  %v10583_v33 = vmul.f32 0.70710677, %v10570_v63  ;;  %v10646_v39 = vand.u32 2147483647, %v10620_v20  ;;  %v4809_v25 = vmul.f32 %v4777_v3, %v10546_v50 }
 0xbf0   : > { %7300 = vrcp.f32 %v4395_v44  ;;  %v10586_v49 = vmul.f32 0.70710677, %v10574_v43  ;;  %v10592_v16 = vand.u32 2147483647, %v10577_v28  ;;  %v10665_v50 = vmul.f32 0.5, %v10543_v41 }
 0xbf1   : > { %v10595_v14 = vand.u32 2147483647, %v10583_v33  ;;  %v10604_v35 = vmul.f32 0.70710677, %v10580_v61  ;;  %v4364_v3 = vmul.f32 0.3275911, %v10646_v39 }
 0xbf2   : > { %v10598_v26 = vand.u32 2147483647, %v10586_v49  ;;  %v4365_v55 = vmul.f32 0.3275911, %v10592_v16  ;;  %vm4973_vm3 = vcmp.lt.f32.partialorder %v10577_v28, 0.0  ;;  %vm4974_vm4 = vcmp.lt.f32.partialorder %v10583_v33, 0.0 }
 0xbf3   : > { %v4206_v22 = vpop.f32.mrb[8].mxu0  ;;  %v4366_v12 = vmul.f32 0.3275911, %v10595_v14  ;;  %v10613_v6 = vand.u32 2147483647, %v10604_v35  ;;  %vm4975_vm5 = vcmp.lt.f32.partialorder %v10586_v49, 0.0 }
 0xbf4   : > { %v4208_v38 = vpop.f32.mrb[9].mxu0  ;;  %v4367_v27 = vmul.f32 0.3275911, %v10598_v26  ;;  %v4397_v21 = vadd.f32 1.0, %v4365_v55  ;;  %v10628_v1 = vadd.f32 %v4206_v22, %v10533_v23  ;;  %v10654_v22 = vmul.f32 0.5, %v10537_v15 }
 0xbf5   : > { %v10600_v24 = vpop.f32.mrb[10].mxu0  ;;  %v4398_v18 = vadd.f32 1.0, %v4366_v12  ;;  %v4368_v2 = vmul.f32 0.3275911, %v10613_v6  ;;  %v10640_v53 = vadd.f32 %v4208_v38, %v10558_v59  ;;  %v4779_v55 = vsub.f32 0.0, %v10554_v40 }
 0xbf6   : > { %v10615_v42 = vpop.f32.mrb[11].mxu0  ;;  %7302 = vrcp.f32 %v4397_v21  ;;  %v4399_v13 = vadd.f32 1.0, %v4367_v27  ;;  %v10637_v31 = vmul.f32 0.70710677, %v10628_v1  ;;  %v10662_v27 = vmul.f32 0.5, %v10564_v58 }
 0xbf7   : > { %7304 = vrcp.f32 %v4398_v18  ;;  %v4400_v34 = vadd.f32 1.0, %v4368_v2  ;;  %v10659_v12 = vmul.f32 0.70710677, %v10640_v53  ;;  %v10667_v21 = vmul.f32 0.5, %v4193_v0 }
 0xbf8   : > { %v10609_v37 = vpop.eup %7298  ;;  %7306 = vrcp.f32 %v4399_v13  ;;  %v10650_v17 = vand.u32 2147483647, %v10637_v31  ;;  %12271 = vst [vmem:[#allocation134_spill] sm:$0xff] %v10662_v27  ;;  %v4394_v15 = vadd.f32 1.0, %v4362_v56  ;;  %v4810_v18 = vmul.f32 %v4778_v45, %v4330_v48 }
 0xbf9   : > { %v4489_v5 = vmul.f32 1.0614054, %v10609_v37  ;;  %7308 = vrcp.f32 %v4400_v34  ;;  %12270 = vst [vmem:[#allocation133_spill] sm:$0xff] %v10659_v12  ;;  %12272 = vst [vmem:[#allocation135_spill] sm:$0xff] %v10667_v21  ;;  %v10671_v13 = vand.u32 2147483647, %v10659_v12 }
 0xbfa   : > { %v10624_v29 = vpop.eup %7300  ;;  %v4841_v58 = vmul.f32 1.442695, %v4809_v25  ;;  %v4781_v56 = vsub.f32 0.0, %v10592_v16  ;;  %vm4976_vm6 = vcmp.lt.f32.partialorder %v10604_v35, 0.0  ;;  %vm4977_vm7 = vcmp.lt.f32.partialorder %v10637_v31, 0.0 }
 0xbfb   : > { %v4521_v36 = vadd.f32 -1.4531521, %v4489_v5  ;;  %v10622_v51 = vpop.f32.mrb[12].mxu0  ;;  %v4491_v10 = vmul.f32 1.0614054, %v10624_v29 }
 0xbfc   : > { %v10630_v8 = vpop.f32.mrb[13].mxu0  ;;  %v4369_v5 = vmul.f32 0.3275911, %v10650_v17  ;;  %v4813_v21 = vmul.f32 %v4781_v56, %v10592_v16 }
 0xbfd   : > { %v4553_v4 = vmul.f32 %v10609_v37, %v4521_v36  ;;  %v10634_v19 = vpop.f32.mrb[14].mxu0  ;;  %v4523_v44 = vadd.f32 -1.4531521, %v4491_v10  ;;  %v4370_v10 = vmul.f32 0.3275911, %v10671_v13 }
 0xbfe   : > { %v10642_v30 = vpop.f32.mrb[15].mxu0  ;;  %v4401_v41 = vadd.f32 1.0, %v4369_v5 }
 0xbff   : > { %v4585_v11 = vadd.f32 1.4214138, %v4553_v4  ;;  %v4555_v38 = vmul.f32 %v10624_v29, %v4523_v44  ;;  %v4811_v4 = vmul.f32 %v4779_v55, %v10554_v40  ;;  %v10695_v40 = vmul.f32 1.442695, %v4810_v18 }
 0xc00   : > { %v10673_v2 = vpop.eup %7302  ;;  %7310 = vrcp.f32 %v4401_v41  ;;  %v4782_v55 = vsub.f32 0.0, %v10595_v14  ;;  %v4402_v9 = vadd.f32 1.0, %v4370_v10 }
 0xc01   : > { %v4587_v54 = vadd.f32 1.4214138, %v4555_v38  ;;  %v4617_v36 = vmul.f32 %v10609_v37, %v4585_v11  ;;  %v10679_v0 = vpop.eup %7304  ;;  %v4493_v48 = vmul.f32 1.0614054, %v10673_v2  ;;  %v10691_v11 = vadd.f32 %v10600_v24, %v10533_v23 }
 0xc02   : > { %v4494_v44 = vmul.f32 1.0614054, %v10679_v0  ;;  %v10699_v5 = vpop.eup %7306  ;;  %7312 = vpow2.f32 %v4841_v58  ;;  %v4845_v7 = vmul.f32 1.442695, %v4811_v4  ;;  %v4814_v10 = vmul.f32 %v4782_v55, %v10595_v14 }
 0xc03   : > { %v10677_v34 = vpop.f32.mrb[16].mxu0  ;;  %v4619_v45 = vmul.f32 %v10624_v29, %v4587_v54  ;;  %v4525_v38 = vadd.f32 -1.4531521, %v4493_v48  ;;  %v4649_v47 = vadd.f32 -0.28449672, %v4617_v36  ;;  %v10706_v27 = vpop.eup %7308  ;;  %7314 = vrcp.f32 %v4402_v9 }
 0xc04   : > { %v10685_v52 = vpop.f32.mrb[17].mxu0  ;;  %v4526_v54 = vadd.f32 -1.4531521, %v4494_v44  ;;  %v4495_v18 = vmul.f32 1.0614054, %v10699_v5  ;;  %v4783_v4 = vsub.f32 0.0, %v10598_v26  ;;  %7316 = vrcp.f32 %v4394_v15 }
 0xc05   : > { %v10693_v25 = vpop.f32.mrb[18].mxu0  ;;  %v4557_v24 = vmul.f32 %v10673_v2, %v4525_v38  ;;  %v4651_v48 = vadd.f32 -0.28449672, %v4619_v45  ;;  %v10710_v36 = vmul.f32 0.70710677, %v10691_v11  ;;  %v4681_v38 = vmul.f32 %v10609_v37, %v4649_v47 }
 0xc06   : > { %12273 = vst [vmem:[#allocation136_spill] sm:$0xff] %v10693_v25  ;;  %v10701_v41 = vpop.f32.mrb[19].mxu0  ;;  %v4558_v60 = vmul.f32 %v10679_v0, %v4526_v54  ;;  %v4527_v44 = vadd.f32 -1.4531521, %v4495_v18  ;;  %v4496_v56 = vmul.f32 1.0614054, %v10706_v27  ;;  %7318 = vpow2.f32 %v4845_v7 }
 0xc07   : > { %12274 = vst [vmem:[#allocation137_spill] sm:$0xff] %v10701_v41  ;;  %12275 = vst [vmem:[#allocation138_spill] sm:$0xff] %v10710_v36  ;;  %v4589_v58 = vadd.f32 1.4214138, %v4557_v24  ;;  %v10717_v20 = vand.u32 2147483647, %v10710_v36  ;;  %v4683_v14 = vmul.f32 %v10624_v29, %v4651_v48 }
 0xc08   : > { %v4590_v16 = vadd.f32 1.4214138, %v4558_v60  ;;  %v4849_v9 = vmul.f32 1.442695, %v4813_v21  ;;  %v4559_v54 = vmul.f32 %v10699_v5, %v4527_v44  ;;  %v4784_v24 = vsub.f32 0.0, %v10613_v6 }
 0xc09   : > { %v4621_v45 = vmul.f32 %v10673_v2, %v4589_v58  ;;  %v4528_v55 = vadd.f32 -1.4531521, %v4496_v56  ;;  %v4371_v47 = vmul.f32 0.3275911, %v10717_v20  ;;  %v4713_v41 = vadd.f32 0.2548296, %v4681_v38 }
 0xc0a   : > { %v4622_v36 = vmul.f32 %v10679_v0, %v4590_v16  ;;  %v4591_v58 = vadd.f32 1.4214138, %v4559_v54  ;;  %v10731_v44 = vpop.eup %7310  ;;  %v4396_v25 = vadd.f32 1.0, %v4364_v3  ;;  %v4851_v12 = vmul.f32 1.442695, %v4814_v10 }
 0xc0b   : > { %v10722_v62 = vpop.f32.mrb[20].mxu0  ;;  %v4653_v18 = vadd.f32 -0.28449672, %v4621_v45  ;;  %v4560_v15 = vmul.f32 %v10706_v27, %v4528_v55  ;;  %v4403_v48 = vadd.f32 1.0, %v4371_v47  ;;  %v4816_v45 = vmul.f32 %v4784_v24, %v10613_v6 }
 0xc0c   : > { %12276 = vst [vmem:[#allocation139_spill] sm:$0xff] %v10722_v62  ;;  %v10726_v60 = vpop.f32.mrb[21].mxu0  ;;  %v4815_v62 = vmul.f32 %v4783_v4, %v10598_v26  ;;  %v4623_v7 = vmul.f32 %v10699_v5, %v4591_v58  ;;  %v7313_v16 = vpop.eup %7312  ;;  %v4715_v54 = vadd.f32 0.2548296, %v4683_v14  ;;  %7320 = vpow2.f32 %v4849_v9 }
 0xc0d   : > { %12277 = vst [vmem:[#allocation140_spill] sm:$0xff] %v10726_v60  ;;  %v10729_v21 = vpop.f32.mrb[22].mxu0  ;;  %v4497_v60 = vmul.f32 1.0614054, %v10731_v44  ;;  %v4685_v38 = vmul.f32 %v10673_v2, %v4653_v18  ;;  %v4654_v26 = vadd.f32 -0.28449672, %v4622_v36  ;;  %7322 = vrcp.f32 %v4403_v48  ;;  %v10743_v47 = vpop.eup %7314 }
 0xc0e   : > { %12278 = vst [vmem:[#allocation141_spill] sm:$0xff] %v10729_v21  ;;  %v10735_v56 = vpop.f32.mrb[23].mxu0  ;;  %v4592_v21 = vadd.f32 1.4214138, %v4560_v15  ;;  %v4655_v4 = vadd.f32 -0.28449672, %v4623_v7  ;;  %v4745_v3 = vmul.f32 %v10609_v37, %v4713_v41  ;;  %7324 = vpow2.f32 %v4851_v12 }
 0xc0f   : > { %v4853_v10 = vmul.f32 1.442695, %v4815_v62  ;;  %v4529_v24 = vadd.f32 -1.4531521, %v4497_v60  ;;  %v12279_v9 = vsub.f32 0.0, %v10646_v39  ;;  %v4747_v48 = vmul.f32 %v10624_v29, %v4715_v54 }
 0xc10   : > { %v4624_v6 = vmul.f32 %v10706_v27, %v4592_v21  ;;  %v4855_v36 = vmul.f32 1.442695, %v4816_v45  ;;  %v4498_v18 = vmul.f32 1.0614054, %v10743_v47  ;;  %v4785_v37 = vsub.f32 0.0, %v10650_v17  ;;  %v10762_v45 = vpop.eup %7316 }
 0xc11   : > { %v4812_v58 = vmul.f32 %v12279_v9, %v10646_v39  ;;  %v4561_v62 = vmul.f32 %v10731_v44, %v4529_v24  ;;  %v4717_v60 = vadd.f32 0.2548296, %v4685_v38  ;;  %v4686_v21 = vmul.f32 %v10679_v0, %v4654_v26  ;;  %12282 = vst [vmem:[#allocation144_spill] sm:$0xff] %v10762_v45  ;;  %v7319_v54 = vpop.eup %7318 }
 0xc12   : > { %v4656_v7 = vadd.f32 -0.28449672, %v4624_v6  ;;  %v4687_v39 = vmul.f32 %v10699_v5, %v4655_v4  ;;  %v4530_v12 = vadd.f32 -1.4531521, %v4498_v18  ;;  %v4905_v9 = vmul.f32 %v7313_v16, %v4745_v3 }
 0xc13   : > { %v10741_v55 = vpop.f32.mrb[24].mxu0  ;;  %7326 = vpow2.f32 %v4853_v10  ;;  %v10766_v29 = vadd.f32 %v10615_v42, %v10558_v59  ;;  %v10769_v6 = vmul.f32 1.442695, %v4812_v58  ;;  %v4907_v4 = vmul.f32 %v7319_v54, %v4747_v48 }
 0xc14   : > { %v10747_v14 = vpop.f32.mrb[25].mxu0  ;;  %7328 = vpow2.f32 %v10695_v40  ;;  %v4688_v38 = vmul.f32 %v10706_v27, %v4656_v7  ;;  %v4562_v26 = vmul.f32 %v10743_v47, %v4530_v12  ;;  %v10774_v24 = vmul.f32 0.5, %v10567_v32 }
 0xc15   : > { %v10753_v15 = vpop.f32.mrb[26].mxu0  ;;  %7330 = vpow2.f32 %v4855_v36  ;;  %v4817_v16 = vmul.f32 %v4785_v37, %v10650_v17  ;;  %v4749_v42 = vmul.f32 %v10673_v2, %v4717_v60  ;;  %v10780_v3 = vmul.f32 0.5, %v10570_v63 }
 0xc16   : > { %12280 = vst [vmem:[#allocation142_spill] sm:$0xff] %v10753_v15  ;;  %v10758_v41 = vpop.f32.mrb[27].mxu0  ;;  %v4593_v15 = vadd.f32 1.4214138, %v4561_v62  ;;  %v4718_v40 = vadd.f32 0.2548296, %v4686_v21  ;;  %v7321_v18 = vpop.eup %7320  ;;  %7332 = vrcp.f32 %v4396_v25 }
 0xc17   : > { %12281 = vst [vmem:[#allocation143_spill] sm:$0xff] %v10758_v41  ;;  %v4719_v10 = vadd.f32 0.2548296, %v4687_v39  ;;  %v4937_v7 = vsub.f32 1.0, %v4905_v9  ;;  %v10785_v48 = vmul.f32 0.5, %v10574_v43  ;;  %v10791_v36 = vpop.eup %7322  ;;  %v4786_v62 = vsub.f32 0.0, %v10671_v13 }
 0xc18   : > { %v4625_v32 = vmul.f32 %v10731_v44, %v4593_v15  ;;  %v10789_v17 = vmul.f32 0.70710677, %v10766_v29  ;;  %v4720_v63 = vadd.f32 0.2548296, %v4688_v38  ;;  %v4594_v2 = vadd.f32 1.4214138, %v4562_v26  ;;  %v7325_v21 = vpop.eup %7324 }
 0xc19   : > { %v4939_v37 = vsub.f32 1.0, %v4907_v4  ;;  %v10796_v60 = vmul.f32 0.5, %v10580_v61  ;;  %v10799_v43 = vmul.f32 0.5, %v10628_v1  ;;  %v4857_v15 = vmul.f32 1.442695, %v4817_v16 }
 0xc1a   : > { %v4909_v39 = vmul.f32 %v7321_v18, %v4749_v42  ;;  %v4750_v12 = vmul.f32 %v10679_v0, %v4718_v40  ;;  %v4751_v9 = vmul.f32 %v10699_v5, %v4719_v10  ;;  %v4499_v25 = vmul.f32 1.0614054, %v10791_v36 }
 0xc1b   : > { %v10782_v58 = vpop.f32.mrb[28].mxu0  ;;  %v5001_v54 = vsub.f32 0.0, %v4937_v7  ;;  %v4657_v38 = vadd.f32 -0.28449672, %v4625_v32  ;;  %v10805_v26 = vmul.f32 0.5, %v10640_v53  ;;  %v4752_v1 = vmul.f32 %v10706_v27, %v4720_v63 }
 0xc1c   : > { %12283 = vst [vmem:[#allocation145_spill] sm:$0xff] %v10782_v58  ;;  %v10808_v61 = vand.u32 2147483647, %v10789_v17  ;;  %v4626_v4 = vmul.f32 %v10743_v47, %v4594_v2  ;;  %v4818_v16 = vmul.f32 %v4786_v62, %v10671_v13  ;;  %v4787_v0 = vsub.f32 0.0, %v10717_v20 }
 0xc1d   : > { %v7327_v42 = vpop.eup %7326  ;;  %v5003_v5 = vsub.f32 0.0, %v4939_v37  ;;  %v4531_v40 = vadd.f32 -1.4531521, %v4499_v25  ;;  %v10818_v53 = vadd.f32 %v10622_v51, %v10533_v23  ;;  %v4941_v27 = vsub.f32 1.0, %v4909_v39 }
 0xc1e   : > { %v4372_v10 = vmul.f32 0.3275911, %v10808_v61  ;;  %v10820_v18 = vpop.eup %7328  ;;  %v4910_v32 = vmul.f32 %v7325_v21, %v4750_v12  ;;  %v4911_v63 = vmul.f32 %v7327_v42, %v4751_v9  ;;  %v10824_v13 = vadd.f32 %v10630_v8, %v10558_v59 }
 0xc1f   : > { %12284 = vst [vmem:[#allocation146_spill] sm:$0xff] %v10820_v18  ;;  %v7331_v2 = vpop.eup %7330  ;;  %v5033_v62 = vsel %vm4969_vm1, %v5001_v54, %v4937_v7  ;;  %v4689_v25 = vmul.f32 %v10731_v44, %v4657_v38  ;;  %7334 = vpow2.f32 %v4857_v15  ;;  %v4658_v51 = vadd.f32 -0.28449672, %v4626_v4 }
 0xc20   : > { %v4404_v45 = vadd.f32 1.0, %v4372_v10  ;;  %v4912_v58 = vmul.f32 %v7331_v2, %v4752_v1  ;;  %v4859_v41 = vmul.f32 1.442695, %v4818_v16  ;;  %v4819_v18 = vmul.f32 %v4787_v0, %v10717_v20  ;;  %v10836_v57 = vpop.eup %7332 }
 0xc21   : > { %v5035_v21 = vsel %vm4971_vm2, %v5003_v5, %v4939_v37  ;;  %v4563_v39 = vmul.f32 %v10791_v36, %v4531_v40  ;;  %v10834_v8 = vmul.f32 0.70710677, %v10818_v53  ;;  %12285 = vst [vmem:[#allocation147_spill] sm:$0xff] %v10836_v57  ;;  %v5065_v7 = vadd.f32 1.0, %v5033_v62 }
 0xc22   : > { %7336 = vrcp.f32 %v4404_v45  ;;  %v5005_v12 = vsub.f32 0.0, %v4941_v27  ;;  %v4942_v15 = vsub.f32 1.0, %v4910_v32  ;;  %v4943_v9 = vsub.f32 1.0, %v4911_v63 }
 0xc23   : > { %7338 = vpow2.f32 %v10769_v6  ;;  %v4721_v46 = vadd.f32 0.2548296, %v4689_v25  ;;  %v10842_v20 = vand.u32 2147483647, %v10834_v8  ;;  %v10845_v45 = vmul.f32 0.70710677, %v10824_v13 }
 0xc24   : > { %v5067_v37 = vadd.f32 1.0, %v5035_v21  ;;  %v4944_v54 = vsub.f32 1.0, %v4912_v58  ;;  %v4690_v38 = vmul.f32 %v10743_v47, %v4658_v51  ;;  %v4861_v1 = vmul.f32 1.442695, %v4819_v18 }
 0xc25   : > { %7340 = vpow2.f32 %v4859_v41  ;;  %v4595_v4 = vadd.f32 1.4214138, %v4563_v39  ;;  %v4373_v16 = vmul.f32 0.3275911, %v10842_v20  ;;  %v10851_v6 = vand.u32 2147483647, %v10845_v45 }
 0xc26   : > { %v5037_v0 = vsel %vm4973_vm3, %v5005_v12, %v4941_v27  ;;  %v5006_v42 = vsub.f32 0.0, %v4942_v15  ;;  %v10856_v5 = vmul.f32 0.5, %v10691_v11  ;;  %v10860_v58 = vadd.f32 %v10634_v19, %v10533_v23 }
 0xc27   : > { %v5007_v40 = vsub.f32 0.0, %v4943_v9  ;;  %v4753_v41 = vmul.f32 %v10731_v44, %v4721_v46  ;;  %v4405_v10 = vadd.f32 1.0, %v4373_v16  ;;  %v4374_v18 = vmul.f32 0.3275911, %v10851_v6 }
 0xc28   : > { %v10865_v32 = vmul.f32 %v5065_v7, %v10654_v22  ;;  %v10868_v28 = vmul.f32 %v5067_v37, %v10665_v50  ;;  %v4722_v27 = vadd.f32 0.2548296, %v4690_v38  ;;  %7342 = vpow2.f32 %v4861_v1 }
 0xc29   : > { %v7335_v11 = vpop.eup %7334  ;;  %v5008_v63 = vsub.f32 0.0, %v4944_v54  ;;  %v4627_v2 = vmul.f32 %v10791_v36, %v4595_v4  ;;  %7344 = vrcp.f32 %v4405_v10  ;;  %v4406_v19 = vadd.f32 1.0, %v4374_v18 }
 0xc2a   : > { %12286 = vst [vmem:[#allocation148_spill] sm:$0xff] %v10865_v32  ;;  %12287 = vst [vmem:[#allocation149_spill] sm:$0xff] %v10868_v28  ;;  %v5069_v62 = vadd.f32 1.0, %v5037_v0  ;;  %v10872_v44 = vmul.f32 0.5, %v10766_v29  ;;  %v10875_v25 = vmul.f32 0.70710677, %v10860_v58  ;;  %v10879_v22 = vadd.f32 %v10642_v30, %v10558_v59 }
 0xc2b   : > { %v5038_v51 = vsel %vm4974_vm4, %v5006_v42, %v4942_v15  ;;  %v5039_v21 = vsel %vm4975_vm5, %v5007_v40, %v4943_v9  ;;  %v4913_v39 = vmul.f32 %v7335_v11, %v4753_v41  ;;  %v10888_v7 = vmul.f32 0.5, %v10818_v53 }
 0xc2c   : > { %v10881_v50 = vpop.eup %7336  ;;  %v4754_v29 = vmul.f32 %v10743_v47, %v4722_v27  ;;  %7346 = vrcp.f32 %v4406_v19  ;;  %v10894_v30 = vadd.f32 %v10677_v34, %v10533_v23  ;;  %v5040_v33 = vsel %vm4976_vm6, %v5008_v63, %v4944_v54  ;;  %v10925_v27 = vpop.f32.mrb[29].mxu0 }
 0xc2d   : > { %v4500_v12 = vmul.f32 1.0614054, %v10881_v50  ;;  %v10896_v46 = vpop.eup %7338  ;;  %v4659_v49 = vadd.f32 -0.28449672, %v4627_v2  ;;  %v10901_v15 = vand.u32 2147483647, %v10875_v25  ;;  %v10907_v47 = vmul.f32 %v5069_v62, %v10774_v24 }
 0xc2e   : > { %12288 = vst [vmem:[#allocation150_spill] sm:$0xff] %v10896_v46  ;;  %v10904_v53 = vmul.f32 0.70710677, %v10879_v22  ;;  %v5070_v9 = vadd.f32 1.0, %v5038_v51  ;;  %v4788_v37 = vsub.f32 0.0, %v10808_v61  ;;  %v5071_v1 = vadd.f32 1.0, %v5039_v21 }
 0xc2f   : > { %12289 = vst [vmem:[#allocation151_spill] sm:$0xff] %v10907_v47  ;;  %v4532_v34 = vadd.f32 -1.4531521, %v4500_v12  ;;  %v7341_v38 = vpop.eup %7340  ;;  %v4945_v35 = vsub.f32 1.0, %v4913_v39  ;;  %v4375_v54 = vmul.f32 0.3275911, %v10901_v15  ;;  %v4691_v40 = vmul.f32 %v10791_v36, %v4659_v49 }
 0xc30   : > { %v10913_v4 = vand.u32 2147483647, %v10904_v53  ;;  %v5072_v16 = vadd.f32 1.0, %v5040_v33  ;;  %v4914_v0 = vmul.f32 %v7341_v38, %v4754_v29  ;;  %v10917_v24 = vmul.f32 0.70710677, %v10894_v30  ;;  %12290 = vst [vmem:[#allocation152_spill] sm:$0xff] %v10925_v27 }
 0xc31   : > { %v4564_v42 = vmul.f32 %v10881_v50, %v4532_v34  ;;  %v4407_v41 = vadd.f32 1.0, %v4375_v54  ;;  %v10923_v18 = vadd.f32 %v10685_v52, %v10558_v59  ;;  %v10928_v63 = vmul.f32 %v5070_v9, %v10780_v3  ;;  %v10934_v51 = vpop.f32.mrb[30].mxu0  ;;  %v12294_v29 = vld [vmem:[#allocation133_spill] sm:$0xff] }
 0xc32   : > { %v4376_v10 = vmul.f32 0.3275911, %v10913_v4  ;;  %v7343_v11 = vpop.eup %7342  ;;  %v4820_v19 = vmul.f32 %v4788_v37, %v10808_v61  ;;  %v10932_v62 = vand.u32 2147483647, %v10917_v24  ;;  %12292 = vst [vmem:[#allocation154_spill] sm:$0xff] %v10934_v51  ;;  %v10939_v39 = vmul.f32 %v5071_v1, %v10785_v48  ;;  %v10942_v3 = vpop.f32.mrb[31].mxu0 }
 0xc33   : > { %12291 = vst [vmem:[#allocation153_spill] sm:$0xff] %v10928_v63  ;;  %v4596_v2 = vadd.f32 1.4214138, %v4564_v42  ;;  %v10936_v21 = vpop.eup %7344  ;;  %v5009_v52 = vsub.f32 0.0, %v4945_v35  ;;  %vm4978_vm8 = vcmp.lt.f32.partialorder %v12294_v29, 0.0  ;;  %7348 = vrcp.f32 %v4407_v41  ;;  %12295 = vst [vmem:[#allocation133_spill] sm:$0xff] %v10942_v3 }
 0xc34   : > { %12293 = vst [vmem:[#allocation155_spill] sm:$0xff] %v10939_v39  ;;  %v4408_v12 = vadd.f32 1.0, %v4376_v10  ;;  %v4946_v33 = vsub.f32 1.0, %v4914_v0  ;;  %v4501_v61 = vmul.f32 1.0614054, %v10936_v21  ;;  %v4789_v49 = vsub.f32 0.0, %v10842_v20 }
 0xc35   : > { %v4377_v9 = vmul.f32 0.3275911, %v10932_v62  ;;  %v10948_v34 = vmul.f32 %v5072_v16, %v10796_v60  ;;  %v4723_v37 = vadd.f32 0.2548296, %v4691_v40  ;;  %v10951_v48 = vmul.f32 0.5, %v10824_v13 }
 0xc36   : > { %v10954_v38 = vmul.f32 0.70710677, %v10923_v18  ;;  %v10956_v1 = vpop.eup %7346  ;;  %v4628_v54 = vmul.f32 %v10881_v50, %v4596_v2  ;;  %v4863_v0 = vmul.f32 1.442695, %v4820_v19  ;;  %v4533_v42 = vadd.f32 -1.4531521, %v4501_v61 }
 0xc37   : > { %12296 = vst [vmem:[#allocation156_spill] sm:$0xff] %v10948_v34  ;;  %7350 = vrcp.f32 %v4408_v12  ;;  %v5041_v41 = vsel %vm4977_vm7, %v5009_v52, %v4945_v35  ;;  %v4502_v60 = vmul.f32 1.0614054, %v10956_v1  ;;  %v4409_v16 = vadd.f32 1.0, %v4377_v9  ;;  %v12297_v61 = vld [vmem:[#allocation136_spill] sm:$0xff] }
 0xc38   : > { %v10963_v40 = vand.u32 2147483647, %v10954_v38  ;;  %v5010_v13 = vsub.f32 0.0, %v4946_v33  ;;  %v4565_v10 = vmul.f32 %v10936_v21, %v4533_v42  ;;  %v4821_v39 = vmul.f32 %v4789_v49, %v10842_v20  ;;  %v12298_v20 = vld [vmem:[#allocation137_spill] sm:$0xff] }
 0xc39   : > { %v4790_v47 = vsub.f32 0.0, %v10851_v6  ;;  %v4755_v2 = vmul.f32 %v10791_v36, %v4723_v37  ;;  %v4534_v19 = vadd.f32 -1.4531521, %v4502_v60  ;;  %7352 = vrcp.f32 %v4409_v16 }
 0xc3a   : > { %v4378_v31 = vmul.f32 0.3275911, %v10963_v40  ;;  %v5073_v35 = vadd.f32 1.0, %v5041_v41  ;;  %v4660_v52 = vadd.f32 -0.28449672, %v4628_v54  ;;  %v10972_v9 = vadd.f32 %v12297_v61, %v10533_v23  ;;  %v12302_v61 = vld [vmem:[#allocation138_spill] sm:$0xff] }
 0xc3b   : > { %v4597_v12 = vadd.f32 1.4214138, %v4565_v10  ;;  %7354 = vpow2.f32 %v4863_v0  ;;  %v4566_v42 = vmul.f32 %v10956_v1, %v4534_v19  ;;  %v10977_v49 = vadd.f32 %v12298_v20, %v10558_v59 }
 0xc3c   : > { %v4410_v34 = vadd.f32 1.0, %v4378_v31  ;;  %v5042_v36 = vsel %vm4978_vm8, %v5010_v13, %v4946_v33  ;;  %v4865_v41 = vmul.f32 1.442695, %v4821_v39  ;;  %v4822_v54 = vmul.f32 %v4790_v47, %v10851_v6 }
 0xc3d   : > { %v4629_v37 = vmul.f32 %v10936_v21, %v4597_v12  ;;  %v10983_v60 = vpop.eup %7348  ;;  %v10985_v16 = vmul.f32 %v7343_v11, %v4755_v2  ;;  %v4598_v0 = vadd.f32 1.4214138, %v4566_v42  ;;  %v10988_v10 = vmul.f32 0.70710677, %v10972_v9 }
 0xc3e   : > { %7356 = vrcp.f32 %v4410_v34  ;;  %v10991_v19 = vmul.f32 %v5073_v35, %v10799_v43  ;;  %v4692_v29 = vmul.f32 %v10881_v50, %v4660_v52  ;;  %v4503_v13 = vmul.f32 1.0614054, %v10983_v60 }
 0xc3f   : > { %v4661_v33 = vadd.f32 -0.28449672, %v4629_v37  ;;  %v10995_v39 = vadd.f32 1.0, %v5042_v36  ;;  %v10998_v6 = vmul.f32 0.5, %v10860_v58  ;;  %v11001_v47 = vand.u32 2147483647, %v10988_v10 }
 0xc40   : > { %12299 = vst [vmem:[#allocation136_spill] sm:$0xff] %v10991_v19  ;;  %v11004_v11 = vmul.f32 0.70710677, %v10977_v49  ;;  %7358 = vpow2.f32 %v4865_v41  ;;  %v4630_v43 = vmul.f32 %v10956_v1, %v4598_v0  ;;  %v4867_v2 = vmul.f32 1.442695, %v4822_v54 }
 0xc41   : > { %v11006_v34 = vpop.eup %7350  ;;  %v4535_v31 = vadd.f32 -1.4531521, %v4503_v13  ;;  %v4947_v35 = vsub.f32 1.0, %v10985_v16  ;;  %v11011_v52 = vmul.f32 0.5, %v10879_v22  ;;  %v4379_v12 = vmul.f32 0.3275911, %v11001_v47 }
 0xc42   : > { %12300 = vst [vmem:[#allocation137_spill] sm:$0xff] %v11004_v11  ;;  %v4504_v58 = vmul.f32 1.0614054, %v11006_v34  ;;  %vm4979_vm9 = vcmp.lt.f32.partialorder %v12302_v61, 0.0  ;;  %v4724_v42 = vadd.f32 0.2548296, %v4692_v29  ;;  %v4693_v20 = vmul.f32 %v10936_v21, %v4661_v33 }
 0xc43   : > { %12301 = vst [vmem:[#allocation157_spill] sm:$0xff] %v11011_v52  ;;  %v4567_v36 = vmul.f32 %v10983_v60, %v4535_v31  ;;  %v4791_v37 = vsub.f32 0.0, %v10901_v15  ;;  %v11019_v41 = vpop.eup %7352  ;;  %v4792_v16 = vsub.f32 0.0, %v10913_v4  ;;  %v4411_v22 = vadd.f32 1.0, %v4379_v12 }
 0xc44   : > { %v4536_v54 = vadd.f32 -1.4531521, %v4504_v58  ;;  %v11023_v0 = vand.u32 2147483647, %v11004_v11  ;;  %v4662_v13 = vadd.f32 -0.28449672, %v4630_v43  ;;  %7360 = vpow2.f32 %v4867_v2 }
 0xc45   : > { %v4599_v19 = vadd.f32 1.4214138, %v4567_v36  ;;  %v4505_v29 = vmul.f32 1.0614054, %v11019_v41  ;;  %v7355_v63 = vpop.eup %7354  ;;  %v5011_v33 = vsub.f32 0.0, %v4947_v35  ;;  %v4793_v3 = vsub.f32 0.0, %v10932_v62 }
 0xc46   : > { %v4568_v31 = vmul.f32 %v11006_v34, %v4536_v54  ;;  %7362 = vrcp.f32 %v4411_v22  ;;  %v4756_v58 = vmul.f32 %v10881_v50, %v4724_v42  ;;  %v4725_v46 = vadd.f32 0.2548296, %v4693_v20 }
 0xc47   : > { %v4823_v12 = vmul.f32 %v4791_v37, %v10901_v15  ;;  %v4537_v51 = vadd.f32 -1.4531521, %v4505_v29  ;;  %v4631_v43 = vmul.f32 %v10983_v60, %v4599_v19  ;;  %v4824_v36 = vmul.f32 %v4792_v16, %v10913_v4 }
 0xc48   : > { %v11030_v28 = vpop.eup %7356  ;;  %v4600_v2 = vadd.f32 1.4214138, %v4568_v31  ;;  %v4380_v32 = vmul.f32 0.3275911, %v11023_v0  ;;  %v4694_v54 = vmul.f32 %v10956_v1, %v4662_v13  ;;  %v4794_v50 = vsub.f32 0.0, %v10963_v40 }
 0xc49   : > { %v4569_v27 = vmul.f32 %v11019_v41, %v4537_v51  ;;  %v4506_v22 = vmul.f32 1.0614054, %v11030_v28  ;;  %v11041_v42 = vmul.f32 0.5, %v10894_v30  ;;  %v4825_v19 = vmul.f32 %v4793_v3, %v10932_v62 }
 0xc4a   : > { %v4632_v15 = vmul.f32 %v11006_v34, %v4600_v2  ;;  %v4412_v20 = vadd.f32 1.0, %v4380_v32  ;;  %v7359_v37 = vpop.eup %7358  ;;  %v4916_v4 = vmul.f32 %v7355_v63, %v4756_v58  ;;  %v4757_v16 = vmul.f32 %v10936_v21, %v4725_v46 }
 0xc4b   : > { %v4601_v29 = vadd.f32 1.4214138, %v4569_v27  ;;  %v4538_v13 = vadd.f32 -1.4531521, %v4506_v22  ;;  %v5043_v51 = vsel %vm4979_vm9, %v5011_v33, %v4947_v35  ;;  %v4663_v31 = vadd.f32 -0.28449672, %v4631_v43 }
 0xc4c   : > { %v4869_v57 = vmul.f32 1.442695, %v4823_v12  ;;  %v4871_v11 = vmul.f32 1.442695, %v4824_v36  ;;  %v4726_v52 = vadd.f32 0.2548296, %v4694_v54  ;;  %v4826_v62 = vmul.f32 %v4794_v50, %v10963_v40 }
 0xc4d   : > { %v4633_v2 = vmul.f32 %v11019_v41, %v4601_v29  ;;  %v4570_v30 = vmul.f32 %v11030_v28, %v4538_v13  ;;  %vm4980_vm10 = vcmp.lt.f32.partialorder %v10789_v17, 0.0  ;;  %v4664_v32 = vadd.f32 -0.28449672, %v4632_v15  ;;  %v12303_v40 = vld [vmem:[#allocation139_spill] sm:$0xff] }
 0xc4e   : > { %v4873_v63 = vmul.f32 1.442695, %v4825_v19  ;;  %v11052_v46 = vmul.f32 0.5, %v10923_v18  ;;  %7364 = vrcp.f32 %v4412_v20  ;;  %v7361_v27 = vpop.eup %7360  ;;  %v4948_v21 = vsub.f32 1.0, %v4916_v4 }
 0xc4f   : > { %v4917_v3 = vmul.f32 %v7359_v37, %v4757_v16  ;;  %v4665_v35 = vadd.f32 -0.28449672, %v4633_v2  ;;  %v4602_v61 = vadd.f32 1.4214138, %v4570_v30  ;;  %v5075_v58 = vadd.f32 1.0, %v5043_v51 }
 0xc50   : > { %v11054_v33 = vpop.eup %7362  ;;  %v4695_v12 = vmul.f32 %v10983_v60, %v4663_v31  ;;  %7366 = vpow2.f32 %v4869_v57  ;;  %v11059_v43 = vadd.f32 %v12303_v40, %v10533_v23  ;;  %v4758_v36 = vmul.f32 %v10956_v1, %v4726_v52 }
 0xc51   : > { %7368 = vpow2.f32 %v4871_v11  ;;  %v4634_v18 = vmul.f32 %v11030_v28, %v4602_v61  ;;  %v4875_v54 = vmul.f32 1.442695, %v4826_v62  ;;  %vm4981_vm11 = vcmp.lt.f32.partialorder %v10834_v8, 0.0 }
 0xc52   : > { %v4696_v22 = vmul.f32 %v11006_v34, %v4664_v32  ;;  %v4697_v50 = vmul.f32 %v11019_v41, %v4665_v35  ;;  %7370 = vpow2.f32 %v4873_v63  ;;  %v4507_v15 = vmul.f32 1.0614054, %v11054_v33  ;;  %v12304_v35 = vld [vmem:[#allocation140_spill] sm:$0xff] }
 0xc53   : > { %v5012_v57 = vsub.f32 0.0, %v4948_v21  ;;  %v4949_v19 = vsub.f32 1.0, %v4917_v3  ;;  %v4666_v20 = vadd.f32 -0.28449672, %v4634_v18  ;;  %v4795_v37 = vsub.f32 0.0, %v11001_v47 }
 0xc54   : > { %v11070_v1 = vmul.f32 %v10995_v39, %v10805_v26  ;;  %v4727_v11 = vadd.f32 0.2548296, %v4695_v12  ;;  %v4539_v52 = vadd.f32 -1.4531521, %v4507_v15  ;;  %v11073_v4 = vmul.f32 0.70710677, %v11059_v43 }
 0xc55   : > { %v11076_v16 = vmul.f32 %v5075_v58, %v10856_v5  ;;  %v4918_v29 = vmul.f32 %v7361_v27, %v4758_v36  ;;  %v4698_v13 = vmul.f32 %v11030_v28, %v4666_v20  ;;  %7372 = vpow2.f32 %v4875_v54 }
 0xc56   : > { %v4728_v51 = vadd.f32 0.2548296, %v4696_v22  ;;  %v4729_v31 = vadd.f32 0.2548296, %v4697_v50  ;;  %v4571_v2 = vmul.f32 %v11054_v33, %v4539_v52  ;;  %v11081_v30 = vand.u32 2147483647, %v11073_v4 }
 0xc57   : > { %v5044_v26 = vsel %vm4980_vm10, %v5012_v57, %v4948_v21  ;;  %v5013_v39 = vsub.f32 0.0, %v4949_v19  ;;  %v11086_v62 = vmul.f32 0.5, %v10972_v9  ;;  %v4827_v5 = vmul.f32 %v4795_v37, %v11001_v47 }
 0xc58   : > { %v11089_v32 = vpop.eup %7364  ;;  %vm4982_vm12 = vcmp.lt.f32.partialorder %v10845_v45, 0.0  ;;  %v4759_v63 = vmul.f32 %v10983_v60, %v4727_v11  ;;  %v4603_v27 = vadd.f32 1.4214138, %v4571_v2  ;;  %v4381_v3 = vmul.f32 0.3275911, %v11081_v30 }
 0xc59   : > { %v11096_v61 = vadd.f32 %v12304_v35, %v10558_v59  ;;  %v4950_v17 = vsub.f32 1.0, %v4918_v29  ;;  %v4730_v21 = vadd.f32 0.2548296, %v4698_v13  ;;  %v4508_v9 = vmul.f32 1.0614054, %v11089_v32 }
 0xc5a   : > { %v4796_v58 = vsub.f32 0.0, %v11023_v0  ;;  %v7367_v47 = vpop.eup %7366  ;;  %v4760_v12 = vmul.f32 %v11006_v34, %v4728_v51  ;;  %v4761_v40 = vmul.f32 %v11019_v41, %v4729_v31  ;;  %v4635_v60 = vmul.f32 %v11054_v33, %v4603_v27 }
 0xc5b   : > { %v4413_v36 = vadd.f32 1.0, %v4381_v3  ;;  %v7369_v18 = vpop.eup %7368  ;;  %v5076_v54 = vadd.f32 1.0, %v5044_v26  ;;  %v5045_v22 = vsel %vm4981_vm11, %v5013_v39, %v4949_v19  ;;  %v4877_v50 = vmul.f32 1.442695, %v4827_v5 }
 0xc5c   : > { %v4540_v15 = vadd.f32 -1.4531521, %v4508_v9  ;;  %v7371_v57 = vpop.eup %7370  ;;  %v4919_v20 = vmul.f32 %v7367_v47, %v4759_v63  ;;  %v4667_v37 = vadd.f32 -0.28449672, %v4635_v60  ;;  %v11106_v11 = vmul.f32 0.70710677, %v11096_v61 }
 0xc5d   : > { %7374 = vrcp.f32 %v4413_v36  ;;  %v5014_v34 = vsub.f32 0.0, %v4950_v17  ;;  %v4762_v41 = vmul.f32 %v11030_v28, %v4730_v21  ;;  %v4828_v29 = vmul.f32 %v4796_v58, %v11023_v0  ;;  %v12305_v28 = vld [vmem:[#allocation141_spill] sm:$0xff] }
 0xc5e   : > { %v4572_v52 = vmul.f32 %v11089_v32, %v4540_v15  ;;  %v4920_v13 = vmul.f32 %v7369_v18, %v4760_v12  ;;  %v4921_v51 = vmul.f32 %v7371_v57, %v4761_v40  ;;  %v11112_v8 = vmul.f32 0.5, %v10977_v49 }
 0xc5f   : > { %v11115_v19 = vand.u32 2147483647, %v11106_v11  ;;  %v7373_v31 = vpop.eup %7372  ;;  %v5077_v2 = vadd.f32 1.0, %v5045_v22  ;;  %vm4983_vm13 = vcmp.lt.f32.partialorder %v10875_v25, 0.0  ;;  %v4699_v26 = vmul.f32 %v11054_v33, %v4667_v37 }
 0xc60   : > { %v4604_v39 = vadd.f32 1.4214138, %v4572_v52  ;;  %v11121_v5 = vadd.f32 %v12305_v28, %v10533_v23  ;;  %v11124_v0 = vmul.f32 %v5076_v54, %v10872_v44  ;;  %v4951_v63 = vsub.f32 1.0, %v4919_v20 }
 0xc61   : > { %7376 = vpow2.f32 %v4877_v50  ;;  %v4382_v49 = vmul.f32 0.3275911, %v11115_v19  ;;  %v5046_v27 = vsel %vm4982_vm12, %v5014_v34, %v4950_v17  ;;  %vm4984_vm14 = vcmp.lt.f32.partialorder %v10904_v53, 0.0 }
 0xc62   : > { %vm4985_vm15 = vcmp.lt.f32.partialorder %v10917_v24, 0.0  ;;  %v4922_v3 = vmul.f32 %v7373_v31, %v4762_v41  ;;  %v4636_v35 = vmul.f32 %v11089_v32, %v4604_v39  ;;  %v4879_v21 = vmul.f32 1.442695, %v4828_v29 }
 0xc63   : > { %v4952_v9 = vsub.f32 1.0, %v4920_v13  ;;  %v4953_v58 = vsub.f32 1.0, %v4921_v51  ;;  %v4414_v47 = vadd.f32 1.0, %v4382_v49  ;;  %v11133_v44 = vmul.f32 0.70710677, %v11121_v5 }
 0xc64   : > { %v11136_v12 = vmul.f32 %v5077_v2, %v10888_v7  ;;  %v4731_v40 = vadd.f32 0.2548296, %v4699_v26  ;;  %v4668_v45 = vadd.f32 -0.28449672, %v4636_v35  ;;  %v11140_v17 = vadd.f32 %v10735_v56, %v10558_v59 }
 0xc65   : > { %v5078_v60 = vadd.f32 1.0, %v5046_v27  ;;  %v5015_v36 = vsub.f32 0.0, %v4951_v63  ;;  %vm4986_vm0 = vcmp.lt.f32.partialorder %v10954_v38, 0.0  ;;  %7378 = vrcp.f32 %v4414_v47 }
 0xc66   : > { %v11144_v18 = vand.u32 2147483647, %v11133_v44  ;;  %v4954_v54 = vsub.f32 1.0, %v4922_v3  ;;  %v4700_v22 = vmul.f32 %v11089_v32, %v4668_v45  ;;  %7380 = vpow2.f32 %v4879_v21 }
 0xc67   : > { %v11149_v7 = vadd.f32 %v10741_v55, %v10533_v23  ;;  %v11151_v50 = vpop.eup %7374  ;;  %v5016_v56 = vsub.f32 0.0, %v4952_v9  ;;  %v5017_v15 = vsub.f32 0.0, %v4953_v58  ;;  %v11155_v20 = vmul.f32 0.70710677, %v11140_v17 }
 0xc68   : > { %v4383_v57 = vmul.f32 0.3275911, %v11144_v18  ;;  %v4763_v37 = vmul.f32 %v11054_v33, %v4731_v40  ;;  %v11159_v34 = vmul.f32 0.5, %v11059_v43  ;;  %v4509_v41 = vmul.f32 1.0614054, %v11151_v50 }
 0xc69   : > { %v4797_v52 = vsub.f32 0.0, %v11081_v30  ;;  %v5047_v55 = vsel %vm4983_vm13, %v5015_v36, %v4951_v63  ;;  %v4732_v29 = vadd.f32 0.2548296, %v4700_v22  ;;  %v11166_v51 = vand.u32 2147483647, %v11155_v20 }
 0xc6a   : > { %v4415_v13 = vadd.f32 1.0, %v4383_v57  ;;  %v11169_v31 = vmul.f32 %v5078_v60, %v10951_v48  ;;  %v5018_v2 = vsub.f32 0.0, %v4954_v54  ;;  %v4541_v33 = vadd.f32 -1.4531521, %v4509_v41 }
 0xc6b   : > { %v11172_v43 = vmul.f32 0.70710677, %v11149_v7  ;;  %v7377_v26 = vpop.eup %7376  ;;  %v5048_v39 = vsel %vm4984_vm14, %v5016_v56, %v4952_v9  ;;  %v5049_v25 = vsel %vm4985_vm15, %v5017_v15, %v4953_v58  ;;  %v4384_v28 = vmul.f32 0.3275911, %v11166_v51 }
 0xc6c   : > { %7382 = vrcp.f32 %v4415_v13  ;;  %v5079_v63 = vadd.f32 1.0, %v5047_v55  ;;  %v4923_v49 = vmul.f32 %v7377_v26, %v4763_v37  ;;  %v4573_v48 = vmul.f32 %v11151_v50, %v4541_v33  ;;  %v12306_v37 = vld [vmem:[#allocation157_spill] sm:$0xff]  ;;  %v12307_v26 = vld [vmem:[#allocation142_spill] sm:$0xff] }
 0xc6d   : > { %v4829_v27 = vmul.f32 %v4797_v52, %v11081_v30  ;;  %v4764_v3 = vmul.f32 %v11089_v32, %v4732_v29  ;;  %v11183_v35 = vmul.f32 0.5, %v11096_v61  ;;  %v4416_v21 = vadd.f32 1.0, %v4384_v28 }
 0xc6e   : > { %v11186_v53 = vand.u32 2147483647, %v11172_v43  ;;  %v5080_v24 = vadd.f32 1.0, %v5048_v39  ;;  %v5081_v9 = vadd.f32 1.0, %v5049_v25  ;;  %v5050_v58 = vsel %vm4986_vm0, %v5018_v2, %v4954_v54 }
 0xc6f   : > { %v4605_v47 = vadd.f32 1.4214138, %v4573_v48  ;;  %v11190_v40 = vpop.eup %7378  ;;  %vm4987_vm1 = vcmp.lt.f32.partialorder %v10988_v10, 0.0  ;;  %v4798_v30 = vsub.f32 0.0, %v11115_v19  ;;  %7384 = vrcp.f32 %v4416_v21 }
 0xc70   : > { %v4385_v32 = vmul.f32 0.3275911, %v11186_v53  ;;  %v11197_v61 = vadd.f32 %v10747_v14, %v10558_v59  ;;  %v7381_v45 = vpop.eup %7380  ;;  %v11200_v60 = vmul.f32 %v5079_v63, %v10998_v6  ;;  %v4955_v38 = vsub.f32 1.0, %v4923_v49  ;;  %v12308_v63 = vld [vmem:[#allocation137_spill] sm:$0xff] }
 0xc71   : > { %v4881_v36 = vmul.f32 1.442695, %v4829_v27  ;;  %v4510_v54 = vmul.f32 1.0614054, %v11190_v40  ;;  %v4924_v22 = vmul.f32 %v7381_v45, %v4764_v3  ;;  %v4799_v56 = vsub.f32 0.0, %v11144_v18 }
 0xc72   : > { %v4417_v15 = vadd.f32 1.0, %v4385_v32  ;;  %v11205_v57 = vmul.f32 0.70710677, %v11197_v61  ;;  %v11208_v41 = vmul.f32 %v5080_v24, %v12306_v37  ;;  %v5082_v14 = vadd.f32 1.0, %v5050_v58 }
 0xc73   : > { %v4637_v52 = vmul.f32 %v11151_v50, %v4605_v47  ;;  %v4542_v55 = vadd.f32 -1.4531521, %v4510_v54  ;;  %v11212_v6 = vmul.f32 %v5081_v9, %v11041_v42  ;;  %v4830_v29 = vmul.f32 %v4798_v30, %v11115_v19  ;;  %v12309_v47 = vld [vmem:[#allocation143_spill] sm:$0xff] }
 0xc74   : > { %7386 = vrcp.f32 %v4417_v15  ;;  %v11216_v13 = vand.u32 2147483647, %v11205_v57  ;;  %v5019_v2 = vsub.f32 0.0, %v4955_v38  ;;  %v11221_v39 = vadd.f32 %v12307_v26, %v10533_v23 }
 0xc75   : > { %7388 = vpow2.f32 %v4881_v36  ;;  %v4574_v33 = vmul.f32 %v11190_v40, %v4542_v55  ;;  %v4956_v28 = vsub.f32 1.0, %v4924_v22  ;;  %vm4988_vm2 = vcmp.lt.f32.partialorder %v12308_v63, 0.0 }
 0xc76   : > { %v11223_v25 = vpop.eup %7382  ;;  %v11227_v42 = vmul.f32 0.5, %v11121_v5  ;;  %v4831_v19 = vmul.f32 %v4799_v56, %v11144_v18  ;;  %v4386_v49 = vmul.f32 0.3275911, %v11216_v13  ;;  %v11232_v48 = vmul.f32 %v5082_v14, %v11052_v46 }
 0xc77   : > { %v4669_v27 = vadd.f32 -0.28449672, %v4637_v52  ;;  %v4606_v3 = vadd.f32 1.4214138, %v4574_v33  ;;  %v4511_v21 = vmul.f32 1.0614054, %v11223_v25  ;;  %v11240_v5 = vadd.f32 %v12309_v47, %v10558_v59 }
 0xc78   : > { %v4883_v24 = vmul.f32 1.442695, %v4830_v29  ;;  %v4418_v9 = vadd.f32 1.0, %v4386_v49  ;;  %v11236_v58 = vmul.f32 0.70710677, %v11221_v39  ;;  %v5051_v18 = vsel %vm4987_vm1, %v5019_v2, %v4955_v38 }
 0xc79   : > { %v4638_v30 = vmul.f32 %v11190_v40, %v4606_v3  ;;  %v4543_v46 = vadd.f32 -1.4531521, %v4511_v21  ;;  %v11246_v32 = vmul.f32 0.5, %v11140_v17  ;;  %v11248_v45 = vpop.eup %7384  ;;  %v4885_v36 = vmul.f32 1.442695, %v4831_v19 }
 0xc7a   : > { %v4800_v54 = vsub.f32 0.0, %v11166_v51  ;;  %7390 = vrcp.f32 %v4418_v9  ;;  %v4355_v22 = vand.u32 2147483647, %v11236_v58  ;;  %v5020_v56 = vsub.f32 0.0, %v4956_v28 }
 0xc7b   : > { %v4701_v15 = vmul.f32 %v11151_v50, %v4669_v27  ;;  %v4575_v10 = vmul.f32 %v11223_v25, %v4543_v46  ;;  %v4512_v38 = vmul.f32 1.0614054, %v11248_v45  ;;  %v4670_v37 = vadd.f32 -0.28449672, %v4638_v30 }
 0xc7c   : > { %7392 = vpow2.f32 %v4883_v24  ;;  %v4387_v14 = vmul.f32 0.3275911, %v4355_v22  ;;  %v11256_v17 = vmul.f32 0.70710677, %v11240_v5  ;;  %v11259_v29 = vmul.f32 0.5, %v11149_v7 }
 0xc7d   : > { %v4607_v52 = vadd.f32 1.4214138, %v4575_v10  ;;  %v4544_v55 = vadd.f32 -1.4531521, %v4512_v38  ;;  %v4801_v2 = vsub.f32 0.0, %v11186_v53  ;;  %v5083_v26 = vadd.f32 1.0, %v5051_v18 }
 0xc7e   : > { %v11262_v33 = vpop.eup %7386  ;;  %v4832_v19 = vmul.f32 %v4800_v54, %v11166_v51  ;;  %v4419_v49 = vadd.f32 1.0, %v4387_v14  ;;  %v11266_v27 = vand.u32 2147483647, %v11256_v17  ;;  %v5052_v21 = vsel %vm4988_vm2, %v5020_v56, %v4956_v28 }
 0xc7f   : > { %v7389_v3 = vpop.eup %7388  ;;  %v4733_v24 = vadd.f32 0.2548296, %v4701_v15  ;;  %v4639_v9 = vmul.f32 %v11223_v25, %v4607_v52  ;;  %v4576_v7 = vmul.f32 %v11248_v45, %v4544_v55  ;;  %v4702_v47 = vmul.f32 %v11190_v40, %v4670_v37 }
 0xc80   : > { %v4513_v30 = vmul.f32 1.0614054, %v11262_v33  ;;  %7394 = vrcp.f32 %v4419_v49  ;;  %v4388_v51 = vmul.f32 0.3275911, %v11266_v27  ;;  %v4833_v54 = vmul.f32 %v4801_v2, %v11186_v53  ;;  %v12311_v53 = vld [vmem:[#allocation145_spill] sm:$0xff] }
 0xc81   : > { %v4671_v18 = vadd.f32 -0.28449672, %v4639_v9  ;;  %7396 = vpow2.f32 %v4885_v36  ;;  %v4608_v46 = vadd.f32 1.4214138, %v4576_v7  ;;  %v11277_v63 = vmul.f32 %v5083_v26, %v11086_v62 }
 0xc82   : > { %v4887_v28 = vmul.f32 1.442695, %v4832_v19  ;;  %v4545_v56 = vadd.f32 -1.4531521, %v4513_v30  ;;  %v4420_v15 = vadd.f32 1.0, %v4388_v51  ;;  %v5084_v10 = vadd.f32 1.0, %v5052_v21 }
 0xc83   : > { %12310 = vst [vmem:[#allocation138_spill] sm:$0xff] %v11277_v63  ;;  %v4765_v38 = vmul.f32 %v11151_v50, %v4733_v24  ;;  %v4640_v37 = vmul.f32 %v11248_v45, %v4608_v46  ;;  %v4803_v14 = vsub.f32 0.0, %v4355_v22  ;;  %v4734_v55 = vadd.f32 0.2548296, %v4702_v47 }
 0xc84   : > { %v11281_v52 = vpop.eup %7390  ;;  %v4577_v36 = vmul.f32 %v11262_v33, %v4545_v56  ;;  %7398 = vrcp.f32 %v4420_v15  ;;  %v11286_v2 = vadd.f32 %v12311_v53, %v10533_v23  ;;  %v4703_v62 = vmul.f32 %v11223_v25, %v4671_v18 }
 0xc85   : > { %v4672_v26 = vadd.f32 -0.28449672, %v4640_v37  ;;  %v4889_v19 = vmul.f32 1.442695, %v4833_v54  ;;  %v4802_v49 = vsub.f32 0.0, %v11216_v13  ;;  %7400 = vpow2.f32 %v4887_v28 }
 0xc86   : > { %12312 = vst [vmem:[#allocation139_spill] sm:$0xff] %v11286_v2  ;;  %v7393_v50 = vpop.eup %7392  ;;  %v4609_v21 = vadd.f32 1.4214138, %v4577_v36  ;;  %v11291_v24 = vmul.f32 0.5, %v11197_v61  ;;  %v4514_v9 = vmul.f32 1.0614054, %v11281_v52  ;;  %v11295_v7 = vmul.f32 %v5084_v10, %v11112_v8 }
 0xc87   : > { %v4925_v47 = vmul.f32 %v7389_v3, %v4765_v38  ;;  %v4704_v30 = vmul.f32 %v11248_v45, %v4672_v26  ;;  %v4835_v51 = vmul.f32 %v4803_v14, %v4355_v22  ;;  %v4766_v18 = vmul.f32 %v11190_v40, %v4734_v55 }
 0xc88   : > { %v4641_v46 = vmul.f32 %v11262_v33, %v4609_v21  ;;  %v4546_v54 = vadd.f32 -1.4531521, %v4514_v9  ;;  %v11301_v28 = vmul.f32 0.70710677, %v11286_v2  ;;  %v4735_v56 = vadd.f32 0.2548296, %v4703_v62 }
 0xc89   : > { %7402 = vpow2.f32 %v4889_v19  ;;  %v4834_v61 = vmul.f32 %v4802_v49, %v11216_v13  ;;  %v4804_v15 = vsub.f32 0.0, %v11266_v27  ;;  %v4736_v3 = vadd.f32 0.2548296, %v4704_v30 }
 0xc8a   : > { %12313 = vst [vmem:[#allocation140_spill] sm:$0xff] %v11301_v28  ;;  %v11305_v8 = vpop.eup %7394  ;;  %v4673_v10 = vadd.f32 -0.28449672, %v4641_v46  ;;  %v4578_v22 = vmul.f32 %v11281_v52, %v4546_v54  ;;  %v11309_v40 = vand.u32 2147483647, %v11301_v28  ;;  %v4957_v37 = vsub.f32 1.0, %v4925_v47 }
 0xc8b   : > { %v7397_v38 = vpop.eup %7396  ;;  %vm4989_vm3 = vcmp.lt.f32.partialorder %v11073_v4, 0.0  ;;  %v11313_v14 = vmul.f32 0.5, %v11221_v39  ;;  %v4515_v13 = vmul.f32 1.0614054, %v11305_v8  ;;  %v11317_v55 = vmul.f32 0.5, %v11240_v5  ;;  %v12314_v46 = vld [vmem:[#allocation144_spill] sm:$0xff] }
 0xc8c   : > { %v4926_v36 = vmul.f32 %v7393_v50, %v4766_v18  ;;  %v4610_v53 = vadd.f32 1.4214138, %v4578_v22  ;;  %v4893_v62 = vmul.f32 1.442695, %v4835_v51  ;;  %v4389_v26 = vmul.f32 0.3275911, %v11309_v40 }
 0xc8d   : > { %v4767_v19 = vmul.f32 %v11223_v25, %v4735_v56  ;;  %v4705_v49 = vmul.f32 %v11262_v33, %v4673_v10  ;;  %v4547_v21 = vadd.f32 -1.4531521, %v4515_v13  ;;  %v4836_v9 = vmul.f32 %v4804_v15, %v11266_v27  ;;  %v12315_v15 = vld [vmem:[#allocation147_spill] sm:$0xff] }
 0xc8e   : > { %v11323_v47 = vpop.eup %7398  ;;  %v4768_v39 = vmul.f32 %v11248_v45, %v4736_v3  ;;  %v4642_v30 = vmul.f32 %v11281_v52, %v4610_v53  ;;  %v4421_v5 = vadd.f32 1.0, %v4389_v26  ;;  %v4490_v50 = vmul.f32 1.0614054, %v12314_v46 }
 0xc8f   : > { %v5021_v18 = vsub.f32 0.0, %v4957_v37  ;;  %vm4990_vm4 = vcmp.lt.f32.partialorder %v11106_v11, 0.0  ;;  %v4891_v51 = vmul.f32 1.442695, %v4834_v61  ;;  %v4579_v25 = vmul.f32 %v11305_v8, %v4547_v21  ;;  %v7401_v56 = vpop.eup %7400 }
 0xc90   : > { %v4516_v54 = vmul.f32 1.0614054, %v11323_v47  ;;  %v4958_v10 = vsub.f32 1.0, %v4926_v36  ;;  %v4674_v27 = vadd.f32 -0.28449672, %v4642_v30  ;;  %7404 = vrcp.f32 %v4421_v5 }
 0xc91   : > { %v4492_v22 = vmul.f32 1.0614054, %v12315_v15  ;;  %v4737_v45 = vadd.f32 0.2548296, %v4705_v49  ;;  %v4611_v3 = vadd.f32 1.4214138, %v4579_v25  ;;  %7406 = vpow2.f32 %v4893_v62 }
 0xc92   : > { %v4548_v13 = vadd.f32 -1.4531521, %v4516_v54  ;;  %v4927_v53 = vmul.f32 %v7397_v38, %v4767_v19  ;;  %v4928_v26 = vmul.f32 %v7401_v56, %v4768_v39  ;;  %v4895_v2 = vmul.f32 1.442695, %v4836_v9  ;;  %v12316_v62 = vld [vmem:[#allocation152_spill] sm:$0xff] }
 0xc93   : > { %v4522_v28 = vadd.f32 -1.4531521, %v4490_v50  ;;  %v7403_v63 = vpop.eup %7402  ;;  %v4706_v61 = vmul.f32 %v11281_v52, %v4674_v27  ;;  %7408 = vpow2.f32 %v4891_v51  ;;  %v4643_v21 = vmul.f32 %v11305_v8, %v4611_v3 }
 0xc94   : > { %v4580_v36 = vmul.f32 %v11323_v47, %v4548_v13  ;;  %v5053_v30 = vsel %vm4989_vm3, %v5021_v18, %v4957_v37  ;;  %v5022_v5 = vsub.f32 0.0, %v4958_v10  ;;  %v4524_v49 = vadd.f32 -1.4531521, %v4492_v22 }
 0xc95   : > { %v11339_v25 = vadd.f32 %v12316_v62, %v10558_v59  ;;  %vm4991_vm5 = vcmp.lt.f32.partialorder %v11133_v44, 0.0  ;;  %v4769_v38 = vmul.f32 %v11262_v33, %v4737_v45  ;;  %v4675_v19 = vadd.f32 -0.28449672, %v4643_v21 }
 0xc96   : > { %v4612_v9 = vadd.f32 1.4214138, %v4580_v36  ;;  %v4554_v39 = vmul.f32 %v12314_v46, %v4522_v28  ;;  %v4959_v50 = vsub.f32 1.0, %v4927_v53  ;;  %v4960_v51 = vsub.f32 1.0, %v4928_v26 }
 0xc97   : > { %vm4992_vm6 = vcmp.lt.f32.partialorder %v11155_v20, 0.0  ;;  %7410 = vpow2.f32 %v4895_v2  ;;  %v4556_v4 = vmul.f32 %v12315_v15, %v4524_v49  ;;  %v4738_v37 = vadd.f32 0.2548296, %v4706_v61 }
 0xc98   : > { %v4707_v18 = vmul.f32 %v11305_v8, %v4675_v19  ;;  %v4644_v54 = vmul.f32 %v11323_v47, %v4612_v9  ;;  %v4586_v56 = vadd.f32 1.4214138, %v4554_v39  ;;  %v5085_v27 = vadd.f32 1.0, %v5053_v30 }
 0xc99   : > { %v5054_v33 = vsel %vm4990_vm4, %v5022_v5, %v4958_v10  ;;  %v4588_v22 = vadd.f32 1.4214138, %v4556_v4  ;;  %v11351_v28 = vmul.f32 0.70710677, %v11339_v25  ;;  %v4929_v45 = vmul.f32 %v7403_v63, %v4769_v38 }
 0xc9a   : > { %v4739_v3 = vadd.f32 0.2548296, %v4707_v18  ;;  %v4676_v13 = vadd.f32 -0.28449672, %v4644_v54  ;;  %v4618_v2 = vmul.f32 %v12314_v46, %v4586_v56  ;;  %v11354_v53 = vpop.eup %7404  ;;  %v5023_v26 = vsub.f32 0.0, %v4959_v50 }
 0xc9b   : > { %v5024_v61 = vsub.f32 0.0, %v4960_v51  ;;  %v4620_v21 = vmul.f32 %v12315_v15, %v4588_v22  ;;  %v11358_v36 = vand.u32 2147483647, %v11351_v28  ;;  %v7407_v11 = vpop.eup %7406  ;;  %v4770_v10 = vmul.f32 %v11281_v52, %v4738_v37 }
 0xc9c   : > { %v4771_v30 = vmul.f32 %v11305_v8, %v4739_v3  ;;  %v4708_v63 = vmul.f32 %v11323_v47, %v4676_v13  ;;  %v4517_v5 = vmul.f32 1.0614054, %v11354_v53  ;;  %v11365_v49 = vmul.f32 %v5085_v27, %v11159_v34  ;;  %v12317_v13 = vld [vmem:[#allocation148_spill] sm:$0xff] }
 0xc9d   : > { %v5086_v62 = vadd.f32 1.0, %v5054_v33  ;;  %vm4993_vm7 = vcmp.lt.f32.partialorder %v11172_v43, 0.0  ;;  %v4650_v38 = vadd.f32 -0.28449672, %v4618_v2  ;;  %v4652_v19 = vadd.f32 -0.28449672, %v4620_v21  ;;  %v7409_v9 = vpop.eup %7408 }
 0xc9e   : > { %v4961_v39 = vsub.f32 1.0, %v4929_v45  ;;  %v4931_v4 = vmul.f32 %v7407_v11, %v4771_v30  ;;  %v4740_v18 = vadd.f32 0.2548296, %v4708_v63  ;;  %v4390_v52 = vmul.f32 0.3275911, %v11358_v36  ;;  %v12318_v2 = vld [vmem:[#allocation149_spill] sm:$0xff] }
 0xc9f   : > { %v5055_v8 = vsel %vm4991_vm5, %v5023_v26, %v4959_v50  ;;  %v4805_v37 = vsub.f32 0.0, %v11309_v40  ;;  %v4682_v54 = vmul.f32 %v12314_v46, %v4650_v38  ;;  %v4684_v34 = vmul.f32 %v12315_v15, %v4652_v19  ;;  %v12319_v21 = vld [vmem:[#allocation131_spill] sm:$0xff]  ;;  %v12320_v11 = vld [vmem:[#allocation132_spill] sm:$0xff] }
 0xca0   : > { %v5056_v56 = vsel %vm4992_vm6, %v5024_v61, %v4960_v51  ;;  %v4930_v27 = vmul.f32 %v7409_v9, %v4770_v10  ;;  %v4772_v33 = vmul.f32 %v11323_v47, %v4740_v18  ;;  %v4549_v22 = vadd.f32 -1.4531521, %v4517_v5  ;;  %v12321_v9 = vld [vmem:[#allocation154_spill] sm:$0xff] }
 0xca1   : > { %v7411_v45 = vpop.eup %7410  ;;  %vm4995_vm8 = vcmp.lt.f32.partialorder %v11236_v58, 0.0  ;;  %vm4996_vm9 = vcmp.lt.f32.partialorder %v11256_v17, 0.0  ;;  %v4714_v44 = vadd.f32 0.2548296, %v4682_v54  ;;  %v4716_v50 = vadd.f32 0.2548296, %v4684_v34 }
 0xca2   : > { %v4422_v3 = vadd.f32 1.0, %v4390_v52  ;;  %v5129_v26 = vpack.c.bf16 %v12318_v2, %v12317_v13  ;;  %vm4970_vm10 = vcmp.lt.f32.partialorder %v12319_v21, 0.0  ;;  %vm4972_vm11 = vcmp.lt.f32.partialorder %v12320_v11, 0.0  ;;  %v12328_v11 = vld [vmem:[#allocation155_spill] sm:$0xff] }
 0xca3   : > { %v5087_v20 = vadd.f32 1.0, %v5055_v8  ;;  %v5025_v51 = vsub.f32 0.0, %v4961_v39  ;;  %v4963_v61 = vsub.f32 1.0, %v4931_v4  ;;  %v4932_v47 = vmul.f32 %v7411_v45, %v4772_v33  ;;  %v12322_v8 = vld [vmem:[#allocation146_spill] sm:$0xff] }
 0xca4   : > { %vm4994_vm12 = vcmp.lt.f32.partialorder %v11205_v57, 0.0  ;;  %v4837_v10 = vmul.f32 %v4805_v37, %v11309_v40  ;;  %v4746_v30 = vmul.f32 %v12314_v46, %v4714_v44  ;;  %v4748_v63 = vmul.f32 %v12315_v15, %v4716_v50  ;;  %v12323_v40 = vld [vmem:[#allocation150_spill] sm:$0xff] }
 0xca5   : > { %7412 = vrcp.f32 %v4422_v3  ;;  %v5088_v5 = vadd.f32 1.0, %v5056_v56  ;;  %v4962_v38 = vsub.f32 1.0, %v4930_v27  ;;  %v4964_v19 = vsub.f32 1.0, %v4932_v47 }
 0xca6   : > { %v11389_v18 = vadd.f32 %v12321_v9, %v10533_v23  ;;  %v11392_v52 = vmul.f32 %v5086_v62, %v11183_v35  ;;  %v4581_v4 = vmul.f32 %v11354_v53, %v4549_v22  ;;  %v4906_v54 = vmul.f32 %v12322_v8, %v4746_v30  ;;  %v12324_v62 = vld [vmem:[#allocation133_spill] sm:$0xff]  ;;  %v12326_v30 = vld [vmem:[#allocation156_spill] sm:$0xff] }
 0xca7   : > { %v4908_v37 = vmul.f32 %v12323_v40, %v4748_v63  ;;  %v5057_v46 = vsel %vm4993_vm7, %v5025_v51, %v4961_v39  ;;  %v5027_v15 = vsub.f32 0.0, %v4963_v61  ;;  %v5028_v34 = vsub.f32 0.0, %v4964_v19  ;;  %v12327_v40 = vld [vmem:[#allocation151_spill] sm:$0xff] }
 0xca8   : > { %v11400_v56 = vmul.f32 0.70710677, %v11389_v18  ;;  %v11403_v23 = vmul.f32 %v5087_v20, %v11227_v42  ;;  %v4938_v27 = vsub.f32 1.0, %v4906_v54  ;;  %v11407_v33 = vadd.f32 %v12324_v62, %v10558_v59  ;;  %v12325_v59 = vld [vmem:[#allocation153_spill] sm:$0xff] }
 0xca9   : > { %v4940_v35 = vsub.f32 1.0, %v4908_v37  ;;  %v11410_v22 = vmul.f32 %v5088_v5, %v11246_v32  ;;  %v5026_v45 = vsub.f32 0.0, %v4962_v38  ;;  %v4897_v43 = vmul.f32 1.442695, %v4837_v10 }
 0xcaa   : > { %v4359_v39 = vand.u32 2147483647, %v11400_v56  ;;  %v5089_v44 = vadd.f32 1.0, %v5057_v46  ;;  %v4613_v50 = vadd.f32 1.4214138, %v4581_v4  ;;  %v5002_v3 = vsub.f32 0.0, %v4938_v27 }
 0xcab   : > { %v5004_v51 = vsub.f32 0.0, %v4940_v35  ;;  %v5059_v42 = vsel %vm4995_vm8, %v5027_v15, %v4963_v61  ;;  %v5060_v20 = vsel %vm4996_vm9, %v5028_v34, %v4964_v19  ;;  %v5132_v63 = vpack.c.bf16 %v12326_v30, %v12325_v59  ;;  %v12329_v15 = vld [vmem:[#allocation134_spill] sm:$0xff]  ;;  %v12331_v30 = vld [vmem:[#allocation136_spill] sm:$0xff] }
 0xcac   : > { %v4391_v47 = vmul.f32 0.3275911, %v4359_v39  ;;  %v5034_v32 = vsel %vm4970_vm10, %v5002_v3, %v4938_v27  ;;  %v4806_v5 = vsub.f32 0.0, %v11358_v36  ;;  %v11425_v9 = vmul.f32 0.70710677, %v11407_v33  ;;  %v12330_v27 = vld [vmem:[#allocation135_spill] sm:$0xff] }
 0xcad   : > { %v5036_v10 = vsel %vm4972_vm11, %v5004_v51, %v4940_v35  ;;  %v5058_v58 = vsel %vm4994_vm12, %v5026_v45, %v4962_v38  ;;  %v5066_v17 = vadd.f32 1.0, %v5034_v32  ;;  %v5091_v8 = vadd.f32 1.0, %v5059_v42 }
 0xcae   : > { %v5068_v61 = vadd.f32 1.0, %v5036_v10  ;;  %v4423_v19 = vadd.f32 1.0, %v4391_v47  ;;  %v5092_v54 = vadd.f32 1.0, %v5060_v20  ;;  %v4360_v21 = vand.u32 2147483647, %v11425_v9 }
 0xcaf   : > { %v11429_v4 = vpop.eup %7412  ;;  %v5131_v37 = vpack.c.bf16 %v12328_v11, %v12327_v40  ;;  %v4645_v46 = vmul.f32 %v11354_v53, %v4613_v50  ;;  %v5098_v34 = vmul.f32 %v5066_v17, %v12329_v15  ;;  %v11439_v38 = vmul.f32 %v5089_v44, %v11259_v29 }
 0xcb0   : > { %v5100_v35 = vmul.f32 %v5068_v61, %v12330_v27  ;;  %v4518_v57 = vmul.f32 1.0614054, %v11429_v4  ;;  %v5090_v62 = vadd.f32 1.0, %v5058_v58  ;;  %7414 = vrcp.f32 %v4423_v19 }
 0xcb1   : > { %v4392_v45 = vmul.f32 0.3275911, %v4360_v21  ;;  %v4838_v42 = vmul.f32 %v4806_v5, %v11358_v36  ;;  %v5134_v20 = vpack.c.bf16 %v11124_v0, %v11070_v1  ;;  %v11445_v50 = vmul.f32 %v5091_v8, %v11313_v14  ;;  %v12332_v14 = vld [vmem:[#allocation138_spill] sm:$0xff] }
 0xcb2   : > { %v5130_v3 = vpack.c.bf16 %v5100_v35, %v5098_v34  ;;  %v4550_v51 = vadd.f32 -1.4531521, %v4518_v57  ;;  %v11448_v47 = vmul.f32 %v5092_v54, %v11317_v55  ;;  %v5133_v29 = vpack.c.bf16 %v11076_v16, %v12331_v30 }
 0xcb3   : > { %v4424_v59 = vadd.f32 1.0, %v4392_v45  ;;  %v4677_v44 = vadd.f32 -0.28449672, %v4645_v46  ;;  %v5136_v36 = vpack.c.bf16 %v11208_v41, %v11169_v31  ;;  %v5135_v1 = vpack.c.bf16 %v11200_v60, %v11136_v12 }
 0xcb4   : > { %5369 = vmatprep.mubr.bf16.mxu1 %v5130_v3  ;;  %v4582_v32 = vmul.f32 %v11429_v4, %v4550_v51  ;;  %v11458_v0 = vmul.f32 %v5090_v62, %v11291_v24  ;;  %v5138_v16 = vpack.c.bf16 %v11295_v7, %v11232_v48  ;;  %v5137_v55 = vpack.c.bf16 %v12332_v14, %v11212_v6 }
 0xcb5   : > { %5370 = vmatmul.mubr.bf16.vlgmr.msra.gmra.mrb[0].mxu1 %v5129_v26  ;;  %7416 = vrcp.f32 %v4424_v59  ;;  %v5140_v31 = vpack.c.bf16 %v11410_v22, %v11392_v52  ;;  %v5139_v12 = vpack.c.bf16 %v11403_v23, %v11365_v49  ;;  %v4807_v60 = vsub.f32 0.0, %v4359_v39 }
 0xcb6   : > { %v4614_v10 = vadd.f32 1.4214138, %v4582_v32  ;;  %5379 = vmatprep.mubr.bf16.mxu1 %v5132_v63  ;;  %v5142_v41 = vpack.c.bf16 %v11448_v47, %v11458_v0  ;;  %v5141_v24 = vpack.c.bf16 %v11445_v50, %v11439_v38  ;;  %v4709_v48 = vmul.f32 %v11354_v53, %v4677_v44 }
 0xcb7   : > { %7418 = vpow2.f32 %v4897_v43  ;;  %v4899_v13 = vmul.f32 1.442695, %v4838_v42  ;;  %v4839_v63 = vmul.f32 %v4807_v60, %v4359_v39  ;;  %v4808_v5 = vsub.f32 0.0, %v4360_v21 }
 0xcb8   : > { %v4646_v7 = vmul.f32 %v11429_v4, %v4614_v10  ;;  %v4741_v58 = vadd.f32 0.2548296, %v4709_v48  ;;  %vm4998_vm14 = vcmp.lt.f32.partialorder %v11351_v28, 0.0  ;;  %vm4999_vm15 = vcmp.lt.f32.partialorder %v11400_v56, 0.0 }
 0xcb9   : > { %7420 = vpow2.f32 %v4899_v13  ;;  %v4901_v54 = vmul.f32 1.442695, %v4839_v63  ;;  %v4840_v40 = vmul.f32 %v4808_v5, %v4360_v21  ;;  %vm5000_vm0 = vcmp.lt.f32.partialorder %v11425_v9, 0.0 }
 0xcba   : > { %v4678_v2 = vadd.f32 -0.28449672, %v4646_v7  ;;  %v7415_v26 = vpop.eup %7414  ;;  %v4773_v11 = vmul.f32 %v11354_v53, %v4741_v58 }
 0xcbb   : > { %v4519_v61 = vmul.f32 1.0614054, %v7415_v26  ;;  %7422 = vpow2.f32 %v4901_v54  ;;  %v4903_v35 = vmul.f32 1.442695, %v4840_v40  ;;  %v12334_v40 = vld [vmem:[#allocation139_spill] sm:$0xff] }
 0xcbc   : > { %v4710_v17 = vmul.f32 %v11429_v4, %v4678_v2 }
 0xcbd   : > { %5380 = vmatmul.mubr.bf16.gmra.mrb[4].mxu1 %v5131_v37  ;;  %v4551_v19 = vadd.f32 -1.4531521, %v4519_v61  ;;  %7424 = vpow2.f32 %v4903_v35 }
 0xcbe   : > { %5389 = vmatprep.mubr.bf16.mxu1 %v5134_v20  ;;  %v4742_v46 = vadd.f32 0.2548296, %v4710_v17 }
 0xcbf   : > { %v7417_v8 = vpop.eup %7416  ;;  %v4583_v43 = vmul.f32 %v7415_v26, %v4551_v19 }
 0xcc0   : > { %v4520_v15 = vmul.f32 1.0614054, %v7417_v8  ;;  %v4774_v62 = vmul.f32 %v11429_v4, %v4742_v46 }
 0xcc1   : > { %v4615_v34 = vadd.f32 1.4214138, %v4583_v43  ;;  %v7419_v39 = vpop.eup %7418 }
 0xcc2   : > { %v4552_v27 = vadd.f32 -1.4531521, %v4520_v15  ;;  %v4933_v57 = vmul.f32 %v7419_v39, %v4773_v11  ;;  %v4293_v11 = vmul.f32 0.5, %v12334_v40 }
 0xcc3   : > { %v4647_v45 = vmul.f32 %v7415_v26, %v4615_v34  ;;  %v7421_v21 = vpop.eup %7420  ;;  %v4294_v34 = vmul.f32 0.5, %v11339_v25 }
 0xcc4   : > { %v4584_v37 = vmul.f32 %v7417_v8, %v4552_v27  ;;  %v4965_v53 = vsub.f32 1.0, %v4933_v57  ;;  %v4934_v42 = vmul.f32 %v7421_v21, %v4774_v62 }
 0xcc5   : > { %5390 = vmatmul.mubr.bf16.gmra.mrb[8].mxu1 %v5133_v29  ;;  %v4679_v3 = vadd.f32 -0.28449672, %v4647_v45  ;;  %v7423_v7 = vpop.eup %7422  ;;  %v12333_v29 = vld [vmem:[#allocation140_spill] sm:$0xff] }
 0xcc6   : > { %v4616_v51 = vadd.f32 1.4214138, %v4584_v37  ;;  %5399 = vmatprep.mubr.bf16.mxu1 %v5136_v36  ;;  %v5029_v32 = vsub.f32 0.0, %v4965_v53  ;;  %v4966_v10 = vsub.f32 1.0, %v4934_v42  ;;  %vm4997_vm13 = vcmp.lt.f32.partialorder %v12333_v29, 0.0 }
 0xcc7   : > { %v4711_v20 = vmul.f32 %v7415_v26, %v4679_v3  ;;  %v7425_v58 = vpop.eup %7424 }
 0xcc8   : > { %v4648_v59 = vmul.f32 %v7417_v8, %v4616_v51  ;;  %v5061_v36 = vsel %vm4997_vm13, %v5029_v32, %v4965_v53  ;;  %v5030_v2 = vsub.f32 0.0, %v4966_v10 }
 0xcc9   : > { %v4743_v30 = vadd.f32 0.2548296, %v4711_v20  ;;  %v5093_v19 = vadd.f32 1.0, %v5061_v36 }
 0xcca   : > { %v4680_v44 = vadd.f32 -0.28449672, %v4648_v59 }
 0xccb   : > { %v4775_v60 = vmul.f32 %v7415_v26, %v4743_v30  ;;  %v5062_v26 = vsel %vm4998_vm14, %v5030_v2, %v4966_v10  ;;  %v5125_v28 = vmul.f32 %v5093_v19, %v4293_v11 }
 0xccc   : > { %v4712_v48 = vmul.f32 %v7417_v8, %v4680_v44  ;;  %v5094_v43 = vadd.f32 1.0, %v5062_v26 }
 0xccd   : > { %5400 = vmatmul.mubr.bf16.gmra.mrb[12].mxu1 %v5135_v1  ;;  %v4935_v4 = vmul.f32 %v7423_v7, %v4775_v60 }
 0xcce   : > { %v4744_v13 = vadd.f32 0.2548296, %v4712_v48  ;;  %5409 = vmatprep.mubr.bf16.mxu1 %v5138_v16  ;;  %v4295_v16 = vmul.f32 0.5, %v11389_v18  ;;  %v4296_v18 = vmul.f32 0.5, %v11407_v33  ;;  %v5126_v35 = vmul.f32 %v5094_v43, %v4294_v34 }
 0xccf   : > { %v4967_v63 = vsub.f32 1.0, %v4935_v4 }
 0xcd0   : > { %v4776_v5 = vmul.f32 %v7417_v8, %v4744_v13 }
 0xcd1   : > { %v5031_v17 = vsub.f32 0.0, %v4967_v63 }
 0xcd2   : > { %v4936_v61 = vmul.f32 %v7425_v58, %v4776_v5 }
 0xcd3   : > { %v5063_v54 = vsel %vm4999_vm15, %v5031_v17, %v4967_v63 }
 0xcd4   : > { %v4968_v1 = vsub.f32 1.0, %v4936_v61  ;;  %v5095_v46 = vadd.f32 1.0, %v5063_v54 }
 0xcd5   : > { %5410 = vmatmul.mubr.bf16.gmra.mrb[16].mxu1 %v5137_v55 }
 0xcd6   : > { %v5032_v8 = vsub.f32 0.0, %v4968_v1  ;;  %5419 = vmatprep.mubr.bf16.mxu1 %v5140_v31  ;;  %v5127_v56 = vmul.f32 %v5095_v46, %v4295_v16 }
 0xcd8   : > { %v5064_v15 = vsel %vm5000_vm0, %v5032_v8, %v4968_v1  ;;  %v5143_v39 = vpack.c.bf16 %v5127_v56, %v5125_v28 }
 0xcd9   : > { %v5096_v27 = vadd.f32 1.0, %v5064_v15 }
 0xcdb   : > { %v5128_v6 = vmul.f32 %v5096_v27, %v4296_v18 }
 0xcdd   : > { %5420 = vmatmul.mubr.bf16.gmra.mrb[20].mxu1 %v5139_v12  ;;  %v5144_v52 = vpack.c.bf16 %v5128_v6, %v5126_v35 }
 0xcde   : > { %5429 = vmatprep.mubr.bf16.mxu1 %v5142_v41 }
 0xce5   : > { %5430 = vmatmul.mubr.bf16.gmra.mrb[24].mxu1 %v5141_v24 }
 0xce6   : > { %5439 = vmatprep.mubr.bf16.mxu1 %v5144_v52 }
 0xced   : > { %5440 = vmatmul.mubr.bf16.gmra.mrb[28].mxu1 %v5143_v39 }
 0xd88   : > { %v11503_v25 = vpop.f32.mrb[0].mxu1 }
 0xd89   : > { %v11505_v33 = vpop.f32.mrb[1].mxu1  ;;  %5453 = vst [vmem:[#allocation6] sm:$0xff] (!%p6093_p9), %v11503_v25 }
 0xd8a   : > { %v11507_v22 = vpop.f32.mrb[2].mxu1  ;;  %5454 = vst [vmem:[#allocation6 + $0x8] sm:$0xff] (!%p6093_p9), %v11505_v33 }
 0xd8b   : > { %v11509_v9 = vpop.f32.mrb[3].mxu1  ;;  %5455 = vst [vmem:[#allocation6 + $0x10] sm:$0xff] (!%p6093_p9), %v11507_v22 }
 0xd8c   : > { %5456 = vst [vmem:[#allocation6 + $0x18] sm:$0xff] (!%p6093_p9), %v11509_v9 }
 0xd90   : > { %v11511_v49 = vpop.f32.mrb[4].mxu1 }
 0xd91   : > { %v11513_v23 = vpop.f32.mrb[5].mxu1  ;;  %5457 = vst [vmem:[#allocation6 + $0x20] sm:$0xff] (!%p6093_p9), %v11511_v49 }
 0xd92   : > { %v11515_v47 = vpop.f32.mrb[6].mxu1  ;;  %5458 = vst [vmem:[#allocation6 + $0x28] sm:$0xff] (!%p6093_p9), %v11513_v23 }
 0xd93   : > { %v11517_v0 = vpop.f32.mrb[7].mxu1  ;;  %5459 = vst [vmem:[#allocation6 + $0x30] sm:$0xff] (!%p6093_p9), %v11515_v47 }
 0xd94   : > { %5460 = vst [vmem:[#allocation6 + $0x38] sm:$0xff] (!%p6093_p9), %v11517_v0 }
 0xd98   : > { %v11519_v38 = vpop.f32.mrb[8].mxu1 }
 0xd99   : > { %v11521_v50 = vpop.f32.mrb[9].mxu1  ;;  %5461 = vst [vmem:[#allocation6 + $0x40] sm:$0xff] (!%p6093_p9), %v11519_v38 }
 0xd9a   : > { %v11523_v14 = vpop.f32.mrb[10].mxu1  ;;  %5462 = vst [vmem:[#allocation6 + $0x48] sm:$0xff] (!%p6093_p9), %v11521_v50 }
 0xd9b   : > { %v11525_v55 = vpop.f32.mrb[11].mxu1  ;;  %5463 = vst [vmem:[#allocation6 + $0x50] sm:$0xff] (!%p6093_p9), %v11523_v14 }
 0xd9c   : > { %5464 = vst [vmem:[#allocation6 + $0x58] sm:$0xff] (!%p6093_p9), %v11525_v55 }
 0xda0   : > { %v11527_v31 = vpop.f32.mrb[12].mxu1 }
 0xda1   : > { %v11529_v12 = vpop.f32.mrb[13].mxu1  ;;  %5465 = vst [vmem:[#allocation6 + $0x60] sm:$0xff] (!%p6093_p9), %v11527_v31 }
 0xda2   : > { %v11531_v41 = vpop.f32.mrb[14].mxu1  ;;  %5466 = vst [vmem:[#allocation6 + $0x68] sm:$0xff] (!%p6093_p9), %v11529_v12 }
 0xda3   : > { %v11533_v24 = vpop.f32.mrb[15].mxu1  ;;  %5467 = vst [vmem:[#allocation6 + $0x70] sm:$0xff] (!%p6093_p9), %v11531_v41 }
 0xda4   : > { %5468 = vst [vmem:[#allocation6 + $0x78] sm:$0xff] (!%p6093_p9), %v11533_v24 }
 0xda8   : > { %v11535_v57 = vpop.f32.mrb[16].mxu1 }
 0xda9   : > { %v11537_v62 = vpop.f32.mrb[17].mxu1  ;;  %5469 = vst [vmem:[#allocation6 + $0x80] sm:$0xff] (!%p6093_p9), %v11535_v57 }
 0xdaa   : > { %v11539_v45 = vpop.f32.mrb[18].mxu1  ;;  %5470 = vst [vmem:[#allocation6 + $0x88] sm:$0xff] (!%p6093_p9), %v11537_v62 }
 0xdab   : > { %v11541_v37 = vpop.f32.mrb[19].mxu1  ;;  %5471 = vst [vmem:[#allocation6 + $0x90] sm:$0xff] (!%p6093_p9), %v11539_v45 }
 0xdac   : > { %5472 = vst [vmem:[#allocation6 + $0x98] sm:$0xff] (!%p6093_p9), %v11541_v37 }
 0xdb0   : > { %v11543_v3 = vpop.f32.mrb[20].mxu1 }
 0xdb1   : > { %v11545_v51 = vpop.f32.mrb[21].mxu1  ;;  %5473 = vst [vmem:[#allocation6 + $0xa0] sm:$0xff] (!%p6093_p9), %v11543_v3 }
 0xdb2   : > { %v11547_v21 = vpop.f32.mrb[22].mxu1  ;;  %5474 = vst [vmem:[#allocation6 + $0xa8] sm:$0xff] (!%p6093_p9), %v11545_v51 }
 0xdb3   : > { %v11549_v53 = vpop.f32.mrb[23].mxu1  ;;  %5475 = vst [vmem:[#allocation6 + $0xb0] sm:$0xff] (!%p6093_p9), %v11547_v21 }
 0xdb4   : > { %5476 = vst [vmem:[#allocation6 + $0xb8] sm:$0xff] (!%p6093_p9), %v11549_v53 }
 0xdb8   : > { %v11551_v42 = vpop.f32.mrb[24].mxu1 }
 0xdb9   : > { %v11553_v20 = vpop.f32.mrb[25].mxu1  ;;  %5477 = vst [vmem:[#allocation6 + $0xc0] sm:$0xff] (!%p6093_p9), %v11551_v42 }
 0xdba   : > { %v11555_v59 = vpop.f32.mrb[26].mxu1  ;;  %5478 = vst [vmem:[#allocation6 + $0xc8] sm:$0xff] (!%p6093_p9), %v11553_v20 }
 0xdbb   : > { %v11557_v30 = vpop.f32.mrb[27].mxu1  ;;  %5479 = vst [vmem:[#allocation6 + $0xd0] sm:$0xff] (!%p6093_p9), %v11555_v59 }
 0xdbc   : > { %5480 = vst [vmem:[#allocation6 + $0xd8] sm:$0xff] (!%p6093_p9), %v11557_v30 }
 0xdbd   : > { %5452 = sbr.rel (%p6093_p9) target bundleno = 3525 (0xdc5), region = 163 }
 0xdc0   : > { %v11559_v44 = vpop.f32.mrb[28].mxu1 }
 0xdc1   : > { %v11561_v32 = vpop.f32.mrb[29].mxu1  ;;  %5481 = vst [vmem:[#allocation6 + $0xe0] sm:$0xff] (!%p6093_p9), %v11559_v44 }
 0xdc2   : > { %v11563_v10 = vpop.f32.mrb[30].mxu1  ;;  %5482 = vst [vmem:[#allocation6 + $0xe8] sm:$0xff] (!%p6093_p9), %v11561_v32 }
 0xdc3   : > { %v11565_v60 = vpop.f32.mrb[31].mxu1  ;;  %5483 = vst [vmem:[#allocation6 + $0xf0] sm:$0xff] (!%p6093_p9), %v11563_v10 }
 0xdc4   : > { %5484 = vst [vmem:[#allocation6 + $0xf8] sm:$0xff] %v11565_v60 }
 0xdc5 PF: > { %s12336_s28 = sld [smem:[#allocation46_spill]] }
 0xdcb   : > { %p6292_p2 = scmp.le.s32.totalorder %s12336_s28, 0 }
 0xdcc   : > { %v5489_v48 = vld [vmem:[#allocation6] sm:$0xff] (!%p6292_p2)  ;;  %v5490_v7 = vld [vmem:[#allocation6 + $0x8] sm:$0xff] (!%p6292_p2)  ;;  %v5491_v4 = vld [vmem:[#allocation6 + $0x10] sm:$0xff] (!%p6292_p2) }
 0xdcd   : > { %5488 = sbr.rel (%p6292_p2) target bundleno = 3551 (0xddf), region = 167  ;;  %v5521_v13 = vadd.f32 (!%p6292_p2), %v5489_v48, %v11503_v25  ;;  %v5522_v29 = vadd.f32 (!%p6292_p2), %v5490_v7, %v11505_v33  ;;  %v5523_v36 = vadd.f32 (!%p6292_p2), %v5491_v4, %v11507_v22  ;;  %v5492_v2 = vld [vmem:[#allocation6 + $0x18] sm:$0xff] (!%p6292_p2)  ;;  %v5493_v63 = vld [vmem:[#allocation6 + $0x20] sm:$0xff] (!%p6292_p2)  ;;  %v5494_v5 = vld [vmem:[#allocation6 + $0x28] sm:$0xff] (!%p6292_p2) }
 0xdce   : > { %v5524_v58 = vadd.f32 (!%p6292_p2), %v5492_v2, %v11509_v9  ;;  %v5525_v17 = vadd.f32 (!%p6292_p2), %v5493_v63, %v11511_v49  ;;  %v5526_v61 = vadd.f32 (!%p6292_p2), %v5494_v5, %v11513_v23  ;;  %v5495_v19 = vld [vmem:[#allocation6 + $0x30] sm:$0xff] (!%p6292_p2)  ;;  %v5496_v26 = vld [vmem:[#allocation6 + $0x38] sm:$0xff] (!%p6292_p2)  ;;  %v5497_v54 = vld [vmem:[#allocation6 + $0x40] sm:$0xff] (!%p6292_p2) }
 0xdcf   : > { %5553 = vst [vmem:[#allocation6] sm:$0xff] (!%p6292_p2), %v5521_v13  ;;  %5554 = vst [vmem:[#allocation6 + $0x8] sm:$0xff] (!%p6292_p2), %v5522_v29  ;;  %v5527_v1 = vadd.f32 (!%p6292_p2), %v5495_v19, %v11515_v47  ;;  %v5528_v40 = vadd.f32 (!%p6292_p2), %v5496_v26, %v11517_v0  ;;  %v5529_v11 = vadd.f32 (!%p6292_p2), %v5497_v54, %v11519_v38  ;;  %v5498_v16 = vld [vmem:[#allocation6 + $0x48] sm:$0xff] (!%p6292_p2)  ;;  %v5499_v46 = vld [vmem:[#allocation6 + $0x50] sm:$0xff] (!%p6292_p2) }
 0xdd0   : > { %5555 = vst [vmem:[#allocation6 + $0x10] sm:$0xff] (!%p6292_p2), %v5523_v36  ;;  %v5500_v8 = vld [vmem:[#allocation6 + $0x58] sm:$0xff] (!%p6292_p2)  ;;  %5556 = vst [vmem:[#allocation6 + $0x18] sm:$0xff] (!%p6292_p2), %v5524_v58  ;;  %v5530_v28 = vadd.f32 (!%p6292_p2), %v5498_v16, %v11521_v50  ;;  %v5531_v43 = vadd.f32 (!%p6292_p2), %v5499_v46, %v11523_v14  ;;  %v5501_v15 = vld [vmem:[#allocation6 + $0x60] sm:$0xff] (!%p6292_p2) }
 0xdd1   : > { %5557 = vst [vmem:[#allocation6 + $0x20] sm:$0xff] (!%p6292_p2), %v5525_v17  ;;  %5558 = vst [vmem:[#allocation6 + $0x28] sm:$0xff] (!%p6292_p2), %v5526_v61  ;;  %v5532_v56 = vadd.f32 (!%p6292_p2), %v5500_v8, %v11525_v55  ;;  %v5502_v34 = vld [vmem:[#allocation6 + $0x68] sm:$0xff] (!%p6292_p2)  ;;  %v5503_v18 = vld [vmem:[#allocation6 + $0x70] sm:$0xff] (!%p6292_p2)  ;;  %v5533_v27 = vadd.f32 (!%p6292_p2), %v5501_v15, %v11527_v31 }
 0xdd2   : > { %5559 = vst [vmem:[#allocation6 + $0x30] sm:$0xff] (!%p6292_p2), %v5527_v1  ;;  %5560 = vst [vmem:[#allocation6 + $0x38] sm:$0xff] (!%p6292_p2), %v5528_v40  ;;  %v5534_v39 = vadd.f32 (!%p6292_p2), %v5502_v34, %v11529_v12  ;;  %v5535_v35 = vadd.f32 (!%p6292_p2), %v5503_v18, %v11531_v41  ;;  %v5504_v6 = vld [vmem:[#allocation6 + $0x78] sm:$0xff] (!%p6292_p2)  ;;  %v5505_v52 = vld [vmem:[#allocation6 + $0x80] sm:$0xff] (!%p6292_p2) }
 0xdd3   : > { %5561 = vst [vmem:[#allocation6 + $0x40] sm:$0xff] (!%p6292_p2), %v5529_v11  ;;  %v5506_v25 = vld [vmem:[#allocation6 + $0x88] sm:$0xff] (!%p6292_p2)  ;;  %5562 = vst [vmem:[#allocation6 + $0x48] sm:$0xff] (!%p6292_p2), %v5530_v28  ;;  %v5536_v33 = vadd.f32 (!%p6292_p2), %v5504_v6, %v11533_v24  ;;  %v5537_v22 = vadd.f32 (!%p6292_p2), %v5505_v52, %v11535_v57  ;;  %v5507_v49 = vld [vmem:[#allocation6 + $0x90] sm:$0xff] (!%p6292_p2) }
 0xdd4   : > { %5563 = vst [vmem:[#allocation6 + $0x50] sm:$0xff] %v5531_v43  ;;  %5564 = vst [vmem:[#allocation6 + $0x58] sm:$0xff] %v5532_v56  ;;  %v5538_v9 = vadd.f32 %v5506_v25, %v11537_v62  ;;  %v5508_v23 = vld [vmem:[#allocation6 + $0x98] sm:$0xff]  ;;  %v5509_v47 = vld [vmem:[#allocation6 + $0xa0] sm:$0xff]  ;;  %v5539_v0 = vadd.f32 %v5507_v49, %v11539_v45 }
 0xdd5   : > { %5565 = vst [vmem:[#allocation6 + $0x60] sm:$0xff] %v5533_v27  ;;  %5566 = vst [vmem:[#allocation6 + $0x68] sm:$0xff] %v5534_v39  ;;  %v5540_v38 = vadd.f32 %v5508_v23, %v11541_v37  ;;  %v5541_v50 = vadd.f32 %v5509_v47, %v11543_v3  ;;  %v5510_v14 = vld [vmem:[#allocation6 + $0xa8] sm:$0xff]  ;;  %v5511_v55 = vld [vmem:[#allocation6 + $0xb0] sm:$0xff] }
 0xdd6   : > { %5567 = vst [vmem:[#allocation6 + $0x70] sm:$0xff] %v5535_v35  ;;  %v5512_v31 = vld [vmem:[#allocation6 + $0xb8] sm:$0xff]  ;;  %5568 = vst [vmem:[#allocation6 + $0x78] sm:$0xff] %v5536_v33  ;;  %v5542_v12 = vadd.f32 %v5510_v14, %v11545_v51  ;;  %v5543_v41 = vadd.f32 %v5511_v55, %v11547_v21  ;;  %v5513_v57 = vld [vmem:[#allocation6 + $0xc0] sm:$0xff] }
 0xdd7   : > { %5569 = vst [vmem:[#allocation6 + $0x80] sm:$0xff] %v5537_v22  ;;  %5570 = vst [vmem:[#allocation6 + $0x88] sm:$0xff] %v5538_v9  ;;  %v5544_v24 = vadd.f32 %v5512_v31, %v11549_v53  ;;  %v5514_v62 = vld [vmem:[#allocation6 + $0xc8] sm:$0xff]  ;;  %v5515_v48 = vld [vmem:[#allocation6 + $0xd0] sm:$0xff]  ;;  %v5545_v45 = vadd.f32 %v5513_v57, %v11551_v42 }
 0xdd8   : > { %5571 = vst [vmem:[#allocation6 + $0x90] sm:$0xff] %v5539_v0  ;;  %5572 = vst [vmem:[#allocation6 + $0x98] sm:$0xff] %v5540_v38  ;;  %v5546_v37 = vadd.f32 %v5514_v62, %v11553_v20  ;;  %v5547_v3 = vadd.f32 %v5515_v48, %v11555_v59  ;;  %v5516_v7 = vld [vmem:[#allocation6 + $0xd8] sm:$0xff]  ;;  %v5517_v4 = vld [vmem:[#allocation6 + $0xe0] sm:$0xff] }
 0xdd9   : > { %5573 = vst [vmem:[#allocation6 + $0xa0] sm:$0xff] %v5541_v50  ;;  %v5518_v13 = vld [vmem:[#allocation6 + $0xe8] sm:$0xff]  ;;  %5574 = vst [vmem:[#allocation6 + $0xa8] sm:$0xff] %v5542_v12  ;;  %v5548_v51 = vadd.f32 %v5516_v7, %v11557_v30  ;;  %v5549_v21 = vadd.f32 %v5517_v4, %v11559_v44  ;;  %v5519_v29 = vld [vmem:[#allocation6 + $0xf0] sm:$0xff] }
 0xdda   : > { %5575 = vst [vmem:[#allocation6 + $0xb0] sm:$0xff] %v5543_v41  ;;  %5576 = vst [vmem:[#allocation6 + $0xb8] sm:$0xff] %v5544_v24  ;;  %v5550_v53 = vadd.f32 %v5518_v13, %v11561_v32  ;;  %v5520_v36 = vld [vmem:[#allocation6 + $0xf8] sm:$0xff]  ;;  %v5551_v42 = vadd.f32 %v5519_v29, %v11563_v10 }
 0xddb   : > { %5577 = vst [vmem:[#allocation6 + $0xc0] sm:$0xff] %v5545_v45  ;;  %5578 = vst [vmem:[#allocation6 + $0xc8] sm:$0xff] %v5546_v37  ;;  %v5552_v20 = vadd.f32 %v5520_v36, %v11565_v60 }
 0xddc   : > { %5579 = vst [vmem:[#allocation6 + $0xd0] sm:$0xff] %v5547_v3  ;;  %5580 = vst [vmem:[#allocation6 + $0xd8] sm:$0xff] %v5548_v51 }
 0xddd   : > { %5581 = vst [vmem:[#allocation6 + $0xe0] sm:$0xff] %v5549_v21  ;;  %5582 = vst [vmem:[#allocation6 + $0xe8] sm:$0xff] %v5550_v53 }
 0xdde   : > { %5583 = vst [vmem:[#allocation6 + $0xf0] sm:$0xff] %v5551_v42  ;;  %5584 = vst [vmem:[#allocation6 + $0xf8] sm:$0xff] %v5552_v20 }
 0xddf PF: > { %s12337_s24 = sld [smem:[#allocation46_spill]] }
 0xde5   : > { %p6293_p7 = scmp.ne.s32.totalorder %s12337_s24, 1 }
 0xde6   : > { %v5589_v59 = vld [vmem:[#allocation4] sm:$0xff] (!%p6293_p7)  ;;  %v5685_v44 = vld [vmem:[#allocation30] sm:$0x3] (!%p6293_p7)  ;;  %v12338_v2 = vld [vmem:[#allocation130_spill] sm:$0xff] (!%p6293_p7) }
 0xde7   : > { %5588 = sbr.rel (%p6293_p7) target bundleno = 3588 (0xe04), region = 171  ;;  %v5621_v30 = vld [vmem:[#allocation6] sm:$0xff] (!%p6293_p7)  ;;  %v12339_v63 = vsub.s32 (!%p6293_p7), 0, %v12338_v2  ;;  %v5590_v10 = vld [vmem:[#allocation4 + $0x8] sm:$0xff] (!%p6293_p7)  ;;  %v12340_v60 = vsub.s32 (!%p6293_p7), 1, %v12338_v2  ;;  %v5591_v61 = vld [vmem:[#allocation4 + $0x10] sm:$0xff] (!%p6293_p7) }
 0xde8   : > { %v5653_v32 = vadd.f32 (!%p6293_p7), %v5621_v30, %v5589_v59  ;;  %v5622_v58 = vld [vmem:[#allocation6 + $0x8] sm:$0xff] (!%p6293_p7)  ;;  %v5623_v26 = vld [vmem:[#allocation6 + $0x10] sm:$0xff] (!%p6293_p7)  ;;  %v5592_v54 = vld [vmem:[#allocation4 + $0x18] sm:$0xff] (!%p6293_p7) }
 0xde9   : > { %v11637_v5 = vrot.slane (!%p6293_p7), %v5685_v44, %v12339_v63  ;;  %v11641_v17 = vrot.slane (!%p6293_p7), %v5685_v44, %v12340_v60  ;;  %v5654_v19 = vadd.f32 (!%p6293_p7), %v5622_v58, %v5590_v10  ;;  %v5624_v1 = vld [vmem:[#allocation6 + $0x18] sm:$0xff] (!%p6293_p7)  ;;  %v5655_v11 = vadd.f32 (!%p6293_p7), %v5623_v26, %v5591_v61  ;;  %v5593_v46 = vld [vmem:[#allocation4 + $0x20] sm:$0xff] (!%p6293_p7)  ;;  %v5594_v28 = vld [vmem:[#allocation4 + $0x28] sm:$0xff] (!%p6293_p7) }
 0xdea   : > { %v5656_v16 = vadd.f32 (!%p6293_p7), %v5624_v1, %v5592_v54  ;;  %v5625_v8 = vld [vmem:[#allocation6 + $0x20] sm:$0xff] (!%p6293_p7)  ;;  %v5626_v15 = vld [vmem:[#allocation6 + $0x28] sm:$0xff] (!%p6293_p7)  ;;  %v5595_v34 = vld [vmem:[#allocation4 + $0x30] sm:$0xff] (!%p6293_p7) }
 0xdeb   : > { %v5697_v40 = vadd.f32 (!%p6293_p7), %v11637_v5, %v5653_v32  ;;  %v5698_v43 = vadd.f32 (!%p6293_p7), %v11641_v17, %v5654_v19  ;;  %v5657_v56 = vadd.f32 (!%p6293_p7), %v5625_v8, %v5593_v46  ;;  %v5627_v18 = vld [vmem:[#allocation6 + $0x30] sm:$0xff] (!%p6293_p7)  ;;  %v5699_v27 = vadd.f32 (!%p6293_p7), %v11637_v5, %v5655_v11  ;;  %v5596_v52 = vld [vmem:[#allocation4 + $0x38] sm:$0xff] (!%p6293_p7)  ;;  %v5597_v33 = vld [vmem:[#allocation4 + $0x40] sm:$0xff] (!%p6293_p7) }
 0xdec   : > { %v5700_v39 = vadd.f32 (!%p6293_p7), %v11641_v17, %v5656_v16  ;;  %v5658_v35 = vadd.f32 (!%p6293_p7), %v5626_v15, %v5594_v28  ;;  %v5659_v6 = vadd.f32 (!%p6293_p7), %v5627_v18, %v5595_v34  ;;  %v5628_v25 = vld [vmem:[#allocation6 + $0x38] sm:$0xff] (!%p6293_p7)  ;;  %v5629_v49 = vld [vmem:[#allocation6 + $0x40] sm:$0xff] (!%p6293_p7)  ;;  %v5598_v23 = vld [vmem:[#allocation4 + $0x48] sm:$0xff] (!%p6293_p7) }
 0xded   : > { %5729 = vst [vmem:[%s8757_s16] sm:$0xff] (!%p6293_p7), %v5697_v40  ;;  %5730 = vst [vmem:[%s8757_s16 + $0x8] sm:$0xff] (!%p6293_p7), %v5698_v43  ;;  %v5701_v22 = vadd.f32 (!%p6293_p7), %v11637_v5, %v5657_v56  ;;  %v5660_v9 = vadd.f32 (!%p6293_p7), %v5628_v25, %v5596_v52  ;;  %v5630_v47 = vld [vmem:[#allocation6 + $0x48] sm:$0xff] (!%p6293_p7)  ;;  %v5661_v50 = vadd.f32 (!%p6293_p7), %v5629_v49, %v5597_v33  ;;  %v5599_v55 = vld [vmem:[#allocation4 + $0x50] sm:$0xff] (!%p6293_p7) }
 0xdee   : > { %5731 = vst [vmem:[%s8757_s16 + $0x10] sm:$0xff] %v5699_v27  ;;  %5732 = vst [vmem:[%s8757_s16 + $0x18] sm:$0xff] %v5700_v39  ;;  %v5702_v0 = vadd.f32 %v11641_v17, %v5658_v35  ;;  %v5703_v38 = vadd.f32 %v11637_v5, %v5659_v6  ;;  %v5662_v14 = vadd.f32 %v5630_v47, %v5598_v23  ;;  %v5631_v31 = vld [vmem:[#allocation6 + $0x50] sm:$0xff]  ;;  %v5600_v12 = vld [vmem:[#allocation4 + $0x58] sm:$0xff] }
 0xdef   : > { %5733 = vst [vmem:[%s8757_s16 + $0x20] sm:$0xff] %v5701_v22  ;;  %v5704_v41 = vadd.f32 %v11641_v17, %v5660_v9  ;;  %v5663_v24 = vadd.f32 %v5631_v31, %v5599_v55  ;;  %v5632_v57 = vld [vmem:[#allocation6 + $0x58] sm:$0xff]  ;;  %v5601_v62 = vld [vmem:[#allocation4 + $0x60] sm:$0xff]  ;;  %v5705_v45 = vadd.f32 %v11637_v5, %v5661_v50  ;;  %v5602_v4 = vld [vmem:[#allocation4 + $0x68] sm:$0xff] }
 0xdf0   : > { %v5633_v48 = vld [vmem:[#allocation6 + $0x60] sm:$0xff]  ;;  %5734 = vst [vmem:[%s8757_s16 + $0x28] sm:$0xff] %v5702_v0  ;;  %5735 = vst [vmem:[%s8757_s16 + $0x30] sm:$0xff] %v5703_v38  ;;  %v5706_v37 = vadd.f32 %v11641_v17, %v5662_v14  ;;  %v5664_v3 = vadd.f32 %v5632_v57, %v5600_v12  ;;  %v5634_v13 = vld [vmem:[#allocation6 + $0x68] sm:$0xff] }
 0xdf1   : > { %v5665_v7 = vadd.f32 %v5633_v48, %v5601_v62  ;;  %v5603_v51 = vld [vmem:[#allocation4 + $0x70] sm:$0xff]  ;;  %5736 = vst [vmem:[%s8757_s16 + $0x38] sm:$0xff] %v5704_v41  ;;  %v5707_v21 = vadd.f32 %v11637_v5, %v5663_v24  ;;  %v5666_v53 = vadd.f32 %v5634_v13, %v5602_v4  ;;  %v5604_v36 = vld [vmem:[#allocation4 + $0x78] sm:$0xff]  ;;  %5737 = vst [vmem:[%s8757_s16 + $0x40] sm:$0xff] %v5705_v45 }
 0xdf2   : > { %v5635_v29 = vld [vmem:[#allocation6 + $0x70] sm:$0xff]  ;;  %v5636_v42 = vld [vmem:[#allocation6 + $0x78] sm:$0xff]  ;;  %5738 = vst [vmem:[%s8757_s16 + $0x48] sm:$0xff] %v5706_v37  ;;  %v5708_v20 = vadd.f32 %v11641_v17, %v5664_v3  ;;  %v5605_v32 = vld [vmem:[#allocation4 + $0x80] sm:$0xff] }
 0xdf3   : > { %v5709_v59 = vadd.f32 %v11637_v5, %v5665_v7  ;;  %v5667_v30 = vadd.f32 %v5635_v29, %v5603_v51  ;;  %v5668_v44 = vadd.f32 %v5636_v42, %v5604_v36  ;;  %v5637_v2 = vld [vmem:[#allocation6 + $0x80] sm:$0xff]  ;;  %v5606_v63 = vld [vmem:[#allocation4 + $0x88] sm:$0xff]  ;;  %5739 = vst [vmem:[%s8757_s16 + $0x50] sm:$0xff] %v5707_v21  ;;  %v5710_v10 = vadd.f32 %v11641_v17, %v5666_v53  ;;  %v5607_v61 = vld [vmem:[#allocation4 + $0x90] sm:$0xff] }
 0xdf4   : > { %v5669_v58 = vadd.f32 %v5637_v2, %v5605_v32  ;;  %v5638_v60 = vld [vmem:[#allocation6 + $0x88] sm:$0xff]  ;;  %v5639_v19 = vld [vmem:[#allocation6 + $0x90] sm:$0xff]  ;;  %5740 = vst [vmem:[%s8757_s16 + $0x58] sm:$0xff] %v5708_v20  ;;  %v5608_v11 = vld [vmem:[#allocation4 + $0x98] sm:$0xff] }
 0xdf5   : > { %5741 = vst [vmem:[%s8757_s16 + $0x60] sm:$0xff] %v5709_v59  ;;  %v5711_v26 = vadd.f32 %v11637_v5, %v5667_v30  ;;  %v5712_v54 = vadd.f32 %v11641_v17, %v5668_v44  ;;  %v5670_v1 = vadd.f32 %v5638_v60, %v5606_v63  ;;  %v5671_v40 = vadd.f32 %v5639_v19, %v5607_v61  ;;  %v5640_v16 = vld [vmem:[#allocation6 + $0x98] sm:$0xff]  ;;  %v5609_v46 = vld [vmem:[#allocation4 + $0xa0] sm:$0xff]  ;;  %v5610_v56 = vld [vmem:[#allocation4 + $0xa8] sm:$0xff] }
 0xdf6   : > { %5742 = vst [vmem:[%s8757_s16 + $0x68] sm:$0xff] %v5710_v10  ;;  %v5713_v8 = vadd.f32 %v11637_v5, %v5669_v58  ;;  %v5672_v28 = vadd.f32 %v5640_v16, %v5608_v11  ;;  %v5641_v43 = vld [vmem:[#allocation6 + $0xa0] sm:$0xff]  ;;  %v5642_v15 = vld [vmem:[#allocation6 + $0xa8] sm:$0xff]  ;;  %v5611_v35 = vld [vmem:[#allocation4 + $0xb0] sm:$0xff] }
 0xdf7   : > { %5743 = vst [vmem:[%s8757_s16 + $0x70] sm:$0xff] %v5711_v26  ;;  %5744 = vst [vmem:[%s8757_s16 + $0x78] sm:$0xff] %v5712_v54  ;;  %v5714_v34 = vadd.f32 %v11641_v17, %v5670_v1  ;;  %v5715_v18 = vadd.f32 %v11637_v5, %v5671_v40  ;;  %v5673_v27 = vadd.f32 %v5641_v43, %v5609_v46  ;;  %v5643_v6 = vld [vmem:[#allocation6 + $0xb0] sm:$0xff]  ;;  %v5612_v52 = vld [vmem:[#allocation4 + $0xb8] sm:$0xff] }
 0xdf8   : > { %v5674_v39 = vadd.f32 %v5642_v15, %v5610_v56  ;;  %5745 = vst [vmem:[%s8757_s16 + $0x80] sm:$0xff] %v5713_v8  ;;  %v5716_v25 = vadd.f32 %v11641_v17, %v5672_v28  ;;  %v5675_v33 = vadd.f32 %v5643_v6, %v5611_v35  ;;  %v5644_v22 = vld [vmem:[#allocation6 + $0xb8] sm:$0xff]  ;;  %v5613_v9 = vld [vmem:[#allocation4 + $0xc0] sm:$0xff]  ;;  %v5614_v50 = vld [vmem:[#allocation4 + $0xc8] sm:$0xff] }
 0xdf9   : > { %v5645_v49 = vld [vmem:[#allocation6 + $0xc0] sm:$0xff]  ;;  %5746 = vst [vmem:[%s8757_s16 + $0x88] sm:$0xff] %v5714_v34  ;;  %5747 = vst [vmem:[%s8757_s16 + $0x90] sm:$0xff] %v5715_v18  ;;  %v5717_v23 = vadd.f32 %v11637_v5, %v5673_v27  ;;  %v5676_v0 = vadd.f32 %v5644_v22, %v5612_v52  ;;  %v5646_v14 = vld [vmem:[#allocation6 + $0xc8] sm:$0xff] }
 0xdfa   : > { %v5718_v47 = vadd.f32 %v11641_v17, %v5674_v39  ;;  %v5677_v38 = vadd.f32 %v5645_v49, %v5613_v9  ;;  %v5615_v55 = vld [vmem:[#allocation4 + $0xd0] sm:$0xff]  ;;  %5748 = vst [vmem:[%s8757_s16 + $0x98] sm:$0xff] %v5716_v25  ;;  %v5719_v31 = vadd.f32 %v11637_v5, %v5675_v33  ;;  %v5678_v12 = vadd.f32 %v5646_v14, %v5614_v50  ;;  %v5616_v24 = vld [vmem:[#allocation4 + $0xd8] sm:$0xff]  ;;  %v5617_v3 = vld [vmem:[#allocation4 + $0xe0] sm:$0xff] }
 0xdfb   : > { %v5647_v41 = vld [vmem:[#allocation6 + $0xd0] sm:$0xff]  ;;  %v5648_v57 = vld [vmem:[#allocation6 + $0xd8] sm:$0xff]  ;;  %5749 = vst [vmem:[%s8757_s16 + $0xa0] sm:$0xff] %v5717_v23  ;;  %v5720_v62 = vadd.f32 %v11641_v17, %v5676_v0  ;;  %v5649_v7 = vld [vmem:[#allocation6 + $0xe0] sm:$0xff] }
 0xdfc   : > { %5750 = vst [vmem:[%s8757_s16 + $0xa8] sm:$0xff] %v5718_v47  ;;  %v5721_v48 = vadd.f32 %v11637_v5, %v5677_v38  ;;  %v5679_v45 = vadd.f32 %v5647_v41, %v5615_v55  ;;  %v5680_v37 = vadd.f32 %v5648_v57, %v5616_v24  ;;  %v5618_v4 = vld [vmem:[#allocation4 + $0xe8] sm:$0xff]  ;;  %5751 = vst [vmem:[%s8757_s16 + $0xb0] sm:$0xff] %v5719_v31  ;;  %v5619_v53 = vld [vmem:[#allocation4 + $0xf0] sm:$0xff] }
 0xdfd   : > { %v5722_v13 = vadd.f32 %v11641_v17, %v5678_v12  ;;  %v5681_v51 = vadd.f32 %v5649_v7, %v5617_v3  ;;  %v5650_v21 = vld [vmem:[#allocation6 + $0xe8] sm:$0xff]  ;;  %v5651_v29 = vld [vmem:[#allocation6 + $0xf0] sm:$0xff]  ;;  %5752 = vst [vmem:[%s8757_s16 + $0xb8] sm:$0xff] %v5720_v62  ;;  %v5620_v30 = vld [vmem:[#allocation4 + $0xf8] sm:$0xff] }
 0xdfe   : > { %5753 = vst [vmem:[%s8757_s16 + $0xc0] sm:$0xff] %v5721_v48  ;;  %v5723_v36 = vadd.f32 %v11637_v5, %v5679_v45  ;;  %v5724_v42 = vadd.f32 %v11641_v17, %v5680_v37  ;;  %v5682_v20 = vadd.f32 %v5650_v21, %v5618_v4  ;;  %v5683_v59 = vadd.f32 %v5651_v29, %v5619_v53  ;;  %v5652_v44 = vld [vmem:[#allocation6 + $0xf8] sm:$0xff] }
 0xdff   : > { %5754 = vst [vmem:[%s8757_s16 + $0xc8] sm:$0xff] %v5722_v13  ;;  %v5725_v32 = vadd.f32 %v11637_v5, %v5681_v51  ;;  %v5684_v2 = vadd.f32 %v5652_v44, %v5620_v30 }
 0xe00   : > { %5755 = vst [vmem:[%s8757_s16 + $0xd0] sm:$0xff] %v5723_v36  ;;  %5756 = vst [vmem:[%s8757_s16 + $0xd8] sm:$0xff] %v5724_v42  ;;  %v5726_v63 = vadd.f32 %v11641_v17, %v5682_v20  ;;  %v5727_v10 = vadd.f32 %v11637_v5, %v5683_v59 }
 0xe01   : > { %5757 = vst [vmem:[%s8757_s16 + $0xe0] sm:$0xff] %v5725_v32  ;;  %v5728_v58 = vadd.f32 %v11641_v17, %v5684_v2 }
 0xe02   : > { %5758 = vst [vmem:[%s8757_s16 + $0xe8] sm:$0xff] %v5726_v63  ;;  %5759 = vst [vmem:[%s8757_s16 + $0xf0] sm:$0xff] %v5727_v10 }
 0xe03   : > { %5760 = vst [vmem:[%s8757_s16 + $0xf8] sm:$0xff] %v5728_v58 }
 0xe04 PF: > { %s12341_s21 = sld [smem:[#allocation47_spill]]  ;;  %s12343_s22 = sld [smem:[#allocation57_spill]] }
 0xe05   : > { %s12344_s30 = sld [smem:[#allocation170_spill]]  ;;  %s5775_s11 = sshll.u32 %s8757_s16, 4  ;;  %s11714_s11 = int_to_ptr.vmem [resolvable:$true] %s5775_s11 }
 0xe06   : > { %s11718_s18 = scalar_lea.sflag [#allocation9], %s681_s20  ;;  %s7882_s14 = scalar_lea.vmem %s11714_s11, 4096 }
 0xe07   : > { %p7883_p11 = scmp.ne.s32.totalorder %s11714_s11, %s7882_s14  ;;  %s8071_s2 = smov [#allocation31]  }
 0xe08   : > { %s7886_s17 = sshll.u32 %s8071_s2, 4  ;;  %s7887_s17 = int_to_ptr.vmem [resolvable:$false] %s7886_s17 }
 0xe09   : > { %s7888_s3 = scalar_lea.vmem %s7887_s17, 8192  ;;  %p7889_p0 = scmp.lt.s32.totalorder %s11714_s11, %s7887_s17 }
 0xe0a   : > { %s6304_s4 = sshll.u32 %s12341_s21, 12  ;;  %p12346_p5 = scmp.ne.s32.totalorder %s12343_s22, 0 }
 0xe0b   : > { %s12345_s5 = smov %s12344_s30  ;;  %s11711_s27 = scalar_lea.hbm %s12344_s30, %s6304_s4 }
 0xe0c   : > { %p7884_p3 = pnand %p7883_p11, %p12346_p5  ;;  %p7890_p4 = scmp.lt.s32.totalorder %s7888_s3, %s7882_s14 }
 0xe0e   : > { %p7885_p1 = pneg %p7884_p3  ;;  %p7891_p6 = por %p7890_p4, %p7889_p0 }
 0xe10   : > { %p7892_p12 = pnand %p7891_p6, %p7885_p1 }
 0xe12   : > { %7895 = shalt.err (!%p7892_p12)
}
 0xe13   : > { %s7896_s20 = scalar_lea.hbm %s11711_s27, 4096  ;;  %s7900_s25 = scalar_lea.hbm %s12345_s5, 8192 }
 0xe14   : > { %p7897_p10 = scmp.ne.s32.totalorder %s11711_s27, %s7896_s20  ;;  %p7901_p13 = scmp.lt.u32.totalorder %s11711_s27, %s12345_s5 }
 0xe15   : > { %p7902_p2 = scmp.lt.u32.totalorder %s7900_s25, %s7896_s20  ;;  %p7904_p11 = scmp.lt.u32.totalorder %s7896_s20, %s11711_s27 }
 0xe16   : > { %p7898_p8 = pnand %p7897_p10, %p12346_p5 }
 0xe17   : > { %p7903_p7 = por %p7902_p2, %p7901_p13 }
 0xe18   : > { %p7899_p9 = pneg %p7898_p8 }
 0xe19   : > { %p7905_p3 = por %p7904_p11, %p7903_p7 }
 0xe1b   : > { %p7906_p1 = pnand %p7905_p3, %p7899_p9 }
 0xe1d   : > { %7909 = shalt.err (!%p7906_p1)
}
 0xe1e   : > { %s8072_s21 = smov 256   ;;  %s8073_s0 = smov 16  }
 0xe1f   : > { %6521 = dma.vmem_to_hbm [thread:$0]  (%p12346_p5), %s11714_s11, 4096, %s11711_s27, %s11718_s18, %s8072_s21, %s8072_s21, %s8073_s0  }
 0xe20 PF: > { %s12347_s4 = sld [smem:[#allocation49_spill]]  ;;  %s12348_s8 = sld [smem:[#allocation43_spill]] }
 0xe21   : > { %s12349_s26 = sld [smem:[#allocation58_spill]] }
 0xe26   : > { %p6602_p0 = scmp.ge.s32.totalorder %s12347_s4, 2  ;;  %s5790_s30 = sand.u32 1, %s12348_s8  }
 0xe27   : > { %p12350_p4 = scmp.ne.s32.totalorder %s12349_s26, 0  ;;  %s5791_s14 = scalar_lea.sflag [#allocation9], %s5790_s30 }
 0xe29   : > { %p6574_p6 = pnand %p6602_p0, %p12350_p4 }
 0xe2b   : > { %7995 = dma.done.wait (!%p6574_p6), %s5791_s14, 4096  }
 0xe2c   : > { %7997 = vsyncadd (!%p6574_p6), %s5791_s14, 4294963200  ;;  %s38_s0 = sadd.s32 1, %s12347_s4   ;;  %s12351_s21 = sld [smem:[#allocation42_spill]] }
 0xe2d   : > { %p35_p12 = scmp.ge.s32.totalorder %s38_s0, 6   ;;  %s12352_s2 = sld [smem:[#allocation54_spill]] }
 0xe2e   : > { %s12353_s24 = sld [smem:[#allocation44_spill]]  ;;  %s12354_s25 = sld [smem:[#allocation45_spill]] }
 0xe2f   : > { %s12355_s26 = sld [smem:[#allocation55_spill]]  ;;  %s12356_s28 = sld [smem:[#allocation48_spill]] }
 0xe30   : > { %s12357_s11 = sld [smem:[#allocation51_spill]]  ;;  %s12358_s30 = sld [smem:[#allocation52_spill]] }
 0xe31   : > { %s12359_s22 = smov %s8008_s23  ;;  %s12361_s27 = smov %s8032_s29 }
 0xe32   :  { %37 = sbr.rel (!%p35_p12) target bundleno = 29 (0x1d), region = 248 }
 0xe33   : > { %s12360_s23 = smov %s12352_s2 }
 0xe36   : > { %s12362_s29 = smov %s12357_s11 }
 0xe39   :  { %5796 = vsyncpa [#allocation8], 1 }
 0xe3a   :  { %5798 = vsyncpa [#allocation8 + $0x1], 1 }
 0xe3b   :  { %5799 = vsyncpa [#allocation11], 1 }
 0xe3c   :  { %5800 = vsyncpa [#allocation14], 1 }
 0xe3d   :  { %5801 = vsyncpa [#allocation17], 1 }
 0xe3e   :  { %5802 = vsyncpa [#allocation20], 1 }
 0xe3f   :  { %5803 = vsyncpa [#allocation23], 1 }
 0xe40   :  { %5804 = vsyncpa [#allocation26], 1 }
 0xe41   :  { %5805 = vsyncpa [#allocation9], 1 }
 0xe42   :  { %5807 = vsyncpa [#allocation9 + $0x1], 1 }

</bundles_post_ra>
